<compile_context>
chip_gen: v7x
topology: tpu7x:2x2x1
jax: 0.10.0
libtpu: 0.0.40
codegen_flags: <defaults>
</compile_context>

<pallas_src>
import functools
import math

import jax
import jax.numpy as jnp
import numpy as np
from jax.experimental import pallas as pl
from jax.experimental.pallas import tpu as pltpu


def _layer_norm(x, g, b, eps=1e-5):
    mu = jnp.mean(x, axis=-1, keepdims=True)
    var = jnp.mean((x - mu) ** 2, axis=-1, keepdims=True)
    return (x - mu) * jax.lax.rsqrt(var + eps) * g + b


def _block_kernel(x_ref,
                  ln1g_ref, ln1b_ref,
                  wqkv_ref, bqkv_ref,
                  wp_ref, bp_ref,
                  ln2g_ref, ln2b_ref,
                  w1_ref, b1_ref, w2_ref, b2_ref,
                  o_ref, *, n_head):
    f32 = jnp.float32
    bf16 = jnp.bfloat16

    x = x_ref[0].astype(f32)                          # (T, C) residual stream, f32
    t, c = x.shape
    d = c // n_head

    # ---- attention branch: x + proj(MHSA(ln1(x))) ----
    h = _layer_norm(x, ln1g_ref[0], ln1b_ref[0]).astype(bf16)      # (T, C) bf16

    # Fused QKV: single lane-dense MXU matmul, f32 accumulate, ONE bf16 cast.
    # The 1/sqrt(d) attention scale is pre-folded into the q columns.
    qkv = (jnp.dot(h, wqkv_ref[...], preferred_element_type=f32)
           + bqkv_ref[0]).astype(bf16)                             # (T, 3C) bf16

    # Split into per-head (H, T, d) via static lane slices + leading-axis stack.
    def split_heads(base):
        return jnp.stack(
            [qkv[:, base + i * d: base + (i + 1) * d] for i in range(n_head)],
            axis=0)                                                # (H, T, d) bf16

    q = split_heads(0)
    k = split_heads(c)
    v = split_heads(2 * c)

    # Scores / softmax: one live (H, T, T) f32 tensor; exp on EUP, max/sum on
    # XLU, divide via approx reciprocal on EUP.
    s = jnp.einsum('hqd,hkd->hqk', q, k, preferred_element_type=f32)
    s = jnp.exp(s - jnp.max(s, axis=-1, keepdims=True))
    p = (s * pl.reciprocal(jnp.sum(s, axis=-1, keepdims=True),
                           approx=True)).astype(bf16)              # (H, T, T) bf16
    # TODO(synk): attn_drop / resid_drop omitted (identity at inference).

    y = jnp.einsum('hqk,hkd->hqd', p, v, preferred_element_type=f32)   # (H, T, d)

    # Merge heads back to (T, C) and do ONE output projection with K=C on the
    # MXU (head reduction happens inside the matmul, not on the VPU).
    y = jnp.concatenate([y[i] for i in range(n_head)], axis=-1).astype(bf16)
    x = x + jnp.dot(y, wp_ref[...], preferred_element_type=f32) + bp_ref[0]

    # ---- MLP branch: x + W2(relu(W1(ln2(x)))) ----
    h2 = _layer_norm(x, ln2g_ref[0], ln2b_ref[0]).astype(bf16)
    m = jnp.dot(h2, w1_ref[...], preferred_element_type=f32) + b1_ref[0]
    m = jnp.maximum(m, 0.0).astype(bf16)
    x = x + jnp.dot(m, w2_ref[...], preferred_element_type=f32) + b2_ref[0]

    o_ref[0] = x.astype(o_ref.dtype)


def transformer_block(x, params, n_head, *, single_buffer_weights=True):
    """x: (B, T, C) float32.  params: dict of f32 master weights (see init)."""
    B, T, C = x.shape
    d = C // n_head
    H = params["w1"].shape[1]  # block_exp * C
    scale = 1.0 / math.sqrt(d)
    bf16 = jnp.bfloat16

    # Fused QKV weight/bias, built once in plain JAX (layout plumbing only).
    # 1/sqrt(d) is folded into the q columns -> zero in-kernel cost.
    wqkv = jnp.concatenate(
        [params["wq"] * scale, params["wk"], params["wv"]], axis=1).astype(bf16)
    bqkv = jnp.concatenate(
        [params["bq"] * scale, params["bk"], params["bv"]], axis=1)   # (1, 3C) f32
    wp = params["wp"].astype(bf16)                                    # (C, C)
    w1 = params["w1"].astype(bf16)
    w2 = params["w2"].astype(bf16)

    # Grid-invariant weights/biases: single-buffered (block index never changes
    # over the batch grid, so double-buffering only wastes VMEM).
    def w_spec(shape):
        index_map = lambda b: (0,) * len(shape)
        if single_buffer_weights:
            return pl.BlockSpec(shape, index_map, pipeline_mode=pl.Buffered(1))
        return pl.BlockSpec(shape, index_map)

    in_specs = [
        pl.BlockSpec((1, T, C), lambda b: (b, 0, 0)),   # x
        w_spec((1, C)), w_spec((1, C)),                 # ln1 gamma/beta
        w_spec((C, 3 * C)), w_spec((1, 3 * C)),         # fused Wqkv (q-scaled), bqkv
        w_spec((C, C)), w_spec((1, C)),                 # Wproj, bproj
        w_spec((1, C)), w_spec((1, C)),                 # ln2 gamma/beta
        w_spec((C, H)), w_spec((1, H)),                 # W1, b1
        w_spec((H, C)), w_spec((1, C)),                 # W2, b2
    ]
    out_spec = pl.BlockSpec((1, T, C), lambda b: (b, 0, 0))

    # TODO(synk): at production C/H the all-weights-resident design no longer
    # fits VMEM (esp. v7x's 64 MiB): add a grid axis over the MLP hidden dim H
    # (tile W1 columns / W2 rows) and a T-tile axis with flash-style K/V
    # streaming.  Also ensure >=2 parallel grid steps (B>=2 or a T-tile axis)
    # so both v7x TensorCores stay busy.
    kernel = functools.partial(_block_kernel, n_head=n_head)
    return pl.pallas_call(
        kernel,
        out_shape=jax.ShapeDtypeStruct((B, T, C), x.dtype),
        grid_spec=pltpu.PrefetchScalarGridSpec(
            num_scalar_prefetch=0,
            grid=(B,),
            in_specs=in_specs,
            out_specs=out_spec,
        ),
        compiler_params=pltpu.CompilerParams(
            dimension_semantics=("parallel",)),
    )(x,
      params["ln1_g"], params["ln1_b"],
      wqkv, bqkv, wp, params["bp"],
      params["ln2_g"], params["ln2_b"],
      w1, params["b1"], w2, params["b2"])


def init_params(key, n_embd, n_head, block_exp):
    C, H = n_embd, block_exp * n_embd
    ks = jax.random.split(key, 10)
    nrm = lambda k, shape: (0.02 * jax.random.normal(k, shape)).astype(jnp.float32)
    return {
        "ln1_g": jnp.ones((1, C), jnp.float32),
        "ln1_b": jnp.zeros((1, C), jnp.float32),
        "wq": nrm(ks[0], (C, C)), "bq": nrm(ks[1], (1, C)),
        "wk": nrm(ks[2], (C, C)), "bk": nrm(ks[3], (1, C)),
        "wv": nrm(ks[4], (C, C)), "bv": nrm(ks[5], (1, C)),
        "wp": nrm(ks[6], (C, C)), "bp": nrm(ks[7], (1, C)),
        "ln2_g": jnp.ones((1, C), jnp.float32),
        "ln2_b": jnp.zeros((1, C), jnp.float32),
        "w1": nrm(ks[8], (C, H)), "b1": jnp.zeros((1, H), jnp.float32),
        "w2": nrm(ks[9], (H, C)), "b2": jnp.zeros((1, C), jnp.float32),
    }


def reference_block(x, p, n_head):
    """Pure-JAX f32 reference mirroring the PyTorch forward (dropout=identity)."""
    B, T, C = x.shape
    D = C // n_head

    def ln(v, g, b):
        mu = v.mean(-1, keepdims=True)
        var = ((v - mu) ** 2).mean(-1, keepdims=True)
        return (v - mu) / jnp.sqrt(var + 1e-5) * g + b

    h = ln(x, p["ln1_g"][0], p["ln1_b"][0])
    q = h @ p["wq"] + p["bq"][0]
    k = h @ p["wk"] + p["bk"][0]
    v = h @ p["wv"] + p["bv"][0]
    q = q.reshape(B, T, n_head, D).transpose(0, 2, 1, 3)
    k = k.reshape(B, T, n_head, D).transpose(0, 2, 1, 3)
    v = v.reshape(B, T, n_head, D).transpose(0, 2, 1, 3)
    att = jnp.einsum("bhtd,bhsd->bhts", q, k) / math.sqrt(D)
    att = jax.nn.softmax(att, axis=-1)
    y = jnp.einsum("bhts,bhsd->bhtd", att, v)
    y = y.transpose(0, 2, 1, 3).reshape(B, T, C)
    x = x + (y @ p["wp"] + p["bp"][0])
    h2 = ln(x, p["ln2_g"][0], p["ln2_b"][0])
    m = jnp.maximum(h2 @ p["w1"] + p["b1"][0], 0.0) @ p["w2"] + p["b2"][0]
    return x + m


if __name__ == "__main__":
    # Lane-dense small config: C and T multiples of the (8,128) tile; B=2 keeps
    # both v7x TensorCores busy.
    n_embd, n_head, block_exp = 128, 4, 4
    B, T = 2, 128

    key = jax.random.PRNGKey(0)
    kx, kp = jax.random.split(key)
    x = jax.random.normal(kx, (B, T, n_embd), dtype=jnp.float32)
    params = init_params(kp, n_embd, n_head, block_exp)

    try:
        out = jax.block_until_ready(
            transformer_block(x, params, n_head, single_buffer_weights=True))
    except Exception:
        # TODO(synk): single-buffering grid-invariant weights via
        # pipeline_mode=pl.Buffered(1) is the intended config; fall back to
        # default double-buffering if this jax/Mosaic build rejects it.
        out = jax.block_until_ready(
            transformer_block(x, params, n_head, single_buffer_weights=False))

    ref = jax.block_until_ready(reference_block(x, params, n_head))
    # Tolerance accounts for bf16 MXU inputs (accumulation is f32) and the
    # approx softmax reciprocal.
    np.testing.assert_allclose(np.asarray(out), np.asarray(ref),
                               rtol=2e-2, atol=2e-2)
    print("KERNEL_OK")
</pallas_src>

<mosaic_0001>
module attributes {stable_mosaic.version = 11 : i64} {
  func.func @_block_kernel(%arg0: i32, %arg1: memref<1x128x128xf32, #tpu.memory_space<vmem>>, %arg2: memref<1x128xf32, #tpu.memory_space<vmem>>, %arg3: memref<1x128xf32, #tpu.memory_space<vmem>>, %arg4: memref<128x384xbf16, #tpu.memory_space<vmem>>, %arg5: memref<1x384xf32, #tpu.memory_space<vmem>>, %arg6: memref<128x128xbf16, #tpu.memory_space<vmem>>, %arg7: memref<1x128xf32, #tpu.memory_space<vmem>>, %arg8: memref<1x128xf32, #tpu.memory_space<vmem>>, %arg9: memref<1x128xf32, #tpu.memory_space<vmem>>, %arg10: memref<128x512xbf16, #tpu.memory_space<vmem>>, %arg11: memref<1x512xf32, #tpu.memory_space<vmem>>, %arg12: memref<512x128xbf16, #tpu.memory_space<vmem>>, %arg13: memref<1x128xf32, #tpu.memory_space<vmem>>, %arg14: memref<1x128x128xf32, #tpu.memory_space<vmem>>) attributes {dimension_semantics = [#tpu.dimension_semantics<parallel>], iteration_bounds = array<i64: 2>, scalar_prefetch = 0 : i64, scratch_operands = 0 : i64, tpu.core_type = #tpu.core_type<tc>, window_params = [{transform_indices = @transform_0, window_bounds = array<i64: 1, 128, 128>}, {pipeline_mode = #tpu.pipeline_mode<synchronous>, transform_indices = @transform_1, window_bounds = array<i64: 1, 128>}, {pipeline_mode = #tpu.pipeline_mode<synchronous>, transform_indices = @transform_2, window_bounds = array<i64: 1, 128>}, {pipeline_mode = #tpu.pipeline_mode<synchronous>, transform_indices = @transform_3, window_bounds = array<i64: 128, 384>}, {pipeline_mode = #tpu.pipeline_mode<synchronous>, transform_indices = @transform_4, window_bounds = array<i64: 1, 384>}, {pipeline_mode = #tpu.pipeline_mode<synchronous>, transform_indices = @transform_5, window_bounds = array<i64: 128, 128>}, {pipeline_mode = #tpu.pipeline_mode<synchronous>, transform_indices = @transform_6, window_bounds = array<i64: 1, 128>}, {pipeline_mode = #tpu.pipeline_mode<synchronous>, transform_indices = @transform_7, window_bounds = array<i64: 1, 128>}, {pipeline_mode = #tpu.pipeline_mode<synchronous>, transform_indices = @transform_8, window_bounds = array<i64: 1, 128>}, {pipeline_mode = #tpu.pipeline_mode<synchronous>, transform_indices = @transform_9, window_bounds = array<i64: 128, 512>}, {pipeline_mode = #tpu.pipeline_mode<synchronous>, transform_indices = @transform_10, window_bounds = array<i64: 1, 512>}, {pipeline_mode = #tpu.pipeline_mode<synchronous>, transform_indices = @transform_11, window_bounds = array<i64: 512, 128>}, {pipeline_mode = #tpu.pipeline_mode<synchronous>, transform_indices = @transform_12, window_bounds = array<i64: 1, 128>}, {transform_indices = @transform_13, window_bounds = array<i64: 1, 128, 128>}]} {
    %c0 = arith.constant 0 : index
    %c0_0 = arith.constant 0 : index
    %c0_1 = arith.constant 0 : index
    %0 = vector.load %arg1[%c0, %c0_0, %c0_1] : memref<1x128x128xf32, #tpu.memory_space<vmem>>, vector<1x128x128xf32>
    %1 = vector.shape_cast %0 : vector<1x128x128xf32> to vector<128x128xf32>
    %c0_2 = arith.constant 0 : index
    %c0_3 = arith.constant 0 : index
    %2 = vector.load %arg2[%c0_2, %c0_3] : memref<1x128xf32, #tpu.memory_space<vmem>>, vector<1x128xf32>
    %3 = vector.shape_cast %2 : vector<1x128xf32> to vector<128xf32>
    %c0_4 = arith.constant 0 : index
    %c0_5 = arith.constant 0 : index
    %4 = vector.load %arg3[%c0_4, %c0_5] : memref<1x128xf32, #tpu.memory_space<vmem>>, vector<1x128xf32>
    %5 = vector.shape_cast %4 : vector<1x128xf32> to vector<128xf32>
    %cst = arith.constant dense<0.000000e+00> : vector<128xf32>
    %6 = vector.multi_reduction <add>, %1, %cst [1] : vector<128x128xf32> to vector<128xf32>
    %7 = vector.shape_cast %6 : vector<128xf32> to vector<128x1xf32>
    %cst_6 = arith.constant 1.280000e+02 : f32
    %8 = vector.broadcast %cst_6 : f32 to vector<128x1xf32>
    %9 = arith.divf %7, %8 : vector<128x1xf32>
    %10 = vector.broadcast %9 : vector<128x1xf32> to vector<128x128xf32>
    %11 = arith.subf %1, %10 : vector<128x128xf32>
    %12 = arith.mulf %11, %11 : vector<128x128xf32>
    %cst_7 = arith.constant dense<0.000000e+00> : vector<128xf32>
    %13 = vector.multi_reduction <add>, %12, %cst_7 [1] : vector<128x128xf32> to vector<128xf32>
    %14 = vector.shape_cast %13 : vector<128xf32> to vector<128x1xf32>
    %cst_8 = arith.constant 1.280000e+02 : f32
    %15 = vector.broadcast %cst_8 : f32 to vector<128x1xf32>
    %16 = arith.divf %14, %15 : vector<128x1xf32>
    %17 = vector.broadcast %9 : vector<128x1xf32> to vector<128x128xf32>
    %18 = arith.subf %1, %17 : vector<128x128xf32>
    %cst_9 = arith.constant 9.99999974E-6 : f32
    %19 = vector.broadcast %cst_9 : f32 to vector<128x1xf32>
    %20 = arith.addf %16, %19 : vector<128x1xf32>
    %21 = math.rsqrt %20 : vector<128x1xf32>
    %22 = vector.broadcast %21 : vector<128x1xf32> to vector<128x128xf32>
    %23 = arith.mulf %18, %22 : vector<128x128xf32>
    %24 = vector.shape_cast %3 : vector<128xf32> to vector<1x128xf32>
    %25 = vector.broadcast %24 : vector<1x128xf32> to vector<128x128xf32>
    %26 = arith.mulf %23, %25 : vector<128x128xf32>
    %27 = vector.shape_cast %5 : vector<128xf32> to vector<1x128xf32>
    %28 = vector.broadcast %27 : vector<1x128xf32> to vector<128x128xf32>
    %29 = arith.addf %26, %28 : vector<128x128xf32>
    %30 = arith.truncf %29 : vector<128x128xf32> to vector<128x128xbf16>
    %c0_10 = arith.constant 0 : index
    %c0_11 = arith.constant 0 : index
    %31 = vector.load %arg4[%c0_10, %c0_11] : memref<128x384xbf16, #tpu.memory_space<vmem>>, vector<128x384xbf16>
    %cst_12 = arith.constant dense<0.000000e+00> : vector<128x384xf32>
    %32 = tpu.matmul %30, %31, %cst_12 {dimension_numbers = #tpu.dot_dimension_numbers<[1], [0], [0], [1], [0, 0, 1, 1], [], []>} : vector<128x128xbf16>, vector<128x384xbf16>, vector<128x384xf32> -> vector<128x384xf32>
    %c0_13 = arith.constant 0 : index
    %c0_14 = arith.constant 0 : index
    %33 = vector.load %arg5[%c0_13, %c0_14] : memref<1x384xf32, #tpu.memory_space<vmem>>, vector<1x384xf32>
    %34 = vector.shape_cast %33 : vector<1x384xf32> to vector<384xf32>
    %35 = vector.shape_cast %34 : vector<384xf32> to vector<1x384xf32>
    %36 = vector.broadcast %35 : vector<1x384xf32> to vector<128x384xf32>
    %37 = arith.addf %32, %36 : vector<128x384xf32>
    %38 = arith.truncf %37 : vector<128x384xf32> to vector<128x384xbf16>
    %39 = vector.extract_strided_slice %38 {offsets = [0, 0], sizes = [128, 32], strides = [1, 1]} : vector<128x384xbf16> to vector<128x32xbf16>
    %40 = vector.extract_strided_slice %38 {offsets = [0, 32], sizes = [128, 32], strides = [1, 1]} : vector<128x384xbf16> to vector<128x32xbf16>
    %41 = vector.extract_strided_slice %38 {offsets = [0, 64], sizes = [128, 32], strides = [1, 1]} : vector<128x384xbf16> to vector<128x32xbf16>
    %42 = vector.extract_strided_slice %38 {offsets = [0, 96], sizes = [128, 32], strides = [1, 1]} : vector<128x384xbf16> to vector<128x32xbf16>
    %43 = vector.shape_cast %39 : vector<128x32xbf16> to vector<1x128x32xbf16>
    %44 = vector.shape_cast %40 : vector<128x32xbf16> to vector<1x128x32xbf16>
    %45 = vector.shape_cast %41 : vector<128x32xbf16> to vector<1x128x32xbf16>
    %46 = vector.shape_cast %42 : vector<128x32xbf16> to vector<1x128x32xbf16>
    %47 = tpu.concatenate %43, %44, %45, %46 in 0 : vector<1x128x32xbf16>, vector<1x128x32xbf16>, vector<1x128x32xbf16>, vector<1x128x32xbf16> -> vector<4x128x32xbf16>
    %48 = vector.extract_strided_slice %38 {offsets = [0, 128], sizes = [128, 32], strides = [1, 1]} : vector<128x384xbf16> to vector<128x32xbf16>
    %49 = vector.extract_strided_slice %38 {offsets = [0, 160], sizes = [128, 32], strides = [1, 1]} : vector<128x384xbf16> to vector<128x32xbf16>
    %50 = vector.extract_strided_slice %38 {offsets = [0, 192], sizes = [128, 32], strides = [1, 1]} : vector<128x384xbf16> to vector<128x32xbf16>
    %51 = vector.extract_strided_slice %38 {offsets = [0, 224], sizes = [128, 32], strides = [1, 1]} : vector<128x384xbf16> to vector<128x32xbf16>
    %52 = vector.shape_cast %48 : vector<128x32xbf16> to vector<1x128x32xbf16>
    %53 = vector.shape_cast %49 : vector<128x32xbf16> to vector<1x128x32xbf16>
    %54 = vector.shape_cast %50 : vector<128x32xbf16> to vector<1x128x32xbf16>
    %55 = vector.shape_cast %51 : vector<128x32xbf16> to vector<1x128x32xbf16>
    %56 = tpu.concatenate %52, %53, %54, %55 in 0 : vector<1x128x32xbf16>, vector<1x128x32xbf16>, vector<1x128x32xbf16>, vector<1x128x32xbf16> -> vector<4x128x32xbf16>
    %57 = vector.extract_strided_slice %38 {offsets = [0, 256], sizes = [128, 32], strides = [1, 1]} : vector<128x384xbf16> to vector<128x32xbf16>
    %58 = vector.extract_strided_slice %38 {offsets = [0, 288], sizes = [128, 32], strides = [1, 1]} : vector<128x384xbf16> to vector<128x32xbf16>
    %59 = vector.extract_strided_slice %38 {offsets = [0, 320], sizes = [128, 32], strides = [1, 1]} : vector<128x384xbf16> to vector<128x32xbf16>
    %60 = vector.extract_strided_slice %38 {offsets = [0, 352], sizes = [128, 32], strides = [1, 1]} : vector<128x384xbf16> to vector<128x32xbf16>
    %61 = vector.shape_cast %57 : vector<128x32xbf16> to vector<1x128x32xbf16>
    %62 = vector.shape_cast %58 : vector<128x32xbf16> to vector<1x128x32xbf16>
    %63 = vector.shape_cast %59 : vector<128x32xbf16> to vector<1x128x32xbf16>
    %64 = vector.shape_cast %60 : vector<128x32xbf16> to vector<1x128x32xbf16>
    %65 = tpu.concatenate %61, %62, %63, %64 in 0 : vector<1x128x32xbf16>, vector<1x128x32xbf16>, vector<1x128x32xbf16>, vector<1x128x32xbf16> -> vector<4x128x32xbf16>
    "tpu.trace_start"() <{level = 10 : i32, message = "hqd,hkd->hqk"}> : () -> ()
    %cst_15 = arith.constant dense<0.000000e+00> : vector<4x128x128xf32>
    %66 = tpu.matmul %47, %56, %cst_15 {dimension_numbers = #tpu.dot_dimension_numbers<[2], [2], [1], [1], [0, 0, 0, 1, 1, 1], [0], [0]>} : vector<4x128x32xbf16>, vector<4x128x32xbf16>, vector<4x128x128xf32> -> vector<4x128x128xf32>
    "tpu.trace_stop"() : () -> ()
    %cst_16 = arith.constant dense<0xFF800000> : vector<4x128xf32>
    %67 = vector.multi_reduction <maximumf>, %66, %cst_16 [2] : vector<4x128x128xf32> to vector<4x128xf32>
    %68 = vector.shape_cast %67 : vector<4x128xf32> to vector<4x128x1xf32>
    %69 = vector.broadcast %68 : vector<4x128x1xf32> to vector<4x128x128xf32>
    %70 = arith.subf %66, %69 : vector<4x128x128xf32>
    %71 = math.exp %70 : vector<4x128x128xf32>
    %cst_17 = arith.constant dense<0.000000e+00> : vector<4x128xf32>
    %72 = vector.multi_reduction <add>, %71, %cst_17 [2] : vector<4x128x128xf32> to vector<4x128xf32>
    %73 = vector.shape_cast %72 : vector<4x128xf32> to vector<4x128x1xf32>
    %74 = tpu.reciprocal %73 {approx = true} : vector<4x128x1xf32> -> vector<4x128x1xf32>
    %75 = vector.broadcast %74 : vector<4x128x1xf32> to vector<4x128x128xf32>
    %76 = arith.mulf %71, %75 : vector<4x128x128xf32>
    %77 = arith.truncf %76 : vector<4x128x128xf32> to vector<4x128x128xbf16>
    "tpu.trace_start"() <{level = 10 : i32, message = "hqk,hkd->hqd"}> : () -> ()
    %cst_18 = arith.constant dense<0.000000e+00> : vector<4x128x32xf32>
    %78 = tpu.matmul %77, %65, %cst_18 {dimension_numbers = #tpu.dot_dimension_numbers<[2], [1], [1], [2], [0, 0, 0, 1, 1, 2], [0], [0]>} : vector<4x128x128xbf16>, vector<4x128x32xbf16>, vector<4x128x32xf32> -> vector<4x128x32xf32>
    "tpu.trace_stop"() : () -> ()
    %79 = vector.extract_strided_slice %78 {offsets = [0, 0, 0], sizes = [1, 128, 32], strides = [1, 1, 1]} : vector<4x128x32xf32> to vector<1x128x32xf32>
    %80 = vector.shape_cast %79 : vector<1x128x32xf32> to vector<128x32xf32>
    %81 = vector.extract_strided_slice %78 {offsets = [1, 0, 0], sizes = [1, 128, 32], strides = [1, 1, 1]} : vector<4x128x32xf32> to vector<1x128x32xf32>
    %82 = vector.shape_cast %81 : vector<1x128x32xf32> to vector<128x32xf32>
    %83 = vector.extract_strided_slice %78 {offsets = [2, 0, 0], sizes = [1, 128, 32], strides = [1, 1, 1]} : vector<4x128x32xf32> to vector<1x128x32xf32>
    %84 = vector.shape_cast %83 : vector<1x128x32xf32> to vector<128x32xf32>
    %85 = vector.extract_strided_slice %78 {offsets = [3, 0, 0], sizes = [1, 128, 32], strides = [1, 1, 1]} : vector<4x128x32xf32> to vector<1x128x32xf32>
    %86 = vector.shape_cast %85 : vector<1x128x32xf32> to vector<128x32xf32>
    %87 = tpu.concatenate %80, %82, %84, %86 in 1 : vector<128x32xf32>, vector<128x32xf32>, vector<128x32xf32>, vector<128x32xf32> -> vector<128x128xf32>
    %88 = arith.truncf %87 : vector<128x128xf32> to vector<128x128xbf16>
    %c0_19 = arith.constant 0 : index
    %c0_20 = arith.constant 0 : index
    %89 = vector.load %arg6[%c0_19, %c0_20] : memref<128x128xbf16, #tpu.memory_space<vmem>>, vector<128x128xbf16>
    %cst_21 = arith.constant dense<0.000000e+00> : vector<128x128xf32>
    %90 = tpu.matmul %88, %89, %cst_21 {dimension_numbers = #tpu.dot_dimension_numbers<[1], [0], [0], [1], [0, 0, 1, 1], [], []>} : vector<128x128xbf16>, vector<128x128xbf16>, vector<128x128xf32> -> vector<128x128xf32>
    %91 = arith.addf %1, %90 : vector<128x128xf32>
    %c0_22 = arith.constant 0 : index
    %c0_23 = arith.constant 0 : index
    %92 = vector.load %arg7[%c0_22, %c0_23] : memref<1x128xf32, #tpu.memory_space<vmem>>, vector<1x128xf32>
    %93 = vector.shape_cast %92 : vector<1x128xf32> to vector<128xf32>
    %94 = vector.shape_cast %93 : vector<128xf32> to vector<1x128xf32>
    %95 = vector.broadcast %94 : vector<1x128xf32> to vector<128x128xf32>
    %96 = arith.addf %91, %95 : vector<128x128xf32>
    %c0_24 = arith.constant 0 : index
    %c0_25 = arith.constant 0 : index
    %97 = vector.load %arg8[%c0_24, %c0_25] : memref<1x128xf32, #tpu.memory_space<vmem>>, vector<1x128xf32>
    %98 = vector.shape_cast %97 : vector<1x128xf32> to vector<128xf32>
    %c0_26 = arith.constant 0 : index
    %c0_27 = arith.constant 0 : index
    %99 = vector.load %arg9[%c0_26, %c0_27] : memref<1x128xf32, #tpu.memory_space<vmem>>, vector<1x128xf32>
    %100 = vector.shape_cast %99 : vector<1x128xf32> to vector<128xf32>
    %cst_28 = arith.constant dense<0.000000e+00> : vector<128xf32>
    %101 = vector.multi_reduction <add>, %96, %cst_28 [1] : vector<128x128xf32> to vector<128xf32>
    %102 = vector.shape_cast %101 : vector<128xf32> to vector<128x1xf32>
    %cst_29 = arith.constant 1.280000e+02 : f32
    %103 = vector.broadcast %cst_29 : f32 to vector<128x1xf32>
    %104 = arith.divf %102, %103 : vector<128x1xf32>
    %105 = vector.broadcast %104 : vector<128x1xf32> to vector<128x128xf32>
    %106 = arith.subf %96, %105 : vector<128x128xf32>
    %107 = arith.mulf %106, %106 : vector<128x128xf32>
    %cst_30 = arith.constant dense<0.000000e+00> : vector<128xf32>
    %108 = vector.multi_reduction <add>, %107, %cst_30 [1] : vector<128x128xf32> to vector<128xf32>
    %109 = vector.shape_cast %108 : vector<128xf32> to vector<128x1xf32>
    %cst_31 = arith.constant 1.280000e+02 : f32
    %110 = vector.broadcast %cst_31 : f32 to vector<128x1xf32>
    %111 = arith.divf %109, %110 : vector<128x1xf32>
    %112 = vector.broadcast %104 : vector<128x1xf32> to vector<128x128xf32>
    %113 = arith.subf %96, %112 : vector<128x128xf32>
    %cst_32 = arith.constant 9.99999974E-6 : f32
    %114 = vector.broadcast %cst_32 : f32 to vector<128x1xf32>
    %115 = arith.addf %111, %114 : vector<128x1xf32>
    %116 = math.rsqrt %115 : vector<128x1xf32>
    %117 = vector.broadcast %116 : vector<128x1xf32> to vector<128x128xf32>
    %118 = arith.mulf %113, %117 : vector<128x128xf32>
    %119 = vector.shape_cast %98 : vector<128xf32> to vector<1x128xf32>
    %120 = vector.broadcast %119 : vector<1x128xf32> to vector<128x128xf32>
    %121 = arith.mulf %118, %120 : vector<128x128xf32>
    %122 = vector.shape_cast %100 : vector<128xf32> to vector<1x128xf32>
    %123 = vector.broadcast %122 : vector<1x128xf32> to vector<128x128xf32>
    %124 = arith.addf %121, %123 : vector<128x128xf32>
    %125 = arith.truncf %124 : vector<128x128xf32> to vector<128x128xbf16>
    %c0_33 = arith.constant 0 : index
    %c0_34 = arith.constant 0 : index
    %126 = vector.load %arg10[%c0_33, %c0_34] : memref<128x512xbf16, #tpu.memory_space<vmem>>, vector<128x512xbf16>
    %cst_35 = arith.constant dense<0.000000e+00> : vector<128x512xf32>
    %127 = tpu.matmul %125, %126, %cst_35 {dimension_numbers = #tpu.dot_dimension_numbers<[1], [0], [0], [1], [0, 0, 1, 1], [], []>} : vector<128x128xbf16>, vector<128x512xbf16>, vector<128x512xf32> -> vector<128x512xf32>
    %c0_36 = arith.constant 0 : index
    %c0_37 = arith.constant 0 : index
    %128 = vector.load %arg11[%c0_36, %c0_37] : memref<1x512xf32, #tpu.memory_space<vmem>>, vector<1x512xf32>
    %129 = vector.shape_cast %128 : vector<1x512xf32> to vector<512xf32>
    %130 = vector.shape_cast %129 : vector<512xf32> to vector<1x512xf32>
    %131 = vector.broadcast %130 : vector<1x512xf32> to vector<128x512xf32>
    %132 = arith.addf %127, %131 : vector<128x512xf32>
    %cst_38 = arith.constant 0.000000e+00 : f32
    %133 = vector.broadcast %cst_38 : f32 to vector<128x512xf32>
    %134 = arith.maximumf %132, %133 : vector<128x512xf32>
    %135 = arith.truncf %134 : vector<128x512xf32> to vector<128x512xbf16>
    %c0_39 = arith.constant 0 : index
    %c0_40 = arith.constant 0 : index
    %136 = vector.load %arg12[%c0_39, %c0_40] : memref<512x128xbf16, #tpu.memory_space<vmem>>, vector<512x128xbf16>
    %cst_41 = arith.constant dense<0.000000e+00> : vector<128x128xf32>
    %137 = tpu.matmul %135, %136, %cst_41 {dimension_numbers = #tpu.dot_dimension_numbers<[1], [0], [0], [1], [0, 0, 1, 1], [], []>} : vector<128x512xbf16>, vector<512x128xbf16>, vector<128x128xf32> -> vector<128x128xf32>
    %138 = arith.addf %96, %137 : vector<128x128xf32>
    %c0_42 = arith.constant 0 : index
    %c0_43 = arith.constant 0 : index
    %139 = vector.load %arg13[%c0_42, %c0_43] : memref<1x128xf32, #tpu.memory_space<vmem>>, vector<1x128xf32>
    %140 = vector.shape_cast %139 : vector<1x128xf32> to vector<128xf32>
    %141 = vector.shape_cast %140 : vector<128xf32> to vector<1x128xf32>
    %142 = vector.broadcast %141 : vector<1x128xf32> to vector<128x128xf32>
    %143 = arith.addf %138, %142 : vector<128x128xf32>
    %c0_44 = arith.constant 0 : index
    %c0_45 = arith.constant 0 : index
    %c0_46 = arith.constant 0 : index
    %144 = vector.load %arg14[%c0_44, %c0_45, %c0_46] : memref<1x128x128xf32, #tpu.memory_space<vmem>>, vector<1x128x128xf32>
    %145 = vector.shape_cast %144 : vector<1x128x128xf32> to vector<128x128xf32>
    %146 = vector.shape_cast %143 : vector<128x128xf32> to vector<1x128x128xf32>
    tpu.vector_store %arg14[%c0_44, %c0_45, %c0_46], %146 {strides = array<i32>} : memref<1x128x128xf32, #tpu.memory_space<vmem>>, vector<1x128x128xf32>,
    return
  }
  func.func @transform_0(%arg0: i32) -> (i32, i32, i32) {
    %c0_i32 = arith.constant 0 : i32
    %c0_i32_0 = arith.constant 0 : i32
    %c0_i32_1 = arith.constant 0 : i32
    return %arg0, %c0_i32, %c0_i32_0 : i32, i32, i32
  }
  func.func @transform_1(%arg0: i32) -> (i32, i32) {
    %c0_i32 = arith.constant 0 : i32
    %c0_i32_0 = arith.constant 0 : i32
    %c0_i32_1 = arith.constant 0 : i32
    return %c0_i32, %c0_i32_0 : i32, i32
  }
  func.func @transform_2(%arg0: i32) -> (i32, i32) {
    %c0_i32 = arith.constant 0 : i32
    %c0_i32_0 = arith.constant 0 : i32
    %c0_i32_1 = arith.constant 0 : i32
    return %c0_i32, %c0_i32_0 : i32, i32
  }
  func.func @transform_3(%arg0: i32) -> (i32, i32) {
    %c0_i32 = arith.constant 0 : i32
    %c0_i32_0 = arith.constant 0 : i32
    %c0_i32_1 = arith.constant 0 : i32
    return %c0_i32, %c0_i32_0 : i32, i32
  }
  func.func @transform_4(%arg0: i32) -> (i32, i32) {
    %c0_i32 = arith.constant 0 : i32
    %c0_i32_0 = arith.constant 0 : i32
    %c0_i32_1 = arith.constant 0 : i32
    return %c0_i32, %c0_i32_0 : i32, i32
  }
  func.func @transform_5(%arg0: i32) -> (i32, i32) {
    %c0_i32 = arith.constant 0 : i32
    %c0_i32_0 = arith.constant 0 : i32
    %c0_i32_1 = arith.constant 0 : i32
    return %c0_i32, %c0_i32_0 : i32, i32
  }
  func.func @transform_6(%arg0: i32) -> (i32, i32) {
    %c0_i32 = arith.constant 0 : i32
    %c0_i32_0 = arith.constant 0 : i32
    %c0_i32_1 = arith.constant 0 : i32
    return %c0_i32, %c0_i32_0 : i32, i32
  }
  func.func @transform_7(%arg0: i32) -> (i32, i32) {
    %c0_i32 = arith.constant 0 : i32
    %c0_i32_0 = arith.constant 0 : i32
    %c0_i32_1 = arith.constant 0 : i32
    return %c0_i32, %c0_i32_0 : i32, i32
  }
  func.func @transform_8(%arg0: i32) -> (i32, i32) {
    %c0_i32 = arith.constant 0 : i32
    %c0_i32_0 = arith.constant 0 : i32
    %c0_i32_1 = arith.constant 0 : i32
    return %c0_i32, %c0_i32_0 : i32, i32
  }
  func.func @transform_9(%arg0: i32) -> (i32, i32) {
    %c0_i32 = arith.constant 0 : i32
    %c0_i32_0 = arith.constant 0 : i32
    %c0_i32_1 = arith.constant 0 : i32
    return %c0_i32, %c0_i32_0 : i32, i32
  }
  func.func @transform_10(%arg0: i32) -> (i32, i32) {
    %c0_i32 = arith.constant 0 : i32
    %c0_i32_0 = arith.constant 0 : i32
    %c0_i32_1 = arith.constant 0 : i32
    return %c0_i32, %c0_i32_0 : i32, i32
  }
  func.func @transform_11(%arg0: i32) -> (i32, i32) {
    %c0_i32 = arith.constant 0 : i32
    %c0_i32_0 = arith.constant 0 : i32
    %c0_i32_1 = arith.constant 0 : i32
    return %c0_i32, %c0_i32_0 : i32, i32
  }
  func.func @transform_12(%arg0: i32) -> (i32, i32) {
    %c0_i32 = arith.constant 0 : i32
    %c0_i32_0 = arith.constant 0 : i32
    %c0_i32_1 = arith.constant 0 : i32
    return %c0_i32, %c0_i32_0 : i32, i32
  }
  func.func @transform_13(%arg0: i32) -> (i32, i32, i32) {
    %c0_i32 = arith.constant 0 : i32
    %c0_i32_0 = arith.constant 0 : i32
    %c0_i32_1 = arith.constant 0 : i32
    return %arg0, %c0_i32, %c0_i32_0 : i32, i32, i32
  }
}

module attributes {stable_mosaic.version = 11 : i64} {
  func.func @_block_kernel(%arg0: i32, %arg1: memref<1x128x128xf32, #tpu.memory_space<vmem>>, %arg2: memref<1x128xf32, #tpu.memory_space<vmem>>, %arg3: memref<1x128xf32, #tpu.memory_space<vmem>>, %arg4: memref<128x384xbf16, #tpu.memory_space<vmem>>, %arg5: memref<1x384xf32, #tpu.memory_space<vmem>>, %arg6: memref<128x128xbf16, #tpu.memory_space<vmem>>, %arg7: memref<1x128xf32, #tpu.memory_space<vmem>>, %arg8: memref<1x128xf32, #tpu.memory_space<vmem>>, %arg9: memref<1x128xf32, #tpu.memory_space<vmem>>, %arg10: memref<128x512xbf16, #tpu.memory_space<vmem>>, %arg11: memref<1x512xf32, #tpu.memory_space<vmem>>, %arg12: memref<512x128xbf16, #tpu.memory_space<vmem>>, %arg13: memref<1x128xf32, #tpu.memory_space<vmem>>, %arg14: memref<1x128x128xf32, #tpu.memory_space<vmem>>) attributes {dimension_semantics = [#tpu.dimension_semantics<parallel>], iteration_bounds = array<i64: 2>, scalar_prefetch = 0 : i64, scratch_operands = 0 : i64, tpu.core_type = #tpu.core_type<tc>, window_params = [{transform_indices = @transform_0, window_bounds = array<i64: 1, 128, 128>}, {pipeline_mode = #tpu.pipeline_mode<synchronous>, transform_indices = @transform_1, window_bounds = array<i64: 1, 128>}, {pipeline_mode = #tpu.pipeline_mode<synchronous>, transform_indices = @transform_2, window_bounds = array<i64: 1, 128>}, {pipeline_mode = #tpu.pipeline_mode<synchronous>, transform_indices = @transform_3, window_bounds = array<i64: 128, 384>}, {pipeline_mode = #tpu.pipeline_mode<synchronous>, transform_indices = @transform_4, window_bounds = array<i64: 1, 384>}, {pipeline_mode = #tpu.pipeline_mode<synchronous>, transform_indices = @transform_5, window_bounds = array<i64: 128, 128>}, {pipeline_mode = #tpu.pipeline_mode<synchronous>, transform_indices = @transform_6, window_bounds = array<i64: 1, 128>}, {pipeline_mode = #tpu.pipeline_mode<synchronous>, transform_indices = @transform_7, window_bounds = array<i64: 1, 128>}, {pipeline_mode = #tpu.pipeline_mode<synchronous>, transform_indices = @transform_8, window_bounds = array<i64: 1, 128>}, {pipeline_mode = #tpu.pipeline_mode<synchronous>, transform_indices = @transform_9, window_bounds = array<i64: 128, 512>}, {pipeline_mode = #tpu.pipeline_mode<synchronous>, transform_indices = @transform_10, window_bounds = array<i64: 1, 512>}, {pipeline_mode = #tpu.pipeline_mode<synchronous>, transform_indices = @transform_11, window_bounds = array<i64: 512, 128>}, {pipeline_mode = #tpu.pipeline_mode<synchronous>, transform_indices = @transform_12, window_bounds = array<i64: 1, 128>}, {transform_indices = @transform_13, window_bounds = array<i64: 1, 128, 128>}]} {
    %c0 = arith.constant 0 : index
    %c0_0 = arith.constant 0 : index
    %c0_1 = arith.constant 0 : index
    %0 = vector.load %arg1[%c0, %c0_0, %c0_1] : memref<1x128x128xf32, #tpu.memory_space<vmem>>, vector<1x128x128xf32>
    %1 = vector.shape_cast %0 : vector<1x128x128xf32> to vector<128x128xf32>
    %c0_2 = arith.constant 0 : index
    %c0_3 = arith.constant 0 : index
    %2 = vector.load %arg2[%c0_2, %c0_3] : memref<1x128xf32, #tpu.memory_space<vmem>>, vector<1x128xf32>
    %3 = vector.shape_cast %2 : vector<1x128xf32> to vector<128xf32>
    %c0_4 = arith.constant 0 : index
    %c0_5 = arith.constant 0 : index
    %4 = vector.load %arg3[%c0_4, %c0_5] : memref<1x128xf32, #tpu.memory_space<vmem>>, vector<1x128xf32>
    %5 = vector.shape_cast %4 : vector<1x128xf32> to vector<128xf32>
    %cst = arith.constant dense<0.000000e+00> : vector<128xf32>
    %6 = vector.multi_reduction <add>, %1, %cst [1] : vector<128x128xf32> to vector<128xf32>
    %7 = vector.shape_cast %6 : vector<128xf32> to vector<128x1xf32>
    %cst_6 = arith.constant 1.280000e+02 : f32
    %8 = vector.broadcast %cst_6 : f32 to vector<128x1xf32>
    %9 = arith.divf %7, %8 : vector<128x1xf32>
    %10 = vector.broadcast %9 : vector<128x1xf32> to vector<128x128xf32>
    %11 = arith.subf %1, %10 : vector<128x128xf32>
    %12 = arith.mulf %11, %11 : vector<128x128xf32>
    %cst_7 = arith.constant dense<0.000000e+00> : vector<128xf32>
    %13 = vector.multi_reduction <add>, %12, %cst_7 [1] : vector<128x128xf32> to vector<128xf32>
    %14 = vector.shape_cast %13 : vector<128xf32> to vector<128x1xf32>
    %cst_8 = arith.constant 1.280000e+02 : f32
    %15 = vector.broadcast %cst_8 : f32 to vector<128x1xf32>
    %16 = arith.divf %14, %15 : vector<128x1xf32>
    %17 = vector.broadcast %9 : vector<128x1xf32> to vector<128x128xf32>
    %18 = arith.subf %1, %17 : vector<128x128xf32>
    %cst_9 = arith.constant 9.99999974E-6 : f32
    %19 = vector.broadcast %cst_9 : f32 to vector<128x1xf32>
    %20 = arith.addf %16, %19 : vector<128x1xf32>
    %21 = math.rsqrt %20 : vector<128x1xf32>
    %22 = vector.broadcast %21 : vector<128x1xf32> to vector<128x128xf32>
    %23 = arith.mulf %18, %22 : vector<128x128xf32>
    %24 = vector.shape_cast %3 : vector<128xf32> to vector<1x128xf32>
    %25 = vector.broadcast %24 : vector<1x128xf32> to vector<128x128xf32>
    %26 = arith.mulf %23, %25 : vector<128x128xf32>
    %27 = vector.shape_cast %5 : vector<128xf32> to vector<1x128xf32>
    %28 = vector.broadcast %27 : vector<1x128xf32> to vector<128x128xf32>
    %29 = arith.addf %26, %28 : vector<128x128xf32>
    %30 = arith.truncf %29 : vector<128x128xf32> to vector<128x128xbf16>
    %c0_10 = arith.constant 0 : index
    %c0_11 = arith.constant 0 : index
    %31 = vector.load %arg4[%c0_10, %c0_11] : memref<128x384xbf16, #tpu.memory_space<vmem>>, vector<128x384xbf16>
    %cst_12 = arith.constant dense<0.000000e+00> : vector<128x384xf32>
    %32 = tpu.matmul %30, %31, %cst_12 {dimension_numbers = #tpu.dot_dimension_numbers<[1], [0], [0], [1], [0, 0, 1, 1], [], []>} : vector<128x128xbf16>, vector<128x384xbf16>, vector<128x384xf32> -> vector<128x384xf32>
    %c0_13 = arith.constant 0 : index
    %c0_14 = arith.constant 0 : index
    %33 = vector.load %arg5[%c0_13, %c0_14] : memref<1x384xf32, #tpu.memory_space<vmem>>, vector<1x384xf32>
    %34 = vector.shape_cast %33 : vector<1x384xf32> to vector<384xf32>
    %35 = vector.shape_cast %34 : vector<384xf32> to vector<1x384xf32>
    %36 = vector.broadcast %35 : vector<1x384xf32> to vector<128x384xf32>
    %37 = arith.addf %32, %36 : vector<128x384xf32>
    %38 = arith.truncf %37 : vector<128x384xf32> to vector<128x384xbf16>
    %39 = vector.extract_strided_slice %38 {offsets = [0, 0], sizes = [128, 32], strides = [1, 1]} : vector<128x384xbf16> to vector<128x32xbf16>
    %40 = vector.extract_strided_slice %38 {offsets = [0, 32], sizes = [128, 32], strides = [1, 1]} : vector<128x384xbf16> to vector<128x32xbf16>
    %41 = vector.extract_strided_slice %38 {offsets = [0, 64], sizes = [128, 32], strides = [1, 1]} : vector<128x384xbf16> to vector<128x32xbf16>
    %42 = vector.extract_strided_slice %38 {offsets = [0, 96], sizes = [128, 32], strides = [1, 1]} : vector<128x384xbf16> to vector<128x32xbf16>
    %43 = vector.shape_cast %39 : vector<128x32xbf16> to vector<1x128x32xbf16>
    %44 = vector.shape_cast %40 : vector<128x32xbf16> to vector<1x128x32xbf16>
    %45 = vector.shape_cast %41 : vector<128x32xbf16> to vector<1x128x32xbf16>
    %46 = vector.shape_cast %42 : vector<128x32xbf16> to vector<1x128x32xbf16>
    %47 = tpu.concatenate %43, %44, %45, %46 in 0 : vector<1x128x32xbf16>, vector<1x128x32xbf16>, vector<1x128x32xbf16>, vector<1x128x32xbf16> -> vector<4x128x32xbf16>
    %48 = vector.extract_strided_slice %38 {offsets = [0, 128], sizes = [128, 32], strides = [1, 1]} : vector<128x384xbf16> to vector<128x32xbf16>
    %49 = vector.extract_strided_slice %38 {offsets = [0, 160], sizes = [128, 32], strides = [1, 1]} : vector<128x384xbf16> to vector<128x32xbf16>
    %50 = vector.extract_strided_slice %38 {offsets = [0, 192], sizes = [128, 32], strides = [1, 1]} : vector<128x384xbf16> to vector<128x32xbf16>
    %51 = vector.extract_strided_slice %38 {offsets = [0, 224], sizes = [128, 32], strides = [1, 1]} : vector<128x384xbf16> to vector<128x32xbf16>
    %52 = vector.shape_cast %48 : vector<128x32xbf16> to vector<1x128x32xbf16>
    %53 = vector.shape_cast %49 : vector<128x32xbf16> to vector<1x128x32xbf16>
    %54 = vector.shape_cast %50 : vector<128x32xbf16> to vector<1x128x32xbf16>
    %55 = vector.shape_cast %51 : vector<128x32xbf16> to vector<1x128x32xbf16>
    %56 = tpu.concatenate %52, %53, %54, %55 in 0 : vector<1x128x32xbf16>, vector<1x128x32xbf16>, vector<1x128x32xbf16>, vector<1x128x32xbf16> -> vector<4x128x32xbf16>
    %57 = vector.extract_strided_slice %38 {offsets = [0, 256], sizes = [128, 32], strides = [1, 1]} : vector<128x384xbf16> to vector<128x32xbf16>
    %58 = vector.extract_strided_slice %38 {offsets = [0, 288], sizes = [128, 32], strides = [1, 1]} : vector<128x384xbf16> to vector<128x32xbf16>
    %59 = vector.extract_strided_slice %38 {offsets = [0, 320], sizes = [128, 32], strides = [1, 1]} : vector<128x384xbf16> to vector<128x32xbf16>
    %60 = vector.extract_strided_slice %38 {offsets = [0, 352], sizes = [128, 32], strides = [1, 1]} : vector<128x384xbf16> to vector<128x32xbf16>
    %61 = vector.shape_cast %57 : vector<128x32xbf16> to vector<1x128x32xbf16>
    %62 = vector.shape_cast %58 : vector<128x32xbf16> to vector<1x128x32xbf16>
    %63 = vector.shape_cast %59 : vector<128x32xbf16> to vector<1x128x32xbf16>
    %64 = vector.shape_cast %60 : vector<128x32xbf16> to vector<1x128x32xbf16>
    %65 = tpu.concatenate %61, %62, %63, %64 in 0 : vector<1x128x32xbf16>, vector<1x128x32xbf16>, vector<1x128x32xbf16>, vector<1x128x32xbf16> -> vector<4x128x32xbf16>
    "tpu.trace_start"() <{level = 10 : i32, message = "hqd,hkd->hqk"}> : () -> ()
    %cst_15 = arith.constant dense<0.000000e+00> : vector<4x128x128xf32>
    %66 = tpu.matmul %47, %56, %cst_15 {dimension_numbers = #tpu.dot_dimension_numbers<[2], [2], [1], [1], [0, 0, 0, 1, 1, 1], [0], [0]>} : vector<4x128x32xbf16>, vector<4x128x32xbf16>, vector<4x128x128xf32> -> vector<4x128x128xf32>
    "tpu.trace_stop"() : () -> ()
    %cst_16 = arith.constant dense<0xFF800000> : vector<4x128xf32>
    %67 = vector.multi_reduction <maximumf>, %66, %cst_16 [2] : vector<4x128x128xf32> to vector<4x128xf32>
    %68 = vector.shape_cast %67 : vector<4x128xf32> to vector<4x128x1xf32>
    %69 = vector.broadcast %68 : vector<4x128x1xf32> to vector<4x128x128xf32>
    %70 = arith.subf %66, %69 : vector<4x128x128xf32>
    %71 = math.exp %70 : vector<4x128x128xf32>
    %cst_17 = arith.constant dense<0.000000e+00> : vector<4x128xf32>
    %72 = vector.multi_reduction <add>, %71, %cst_17 [2] : vector<4x128x128xf32> to vector<4x128xf32>
    %73 = vector.shape_cast %72 : vector<4x128xf32> to vector<4x128x1xf32>
    %74 = tpu.reciprocal %73 {approx = true} : vector<4x128x1xf32> -> vector<4x128x1xf32>
    %75 = vector.broadcast %74 : vector<4x128x1xf32> to vector<4x128x128xf32>
    %76 = arith.mulf %71, %75 : vector<4x128x128xf32>
    %77 = arith.truncf %76 : vector<4x128x128xf32> to vector<4x128x128xbf16>
    "tpu.trace_start"() <{level = 10 : i32, message = "hqk,hkd->hqd"}> : () -> ()
    %cst_18 = arith.constant dense<0.000000e+00> : vector<4x128x32xf32>
    %78 = tpu.matmul %77, %65, %cst_18 {dimension_numbers = #tpu.dot_dimension_numbers<[2], [1], [1], [2], [0, 0, 0, 1, 1, 2], [0], [0]>} : vector<4x128x128xbf16>, vector<4x128x32xbf16>, vector<4x128x32xf32> -> vector<4x128x32xf32>
    "tpu.trace_stop"() : () -> ()
    %79 = vector.extract_strided_slice %78 {offsets = [0, 0, 0], sizes = [1, 128, 32], strides = [1, 1, 1]} : vector<4x128x32xf32> to vector<1x128x32xf32>
    %80 = vector.shape_cast %79 : vector<1x128x32xf32> to vector<128x32xf32>
    %81 = vector.extract_strided_slice %78 {offsets = [1, 0, 0], sizes = [1, 128, 32], strides = [1, 1, 1]} : vector<4x128x32xf32> to vector<1x128x32xf32>
    %82 = vector.shape_cast %81 : vector<1x128x32xf32> to vector<128x32xf32>
    %83 = vector.extract_strided_slice %78 {offsets = [2, 0, 0], sizes = [1, 128, 32], strides = [1, 1, 1]} : vector<4x128x32xf32> to vector<1x128x32xf32>
    %84 = vector.shape_cast %83 : vector<1x128x32xf32> to vector<128x32xf32>
    %85 = vector.extract_strided_slice %78 {offsets = [3, 0, 0], sizes = [1, 128, 32], strides = [1, 1, 1]} : vector<4x128x32xf32> to vector<1x128x32xf32>
    %86 = vector.shape_cast %85 : vector<1x128x32xf32> to vector<128x32xf32>
    %87 = tpu.concatenate %80, %82, %84, %86 in 1 : vector<128x32xf32>, vector<128x32xf32>, vector<128x32xf32>, vector<128x32xf32> -> vector<128x128xf32>
    %88 = arith.truncf %87 : vector<128x128xf32> to vector<128x128xbf16>
    %c0_19 = arith.constant 0 : index
    %c0_20 = arith.constant 0 : index
    %89 = vector.load %arg6[%c0_19, %c0_20] : memref<128x128xbf16, #tpu.memory_space<vmem>>, vector<128x128xbf16>
    %cst_21 = arith.constant dense<0.000000e+00> : vector<128x128xf32>
    %90 = tpu.matmul %88, %89, %cst_21 {dimension_numbers = #tpu.dot_dimension_numbers<[1], [0], [0], [1], [0, 0, 1, 1], [], []>} : vector<128x128xbf16>, vector<128x128xbf16>, vector<128x128xf32> -> vector<128x128xf32>
    %91 = arith.addf %1, %90 : vector<128x128xf32>
    %c0_22 = arith.constant 0 : index
    %c0_23 = arith.constant 0 : index
    %92 = vector.load %arg7[%c0_22, %c0_23] : memref<1x128xf32, #tpu.memory_space<vmem>>, vector<1x128xf32>
    %93 = vector.shape_cast %92 : vector<1x128xf32> to vector<128xf32>
    %94 = vector.shape_cast %93 : vector<128xf32> to vector<1x128xf32>
    %95 = vector.broadcast %94 : vector<1x128xf32> to vector<128x128xf32>
    %96 = arith.addf %91, %95 : vector<128x128xf32>
    %c0_24 = arith.constant 0 : index
    %c0_25 = arith.constant 0 : index
    %97 = vector.load %arg8[%c0_24, %c0_25] : memref<1x128xf32, #tpu.memory_space<vmem>>, vector<1x128xf32>
    %98 = vector.shape_cast %97 : vector<1x128xf32> to vector<128xf32>
    %c0_26 = arith.constant 0 : index
    %c0_27 = arith.constant 0 : index
    %99 = vector.load %arg9[%c0_26, %c0_27] : memref<1x128xf32, #tpu.memory_space<vmem>>, vector<1x128xf32>
    %100 = vector.shape_cast %99 : vector<1x128xf32> to vector<128xf32>
    %cst_28 = arith.constant dense<0.000000e+00> : vector<128xf32>
    %101 = vector.multi_reduction <add>, %96, %cst_28 [1] : vector<128x128xf32> to vector<128xf32>
    %102 = vector.shape_cast %101 : vector<128xf32> to vector<128x1xf32>
    %cst_29 = arith.constant 1.280000e+02 : f32
    %103 = vector.broadcast %cst_29 : f32 to vector<128x1xf32>
    %104 = arith.divf %102, %103 : vector<128x1xf32>
    %105 = vector.broadcast %104 : vector<128x1xf32> to vector<128x128xf32>
    %106 = arith.subf %96, %105 : vector<128x128xf32>
    %107 = arith.mulf %106, %106 : vector<128x128xf32>
    %cst_30 = arith.constant dense<0.000000e+00> : vector<128xf32>
    %108 = vector.multi_reduction <add>, %107, %cst_30 [1] : vector<128x128xf32> to vector<128xf32>
    %109 = vector.shape_cast %108 : vector<128xf32> to vector<128x1xf32>
    %cst_31 = arith.constant 1.280000e+02 : f32
    %110 = vector.broadcast %cst_31 : f32 to vector<128x1xf32>
    %111 = arith.divf %109, %110 : vector<128x1xf32>
    %112 = vector.broadcast %104 : vector<128x1xf32> to vector<128x128xf32>
    %113 = arith.subf %96, %112 : vector<128x128xf32>
    %cst_32 = arith.constant 9.99999974E-6 : f32
    %114 = vector.broadcast %cst_32 : f32 to vector<128x1xf32>
    %115 = arith.addf %111, %114 : vector<128x1xf32>
    %116 = math.rsqrt %115 : vector<128x1xf32>
    %117 = vector.broadcast %116 : vector<128x1xf32> to vector<128x128xf32>
    %118 = arith.mulf %113, %117 : vector<128x128xf32>
    %119 = vector.shape_cast %98 : vector<128xf32> to vector<1x128xf32>
    %120 = vector.broadcast %119 : vector<1x128xf32> to vector<128x128xf32>
    %121 = arith.mulf %118, %120 : vector<128x128xf32>
    %122 = vector.shape_cast %100 : vector<128xf32> to vector<1x128xf32>
    %123 = vector.broadcast %122 : vector<1x128xf32> to vector<128x128xf32>
    %124 = arith.addf %121, %123 : vector<128x128xf32>
    %125 = arith.truncf %124 : vector<128x128xf32> to vector<128x128xbf16>
    %c0_33 = arith.constant 0 : index
    %c0_34 = arith.constant 0 : index
    %126 = vector.load %arg10[%c0_33, %c0_34] : memref<128x512xbf16, #tpu.memory_space<vmem>>, vector<128x512xbf16>
    %cst_35 = arith.constant dense<0.000000e+00> : vector<128x512xf32>
    %127 = tpu.matmul %125, %126, %cst_35 {dimension_numbers = #tpu.dot_dimension_numbers<[1], [0], [0], [1], [0, 0, 1, 1], [], []>} : vector<128x128xbf16>, vector<128x512xbf16>, vector<128x512xf32> -> vector<128x512xf32>
    %c0_36 = arith.constant 0 : index
    %c0_37 = arith.constant 0 : index
    %128 = vector.load %arg11[%c0_36, %c0_37] : memref<1x512xf32, #tpu.memory_space<vmem>>, vector<1x512xf32>
    %129 = vector.shape_cast %128 : vector<1x512xf32> to vector<512xf32>
    %130 = vector.shape_cast %129 : vector<512xf32> to vector<1x512xf32>
    %131 = vector.broadcast %130 : vector<1x512xf32> to vector<128x512xf32>
    %132 = arith.addf %127, %131 : vector<128x512xf32>
    %cst_38 = arith.constant 0.000000e+00 : f32
    %133 = vector.broadcast %cst_38 : f32 to vector<128x512xf32>
    %134 = arith.maximumf %132, %133 : vector<128x512xf32>
    %135 = arith.truncf %134 : vector<128x512xf32> to vector<128x512xbf16>
    %c0_39 = arith.constant 0 : index
    %c0_40 = arith.constant 0 : index
    %136 = vector.load %arg12[%c0_39, %c0_40] : memref<512x128xbf16, #tpu.memory_space<vmem>>, vector<512x128xbf16>
    %cst_41 = arith.constant dense<0.000000e+00> : vector<128x128xf32>
    %137 = tpu.matmul %135, %136, %cst_41 {dimension_numbers = #tpu.dot_dimension_numbers<[1], [0], [0], [1], [0, 0, 1, 1], [], []>} : vector<128x512xbf16>, vector<512x128xbf16>, vector<128x128xf32> -> vector<128x128xf32>
    %138 = arith.addf %96, %137 : vector<128x128xf32>
    %c0_42 = arith.constant 0 : index
    %c0_43 = arith.constant 0 : index
    %139 = vector.load %arg13[%c0_42, %c0_43] : memref<1x128xf32, #tpu.memory_space<vmem>>, vector<1x128xf32>
    %140 = vector.shape_cast %139 : vector<1x128xf32> to vector<128xf32>
    %141 = vector.shape_cast %140 : vector<128xf32> to vector<1x128xf32>
    %142 = vector.broadcast %141 : vector<1x128xf32> to vector<128x128xf32>
    %143 = arith.addf %138, %142 : vector<128x128xf32>
    %c0_44 = arith.constant 0 : index
    %c0_45 = arith.constant 0 : index
    %c0_46 = arith.constant 0 : index
    %144 = vector.load %arg14[%c0_44, %c0_45, %c0_46] : memref<1x128x128xf32, #tpu.memory_space<vmem>>, vector<1x128x128xf32>
    %145 = vector.shape_cast %144 : vector<1x128x128xf32> to vector<128x128xf32>
    %146 = vector.shape_cast %143 : vector<128x128xf32> to vector<1x128x128xf32>
    tpu.vector_store %arg14[%c0_44, %c0_45, %c0_46], %146 {strides = array<i32>} : memref<1x128x128xf32, #tpu.memory_space<vmem>>, vector<1x128x128xf32>,
    return
  }
  func.func @transform_0(%arg0: i32) -> (i32, i32, i32) {
    %c0_i32 = arith.constant 0 : i32
    %c0_i32_0 = arith.constant 0 : i32
    %c0_i32_1 = arith.constant 0 : i32
    return %arg0, %c0_i32, %c0_i32_0 : i32, i32, i32
  }
  func.func @transform_1(%arg0: i32) -> (i32, i32) {
    %c0_i32 = arith.constant 0 : i32
    %c0_i32_0 = arith.constant 0 : i32
    %c0_i32_1 = arith.constant 0 : i32
    return %c0_i32, %c0_i32_0 : i32, i32
  }
  func.func @transform_2(%arg0: i32) -> (i32, i32) {
    %c0_i32 = arith.constant 0 : i32
    %c0_i32_0 = arith.constant 0 : i32
    %c0_i32_1 = arith.constant 0 : i32
    return %c0_i32, %c0_i32_0 : i32, i32
  }
  func.func @transform_3(%arg0: i32) -> (i32, i32) {
    %c0_i32 = arith.constant 0 : i32
    %c0_i32_0 = arith.constant 0 : i32
    %c0_i32_1 = arith.constant 0 : i32
    return %c0_i32, %c0_i32_0 : i32, i32
  }
  func.func @transform_4(%arg0: i32) -> (i32, i32) {
    %c0_i32 = arith.constant 0 : i32
    %c0_i32_0 = arith.constant 0 : i32
    %c0_i32_1 = arith.constant 0 : i32
    return %c0_i32, %c0_i32_0 : i32, i32
  }
  func.func @transform_5(%arg0: i32) -> (i32, i32) {
    %c0_i32 = arith.constant 0 : i32
    %c0_i32_0 = arith.constant 0 : i32
    %c0_i32_1 = arith.constant 0 : i32
    return %c0_i32, %c0_i32_0 : i32, i32
  }
  func.func @transform_6(%arg0: i32) -> (i32, i32) {
    %c0_i32 = arith.constant 0 : i32
    %c0_i32_0 = arith.constant 0 : i32
    %c0_i32_1 = arith.constant 0 : i32
    return %c0_i32, %c0_i32_0 : i32, i32
  }
  func.func @transform_7(%arg0: i32) -> (i32, i32) {
    %c0_i32 = arith.constant 0 : i32
    %c0_i32_0 = arith.constant 0 : i32
    %c0_i32_1 = arith.constant 0 : i32
    return %c0_i32, %c0_i32_0 : i32, i32
  }
  func.func @transform_8(%arg0: i32) -> (i32, i32) {
    %c0_i32 = arith.constant 0 : i32
    %c0_i32_0 = arith.constant 0 : i32
    %c0_i32_1 = arith.constant 0 : i32
    return %c0_i32, %c0_i32_0 : i32, i32
  }
  func.func @transform_9(%arg0: i32) -> (i32, i32) {
    %c0_i32 = arith.constant 0 : i32
    %c0_i32_0 = arith.constant 0 : i32
    %c0_i32_1 = arith.constant 0 : i32
    return %c0_i32, %c0_i32_0 : i32, i32
  }
  func.func @transform_10(%arg0: i32) -> (i32, i32) {
    %c0_i32 = arith.constant 0 : i32
    %c0_i32_0 = arith.constant 0 : i32
    %c0_i32_1 = arith.constant 0 : i32
    return %c0_i32, %c0_i32_0 : i32, i32
  }
  func.func @transform_11(%arg0: i32) -> (i32, i32) {
    %c0_i32 = arith.constant 0 : i32
    %c0_i32_0 = arith.constant 0 : i32
    %c0_i32_1 = arith.constant 0 : i32
    return %c0_i32, %c0_i32_0 : i32, i32
  }
  func.func @transform_12(%arg0: i32) -> (i32, i32) {
    %c0_i32 = arith.constant 0 : i32
    %c0_i32_0 = arith.constant 0 : i32
    %c0_i32_1 = arith.constant 0 : i32
    return %c0_i32, %c0_i32_0 : i32, i32
  }
  func.func @transform_13(%arg0: i32) -> (i32, i32, i32) {
    %c0_i32 = arith.constant 0 : i32
    %c0_i32_0 = arith.constant 0 : i32
    %c0_i32_1 = arith.constant 0 : i32
    return %arg0, %c0_i32, %c0_i32_0 : i32, i32, i32
  }
}

</mosaic_0001>

<bundles_post_ra>
// kernel: tpu_custom_call.1
= control target key start
LH: loop header
LB: loop body
LE: loop exit
PB: predicated region body
PF: predicated region fallthrough
CT: control target
= control target key end

     0   :  { %s8832_s0 = inlined_call_operand.hbm [shape: f32[2,128,128], index: 0, kind: input, shape index: {}]   ;;  %s8833_s1 = inlined_call_operand.hbm [shape: f32[1,128], index: 1, kind: input, shape index: {}]   ;;  %s8834_s2 = inlined_call_operand.hbm [shape: f32[1,128], index: 2, kind: input, shape index: {}]   ;;  %s8835_s3 = inlined_call_operand.hbm [shape: bf16[128,384], index: 3, kind: input, shape index: {}]   ;;  %s8836_s4 = inlined_call_operand.vmem [shape: f32[1,384], index: 4, kind: input, shape index: {}]   ;;  %s8837_s5 = inlined_call_operand.hbm [shape: bf16[128,128], index: 5, kind: input, shape index: {}]   ;;  %s8838_s6 = inlined_call_operand.vmem [shape: f32[1,128], index: 6, kind: input, shape index: {}]   ;;  %s8839_s7 = inlined_call_operand.vmem [shape: f32[1,128], index: 7, kind: input, shape index: {}]   ;;  %s8840_s8 = inlined_call_operand.vmem [shape: f32[1,128], index: 8, kind: input, shape index: {}]   ;;  %s8841_s9 = inlined_call_operand.hbm [shape: bf16[128,512], index: 9, kind: input, shape index: {}]   ;;  %s8842_s10 = inlined_call_operand.vmem [shape: f32[1,512], index: 10, kind: input, shape index: {}]   ;;  %s8843_s11 = inlined_call_operand.hbm [shape: bf16[512,128], index: 11, kind: input, shape index: {}]   ;;  %s8844_s12 = inlined_call_operand.vmem [shape: f32[1,128], index: 12, kind: input, shape index: {}]   ;;  %s8845_s13 = inlined_call_operand.hbm [shape: f32[2,128,128], index: 13, kind: output, shape index: {}]  }
   0x1   :  { %8912 = sst [smem:[#allocation63_spill]] %s8833_s1 }
   0x2   :  { %8913 = sst [smem:[#allocation64_spill]] %s8835_s3 }
   0x3   :  { %8914 = sst [smem:[#allocation65_spill]] %s8839_s7 }
   0x4   :  { %8915 = sst [smem:[#allocation66_spill]] %s8840_s8 }
   0x5   :  { %8916 = sst [smem:[#allocation67_spill]] %s8842_s10 }
   0x6   :  { %8917 = sst [smem:[#allocation68_spill]] %s8844_s12 }
   0x7   :  { %8918 = sst [smem:[#allocation69_spill]] %s8845_s13 }
   0x8   :  { %18 = vsyncpa [#allocation3], 0 }
   0x9   :  { %20 = vsyncpa [#allocation3 + $0x1], 0 }
   0xa   :  { %21 = vsyncpa [#allocation6], 0 }
   0xb   :  { %22 = vsyncpa [#allocation9], 0 }
   0xc   :  { %23 = vsyncpa [#allocation12], 0 }
   0xd   :  { %24 = vsyncpa [#allocation4], 0 }
   0xe   :  { %26 = vsyncpa [#allocation4 + $0x1], 0  ;;  %s6720_s25 = smov 0   ;;  %s6722_s26 = smov 0  }
   0xf   :  { %s6724_s27 = smov 0   ;;  %s6726_s28 = smov 0  }
  0x10 LB: > { %s6628_s29 = smov [#allocation5]   ;;  %s6741_s14 = sadd.s32 4294967295, %s6626_s28   ;;  %s6626_s28 = sphi %s6726_s28, %s9062_s28   ;;  %s6622_s27 = sphi %s6724_s27, %s9061_s27   ;;  %s6618_s26 = sphi %s6722_s26, %s9060_s26   ;;  %s6614_s25 = sphi %s6720_s25, %s9059_s25  }
  0x11   : > { %s354_s30 = sshll.u32 %s6628_s29, 4  ;;  %p4836_p0 = scmp.ge.s32.totalorder %s6626_s28, 1  ;;  %s6746_s30 = int_to_ptr.vmem [resolvable:$true] %s354_s30 }
  0x12   : > { %p8847_p1 = scmp.eq.s32.totalorder %s6741_s14, 0  ;;  %p341_p2 = scmp.lt.s32.totalorder %s6626_s28, 3 }
  0x13   : > { %s6629_s16 = smov [#allocation8]   ;;  %s6630_s19 = smov [#allocation11]  }
  0x14   : > { %p6748_p3 = pnand %p4836_p0, %p341_p2  ;;  %s375_s17 = sshll.u32 %s6629_s16, 4  ;;  %s6755_s17 = int_to_ptr.vmem [resolvable:$true] %s375_s17 }
  0x15   : > { %s413_s20 = sshll.u32 %s6630_s19, 4  ;;  %s8921_s1 = sld [smem:[#allocation63_spill]]  ;;  %s6763_s20 = int_to_ptr.vmem [resolvable:$true] %s413_s20 }
  0x16   : > { %s8919_s15 = scalar_select %p6748_p3, 1, 0 }
  0x17   : > { %p5681_p5 = pneg %p6748_p3 }
  0x19   : > { %p6759_p6 = pnand %p5681_p5, %p8847_p1 }
  0x1b   : > { %s6350_s23 = scalar_lea.hbm %s8921_s1, 16  ;;  %p6773_p8 = pneg %p6759_p6 }
  0x1c   : > { %p6351_p7 = scmp.ne.s32.totalorder %s8921_s1, %s6350_s23  ;;  %p6357_p11 = scmp.lt.u32.totalorder %s6350_s23, %s8921_s1 }
  0x1e   : > { %p6353_p9 = pnand %p6773_p8, %p6351_p7 }
  0x20   : > { %p6354_p10 = pneg %p6353_p9 }
  0x22   : > { %p6359_p12 = pnand %p6357_p11, %p6354_p10 }
  0x24   : > { %6362 = shalt.err (!%p6359_p12)
}
  0x25   : > { %s6363_s21 = scalar_lea.vmem %s6746_s30, 16  ;;  %s6370_s22 = scalar_lea.vmem %s6746_s30, 32 }
  0x26   : > { %p6364_p13 = scmp.ne.s32.totalorder %s6746_s30, %s6363_s21  ;;  %p6371_p5 = scmp.lt.s32.totalorder %s6746_s30, %s6746_s30 }
  0x27   : > { %p6372_p7 = scmp.lt.s32.totalorder %s6370_s22, %s6363_s21 }
  0x28   : > { %p6366_p0 = pnand %p6364_p13, %p6773_p8 }
  0x29   : > { %p6373_p9 = por %p6372_p7, %p6371_p5 }
  0x2a   : > { %p6367_p2 = pneg %p6366_p0 }
  0x2c   : > { %p6374_p4 = pnand %p6373_p9, %p6367_p2 }
  0x2e   : > { %6377 = shalt.err (!%p6374_p4)
}
  0x2f   : > { %5684 = dma.hbm_to_vmem [thread:$0]  (!%p6759_p6), %s8921_s1, 16, %s6746_s30, [#allocation6]  }
  0x30   : > { %s8923_s3 = sld [smem:[#allocation64_spill]] }
  0x36   : > { %s6378_s19 = scalar_lea.hbm %s8923_s3, 3072 }
  0x37   : > { %p6379_p10 = scmp.ne.s32.totalorder %s8923_s3, %s6378_s19  ;;  %p6385_p4 = scmp.lt.u32.totalorder %s6378_s19, %s8923_s3 }
  0x39   : > { %p6381_p11 = pnand %p6379_p10, %p6773_p8 }
  0x3b   : > { %p6382_p12 = pneg %p6381_p11 }
  0x3d   : > { %p6387_p13 = pnand %p6385_p4, %p6382_p12 }
  0x3f   : > { %6390 = shalt.err (!%p6387_p13)
}
  0x40   : > { %s6391_s30 = scalar_lea.vmem %s6755_s17, 3072  ;;  %p6399_p7 = scmp.lt.s32.totalorder %s6755_s17, %s6755_s17 }
  0x41   : > { %p6392_p0 = scmp.ne.s32.totalorder %s6755_s17, %s6391_s30  ;;  %p6400_p9 = scmp.lt.s32.totalorder %s6391_s30, %s6391_s30 }
  0x43   : > { %p6394_p2 = pnand %p6392_p0, %p6773_p8  ;;  %p6401_p10 = por %p6400_p9, %p6399_p7 }
  0x45   : > { %p6395_p5 = pneg %p6394_p2 }
  0x47   : > { %p6402_p11 = pnand %p6401_p10, %p6395_p5 }
  0x49   : > { %6405 = shalt.err (!%p6402_p11)
}
  0x4a   : > { %s6631_s10 = smov 192   ;;  %s6632_s12 = smov 12  }
  0x4b   : > { %5690 = dma.hbm_to_vmem [thread:$0]  (!%p6759_p6), %s8923_s3, 3072, %s6755_s17, [#allocation9], %s6631_s10, %s6631_s10, %s6632_s12  }
  0x4c   : > { %s6406_s19 = scalar_lea.hbm %s8841_s9, 4096 }
  0x4d   : > { %p6407_p12 = scmp.ne.s32.totalorder %s8841_s9, %s6406_s19  ;;  %p6413_p0 = scmp.lt.u32.totalorder %s6406_s19, %s8841_s9 }
  0x4f   : > { %p6409_p4 = pnand %p6407_p12, %p6773_p8 }
  0x51   : > { %p6410_p13 = pneg %p6409_p4 }
  0x53   : > { %p6415_p2 = pnand %p6413_p0, %p6410_p13 }
  0x55   : > { %6418 = shalt.err (!%p6415_p2)
}
  0x56   : > { %s6419_s17 = scalar_lea.vmem %s6763_s20, 4096  ;;  %p6427_p10 = scmp.lt.s32.totalorder %s6763_s20, %s6763_s20 }
  0x57   : > { %p6420_p5 = scmp.ne.s32.totalorder %s6763_s20, %s6419_s17  ;;  %p6428_p11 = scmp.lt.s32.totalorder %s6419_s17, %s6419_s17 }
  0x59   : > { %p6422_p7 = pnand %p6420_p5, %p6773_p8  ;;  %p6429_p12 = por %p6428_p11, %p6427_p10 }
  0x5b   : > { %p6423_p9 = pneg %p6422_p7 }
  0x5d   : > { %p6430_p4 = pnand %p6429_p12, %p6423_p9 }
  0x5f   : > { %6433 = shalt.err (!%p6430_p4)
}
  0x60   : > { %s6633_s10 = smov 256   ;;  %s6634_s1 = smov 16  }
  0x61   : > { %5696 = dma.hbm_to_vmem [thread:$0]  (!%p6759_p6), %s8841_s9, 4096, %s6763_s20, [#allocation12], %s6633_s10, %s6633_s10, %s6634_s1  }
  0x62   : > { %s6635_s23 = smov [#allocation7]   ;;  %s6636_s29 = smov [#allocation10]  }
  0x63   : > { %s365_s24 = sshll.u32 %s6635_s23, 4  ;;  %s391_s19 = sshll.u32 %s6636_s29, 4  ;;  %s366_s24 = int_to_ptr.vmem [resolvable:$true] %s365_s24  ;;  %s392_s19 = int_to_ptr.vmem [resolvable:$true] %s391_s19 }
  0x64   : > { %s6434_s30 = scalar_lea.hbm %s8834_s2, 16 }
  0x65   : > { %p6435_p13 = scmp.ne.s32.totalorder %s8834_s2, %s6434_s30  ;;  %p6441_p5 = scmp.lt.u32.totalorder %s6434_s30, %s8834_s2 }
  0x67   : > { %p6437_p0 = pnand %p6435_p13, %p6773_p8 }
  0x69   : > { %p6438_p2 = pneg %p6437_p0 }
  0x6b   : > { %p6443_p7 = pnand %p6441_p5, %p6438_p2 }
  0x6d   : > { %6446 = shalt.err (!%p6443_p7)
}
  0x6e   : > { %s6447_s20 = scalar_lea.vmem %s366_s24, 16  ;;  %s6454_s10 = scalar_lea.vmem %s366_s24, 32 }
  0x6f   : > { %p6448_p9 = scmp.ne.s32.totalorder %s366_s24, %s6447_s20  ;;  %p6455_p12 = scmp.lt.s32.totalorder %s366_s24, %s366_s24 }
  0x70   : > { %p6456_p4 = scmp.lt.s32.totalorder %s6454_s10, %s6447_s20 }
  0x71   : > { %p6450_p10 = pnand %p6448_p9, %p6773_p8 }
  0x72   : > { %p6457_p1 = por %p6456_p4, %p6455_p12 }
  0x73   : > { %p6451_p11 = pneg %p6450_p10 }
  0x75   : > { %p6458_p3 = pnand %p6457_p1, %p6451_p11 }
  0x77   : > { %6461 = shalt.err (!%p6458_p3)
}
  0x78   : > { %5687 = dma.hbm_to_vmem [thread:$0]  (!%p6759_p6), %s8834_s2, 16, %s366_s24, [#allocation6]  }
  0x79   : > { %s6462_s12 = scalar_lea.hbm %s8837_s5, 1024 }
  0x7a   : > { %p6463_p13 = scmp.ne.s32.totalorder %s8837_s5, %s6462_s12  ;;  %p6469_p3 = scmp.lt.u32.totalorder %s6462_s12, %s8837_s5 }
  0x7c   : > { %p6465_p0 = pnand %p6463_p13, %p6773_p8 }
  0x7e   : > { %p6466_p1 = pneg %p6465_p0 }
  0x80   : > { %p6471_p2 = pnand %p6469_p3, %p6466_p1 }
  0x82   : > { %6474 = shalt.err (!%p6471_p2)
}
  0x83   : > { %s6475_s22 = scalar_lea.vmem %s392_s19, 1024  ;;  %p6483_p10 = scmp.lt.s32.totalorder %s392_s19, %s392_s19 }
  0x84   : > { %p6476_p5 = scmp.ne.s32.totalorder %s392_s19, %s6475_s22  ;;  %p6484_p11 = scmp.lt.s32.totalorder %s6475_s22, %s6475_s22 }
  0x86   : > { %p6478_p7 = pnand %p6476_p5, %p6773_p8  ;;  %p6485_p12 = por %p6484_p11, %p6483_p10 }
  0x88   : > { %p6479_p9 = pneg %p6478_p7 }
  0x8a   : > { %p6486_p4 = pnand %p6485_p12, %p6479_p9 }
  0x8c   : > { %6489 = shalt.err (!%p6486_p4)
}
  0x8d   : > { %s6637_s24 = smov 64   ;;  %s6638_s30 = smov 4  }
  0x8e   : > { %5693 = dma.hbm_to_vmem [thread:$0]  (!%p6759_p6), %s8837_s5, 1024, %s392_s19, [#allocation9], %s6637_s24, %s6637_s24, %s6638_s30  }
  0x8f   : > { %s6639_s10 = smov [#allocation13]   ;;  %s6490_s8 = scalar_lea.hbm %s8843_s11, 4096 }
  0x90   : > { %s429_s3 = sshll.u32 %s6639_s10, 4  ;;  %p6491_p13 = scmp.ne.s32.totalorder %s8843_s11, %s6490_s8  ;;  %s430_s3 = int_to_ptr.vmem [resolvable:$true] %s429_s3 }
  0x91   : > { %p6497_p3 = scmp.lt.u32.totalorder %s6490_s8, %s8843_s11 }
  0x92   : > { %p6493_p0 = pnand %p6491_p13, %p6773_p8 }
  0x94   : > { %p6494_p1 = pneg %p6493_p0 }
  0x96   : > { %p6499_p2 = pnand %p6497_p3, %p6494_p1 }
  0x98   : > { %6502 = shalt.err (!%p6499_p2)
}
  0x99   : > { %s6503_s19 = scalar_lea.vmem %s430_s3, 4096  ;;  %p6511_p10 = scmp.lt.s32.totalorder %s430_s3, %s430_s3 }
  0x9a   : > { %p6504_p5 = scmp.ne.s32.totalorder %s430_s3, %s6503_s19  ;;  %p6512_p11 = scmp.lt.s32.totalorder %s6503_s19, %s6503_s19 }
  0x9c   : > { %p6506_p7 = pnand %p6504_p5, %p6773_p8  ;;  %p6513_p12 = por %p6512_p11, %p6511_p10 }
  0x9e   : > { %p6507_p9 = pneg %p6506_p7 }
  0xa0   : > { %p6514_p4 = pnand %p6513_p12, %p6507_p9 }
  0xa2   : > { %6517 = shalt.err (!%p6514_p4)
}
  0xa3   : > { %5699 = dma.hbm_to_vmem [thread:$0]  (!%p6759_p6), %s8843_s11, 4096, %s430_s3, [#allocation12], %s6637_s24, %s6637_s24, %s6638_s30  }
  0xa4   : > { %s4835_s16 = sadd.s32 4294967294, %s6626_s28   ;;  %s6897_s18 = sadd.s32 1, %s6626_s28  }
  0xa5   : > { %s36_s17 = ssub.s32 %s6626_s28, %s6897_s18  ;;  %s39_s20 = sadd.s32 1, %s6622_s27 }
  0xa6   : > { %p37_p8 = scmp.eq.s32.totalorder %s36_s17, 0  ;;  %p46_p13 = scmp.ne.s32.totalorder %s6622_s27, %s6618_s26 }
  0xa7   : > { %p47_p0 = scmp.eq.s32.totalorder %s6626_s28, 0  ;;  %p52_p1 = scmp.ne.s32.totalorder %s6618_s26, %s6614_s25 }
  0xa8   : > { %s6908_s10 = scalar_select %p37_p8, %s6622_s27, %s39_s20  }
  0xa9   : > { %p6910_p3 = por %p47_p0, %p46_p13  ;;  %p8925_p2 = scmp.eq.s32.totalorder %s6741_s14, 0 }
  0xaa   : > { %p328_p5 = scmp.eq.s32.totalorder %s6741_s14, 1  ;;  %p334_p7 = scmp.eq.s32.totalorder %s4835_s16, 1 }
  0xab   : > { %p6916_p6 = por %p8925_p2, %p52_p1  ;;  %p5714_p9 = scmp.lt.s32.totalorder %s6626_s28, 2 }
  0xac   : > { %s446_s30 = sand.u32 1, %s6622_s27   ;;  %p6923_p10 = por %p328_p5, %p46_p13 }
  0xad   : > { %p6927_p11 = por %p334_p7, %p52_p1  ;;  %s4844_s8 = sshll.u32 %s446_s30, 7 }
  0xae   : > { %s8927_s3 = scalar_select %p6923_p10, 1, 0 }
  0xaf   : > { %s8928_s7 = scalar_select %p6927_p11, 1, 0 }
  0xb0   : > { %s4995_s12 = sshll.u32 %s6626_s28, 11  ;;  %s450_s19 = scalar_lea.vmem [#allocation2], %s4844_s8 }
  0xb1   : > { %s6935_s29 = scalar_lea.hbm %s8832_s0, %s4995_s12  ;;  %s457_s21 = sshll.u32 %s450_s19, 4  ;;  %s6937_s21 = int_to_ptr.vmem [resolvable:$true] %s457_s21 }
  0xb2   : > { %p6941_p12 = pnand %p5714_p9, %p6910_p3  ;;  %s6945_s16 = scalar_lea.sflag [#allocation3], %s446_s30 }
  0xb3   : > { %s6518_s17 = scalar_lea.hbm %s6935_s29, 2048  ;;  %s6523_s1 = scalar_lea.hbm %s8832_s0, 4096 }
  0xb4   : > { %p6519_p4 = scmp.ne.s32.totalorder %s6935_s29, %s6518_s17  ;;  %p6520_p8 = pneg %p6941_p12 }
  0xb5   : > { %p6524_p1 = scmp.lt.u32.totalorder %s6935_s29, %s8832_s0  ;;  %p6525_p3 = scmp.lt.u32.totalorder %s6523_s1, %s6518_s17 }
  0xb6   : > { %p6521_p13 = pnand %p6520_p8, %p6519_p4  ;;  %p6527_p5 = scmp.lt.u32.totalorder %s6518_s17, %s6935_s29 }
  0xb7   : > { %p6526_p2 = por %p6525_p3, %p6524_p1 }
  0xb8   : > { %p6522_p0 = pneg %p6521_p13 }
  0xb9   : > { %p6528_p7 = por %p6527_p5, %p6526_p2 }
  0xbb   : > { %p6529_p9 = pnand %p6528_p7, %p6522_p0 }
  0xbd   : > { %6532 = shalt.err (!%p6529_p9)
}
  0xbe   : > { %s6533_s30 = scalar_lea.vmem %s6937_s21, 2048  ;;  %s6640_s23 = smov [#allocation2]  }
  0xbf   : > { %p6534_p4 = scmp.ne.s32.totalorder %s6937_s21, %s6533_s30  ;;  %s6538_s19 = sshll.u32 %s6640_s23, 4  ;;  %s6539_s19 = int_to_ptr.vmem [resolvable:$false] %s6538_s19 }
  0xc0   : > { %s6540_s20 = scalar_lea.vmem %s6539_s19, 4096  ;;  %p6541_p10 = scmp.lt.s32.totalorder %s6937_s21, %s6539_s19 }
  0xc1   : > { %p6536_p13 = pnand %p6534_p4, %p6520_p8  ;;  %p6542_p1 = scmp.lt.s32.totalorder %s6540_s20, %s6533_s30 }
  0xc3   : > { %p6537_p11 = pneg %p6536_p13  ;;  %p6543_p3 = por %p6542_p1, %p6541_p10 }
  0xc5   : > { %p6544_p2 = pnand %p6543_p3, %p6537_p11 }
  0xc7   : > { %6547 = shalt.err (!%p6544_p2)
}
  0xc8   : > { %s6641_s17 = smov 128   ;;  %s6642_s8 = smov 8  }
  0xc9   : > { %5703 = dma.hbm_to_vmem [thread:$0]  (!%p6941_p12), %s6935_s29, 2048, %s6937_s21, %s6945_s16, %s6641_s17, %s6641_s17, %s6642_s8  }
  0xca   : > { %p8930_p8 = scmp.ne.s32.totalorder %s8919_s15, 0 }
  0xcc   : > { %469 = sbr.rel (%p8930_p8) target bundleno = 3059 (0xbf3), region = 72 }
  0xd3   : > { %s6976_s1 = sand.u32 1, %s6618_s26  }
  0xd4   : > { %s4848_s12 = sshll.u32 %s6976_s1, 7  ;;  %s472_s13 = scalar_lea.sflag [#allocation3], %s6976_s1 }
  0xd5   : > { %s6982_s30 = scalar_lea.vmem [#allocation2], %s4848_s12 }
  0xd6   : > { %6593 = dma.done.wait (%p6916_p6), %s472_s13, 2048  }
  0xd7   : > { %6595 = vsyncadd (%p6916_p6), %s472_s13, 4294965248  ;;  %p8931_p10 = scmp.eq.s32.totalorder %s6741_s14, 0 }
  0xd9   : > { %6597 = dma.done.wait (%p8931_p10), [#allocation6], 32   ;;  %p8932_p11 = pmov %p8931_p10 }
  0xda   : > { %p8933_p12 = pmov %p8931_p10 }
  0xdb   : > { %6599 = vsyncadd (%p8932_p11), [#allocation6], 4294967264 }
  0xdc   : > { %6601 = dma.done.wait (%p8933_p12), [#allocation9], 4096   ;;  %p8934_p0 = pmov %p8931_p10 }
  0xde   : > { %6603 = vsyncadd (%p8934_p0), [#allocation9], 4294963200  ;;  %p8935_p5 = pmov %p8934_p0 }
  0xdf   : > { %p8936_p7 = pmov %p8934_p0 }
  0xe0   : > { %6605 = dma.done.wait (%p8935_p5), [#allocation12], 8192  }
  0xe1   : > { %6607 = vsyncadd (%p8936_p7), [#allocation12], 4294959104  ;;  %v543_v0 = vld [vmem:[%s6982_s30] sm:$0xff]  ;;  %v545_v1 = vld [vmem:[%s6982_s30 + $0x10] sm:$0xff]  ;;  %vm1393_vm0 = vcmask 261120   ;;  %s6644_s29 = smov 96  }
  0xe2   : > { %561 = vadd.xlane.f32.xlu0 %v543_v0  ;;  %565 = vadd.xlane.f32.xlu1 %v545_v1  ;;  %v544_v2 = vld [vmem:[%s6982_s30 + $0x8] sm:$0xff]  ;;  %v546_v3 = vld [vmem:[%s6982_s30 + $0x18] sm:$0xff]  ;;  %v547_v4 = vld [vmem:[%s6982_s30 + $0x20] sm:$0xff]  ;;  %s6645_s21 = smov 64   ;;  %s6646_s22 = smov 32   ;;  %vm3178_vm1 = vcmask 523264  }
  0xe3   : > { %v548_v5 = vld [vmem:[%s6982_s30 + $0x28] sm:$0xff]  ;;  %v7007_v6 = vld [vmem:[%s6982_s30 + $0x30] sm:$0xff]  ;;  %v7010_v7 = vld [vmem:[%s6982_s30 + $0x38] sm:$0xff]  ;;  %vm3195_vm2 = vcmask 785408   ;;  %s9047_s17 = sld [smem:[#allocation65_spill]]  ;;  %s9054_s16 = sld [smem:[#allocation68_spill]] }
  0xe4   : > { %v7013_v8 = vld [vmem:[%s6982_s30 + $0x40] sm:$0xff]  ;;  %v7016_v9 = vld [vmem:[%s6982_s30 + $0x48] sm:$0xff]  ;;  %v7021_v10 = vld [vmem:[%s6982_s30 + $0x50] sm:$0xff]  ;;  %s8734_s23 = scalar_lea.vmem [#allocation14], %s4848_s12  ;;  %s4996_s12 = sshll.u32 %s6741_s14, 11 }
  0xe5   : > { %v7024_v11 = vld [vmem:[%s6982_s30 + $0x58] sm:$0xff]  ;;  %v7029_v12 = vld [vmem:[%s6982_s30 + $0x60] sm:$0xff]  ;;  %v7032_v13 = vld [vmem:[%s6982_s30 + $0x68] sm:$0xff]  ;;  %s4705_s19 = sshll.u32 %s8734_s23, 4  ;;  %s9055_s8 = sld [smem:[#allocation69_spill]]  ;;  %s8785_s19 = int_to_ptr.vmem [resolvable:$true] %s4705_s19 }
  0xe6   : > { %563 = vadd.xlane.f32.xlu0 %v544_v2  ;;  %567 = vadd.xlane.f32.xlu1 %v546_v3  ;;  %v7037_v14 = vld [vmem:[%s6982_s30 + $0x70] sm:$0xff]  ;;  %v7040_v15 = vld [vmem:[%s6982_s30 + $0x78] sm:$0xff]  ;;  %v5897_v18 = vld [vmem:[#allocation8 + $0x1c] ss:$12 sps:$4 sm:$0xff]   ;;  %s4692_s14 = scalar_lea.sflag [#allocation4], %s6976_s1  ;;  %p9056_p9 = scmp.ne.s32.totalorder %s8927_s3, 0 }
  0xe7   : > { %v5894_v16 = vld [vmem:[#allocation8 + $0x4] ss:$12 sps:$4 sm:$0xff]   ;;  %v5896_v17 = vld [vmem:[#allocation8] ss:$12 sps:$4 sm:$0xff]   ;;  %v5899_v19 = vld [vmem:[#allocation8 + $0x8] ss:$12 sps:$4 sm:$0xff]  }
  0xe8   : > { %967 = vmatprep.subr.bf16.mxu0 %v5894_v16  ;;  %5285 = vmatprep.subr.bf16.mxu1 %v5899_v19  ;;  %v5900_v58 = vld [vmem:[#allocation8 + $0x18] ss:$12 sps:$4 sm:$0xff]   ;;  %s6647_s15 = smov [#allocation14]  }
  0xe9   : > { %968 = vmatpush1.bf16.msra.mxu0 %v5896_v17  ;;  %5286 = vmatpush3.bf16.msra.mxu1 %v5899_v19  ;;  %v5907_v19 = vld [vmem:[#allocation8 + $0x38] ss:$12 sps:$4 sm:$0xff]   ;;  %s6552_s24 = sshll.u32 %s6647_s15, 4  ;;  %s6553_s24 = int_to_ptr.vmem [resolvable:$false] %s6552_s24 }
  0xea   : > { %569 = vadd.xlane.f32.xlu0 %v547_v4  ;;  %571 = vadd.xlane.f32.xlu1 %v548_v5  ;;  %p6555_p1 = scmp.lt.s32.totalorder %s8785_s19, %s6553_s24 }
  0xeb   : > { %969 = vmatprep.subr.bf16.mxu0 %v5897_v18  ;;  %v5905_v18 = vld [vmem:[#allocation8 + $0x4c] ss:$12 sps:$4 sm:$0xff]   ;;  %s8783_s13 = scalar_lea.hbm %s9055_s8, %s4996_s12 }
  0xed   : > { %970 = vmatpush1.bf16.msra.mxu0 %v5900_v58 }
  0xee   : > { %573 = vadd.xlane.f32.xlu0 %v7007_v6  ;;  %575 = vadd.xlane.f32.xlu1 %v7010_v7 }
  0xf2   : > { %577 = vadd.xlane.f32.xlu0 %v7013_v8  ;;  %579 = vadd.xlane.f32.xlu1 %v7016_v9 }
  0xf6   : > { %581 = vadd.xlane.f32.xlu0 %v7021_v10  ;;  %583 = vadd.xlane.f32.xlu1 %v7024_v11 }
  0xfa   : > { %585 = vadd.xlane.f32.xlu0 %v7029_v12  ;;  %587 = vadd.xlane.f32.xlu1 %v7032_v13 }
  0xfe   : > { %589 = vadd.xlane.f32.xlu0 %v7037_v14  ;;  %591 = vadd.xlane.f32.xlu1 %v7040_v15 }
 0x16f   : > { %v562_v20 = vpop.xlane.xlu0 %561  ;;  %v566_v21 = vpop.xlane.xlu1 %565 }
 0x170   : > { %v594_v22 = vmul.f32 0.0078125, %v562_v20  ;;  %v596_v23 = vmul.f32 0.0078125, %v566_v21 }
 0x172   : > { %v7046_v24 = vsub.f32 %v543_v0, %v594_v22  ;;  %v7048_v25 = vsub.f32 %v545_v1, %v596_v23  ;;  %v5901_v0 = vld [vmem:[#allocation8 + $0x34] ss:$12 sps:$4 sm:$0xff]  }
 0x173   : > { %v564_v26 = vpop.xlane.xlu0 %563  ;;  %v568_v27 = vpop.xlane.xlu1 %567  ;;  %v5903_v1 = vld [vmem:[#allocation8 + $0x20] ss:$12 sps:$4 sm:$0xff]   ;;  %971 = vmatprep.subr.bf16.mxu0 %v5901_v0  ;;  %v5908_v22 = vld [vmem:[#allocation8 + $0x48] ss:$12 sps:$4 sm:$0xff]  }
 0x174   : > { %v595_v28 = vmul.f32 0.0078125, %v564_v26  ;;  %v626_v29 = vmul.f32 %v7046_v24, %v7046_v24  ;;  %v597_v30 = vmul.f32 0.0078125, %v568_v27  ;;  %v628_v31 = vmul.f32 %v7048_v25, %v7048_v25  ;;  %5287 = vmatprep.subr.bf16.mxu1 %v5903_v1 }
 0x175   : > { %5288 = vmatpush3.bf16.msra.mxu1 %v5903_v1 }
 0x176   : > { %642 = vadd.xlane.f32.xlu0 %v626_v29  ;;  %v7054_v32 = vsub.f32 %v544_v2, %v595_v28  ;;  %v7056_v33 = vsub.f32 %v546_v3, %v597_v30  ;;  %5289 = vmatprep.subr.bf16.mxu1 %v5907_v19  ;;  %v5909_v29 = vld [vmem:[#allocation8 + $0x64] ss:$12 sps:$4 sm:$0xff]  }
 0x177   : > { %v570_v34 = vpop.xlane.xlu0 %569  ;;  %v572_v35 = vpop.xlane.xlu1 %571  ;;  %v5911_v30 = vld [vmem:[#allocation8 + $0x50] ss:$12 sps:$4 sm:$0xff]  }
 0x178   : > { %v598_v36 = vmul.f32 0.0078125, %v570_v34  ;;  %v627_v37 = vmul.f32 %v7054_v32, %v7054_v32  ;;  %v599_v38 = vmul.f32 0.0078125, %v572_v35  ;;  %v629_v39 = vmul.f32 %v7056_v33, %v7056_v33 }
 0x179   : > { %5290 = vmatpush3.bf16.msra.mxu1 %v5907_v19 }
 0x17a   : > { %646 = vadd.xlane.f32.xlu0 %v628_v31  ;;  %644 = vadd.xlane.f32.xlu1 %v627_v37  ;;  %v7062_v40 = vsub.f32 %v547_v4, %v598_v36  ;;  %v7064_v41 = vsub.f32 %v548_v5, %v599_v38  ;;  %v5912_v31 = vld [vmem:[#allocation8 + $0x60] ss:$12 sps:$4 sm:$0xff]   ;;  %v5915_v36 = vld [vmem:[#allocation8 + $0x68] ss:$12 sps:$4 sm:$0xff]   ;;  %v5916_v37 = vld [vmem:[#allocation8 + $0x78] ss:$12 sps:$4 sm:$0xff]  }
 0x17b   : > { %v574_v42 = vpop.xlane.xlu0 %573  ;;  %v576_v43 = vpop.xlane.xlu1 %575  ;;  %5291 = vmatprep.subr.bf16.mxu1 %v5911_v30  ;;  %v5919_v38 = vld [vmem:[#allocation8 + $0x80] ss:$12 sps:$4 sm:$0xff]  }
 0x17c   : > { %v600_v44 = vmul.f32 0.0078125, %v574_v42  ;;  %v630_v45 = vmul.f32 %v7062_v40, %v7062_v40  ;;  %v601_v46 = vmul.f32 0.0078125, %v576_v43  ;;  %v631_v47 = vmul.f32 %v7064_v41, %v7064_v41  ;;  %v5921_v42 = vld [vmem:[#allocation8 + $0xac] ss:$12 sps:$4 sm:$0xff]  }
 0x17d   : > { %5292 = vmatpush3.bf16.msra.mxu1 %v5911_v30  ;;  %v5923_v43 = vld [vmem:[#allocation8 + $0x98] ss:$12 sps:$4 sm:$0xff]  }
 0x17e   : > { %648 = vadd.xlane.f32.xlu1 %v629_v39  ;;  %650 = vadd.xlane.f32.xlu0 %v630_v45  ;;  %v7071_v48 = vsub.f32 %v7007_v6, %v600_v44  ;;  %v7074_v49 = vsub.f32 %v7010_v7, %v601_v46  ;;  %v5904_v7 = vld [vmem:[#allocation8 + $0x30] ss:$12 sps:$4 sm:$0xff]   ;;  %v5924_v44 = vld [vmem:[#allocation8 + $0xa8] ss:$12 sps:$4 sm:$0xff]   ;;  %v8853_v46 = vmov 0  }
 0x17f   : > { %v578_v50 = vpop.xlane.xlu0 %577  ;;  %v580_v51 = vpop.xlane.xlu1 %579  ;;  %972 = vmatpush1.bf16.msra.mxu0 %v5904_v7  ;;  %5293 = vmatprep.subr.bf16.mxu1 %v5915_v36  ;;  %v5920_v39 = vld [vmem:[#allocation8 + $0x90] ss:$12 sps:$4 sm:$0xff]  }
 0x180   : > { %v602_v52 = vmul.f32 0.0078125, %v578_v50  ;;  %v632_v53 = vmul.f32 %v7071_v48, %v7071_v48  ;;  %v603_v54 = vmul.f32 0.0078125, %v580_v51  ;;  %v633_v55 = vmul.f32 %v7074_v49, %v7074_v49  ;;  %973 = vmatprep.subr.bf16.mxu0 %v5905_v18  ;;  %v5925_v45 = vld [vmem:[#allocation8 + $0xb0] ss:$12 sps:$4 sm:$0xff]   ;;  %999 = vmatprep.mubr.bf16.mxu0 %v8853_v46 }
 0x181   : > { %5294 = vmatpush3.bf16.msra.mxu1 %v5915_v36 }
 0x182   : > { %652 = vadd.xlane.f32.xlu1 %v631_v47  ;;  %654 = vadd.xlane.f32.xlu0 %v632_v53  ;;  %v7081_v56 = vsub.f32 %v7013_v8, %v602_v52  ;;  %v7084_v57 = vsub.f32 %v7016_v9, %v603_v54 }
 0x183   : > { %v582_v59 = vpop.xlane.xlu0 %581  ;;  %v584_v60 = vpop.xlane.xlu1 %583  ;;  %974 = vmatpush1.bf16.msra.mxu0 %v5908_v22  ;;  %5295 = vmatprep.subr.bf16.mxu1 %v5919_v38  ;;  %v7122_v22 = vld [vmem:[#allocation5] ss:$0 sm:$0xff] }
 0x184   : > { %v604_v61 = vmul.f32 0.0078125, %v582_v59  ;;  %v634_v62 = vmul.f32 %v7081_v56, %v7081_v56  ;;  %v605_v63 = vmul.f32 0.0078125, %v584_v60  ;;  %v635_v2 = vmul.f32 %v7084_v57, %v7084_v57  ;;  %975 = vmatprep.subr.bf16.mxu0 %v5909_v29 }
 0x185   : > { %5296 = vmatpush3.bf16.msra.mxu1 %v5919_v38 }
 0x186   : > { %656 = vadd.xlane.f32.xlu1 %v633_v55  ;;  %658 = vadd.xlane.f32.xlu0 %v634_v62  ;;  %v7091_v3 = vsub.f32 %v7021_v10, %v604_v61  ;;  %v7094_v4 = vsub.f32 %v7024_v11, %v605_v63 }
 0x187   : > { %v586_v5 = vpop.xlane.xlu0 %585  ;;  %v588_v6 = vpop.xlane.xlu1 %587  ;;  %976 = vmatpush1.bf16.msra.mxu0 %v5912_v31  ;;  %5297 = vmatprep.subr.bf16.mxu1 %v5923_v43 }
 0x188   : > { %v606_v8 = vmul.f32 0.0078125, %v586_v5  ;;  %v636_v9 = vmul.f32 %v7091_v3, %v7091_v3  ;;  %v607_v16 = vmul.f32 0.0078125, %v588_v6  ;;  %v637_v10 = vmul.f32 %v7094_v4, %v7094_v4 }
 0x189   : > { %5298 = vmatpush3.bf16.msra.mxu1 %v5923_v43 }
 0x18a   : > { %660 = vadd.xlane.f32.xlu1 %v635_v2  ;;  %662 = vadd.xlane.f32.xlu0 %v636_v9  ;;  %v7101_v11 = vsub.f32 %v7029_v12, %v606_v8  ;;  %v7104_v17 = vsub.f32 %v7032_v13, %v607_v16 }
 0x18b   : > { %v590_v20 = vpop.xlane.xlu0 %589  ;;  %v592_v21 = vpop.xlane.xlu1 %591  ;;  %5299 = vmatprep.subr.bf16.mxu1 %v5925_v45 }
 0x18c   : > { %v608_v23 = vmul.f32 0.0078125, %v590_v20  ;;  %v638_v26 = vmul.f32 %v7101_v11, %v7101_v11  ;;  %v609_v27 = vmul.f32 0.0078125, %v592_v21  ;;  %v639_v12 = vmul.f32 %v7104_v17, %v7104_v17 }
 0x18d   : > { %5300 = vmatpush3.bf16.msra.mxu1 %v5925_v45 }
 0x18e   : > { %664 = vadd.xlane.f32.xlu1 %v637_v10  ;;  %666 = vadd.xlane.f32.xlu0 %v638_v26  ;;  %v7111_v13 = vsub.f32 %v7037_v14, %v608_v23  ;;  %v7114_v28 = vsub.f32 %v7040_v15, %v609_v27  ;;  %v5913_v14 = vld [vmem:[#allocation8 + $0x7c] ss:$12 sps:$4 sm:$0xff]   ;;  %v5917_v15 = vld [vmem:[#allocation8 + $0x94] ss:$12 sps:$4 sm:$0xff]  }
 0x18f   : > { %977 = vmatprep.subr.bf16.mxu0 %v5913_v14 }
 0x190   : > { %v640_v34 = vmul.f32 %v7111_v13, %v7111_v13  ;;  %v641_v35 = vmul.f32 %v7114_v28, %v7114_v28  ;;  %978 = vmatpush1.bf16.msra.mxu0 %v5916_v37 }
 0x191   : > { %979 = vmatprep.subr.bf16.mxu0 %v5917_v15 }
 0x192   : > { %668 = vadd.xlane.f32.xlu1 %v639_v12  ;;  %670 = vadd.xlane.f32.xlu0 %v640_v34 }
 0x194   : > { %980 = vmatpush1.bf16.msra.mxu0 %v5920_v39 }
 0x195   : > { %981 = vmatprep.subr.bf16.mxu0 %v5921_v42 }
 0x196   : > { %672 = vadd.xlane.f32.xlu1 %v641_v35 }
 0x198   : > { %982 = vmatpush1.bf16.msra.mxu0 %v5924_v44 }
 0x203   : > { %v643_v47 = vpop.xlane.xlu0 %642 }
 0x204   : > { %v674_v50 = vmul.f32 0.0078125, %v643_v47 }
 0x206   : > { %v690_v51 = vadd.f32 1e-05, %v674_v50 }
 0x207   : > { %v645_v52 = vpop.xlane.xlu1 %644  ;;  %v647_v53 = vpop.xlane.xlu0 %646 }
 0x208   : > { %6014 = vrsqrt.f32 %v690_v51  ;;  %v675_v54 = vmul.f32 0.0078125, %v645_v52  ;;  %v676_v55 = vmul.f32 0.0078125, %v647_v53 }
 0x20a   : > { %v691_v58 = vadd.f32 1e-05, %v675_v54  ;;  %v692_v59 = vadd.f32 1e-05, %v676_v55 }
 0x20b   : > { %v649_v60 = vpop.xlane.xlu1 %648  ;;  %v651_v61 = vpop.xlane.xlu0 %650 }
 0x20c   : > { %6016 = vrsqrt.f32 %v691_v58  ;;  %v677_v62 = vmul.f32 0.0078125, %v649_v60  ;;  %v678_v63 = vmul.f32 0.0078125, %v651_v61 }
 0x20d   : > { %6018 = vrsqrt.f32 %v692_v59 }
 0x20e   : > { %v693_v0 = vadd.f32 1e-05, %v677_v62  ;;  %v694_v1 = vadd.f32 1e-05, %v678_v63 }
 0x20f   : > { %v653_v2 = vpop.xlane.xlu1 %652  ;;  %v655_v5 = vpop.xlane.xlu0 %654 }
 0x210   : > { %6020 = vrsqrt.f32 %v693_v0  ;;  %v679_v6 = vmul.f32 0.0078125, %v653_v2  ;;  %v680_v7 = vmul.f32 0.0078125, %v655_v5 }
 0x211   : > { %6022 = vrsqrt.f32 %v694_v1 }
 0x212   : > { %v6015_v8 = vpop.eup %6014  ;;  %v695_v9 = vadd.f32 1e-05, %v679_v6  ;;  %v696_v16 = vadd.f32 1e-05, %v680_v7 }
 0x213   : > { %v657_v10 = vpop.xlane.xlu1 %656  ;;  %v659_v18 = vpop.xlane.xlu0 %658  ;;  %v722_v19 = vmul.f32 %v6015_v8, %v7046_v24  ;;  %v7126_v24 = vld [vmem:[#allocation7] ss:$0 sm:$0xff] }
 0x214   : > { %6024 = vrsqrt.f32 %v695_v9  ;;  %v681_v20 = vmul.f32 0.0078125, %v657_v10  ;;  %v682_v21 = vmul.f32 0.0078125, %v659_v18 }
 0x215   : > { %6026 = vrsqrt.f32 %v696_v16  ;;  %v744_v34 = vmul.f32 %v7122_v22, %v722_v19 }
 0x216   : > { %v6017_v23 = vpop.eup %6016  ;;  %v697_v26 = vadd.f32 1e-05, %v681_v20  ;;  %v698_v27 = vadd.f32 1e-05, %v682_v21 }
 0x217   : > { %v6019_v12 = vpop.eup %6018  ;;  %v661_v29 = vpop.xlane.xlu1 %660  ;;  %v723_v31 = vmul.f32 %v6017_v23, %v7054_v32  ;;  %v766_v45 = vadd.f32 %v7126_v24, %v744_v34 }
 0x218   : > { %v663_v30 = vpop.xlane.xlu0 %662  ;;  %6028 = vrsqrt.f32 %v697_v26  ;;  %v683_v35 = vmul.f32 0.0078125, %v661_v29  ;;  %v724_v36 = vmul.f32 %v6019_v12, %v7048_v25 }
 0x219   : > { %v684_v14 = vmul.f32 0.0078125, %v663_v30  ;;  %6030 = vrsqrt.f32 %v698_v27  ;;  %v745_v37 = vmul.f32 %v7122_v22, %v723_v31 }
 0x21a   : > { %v6021_v15 = vpop.eup %6020  ;;  %v699_v38 = vadd.f32 1e-05, %v683_v35  ;;  %v746_v42 = vmul.f32 %v7122_v22, %v724_v36 }
 0x21b   : > { %v700_v39 = vadd.f32 1e-05, %v684_v14  ;;  %v6023_v43 = vpop.eup %6022  ;;  %v665_v44 = vpop.xlane.xlu1 %664  ;;  %v767_v47 = vadd.f32 %v7126_v24, %v745_v37  ;;  %v725_v50 = vmul.f32 %v6021_v15, %v7056_v33 }
 0x21c   : > { %v667_v32 = vpop.xlane.xlu0 %666  ;;  %6032 = vrsqrt.f32 %v699_v38  ;;  %v685_v51 = vmul.f32 0.0078125, %v665_v44  ;;  %v726_v54 = vmul.f32 %v6023_v43, %v7062_v40  ;;  %v768_v60 = vadd.f32 %v7126_v24, %v746_v42 }
 0x21d   : > { %v686_v25 = vmul.f32 0.0078125, %v667_v32  ;;  %6034 = vrsqrt.f32 %v700_v39  ;;  %v782_v52 = vpack.c.bf16 %v767_v47, %v766_v45  ;;  %v747_v53 = vmul.f32 %v7122_v22, %v725_v50 }
 0x21e   : > { %v6025_v55 = vpop.eup %6024  ;;  %v701_v58 = vadd.f32 1e-05, %v685_v51  ;;  %v748_v1 = vmul.f32 %v7122_v22, %v726_v54 }
 0x21f   : > { %v702_v59 = vadd.f32 1e-05, %v686_v25  ;;  %v6027_v61 = vpop.eup %6026  ;;  %v669_v62 = vpop.xlane.xlu1 %668  ;;  %1000 = vmatmul.mubr.bf16.vlgmr.msra.gmra.mrb[0].mxu0 %v782_v52  ;;  %5301 = vmatprep.mubr.bf16.mxu1 %v782_v52  ;;  %v769_v33 = vadd.f32 %v7126_v24, %v747_v53  ;;  %v727_v0 = vmul.f32 %v6025_v55, %v7064_v41 }
 0x220   : > { %v671_v63 = vpop.xlane.xlu0 %670  ;;  %6036 = vrsqrt.f32 %v701_v58  ;;  %v687_v2 = vmul.f32 0.0078125, %v669_v62  ;;  %1009 = vmatprep.mubr.bf16.mxu0 %v8853_v46  ;;  %v728_v40 = vmul.f32 %v6027_v61, %v7071_v48  ;;  %v770_v19 = vadd.f32 %v7126_v24, %v748_v1 }
 0x221   : > { %v688_v5 = vmul.f32 0.0078125, %v671_v63  ;;  %6038 = vrsqrt.f32 %v702_v59  ;;  %v783_v6 = vpack.c.bf16 %v769_v33, %v768_v60  ;;  %v749_v7 = vmul.f32 %v7122_v22, %v727_v0 }
 0x222   : > { %v6029_v8 = vpop.eup %6028  ;;  %v703_v9 = vadd.f32 1e-05, %v687_v2  ;;  %v750_v10 = vmul.f32 %v7122_v22, %v728_v40 }
 0x223   : > { %v704_v16 = vadd.f32 1e-05, %v688_v5  ;;  %v6031_v18 = vpop.eup %6030  ;;  %v673_v41 = vpop.xlane.xlu1 %672  ;;  %5302 = vmatmul.mubr.bf16.vlgmr.msra.gmra.mrb[0].mxu1 %v783_v6  ;;  %v771_v20 = vadd.f32 %v7126_v24, %v749_v7  ;;  %v729_v21 = vmul.f32 %v6029_v8, %v7074_v49 }
 0x224   : > { %6040 = vrsqrt.f32 %v703_v9  ;;  %v689_v48 = vmul.f32 0.0078125, %v673_v41  ;;  %v730_v23 = vmul.f32 %v6031_v18, %v7081_v56  ;;  %v772_v30 = vadd.f32 %v7126_v24, %v750_v10 }
 0x225   : > { %6042 = vrsqrt.f32 %v704_v16  ;;  %v784_v26 = vpack.c.bf16 %v771_v20, %v770_v19  ;;  %v751_v27 = vmul.f32 %v7122_v22, %v729_v21 }
 0x226   : > { %v6033_v12 = vpop.eup %6032  ;;  %v705_v29 = vadd.f32 1e-05, %v689_v48  ;;  %v752_v49 = vmul.f32 %v7122_v22, %v730_v23 }
 0x227   : > { %v6035_v31 = vpop.eup %6034  ;;  %1010 = vmatmul.mubr.bf16.gmra.mrb[4].mxu0 %v783_v6  ;;  %5305 = vmatprep.mubr.bf16.mxu1 %v784_v26  ;;  %v773_v34 = vadd.f32 %v7126_v24, %v751_v27  ;;  %v731_v35 = vmul.f32 %v6033_v12, %v7084_v57 }
 0x228   : > { %6044 = vrsqrt.f32 %v705_v29  ;;  %1019 = vmatprep.mubr.bf16.mxu0 %v8853_v46  ;;  %v732_v56 = vmul.f32 %v6035_v31, %v7091_v3  ;;  %v774_v39 = vadd.f32 %v7126_v24, %v752_v49 }
 0x229   : > { %v785_v14 = vpack.c.bf16 %v773_v34, %v772_v30  ;;  %v753_v36 = vmul.f32 %v7122_v22, %v731_v35 }
 0x22a   : > { %v6037_v37 = vpop.eup %6036  ;;  %v754_v15 = vmul.f32 %v7122_v22, %v732_v56 }
 0x22b   : > { %v6039_v38 = vpop.eup %6038  ;;  %5306 = vmatmul.mubr.bf16.gmra.mrb[4].mxu1 %v785_v14  ;;  %v775_v42 = vadd.f32 %v7126_v24, %v753_v36  ;;  %v733_v57 = vmul.f32 %v6037_v37, %v7094_v4 }
 0x22c   : > { %v734_v43 = vmul.f32 %v6039_v38, %v7101_v11  ;;  %v776_v45 = vadd.f32 %v7126_v24, %v754_v15 }
 0x22d   : > { %v786_v44 = vpack.c.bf16 %v775_v42, %v774_v39  ;;  %v755_v32 = vmul.f32 %v7122_v22, %v733_v57 }
 0x22e   : > { %v6041_v3 = vpop.eup %6040  ;;  %v756_v25 = vmul.f32 %v7122_v22, %v734_v43 }
 0x22f   : > { %v6043_v47 = vpop.eup %6042  ;;  %1020 = vmatmul.mubr.bf16.gmra.mrb[8].mxu0 %v784_v26  ;;  %5309 = vmatprep.mubr.bf16.mxu1 %v786_v44  ;;  %v777_v50 = vadd.f32 %v7126_v24, %v755_v32  ;;  %v735_v51 = vmul.f32 %v6041_v3, %v7104_v17 }
 0x230   : > { %1029 = vmatprep.mubr.bf16.mxu0 %v8853_v46  ;;  %v736_v4 = vmul.f32 %v6043_v47, %v7111_v13  ;;  %v778_v54 = vadd.f32 %v7126_v24, %v756_v25 }
 0x231   : > { %v787_v11 = vpack.c.bf16 %v777_v50, %v776_v45  ;;  %v757_v52 = vmul.f32 %v7122_v22, %v735_v51 }
 0x232   : > { %v6045_v53 = vpop.eup %6044  ;;  %v758_v59 = vmul.f32 %v7122_v22, %v736_v4 }
 0x233   : > { %5310 = vmatmul.mubr.bf16.gmra.mrb[8].mxu1 %v787_v11  ;;  %v779_v55 = vadd.f32 %v7126_v24, %v757_v52  ;;  %v737_v58 = vmul.f32 %v6045_v53, %v7114_v28  ;;  %v824_v28 = vlaneseq }
 0x234   : > { %v780_v13 = vadd.f32 %v7126_v24, %v758_v59 }
 0x235   : > { %v788_v17 = vpack.c.bf16 %v779_v55, %v778_v54  ;;  %v759_v60 = vmul.f32 %v7122_v22, %v737_v58  ;;  %v7180_v22 = vshrl.u32 %v824_v28, 7 }
 0x237   : > { %1030 = vmatmul.mubr.bf16.gmra.mrb[12].mxu0 %v785_v14  ;;  %5313 = vmatprep.mubr.bf16.mxu1 %v788_v17  ;;  %v781_v61 = vadd.f32 %v7126_v24, %v759_v60  ;;  %8937 = vst [vmem:[#allocation20_spill] sm:$0xff] %v7180_v22  ;;  %v8852_v63 = vsub.s32 0, %v7180_v22  ;;  %v822_v24 = vld [vmem:[%s8836_s4] sm:$0x7]  ;;  %v8850_v33 = vsub.s32 1, %v7180_v22  ;;  %v8851_v1 = vsub.s32 2, %v7180_v22 }
 0x238   : > { %1039 = vmatprep.mubr.bf16.mxu0 %v8853_v46 }
 0x239   : > { %v789_v62 = vpack.c.bf16 %v781_v61, %v780_v13  ;;  %v7189_v0 = vrot.slane %v822_v24, %v8852_v63  ;;  %v7194_v5 = vrot.slane %v822_v24, %v8850_v33  ;;  %v7200_v16 = vrot.slane %v822_v24, %v8851_v1 }
 0x23b   : > { %5314 = vmatmul.mubr.bf16.gmra.mrb[12].mxu1 %v789_v62 }
 0x23f   : > { %1040 = vmatmul.mubr.bf16.gmra.mrb[16].mxu0 %v786_v44 }
 0x240   : > { %1049 = vmatprep.mubr.bf16.mxu0 %v8853_v46 }
 0x247   : > { %1050 = vmatmul.mubr.bf16.gmra.mrb[20].mxu0 %v787_v11 }
 0x248   : > { %1059 = vmatprep.mubr.bf16.mxu0 %v8853_v46 }
 0x24f   : > { %1060 = vmatmul.mubr.bf16.gmra.mrb[24].mxu0 %v788_v17 }
 0x250   : > { %1069 = vmatprep.mubr.bf16.mxu0 %v8853_v46 }
 0x257   : > { %1070 = vmatmul.mubr.bf16.gmra.mrb[28].mxu0 %v789_v62 }
 0x2f2   : > { %v1001_v2 = vpop.f32.mrb[0].mxu0 }
 0x2f3   : > { %v1003_v40 = vpop.f32.mrb[1].mxu0  ;;  %v1002_v7 = vadd.f32 %v1001_v2, %v7189_v0 }
 0x2f4   : > { %v1005_v6 = vpop.f32.mrb[2].mxu0  ;;  %v1004_v10 = vadd.f32 %v1003_v40, %v7194_v5 }
 0x2f5   : > { %v1006_v8 = vadd.f32 %v1005_v6, %v7189_v0  ;;  %v1007_v9 = vpop.f32.mrb[3].mxu0 }
 0x2f6   : > { %v1008_v18 = vadd.f32 %v1007_v9, %v7194_v5  ;;  %v5303_v41 = vpop.f32.mrb[0].mxu1 }
 0x2f7   : > { %v7204_v19 = vpack.c.bf16 %v1006_v8, %v1002_v7  ;;  %v1114_v20 = vpop.f32.mrb[1].mxu1  ;;  %v1123_v23 = vadd.f32 %v5303_v41, %v7200_v16 }
 0x2f8   : > { %v7206_v21 = vpack.c.bf16 %v1008_v18, %v1004_v10  ;;  %v5304_v48 = vpop.f32.mrb[2].mxu1  ;;  %v1115_v12 = vadd.f32 %v1114_v20, %v7200_v16 }
 0x2f9   : > { %v1126_v26 = vadd.f32 %v5304_v48, %v7200_v16  ;;  %v1117_v27 = vpop.f32.mrb[3].mxu1  ;;  %5333 = vmatprep.mubr.msk.bf16.mxu0 %vm1393_vm0, %v7204_v19 }
 0x2fa   : > { %v1118_v29 = vadd.f32 %v1117_v27, %v7200_v16  ;;  %1265 = vrot.lane.b32.xlu0 %v7206_v21, %s6644_s29  ;;  %v1011_v30 = vpop.f32.mrb[4].mxu0  ;;  %5621 = vmatprep.subr.msk.bf16.mxu0 %vm1393_vm0, %v7206_v21  ;;  %v1419_v31 = vsel %vm1393_vm0, %v7206_v21, 0 }
 0x2fb   : > { %v7220_v34 = vpack.c.bf16 %v1126_v26, %v1123_v23  ;;  %v1012_v35 = vadd.f32 %v1011_v30, %v7189_v0  ;;  %v1013_v49 = vpop.f32.mrb[5].mxu0  ;;  %5318 = vmatpush3.bf16.xpose.msra.mxu0 %v1419_v31 }
 0x2fc   : > { %v7223_v56 = vpack.c.bf16 %v1118_v29, %v1115_v12  ;;  %v1015_v14 = vpop.f32.mrb[6].mxu0  ;;  %v1014_v15 = vadd.f32 %v1013_v49, %v7194_v5 }
 0x2fd   : > { %v1016_v36 = vadd.f32 %v1015_v14, %v7189_v0  ;;  %v1017_v37 = vpop.f32.mrb[7].mxu0 }
 0x2fe   : > { %v1018_v38 = vadd.f32 %v1017_v37, %v7194_v5  ;;  %v5307_v39 = vpop.f32.mrb[4].mxu1 }
 0x2ff   : > { %v7228_v42 = vpack.c.bf16 %v1016_v36, %v1012_v35  ;;  %v1130_v57 = vpop.f32.mrb[5].mxu1  ;;  %v1139_v32 = vadd.f32 %v5307_v39, %v7200_v16 }
 0x300   : > { %v7230_v43 = vpack.c.bf16 %v1018_v38, %v1014_v15  ;;  %v5308_v44 = vpop.f32.mrb[6].mxu1  ;;  %v1131_v47 = vadd.f32 %v1130_v57, %v7200_v16 }
 0x301   : > { %v1142_v3 = vadd.f32 %v5308_v44, %v7200_v16  ;;  %v1133_v45 = vpop.f32.mrb[7].mxu1 }
 0x302   : > { %v1134_v50 = vadd.f32 %v1133_v45, %v7200_v16  ;;  %1267 = vrot.lane.b32.xlu1 %v7230_v43, %s6644_s29  ;;  %v1021_v51 = vpop.f32.mrb[8].mxu0  ;;  %5622 = vmatprep.subr.msk.bf16.mxu0 %vm1393_vm0, %v7230_v43  ;;  %v1422_v25 = vsel %vm1393_vm0, %v7230_v43, 0 }
 0x303   : > { %v7242_v4 = vpack.c.bf16 %v1142_v3, %v1139_v32  ;;  %v1022_v11 = vadd.f32 %v1021_v51, %v7189_v0  ;;  %v1023_v52 = vpop.f32.mrb[9].mxu0  ;;  %5320 = vmatpush3.bf16.xpose.msra.mxu0 %v1422_v25 }
 0x304   : > { %v7245_v53 = vpack.c.bf16 %v1134_v50, %v1131_v47  ;;  %v1025_v54 = vpop.f32.mrb[10].mxu0  ;;  %v1024_v59 = vadd.f32 %v1023_v52, %v7194_v5 }
 0x305   : > { %v1026_v55 = vadd.f32 %v1025_v54, %v7189_v0  ;;  %v1027_v58 = vpop.f32.mrb[11].mxu0 }
 0x306   : > { %v1028_v17 = vadd.f32 %v1027_v58, %v7194_v5  ;;  %v5311_v60 = vpop.f32.mrb[8].mxu1 }
 0x307   : > { %v7250_v13 = vpack.c.bf16 %v1026_v55, %v1022_v11  ;;  %v1146_v61 = vpop.f32.mrb[9].mxu1  ;;  %v1155_v24 = vadd.f32 %v5311_v60, %v7200_v16 }
 0x308   : > { %v7252_v62 = vpack.c.bf16 %v1028_v17, %v1024_v59  ;;  %v5312_v28 = vpop.f32.mrb[10].mxu1  ;;  %v1147_v6 = vadd.f32 %v1146_v61, %v7200_v16 }
 0x309   : > { %v1158_v2 = vadd.f32 %v5312_v28, %v7200_v16  ;;  %v1149_v40 = vpop.f32.mrb[11].mxu1 }
 0x30a   : > { %v1150_v7 = vadd.f32 %v1149_v40, %v7200_v16  ;;  %1269 = vrot.lane.b32.xlu1 %v7252_v62, %s6644_s29  ;;  %v1031_v8 = vpop.f32.mrb[12].mxu0  ;;  %5623 = vmatprep.subr.msk.bf16.mxu0 %vm1393_vm0, %v7252_v62  ;;  %v1425_v9 = vsel %vm1393_vm0, %v7252_v62, 0 }
 0x30b   : > { %v7264_v10 = vpack.c.bf16 %v1158_v2, %v1155_v24  ;;  %v1032_v18 = vadd.f32 %v1031_v8, %v7189_v0  ;;  %v1033_v41 = vpop.f32.mrb[13].mxu0  ;;  %5322 = vmatpush3.bf16.xpose.msra.mxu0 %v1425_v9 }
 0x30c   : > { %v7267_v20 = vpack.c.bf16 %v1150_v7, %v1147_v6  ;;  %v1035_v48 = vpop.f32.mrb[14].mxu0  ;;  %v1034_v27 = vadd.f32 %v1033_v41, %v7194_v5 }
 0x30d   : > { %v1036_v23 = vadd.f32 %v1035_v48, %v7189_v0  ;;  %v1037_v26 = vpop.f32.mrb[15].mxu0 }
 0x30e   : > { %v1038_v12 = vadd.f32 %v1037_v26, %v7194_v5  ;;  %v5315_v29 = vpop.f32.mrb[12].mxu1 }
 0x30f   : > { %v7272_v30 = vpack.c.bf16 %v1036_v23, %v1032_v18  ;;  %v1162_v31 = vpop.f32.mrb[13].mxu1  ;;  %v1171_v14 = vadd.f32 %v5315_v29, %v7200_v16 }
 0x310   : > { %v7274_v35 = vpack.c.bf16 %v1038_v12, %v1034_v27  ;;  %v5316_v49 = vpop.f32.mrb[14].mxu1  ;;  %v1163_v15 = vadd.f32 %v1162_v31, %v7200_v16 }
 0x311   : > { %v1174_v36 = vadd.f32 %v5316_v49, %v7200_v16  ;;  %v1165_v37 = vpop.f32.mrb[15].mxu1 }
 0x312   : > { %v1166_v38 = vadd.f32 %v1165_v37, %v7200_v16  ;;  %1271 = vrot.lane.b32.xlu1 %v7274_v35, %s6644_s29  ;;  %v1041_v39 = vpop.f32.mrb[16].mxu0  ;;  %5624 = vmatprep.subr.msk.bf16.mxu0 %vm1393_vm0, %v7274_v35  ;;  %v1428_v57 = vsel %vm1393_vm0, %v7274_v35, 0 }
 0x313   : > { %v7286_v44 = vpack.c.bf16 %v1174_v36, %v1171_v14  ;;  %v1042_v32 = vadd.f32 %v1041_v39, %v7189_v0  ;;  %v1043_v3 = vpop.f32.mrb[17].mxu0  ;;  %5324 = vmatpush3.bf16.xpose.msra.mxu0 %v1428_v57 }
 0x314   : > { %v7289_v45 = vpack.c.bf16 %v1166_v38, %v1163_v15  ;;  %v1045_v47 = vpop.f32.mrb[18].mxu0  ;;  %v1044_v51 = vadd.f32 %v1043_v3, %v7194_v5 }
 0x315   : > { %8938 = vst [vmem:[#allocation21_spill] sm:$0xff] %v7286_v44  ;;  %v1046_v16 = vadd.f32 %v1045_v47, %v7189_v0  ;;  %v1047_v50 = vpop.f32.mrb[19].mxu0 }
 0x316   : > { %v1048_v25 = vadd.f32 %v1047_v50, %v7194_v5 }
 0x317   : > { %v7294_v11 = vpack.c.bf16 %v1046_v16, %v1042_v32 }
 0x318   : > { %v7296_v52 = vpack.c.bf16 %v1048_v25, %v1044_v51 }
 0x31a   : > { %1273 = vrot.lane.b32.xlu0 %v7296_v52, %s6644_s29  ;;  %v1051_v54 = vpop.f32.mrb[20].mxu0  ;;  %5625 = vmatprep.subr.msk.bf16.mxu0 %vm1393_vm0, %v7296_v52  ;;  %v1431_v55 = vsel %vm1393_vm0, %v7296_v52, 0 }
 0x31b   : > { %v1052_v58 = vadd.f32 %v1051_v54, %v7189_v0  ;;  %v1053_v59 = vpop.f32.mrb[21].mxu0  ;;  %5326 = vmatpush3.bf16.xpose.msra.mxu0 %v1431_v55 }
 0x31c   : > { %v1055_v17 = vpop.f32.mrb[22].mxu0  ;;  %v1054_v28 = vadd.f32 %v1053_v59, %v7194_v5 }
 0x31d   : > { %v1056_v60 = vadd.f32 %v1055_v17, %v7189_v0  ;;  %v1057_v61 = vpop.f32.mrb[23].mxu0 }
 0x31e   : > { %v1058_v24 = vadd.f32 %v1057_v61, %v7194_v5 }
 0x31f   : > { %v7308_v2 = vpack.c.bf16 %v1056_v60, %v1052_v58 }
 0x320   : > { %v1193_v40 = vpack.c.bf16 %v1058_v24, %v1054_v28 }
 0x322   : > { %1275 = vrot.lane.b32.xlu1 %v1193_v40, %s6644_s29  ;;  %v1061_v6 = vpop.f32.mrb[24].mxu0  ;;  %5626 = vmatprep.subr.msk.bf16.mxu0 %vm1393_vm0, %v1193_v40  ;;  %v1434_v7 = vsel %vm1393_vm0, %v1193_v40, 0 }
 0x323   : > { %v1062_v8 = vadd.f32 %v1061_v6, %v7189_v0  ;;  %v1063_v9 = vpop.f32.mrb[25].mxu0  ;;  %5328 = vmatpush3.bf16.xpose.msra.mxu0 %v1434_v7 }
 0x324   : > { %v1065_v18 = vpop.f32.mrb[26].mxu0  ;;  %v1064_v23 = vadd.f32 %v1063_v9, %v7194_v5 }
 0x325   : > { %v1066_v41 = vadd.f32 %v1065_v18, %v7189_v0  ;;  %v1067_v48 = vpop.f32.mrb[27].mxu0 }
 0x326   : > { %v1068_v26 = vadd.f32 %v1067_v48, %v7194_v5 }
 0x327   : > { %v7317_v27 = vpack.c.bf16 %v1066_v41, %v1062_v8 }
 0x328   : > { %v1196_v12 = vpack.c.bf16 %v1068_v26, %v1064_v23 }
 0x32a   : > { %1277 = vrot.lane.b32.xlu0 %v1196_v12, %s6644_s29  ;;  %v1071_v29 = vpop.f32.mrb[28].mxu0  ;;  %5627 = vmatprep.subr.msk.bf16.mxu0 %vm1393_vm0, %v1196_v12  ;;  %v1437_v31 = vsel %vm1393_vm0, %v1196_v12, 0 }
 0x32b   : > { %v1072_v49 = vadd.f32 %v1071_v29, %v7189_v0  ;;  %v1073_v14 = vpop.f32.mrb[29].mxu0  ;;  %5330 = vmatpush3.bf16.xpose.msra.mxu0 %v1437_v31 }
 0x32c   : > { %v1075_v36 = vpop.f32.mrb[30].mxu0  ;;  %v1074_v38 = vadd.f32 %v1073_v14, %v7194_v5 }
 0x32d   : > { %v1076_v37 = vadd.f32 %v1075_v36, %v7189_v0  ;;  %v1077_v15 = vpop.f32.mrb[31].mxu0 }
 0x32e   : > { %v1078_v39 = vadd.f32 %v1077_v15, %v7194_v5  ;;  %1281 = vrot.lane.b32.xlu0 %v7206_v21, %s6645_s21 }
 0x32f   : > { %v7328_v57 = vpack.c.bf16 %v1076_v37, %v1072_v49 }
 0x330   : > { %v1199_v32 = vpack.c.bf16 %v1078_v39, %v1074_v38 }
 0x332   : > { %1297 = vrot.lane.b32.xlu0 %v7206_v21, %s6646_s22  ;;  %1279 = vrot.lane.b32.xlu1 %v1199_v32, %s6644_s29  ;;  %v1440_v0 = vsel %vm1393_vm0, %v1199_v32, 0 }
 0x333   : > { %5628 = vmatprep.subr.msk.bf16.mxu0 %vm1393_vm0, %v1199_v32 }
 0x334   : > { %5332 = vmatpush3.bf16.xpose.msra.mxu0 %v1440_v0 }
 0x336   : > { %1283 = vrot.lane.b32.xlu0 %v7230_v43, %s6645_s21  ;;  %1209 = vrot.lane.b32.xlu1 %v7204_v19, %s6644_s29 }
 0x33a   : > { %1285 = vrot.lane.b32.xlu0 %v7252_v62, %s6645_s21  ;;  %1211 = vrot.lane.b32.xlu1 %v7228_v42, %s6644_s29 }
 0x33b   : > { %5334 = vmatmul.mubr.msk.bf16.vlgmr.msra.gmra.mrb[32].mxu0 %vm1393_vm0, %v7228_v42 }
 0x33c   : > { %5337 = vmatprep.mubr.msk.bf16.mxu0 %vm1393_vm0, %v7250_v13 }
 0x33e   : > { %1287 = vrot.lane.b32.xlu0 %v7274_v35, %s6645_s21  ;;  %1299 = vrot.lane.b32.xlu1 %v7230_v43, %s6646_s22 }
 0x342   : > { %1289 = vrot.lane.b32.xlu0 %v7296_v52, %s6645_s21  ;;  %1301 = vrot.lane.b32.xlu1 %v7252_v62, %s6646_s22 }
 0x343   : > { %5338 = vmatmul.mubr.msk.bf16.gmra.mrb[36].mxu0 %vm1393_vm0, %v7272_v30 }
 0x344   : > { %5341 = vmatprep.mubr.msk.bf16.mxu0 %vm1393_vm0, %v7294_v11 }
 0x346   : > { %1213 = vrot.lane.b32.xlu0 %v7250_v13, %s6644_s29  ;;  %1303 = vrot.lane.b32.xlu1 %v7274_v35, %s6646_s22 }
 0x34a   : > { %1215 = vrot.lane.b32.xlu0 %v7272_v30, %s6644_s29  ;;  %1305 = vrot.lane.b32.xlu1 %v7296_v52, %s6646_s22 }
 0x34b   : > { %5342 = vmatmul.mubr.msk.bf16.gmra.mrb[40].mxu0 %vm1393_vm0, %v7308_v2 }
 0x34c   : > { %5345 = vmatprep.mubr.msk.bf16.mxu0 %vm1393_vm0, %v7317_v27 }
 0x34e   : > { %1217 = vrot.lane.b32.xlu0 %v7294_v11, %s6644_s29  ;;  %1291 = vrot.lane.b32.xlu1 %v1193_v40, %s6645_s21 }
 0x352   : > { %1219 = vrot.lane.b32.xlu0 %v7308_v2, %s6644_s29  ;;  %1307 = vrot.lane.b32.xlu1 %v1193_v40, %s6646_s22 }
 0x353   : > { %5346 = vmatmul.mubr.msk.bf16.gmra.mrb[44].mxu0 %vm1393_vm0, %v7328_v57 }
 0x356   : > { %1221 = vrot.lane.b32.xlu0 %v7317_v27, %s6644_s29  ;;  %1293 = vrot.lane.b32.xlu1 %v1196_v12, %s6645_s21 }
 0x35a   : > { %1309 = vrot.lane.b32.xlu1 %v1196_v12, %s6646_s22  ;;  %1223 = vrot.lane.b32.xlu0 %v7328_v57, %s6644_s29 }
 0x35e   : > { %1295 = vrot.lane.b32.xlu1 %v1199_v32, %s6645_s21  ;;  %1225 = vrot.lane.b32.xlu0 %v7204_v19, %s6645_s21 }
 0x362   : > { %1311 = vrot.lane.b32.xlu1 %v1199_v32, %s6646_s22  ;;  %1241 = vrot.lane.b32.xlu0 %v7204_v19, %s6646_s22 }
 0x366   : > { %1227 = vrot.lane.b32.xlu1 %v7228_v42, %s6645_s21  ;;  %1229 = vrot.lane.b32.xlu0 %v7250_v13, %s6645_s21 }
 0x36a   : > { %1243 = vrot.lane.b32.xlu1 %v7228_v42, %s6646_s22  ;;  %1245 = vrot.lane.b32.xlu0 %v7250_v13, %s6646_s22 }
 0x36c   : > { %v1266_v5 = vpop.permute.xlu0 %1265 }
 0x36d   : > { %5629 = vmatprep.subr.msk.bf16.mxu1 %vm1393_vm0, %v1266_v5  ;;  %v1564_v21 = vsel %vm1393_vm0, %v1266_v5, 0 }
 0x36e   : > { %1231 = vrot.lane.b32.xlu1 %v7272_v30, %s6645_s21  ;;  %1233 = vrot.lane.b32.xlu0 %v7294_v11, %s6645_s21 }
 0x36f   : > { %5350 = vmatpush3.bf16.xpose.msra.mxu1 %v1564_v21 }
 0x372   : > { %1247 = vrot.lane.b32.xlu1 %v7272_v30, %s6646_s22  ;;  %1249 = vrot.lane.b32.xlu0 %v7294_v11, %s6646_s22 }
 0x374   : > { %v1268_v19 = vpop.permute.xlu1 %1267 }
 0x375   : > { %5630 = vmatprep.subr.msk.bf16.mxu1 %vm1393_vm0, %v1268_v19  ;;  %v1567_v42 = vsel %vm1393_vm0, %v1268_v19, 0 }
 0x376   : > { %1235 = vrot.lane.b32.xlu1 %v7308_v2, %s6645_s21  ;;  %1237 = vrot.lane.b32.xlu0 %v7317_v27, %s6645_s21 }
 0x377   : > { %5352 = vmatpush3.bf16.xpose.msra.mxu1 %v1567_v42 }
 0x37a   : > { %1251 = vrot.lane.b32.xlu1 %v7308_v2, %s6646_s22  ;;  %1253 = vrot.lane.b32.xlu0 %v7317_v27, %s6646_s22 }
 0x37c   : > { %v1270_v43 = vpop.permute.xlu1 %1269 }
 0x37d   : > { %5631 = vmatprep.subr.msk.bf16.mxu1 %vm1393_vm0, %v1270_v43  ;;  %v1570_v13 = vsel %vm1393_vm0, %v1270_v43, 0 }
 0x37e   : > { %1239 = vrot.lane.b32.xlu1 %v7328_v57, %s6645_s21  ;;  %1321 = vrot.lane.b32.xlu0 %v7223_v56, %s6644_s29 }
 0x37f   : > { %5354 = vmatpush3.bf16.xpose.msra.mxu1 %v1570_v13 }
 0x382   : > { %1255 = vrot.lane.b32.xlu1 %v7328_v57, %s6646_s22  ;;  %1327 = vrot.lane.b32.xlu0 %v7242_v4, %s6644_s29 }
 0x384   : > { %v1272_v62 = vpop.permute.xlu1 %1271 }
 0x385   : > { %5632 = vmatprep.subr.msk.bf16.mxu1 %vm1393_vm0, %v1272_v62  ;;  %v1573_v30 = vsel %vm1393_vm0, %v1272_v62, 0 }
 0x386   : > { %1323 = vrot.lane.b32.xlu1 %v7220_v34, %s6644_s29  ;;  %1333 = vrot.lane.b32.xlu0 %v7289_v45, %s6644_s29 }
 0x387   : > { %5356 = vmatpush3.bf16.xpose.msra.mxu1 %v1573_v30 }
 0x38a   : > { %1325 = vrot.lane.b32.xlu1 %v7245_v53, %s6644_s29  ;;  %1345 = vrot.lane.b32.xlu0 %v7223_v56, %s6645_s21 }
 0x38c   : > { %v1274_v35 = vpop.permute.xlu0 %1273 }
 0x38d   : > { %5633 = vmatprep.subr.msk.bf16.mxu1 %vm1393_vm0, %v1274_v35  ;;  %v1576_v3 = vsel %vm1393_vm0, %v1274_v35, 0 }
 0x38e   : > { %1329 = vrot.lane.b32.xlu1 %v7267_v20, %s6644_s29  ;;  %1347 = vrot.lane.b32.xlu0 %v7220_v34, %s6645_s21 }
 0x38f   : > { %5358 = vmatpush3.bf16.xpose.msra.mxu1 %v1576_v3 }
 0x392   : > { %1331 = vrot.lane.b32.xlu1 %v7264_v10, %s6644_s29  ;;  %1349 = vrot.lane.b32.xlu0 %v7245_v53, %s6645_s21 }
 0x394   : > { %v1276_v47 = vpop.permute.xlu1 %1275 }
 0x395   : > { %5634 = vmatprep.subr.msk.bf16.mxu1 %vm1393_vm0, %v1276_v47  ;;  %v1579_v16 = vsel %vm1393_vm0, %v1276_v47, 0 }
 0x396   : > { %1335 = vrot.lane.b32.xlu1 %v7286_v44, %s6644_s29  ;;  %1351 = vrot.lane.b32.xlu0 %v7242_v4, %s6645_s21 }
 0x397   : > { %5360 = vmatpush3.bf16.xpose.msra.mxu1 %v1579_v16 }
 0x39a   : > { %1369 = vrot.lane.b32.xlu1 %v7223_v56, %s6646_s22  ;;  %1353 = vrot.lane.b32.xlu0 %v7267_v20, %s6645_s21 }
 0x39c   : > { %v1278_v50 = vpop.permute.xlu0 %1277 }
 0x39d   : > { %5635 = vmatprep.subr.msk.bf16.mxu1 %vm1393_vm0, %v1278_v50  ;;  %v1582_v51 = vsel %vm1393_vm0, %v1278_v50, 0 }
 0x39e   : > { %1371 = vrot.lane.b32.xlu1 %v7220_v34, %s6646_s22  ;;  %1355 = vrot.lane.b32.xlu0 %v7264_v10, %s6645_s21 }
 0x39f   : > { %5362 = vmatpush3.bf16.xpose.msra.mxu1 %v1582_v51 }
 0x3a0   : > { %v1282_v25 = vpop.permute.xlu0 %1281 }
 0x3a1   : > { %5637 = vmatprep.subr.msk.bf16.mxu0 %vm1393_vm0, %v1282_v25  ;;  %v1709_v11 = vsel %vm1393_vm0, %v1282_v25, 0 }
 0x3a2   : > { %1373 = vrot.lane.b32.xlu1 %v7245_v53, %s6646_s22  ;;  %1357 = vrot.lane.b32.xlu0 %v7289_v45, %s6645_s21 }
 0x3a3   : > { %5382 = vmatpush3.bf16.xpose.msra.mxu0 %v1709_v11 }
 0x3a4   : > { %v1280_v52 = vpop.permute.xlu1 %1279  ;;  %v1298_v54 = vpop.permute.xlu0 %1297 }
 0x3a5   : > { %5636 = vmatprep.subr.msk.bf16.mxu1 %vm1393_vm0, %v1280_v52  ;;  %v1585_v55 = vsel %vm1393_vm0, %v1280_v52, 0  ;;  %v1854_v28 = vsel %vm1393_vm0, %v1298_v54, 0 }
 0x3a6   : > { %1375 = vrot.lane.b32.xlu1 %v7242_v4, %s6646_s22 }
 0x3a7   : > { %5364 = vmatpush3.bf16.xpose.msra.mxu1 %v1585_v55 }
 0x3a8   : > { %5645 = vmatprep.subr.msk.bf16.mxu1 %vm1393_vm0, %v1298_v54  ;;  %v1210_v58 = vpop.permute.xlu1 %1209  ;;  %v1284_v59 = vpop.permute.xlu0 %1283 }
 0x3a9   : > { %5365 = vmatprep.mubr.msk.bf16.mxu1 %vm1393_vm0, %v1210_v58  ;;  %5638 = vmatprep.subr.msk.bf16.mxu0 %vm1393_vm0, %v1284_v59  ;;  %v1712_v17 = vsel %vm1393_vm0, %v1284_v59, 0 }
 0x3aa   : > { %1377 = vrot.lane.b32.xlu1 %v7267_v20, %s6646_s22 }
 0x3ab   : > { %5384 = vmatpush3.bf16.xpose.msra.mxu0 %v1712_v17 }
 0x3ac   : > { %v1212_v60 = vpop.permute.xlu1 %1211  ;;  %v1286_v61 = vpop.permute.xlu0 %1285 }
 0x3ad   : > { %5639 = vmatprep.subr.msk.bf16.mxu0 %vm1393_vm0, %v1286_v61  ;;  %v1715_v40 = vsel %vm1393_vm0, %v1286_v61, 0 }
 0x3ae   : > { %5366 = vmatmul.mubr.msk.bf16.vlgmr.msra.gmra.mrb[16].mxu1 %vm1393_vm0, %v1212_v60  ;;  %1379 = vrot.lane.b32.xlu1 %v7264_v10, %s6646_s22 }
 0x3af   : > { %5414 = vmatpush3.bf16.xpose.msra.mxu1 %v1854_v28 }
 0x3b0   : > { %v1300_v24 = vpop.permute.xlu1 %1299  ;;  %v1288_v2 = vpop.permute.xlu0 %1287 }
 0x3b1   : > { %5646 = vmatprep.subr.msk.bf16.mxu1 %vm1393_vm0, %v1300_v24  ;;  %v1857_v8 = vsel %vm1393_vm0, %v1300_v24, 0  ;;  %v1718_v41 = vsel %vm1393_vm0, %v1288_v2, 0 }
 0x3b2   : > { %1381 = vrot.lane.b32.xlu1 %v7289_v45, %s6646_s22 }
 0x3b3   : > { %5386 = vmatpush3.bf16.xpose.msra.mxu0 %v1715_v40 }
 0x3b4   : > { %5640 = vmatprep.subr.msk.bf16.mxu0 %vm1393_vm0, %v1288_v2  ;;  %v1302_v6 = vpop.permute.xlu1 %1301  ;;  %v1290_v7 = vpop.permute.xlu0 %1289 }
 0x3b5   : > { %v1860_v26 = vsel %vm1393_vm0, %v1302_v6, 0  ;;  %v1721_v29 = vsel %vm1393_vm0, %v1290_v7, 0 }
 0x3b7   : > { %5416 = vmatpush3.bf16.xpose.msra.mxu1 %v1857_v8 }
 0x3b8   : > { %5647 = vmatprep.subr.msk.bf16.mxu1 %vm1393_vm0, %v1302_v6  ;;  %v1304_v9 = vpop.permute.xlu1 %1303  ;;  %v1214_v18 = vpop.permute.xlu0 %1213 }
 0x3b9   : > { %5369 = vmatprep.mubr.msk.bf16.mxu1 %vm1393_vm0, %v1214_v18  ;;  %v1863_v14 = vsel %vm1393_vm0, %v1304_v9, 0 }
 0x3bb   : > { %5388 = vmatpush3.bf16.xpose.msra.mxu0 %v1718_v41 }
 0x3bc   : > { %5641 = vmatprep.subr.msk.bf16.mxu0 %vm1393_vm0, %v1290_v7  ;;  %v1306_v48 = vpop.permute.xlu1 %1305  ;;  %v1216_v23 = vpop.permute.xlu0 %1215 }
 0x3bd   : > { %5370 = vmatmul.mubr.msk.bf16.gmra.mrb[20].mxu1 %vm1393_vm0, %v1216_v23  ;;  %v1866_v57 = vsel %vm1393_vm0, %v1306_v48, 0 }
 0x3bf   : > { %5418 = vmatpush3.bf16.xpose.msra.mxu1 %v1860_v26 }
 0x3c0   : > { %5648 = vmatprep.subr.msk.bf16.mxu1 %vm1393_vm0, %v1304_v9  ;;  %v1292_v27 = vpop.permute.xlu1 %1291  ;;  %v1218_v12 = vpop.permute.xlu0 %1217 }
 0x3c1   : > { %5373 = vmatprep.mubr.msk.bf16.mxu1 %vm1393_vm0, %v1218_v12  ;;  %v1724_v15 = vsel %vm1393_vm0, %v1292_v27, 0 }
 0x3c3   : > { %5390 = vmatpush3.bf16.xpose.msra.mxu0 %v1721_v29 }
 0x3c4   : > { %5642 = vmatprep.subr.msk.bf16.mxu0 %vm1393_vm0, %v1292_v27  ;;  %v1308_v31 = vpop.permute.xlu1 %1307  ;;  %v1220_v49 = vpop.permute.xlu0 %1219 }
 0x3c5   : > { %5374 = vmatmul.mubr.msk.bf16.gmra.mrb[24].mxu1 %vm1393_vm0, %v1220_v49  ;;  %v1869_v42 = vsel %vm1393_vm0, %v1308_v31, 0 }
 0x3c7   : > { %5420 = vmatpush3.bf16.xpose.msra.mxu1 %v1863_v14 }
 0x3c8   : > { %5649 = vmatprep.subr.msk.bf16.mxu1 %vm1393_vm0, %v1306_v48  ;;  %v1294_v36 = vpop.permute.xlu1 %1293  ;;  %v1222_v37 = vpop.permute.xlu0 %1221 }
 0x3c9   : > { %5377 = vmatprep.mubr.msk.bf16.mxu1 %vm1393_vm0, %v1222_v37  ;;  %v1727_v5 = vsel %vm1393_vm0, %v1294_v36, 0 }
 0x3cb   : > { %5392 = vmatpush3.bf16.xpose.msra.mxu0 %v1724_v15 }
 0x3cc   : > { %5643 = vmatprep.subr.msk.bf16.mxu0 %vm1393_vm0, %v1294_v36  ;;  %v1310_v38 = vpop.permute.xlu1 %1309  ;;  %v1224_v39 = vpop.permute.xlu0 %1223 }
 0x3cd   : > { %5378 = vmatmul.mubr.msk.bf16.gmra.mrb[28].mxu1 %vm1393_vm0, %v1224_v39  ;;  %v1872_v3 = vsel %vm1393_vm0, %v1310_v38, 0 }
 0x3cf   : > { %5422 = vmatpush3.bf16.xpose.msra.mxu1 %v1866_v57 }
 0x3d0   : > { %5650 = vmatprep.subr.msk.bf16.mxu1 %vm1393_vm0, %v1308_v31  ;;  %v1296_v32 = vpop.permute.xlu1 %1295  ;;  %v1226_v0 = vpop.permute.xlu0 %1225 }
 0x3d1   : > { %5397 = vmatprep.mubr.msk.bf16.mxu0 %vm1393_vm0, %v1226_v0  ;;  %v1730_v62 = vsel %vm1393_vm0, %v1296_v32, 0 }
 0x3d3   : > { %5394 = vmatpush3.bf16.xpose.msra.mxu0 %v1727_v5 }
 0x3d4   : > { %5644 = vmatprep.subr.msk.bf16.mxu0 %vm1393_vm0, %v1296_v32  ;;  %v1312_v21 = vpop.permute.xlu1 %1311  ;;  %v1242_v19 = vpop.permute.xlu0 %1241 }
 0x3d5   : > { %5429 = vmatprep.mubr.msk.bf16.mxu1 %vm1393_vm0, %v1242_v19  ;;  %v1875_v25 = vsel %vm1393_vm0, %v1312_v21, 0 }
 0x3d7   : > { %5424 = vmatpush3.bf16.xpose.msra.mxu1 %v1869_v42 }
 0x3d8   : > { %5651 = vmatprep.subr.msk.bf16.mxu1 %vm1393_vm0, %v1310_v38  ;;  %v1228_v43 = vpop.permute.xlu1 %1227  ;;  %v1230_v13 = vpop.permute.xlu0 %1229 }
 0x3db   : > { %5396 = vmatpush3.bf16.xpose.msra.mxu0 %v1730_v62 }
 0x3dc   : > { %5445 = vmatprep.subr.bf16.mxu0 %v7223_v56  ;;  %v1244_v30 = vpop.permute.xlu1 %1243  ;;  %v1246_v35 = vpop.permute.xlu0 %1245 }
 0x3df   : > { %5426 = vmatpush3.bf16.xpose.msra.mxu1 %v1872_v3 }
 0x3e0   : > { %5652 = vmatprep.subr.msk.bf16.mxu1 %vm1393_vm0, %v1312_v21  ;;  %v1232_v47 = vpop.permute.xlu1 %1231  ;;  %v1234_v16 = vpop.permute.xlu0 %1233 }
 0x3e2   : > { %5398 = vmatmul.mubr.msk.bf16.vlgmr.msra.gmra.mrb[48].mxu0 %vm1393_vm0, %v1228_v43 }
 0x3e3   : > { %5401 = vmatprep.mubr.msk.bf16.mxu0 %vm1393_vm0, %v1230_v13  ;;  %5446 = vmatpush3.bf16.msra.mxu0 %v7223_v56 }
 0x3e4   : > { %5447 = vmatprep.subr.bf16.mxu0 %v7220_v34  ;;  %v1248_v50 = vpop.permute.xlu1 %1247  ;;  %v1250_v51 = vpop.permute.xlu0 %1249 }
 0x3e7   : > { %5428 = vmatpush3.bf16.xpose.msra.mxu1 %v1875_v25  ;;  %5448 = vmatpush3.bf16.msra.mxu0 %v7220_v34 }
 0x3e8   : > { %5449 = vmatprep.subr.bf16.mxu0 %v7245_v53  ;;  %v1236_v11 = vpop.permute.xlu1 %1235  ;;  %v1238_v52 = vpop.permute.xlu0 %1237 }
 0x3ea   : > { %5402 = vmatmul.mubr.msk.bf16.gmra.mrb[52].mxu0 %vm1393_vm0, %v1232_v47 }
 0x3eb   : > { %5405 = vmatprep.mubr.msk.bf16.mxu0 %vm1393_vm0, %v1234_v16  ;;  %5450 = vmatpush3.bf16.msra.mxu0 %v7245_v53 }
 0x3ec   : > { %5451 = vmatprep.subr.bf16.mxu0 %v7242_v4  ;;  %v1252_v56 = vpop.permute.xlu1 %1251  ;;  %v1254_v54 = vpop.permute.xlu0 %1253 }
 0x3ee   : > { %5430 = vmatmul.mubr.msk.bf16.vlgmr.msra.gmra.mrb[32].mxu1 %vm1393_vm0, %v1244_v30 }
 0x3ef   : > { %5433 = vmatprep.mubr.msk.bf16.mxu1 %vm1393_vm0, %v1246_v35  ;;  %5452 = vmatpush3.bf16.msra.mxu0 %v7242_v4 }
 0x3f0   : > { %5453 = vmatprep.subr.bf16.mxu0 %v7267_v20  ;;  %v1240_v34 = vpop.permute.xlu1 %1239  ;;  %v1322_v55 = vpop.permute.xlu0 %1321 }
 0x3f1   : > { %5477 = vmatprep.subr.bf16.mxu1 %v1322_v55 }
 0x3f2   : > { %5406 = vmatmul.mubr.msk.bf16.gmra.mrb[56].mxu0 %vm1393_vm0, %v1236_v11  ;;  %5478 = vmatpush3.bf16.msra.mxu1 %v1322_v55 }
 0x3f3   : > { %5409 = vmatprep.mubr.msk.bf16.mxu0 %vm1393_vm0, %v1238_v52  ;;  %5454 = vmatpush3.bf16.msra.mxu0 %v7267_v20 }
 0x3f4   : > { %5455 = vmatprep.subr.bf16.mxu0 %v7264_v10  ;;  %v1256_v53 = vpop.permute.xlu1 %1255  ;;  %v1328_v58 = vpop.permute.xlu0 %1327 }
 0x3f6   : > { %5434 = vmatmul.mubr.msk.bf16.gmra.mrb[36].mxu1 %vm1393_vm0, %v1248_v50 }
 0x3f7   : > { %5437 = vmatprep.mubr.msk.bf16.mxu1 %vm1393_vm0, %v1250_v51  ;;  %5456 = vmatpush3.bf16.msra.mxu0 %v7264_v10 }
 0x3f8   : > { %5457 = vmatprep.subr.bf16.mxu0 %v7289_v45  ;;  %v1324_v4 = vpop.permute.xlu1 %1323  ;;  %v1334_v59 = vpop.permute.xlu0 %1333 }
 0x3f9   : > { %5479 = vmatprep.subr.bf16.mxu1 %v1324_v4 }
 0x3fa   : > { %5410 = vmatmul.mubr.msk.bf16.gmra.mrb[60].mxu0 %vm1393_vm0, %v1240_v34  ;;  %5480 = vmatpush3.bf16.msra.mxu1 %v1324_v4 }
 0x3fb   : > { %5458 = vmatpush3.bf16.msra.mxu0 %v7289_v45 }
 0x3fc   : > { %5459 = vmatprep.subr.bf16.mxu0 %v7286_v44  ;;  %v1326_v20 = vpop.permute.xlu1 %1325  ;;  %v7548_v17 = vpop.permute.xlu0 %1345 }
 0x3fd   : > { %5481 = vmatprep.subr.bf16.mxu1 %v1326_v20  ;;  %8939 = vst [vmem:[#allocation22_spill] sm:$0xff] %v7548_v17 }
 0x3fe   : > { %5438 = vmatmul.mubr.msk.bf16.gmra.mrb[40].mxu1 %vm1393_vm0, %v1252_v56 }
 0x3ff   : > { %5441 = vmatprep.mubr.msk.bf16.mxu1 %vm1393_vm0, %v1254_v54  ;;  %5460 = vmatpush3.bf16.msra.mxu0 %v7286_v44 }
 0x400   : > { %5482 = vmatpush3.bf16.msra.mxu1 %v1326_v20  ;;  %5509 = vmatprep.subr.bf16.mxu0 %v7548_v17  ;;  %v1330_v10 = vpop.permute.xlu1 %1329  ;;  %v7639_v13 = vpop.permute.xlu0 %1347 }
 0x401   : > { %5483 = vmatprep.subr.bf16.mxu1 %v1328_v58  ;;  %8949 = vst [vmem:[#allocation32_spill] sm:$0xff] %v7639_v13 }
 0x404   : > { %5484 = vmatpush3.bf16.msra.mxu1 %v1328_v58  ;;  %v1332_v45 = vpop.permute.xlu1 %1331  ;;  %v7641_v62 = vpop.permute.xlu0 %1349 }
 0x405   : > { %5485 = vmatprep.subr.bf16.mxu1 %v1330_v10  ;;  %8950 = vst [vmem:[#allocation33_spill] sm:$0xff] %v7641_v62 }
 0x406   : > { %5442 = vmatmul.mubr.msk.bf16.gmra.mrb[44].mxu1 %vm1393_vm0, %v1256_v53 }
 0x408   : > { %5486 = vmatpush3.bf16.msra.mxu1 %v1330_v10  ;;  %v1336_v60 = vpop.permute.xlu1 %1335  ;;  %v7643_v30 = vpop.permute.xlu0 %1351 }
 0x409   : > { %5487 = vmatprep.subr.bf16.mxu1 %v1332_v45  ;;  %8951 = vst [vmem:[#allocation34_spill] sm:$0xff] %v7643_v30 }
 0x40c   : > { %5488 = vmatpush3.bf16.msra.mxu1 %v1332_v45  ;;  %v7565_v40 = vpop.permute.xlu1 %1369  ;;  %v7657_v51 = vpop.permute.xlu0 %1353 }
 0x40d   : > { %5489 = vmatprep.subr.bf16.mxu1 %v1334_v59  ;;  %8940 = vst [vmem:[#allocation23_spill] sm:$0xff] %v7565_v40  ;;  %8953 = vst [vmem:[#allocation36_spill] sm:$0xff] %v7657_v51 }
 0x40e   : > { %v7554_v61 = vpop.f32.mrb[32].mxu0 }
 0x40f   : > { %v7556_v28 = vpop.f32.mrb[33].mxu0  ;;  %1978 = vmax.xlane.f32.xlu0 %v7554_v61 }
 0x410   : > { %5490 = vmatpush3.bf16.msra.mxu1 %v1334_v59  ;;  %v7559_v24 = vpop.f32.mrb[34].mxu0  ;;  %v7650_v47 = vpop.permute.xlu1 %1371 }
 0x411   : > { %5491 = vmatprep.subr.bf16.mxu1 %v1336_v60  ;;  %v7561_v2 = vpop.f32.mrb[35].mxu0  ;;  %8952 = vst [vmem:[#allocation35_spill] sm:$0xff] %v7650_v47  ;;  %v7670_v54 = vpop.permute.xlu0 %1355 }
 0x412   : > { %1976 = vmax.xlane.f32.xlu1 %v7561_v2  ;;  %8958 = vst [vmem:[#allocation41_spill] sm:$0xff] %v7670_v54 }
 0x413   : > { %1974 = vmax.xlane.f32.xlu0 %v7556_v28 }
 0x414   : > { %5492 = vmatpush3.bf16.msra.mxu1 %v1336_v60  ;;  %v7661_v25 = vpop.permute.xlu1 %1373 }
 0x415   : > { %5541 = vmatprep.subr.bf16.mxu1 %v7565_v40  ;;  %8954 = vst [vmem:[#allocation37_spill] sm:$0xff] %v7661_v25  ;;  %v7689_v10 = vpop.permute.xlu0 %1357 }
 0x416   : > { %v7568_v6 = vpop.f32.mrb[36].mxu0  ;;  %8962 = vst [vmem:[#allocation45_spill] sm:$0xff] %v7689_v10 }
 0x417   : > { %v7570_v7 = vpop.f32.mrb[37].mxu0  ;;  %1980 = vmax.xlane.f32.xlu0 %v7559_v24 }
 0x418   : > { %v7573_v8 = vpop.f32.mrb[38].mxu0  ;;  %v7680_v58 = vpop.permute.xlu1 %1375 }
 0x419   : > { %v7575_v9 = vpop.f32.mrb[39].mxu0  ;;  %1988 = vmax.xlane.f32.xlu1 %v7573_v8  ;;  %8960 = vst [vmem:[#allocation43_spill] sm:$0xff] %v7680_v58 }
 0x41b   : > { %1986 = vmax.xlane.f32.xlu0 %v7568_v6 }
 0x41c   : > { %v7699_v1 = vpop.permute.xlu1 %1377 }
 0x41d   : > { %1984 = vmax.xlane.f32.xlu1 %v7575_v9  ;;  %8965 = vst [vmem:[#allocation48_spill] sm:$0xff] %v7699_v1 }
 0x41e   : > { %v7580_v18 = vpop.f32.mrb[40].mxu0 }
 0x41f   : > { %v7582_v41 = vpop.f32.mrb[41].mxu0  ;;  %1982 = vmax.xlane.f32.xlu0 %v7570_v7 }
 0x420   : > { %v7585_v48 = vpop.f32.mrb[42].mxu0  ;;  %v7716_v1 = vpop.permute.xlu1 %1379 }
 0x421   : > { %v7587_v23 = vpop.f32.mrb[43].mxu0  ;;  %1996 = vmax.xlane.f32.xlu1 %v7585_v48  ;;  %8966 = vst [vmem:[#allocation49_spill] sm:$0xff] %v7716_v1 }
 0x423   : > { %1994 = vmax.xlane.f32.xlu0 %v7580_v18 }
 0x424   : > { %v7733_v1 = vpop.permute.xlu1 %1381 }
 0x425   : > { %1992 = vmax.xlane.f32.xlu1 %v7587_v23  ;;  %8967 = vst [vmem:[#allocation50_spill] sm:$0xff] %v7733_v1 }
 0x426   : > { %v7592_v26 = vpop.f32.mrb[44].mxu0 }
 0x427   : > { %1990 = vmax.xlane.f32.xlu0 %v7582_v41  ;;  %v7595_v27 = vpop.f32.mrb[45].mxu0 }
 0x428   : > { %v7597_v12 = vpop.f32.mrb[46].mxu0 }
 0x429   : > { %2004 = vmax.xlane.f32.xlu1 %v7597_v12  ;;  %v7600_v29 = vpop.f32.mrb[47].mxu0 }
 0x42b   : > { %2002 = vmax.xlane.f32.xlu0 %v7592_v26 }
 0x42d   : > { %2000 = vmax.xlane.f32.xlu1 %v7600_v29 }
 0x42f   : > { %1998 = vmax.xlane.f32.xlu0 %v7595_v27 }
 0x481   : > { %v7605_v31 = vpop.f32.mrb[16].mxu1 }
 0x482   : > { %2010 = vmax.xlane.f32.xlu0 %v7605_v31  ;;  %v7608_v49 = vpop.f32.mrb[17].mxu1 }
 0x483   : > { %v7610_v14 = vpop.f32.mrb[18].mxu1 }
 0x484   : > { %2012 = vmax.xlane.f32.xlu1 %v7610_v14  ;;  %v7613_v36 = vpop.f32.mrb[19].mxu1 }
 0x485   : > { %8941 = vst [vmem:[#allocation24_spill] sm:$0xff] %v7613_v36 }
 0x490   : > { %v7615_v37 = vpop.f32.mrb[20].mxu1 }
 0x491   : > { %v7617_v15 = vpop.f32.mrb[21].mxu1 }
 0x492   : > { %8942 = vst [vmem:[#allocation25_spill] sm:$0xff] %v7617_v15  ;;  %v7619_v38 = vpop.f32.mrb[22].mxu1 }
 0x493   : > { %8943 = vst [vmem:[#allocation26_spill] sm:$0xff] %v7619_v38  ;;  %v7621_v39 = vpop.f32.mrb[23].mxu1 }
 0x494   : > { %8944 = vst [vmem:[#allocation27_spill] sm:$0xff] %v7621_v39 }
 0x498   : > { %v7623_v57 = vpop.f32.mrb[24].mxu1 }
 0x499   : > { %8945 = vst [vmem:[#allocation28_spill] sm:$0xff] %v7623_v57  ;;  %v7625_v32 = vpop.f32.mrb[25].mxu1 }
 0x49a   : > { %8946 = vst [vmem:[#allocation29_spill] sm:$0xff] %v7625_v32  ;;  %v7627_v0 = vpop.f32.mrb[26].mxu1 }
 0x49b   : > { %8947 = vst [vmem:[#allocation30_spill] sm:$0xff] %v7627_v0  ;;  %v7629_v5 = vpop.f32.mrb[27].mxu1 }
 0x49c   : > { %8948 = vst [vmem:[#allocation31_spill] sm:$0xff] %v7629_v5  ;;  %v1979_v46 = vpop.xlane.xlu0 %1978 }
 0x4a0   : > { %v7631_v21 = vpop.f32.mrb[28].mxu1  ;;  %v1975_v10 = vpop.xlane.xlu0 %1974 }
 0x4a1   : > { %v7633_v19 = vpop.f32.mrb[29].mxu1 }
 0x4a2   : > { %v7635_v42 = vpop.f32.mrb[30].mxu1 }
 0x4a3   : > { %v7637_v43 = vpop.f32.mrb[31].mxu1 }
 0x4a4   : > { %v1981_v17 = vpop.xlane.xlu0 %1980 }
 0x4b5   : > { %v7645_v35 = vpop.f32.mrb[48].mxu0 }
 0x4b6   : > { %2042 = vmax.xlane.f32.xlu0 %v7645_v35  ;;  %v7648_v3 = vpop.f32.mrb[49].mxu0 }
 0x4b7   : > { %v7652_v16 = vpop.f32.mrb[50].mxu0 }
 0x4b8   : > { %2044 = vmax.xlane.f32.xlu1 %v7652_v16  ;;  %v7655_v50 = vpop.f32.mrb[51].mxu0 }
 0x4ba   : > { %2006 = vmax.xlane.f32.xlu0 %v7608_v49 }
 0x4bc   : > { %2008 = vmax.xlane.f32.xlu1 %v7613_v36  ;;  %v2102_v36 = vsub.f32 %v7556_v28, %v1975_v10 }
 0x4bd   : > { %v7663_v11 = vpop.f32.mrb[52].mxu0 }
 0x4be   : > { %8955 = vst [vmem:[#allocation38_spill] sm:$0xff] %v7663_v11  ;;  %2038 = vmax.xlane.f32.xlu0 %v7648_v3  ;;  %v7666_v52 = vpop.f32.mrb[53].mxu0 }
 0x4bf   : > { %8956 = vst [vmem:[#allocation39_spill] sm:$0xff] %v7666_v52  ;;  %v7668_v56 = vpop.f32.mrb[54].mxu0 }
 0x4c0   : > { %8957 = vst [vmem:[#allocation40_spill] sm:$0xff] %v7668_v56  ;;  %2040 = vmax.xlane.f32.xlu1 %v7655_v50  ;;  %v7673_v34 = vpop.f32.mrb[55].mxu0 }
 0x4c1   : > { %8959 = vst [vmem:[#allocation42_spill] sm:$0xff] %v7673_v34  ;;  %v7675_v55 = vpop.f32.mrb[32].mxu1 }
 0x4c2   : > { %2018 = vmax.xlane.f32.xlu0 %v7615_v37  ;;  %v7678_v53 = vpop.f32.mrb[33].mxu1 }
 0x4c3   : > { %v7682_v4 = vpop.f32.mrb[34].mxu1 }
 0x4c4   : > { %2020 = vmax.xlane.f32.xlu1 %v7619_v38  ;;  %v7685_v59 = vpop.f32.mrb[35].mxu1  ;;  %v1987_v38 = vpop.xlane.xlu0 %1986 }
 0x4c5   : > { %v7687_v20 = vpop.f32.mrb[56].mxu0 }
 0x4c6   : > { %8961 = vst [vmem:[#allocation44_spill] sm:$0xff] %v7687_v20  ;;  %2050 = vmax.xlane.f32.xlu0 %v7663_v11  ;;  %v7692_v45 = vpop.f32.mrb[57].mxu0 }
 0x4c7   : > { %8963 = vst [vmem:[#allocation46_spill] sm:$0xff] %v7692_v45  ;;  %v7694_v60 = vpop.f32.mrb[58].mxu0 }
 0x4c8   : > { %8964 = vst [vmem:[#allocation47_spill] sm:$0xff] %v7694_v60  ;;  %2052 = vmax.xlane.f32.xlu1 %v7668_v56  ;;  %v7697_v33 = vpop.f32.mrb[59].mxu0  ;;  %v1977_v56 = vpop.xlane.xlu1 %1976 }
 0x4c9   : > { %v7701_v63 = vpop.f32.mrb[36].mxu1 }
 0x4ca   : > { %2014 = vmax.xlane.f32.xlu0 %v7617_v15  ;;  %v7704_v22 = vpop.f32.mrb[37].mxu1 }
 0x4cb   : > { %v7706_v58 = vpop.f32.mrb[38].mxu1 }
 0x4cc   : > { %2016 = vmax.xlane.f32.xlu1 %v7621_v39  ;;  %v7709_v25 = vpop.f32.mrb[39].mxu1  ;;  %v1989_v1 = vpop.xlane.xlu1 %1988 }
 0x4cd   : > { %v7711_v47 = vpop.f32.mrb[60].mxu0 }
 0x4ce   : > { %2046 = vmax.xlane.f32.xlu0 %v7666_v52  ;;  %v7714_v40 = vpop.f32.mrb[61].mxu0  ;;  %v1983_v52 = vpop.xlane.xlu0 %1982 }
 0x4cf   : > { %v7718_v44 = vpop.f32.mrb[62].mxu0 }
 0x4d0   : > { %2048 = vmax.xlane.f32.xlu1 %v7673_v34  ;;  %v7721_v54 = vpop.f32.mrb[63].mxu0  ;;  %v1985_v11 = vpop.xlane.xlu1 %1984 }
 0x4d1   : > { %v7723_v51 = vpop.f32.mrb[40].mxu1 }
 0x4d2   : > { %2026 = vmax.xlane.f32.xlu0 %v7623_v57  ;;  %v7726_v30 = vpop.f32.mrb[41].mxu1 }
 0x4d3   : > { %v7728_v62 = vpop.f32.mrb[42].mxu1 }
 0x4d4   : > { %2028 = vmax.xlane.f32.xlu1 %v7627_v0  ;;  %v7731_v13 = vpop.f32.mrb[43].mxu1 }
 0x4d6   : > { %2058 = vmax.xlane.f32.xlu0 %v7687_v20  ;;  %v2108_v20 = vsub.f32 %v7568_v6, %v1987_v38  ;;  %v2107_v6 = vsub.f32 %v7575_v9, %v1985_v11  ;;  %v1995_v38 = vpop.xlane.xlu0 %1994 }
 0x4d7   : > { %v2112_v28 = vsub.f32 %v7580_v18, %v1995_v38  ;;  %v2106_v18 = vsub.f32 %v7570_v7, %v1983_v52 }
 0x4d8   : > { %2060 = vmax.xlane.f32.xlu1 %v7694_v60  ;;  %v2104_v60 = vsub.f32 %v7554_v61, %v1979_v46  ;;  %v2178_v15 = vmul.f32 1.442695, %v2108_v20  ;;  %v2166_v46 = vmul.f32 1.442695, %v2102_v36  ;;  %v1997_v61 = vpop.xlane.xlu1 %1996 }
 0x4d9   : > { %v7737_v39 = vpop.f32.mrb[44].mxu1  ;;  %v2113_v36 = vsub.f32 %v7585_v48, %v1997_v61  ;;  %v2174_v10 = vmul.f32 1.442695, %v2106_v18 }
 0x4da   : > { %2022 = vmax.xlane.f32.xlu0 %v7625_v32  ;;  %v7740_v57 = vpop.f32.mrb[45].mxu1  ;;  %v2109_v32 = vsub.f32 %v7573_v8, %v1989_v1  ;;  %6046 = vpow2.f32 %v2178_v15  ;;  %v2105_v1 = vsub.f32 %v7559_v24, %v1981_v17  ;;  %v2176_v8 = vmul.f32 1.442695, %v2107_v6  ;;  %v1991_v11 = vpop.xlane.xlu0 %1990 }
 0x4db   : > { %v7742_v34 = vpop.f32.mrb[46].mxu1  ;;  %v2103_v15 = vsub.f32 %v7561_v2, %v1977_v56  ;;  %v2188_v56 = vmul.f32 1.442695, %v2113_v36 }
 0x4dc   : > { %8968 = vst [vmem:[#allocation51_spill] sm:$0xff] %v7742_v34  ;;  %2024 = vmax.xlane.f32.xlu1 %v7629_v5  ;;  %v7745_v0 = vpop.f32.mrb[47].mxu1  ;;  %v2170_v5 = vmul.f32 1.442695, %v2104_v60  ;;  %v2172_v9 = vmul.f32 1.442695, %v2105_v1  ;;  %v1993_v17 = vpop.xlane.xlu1 %1992 }
 0x4dd   : > { %v2111_v20 = vsub.f32 %v7587_v23, %v1993_v17 }
 0x4de   : > { %2054 = vmax.xlane.f32.xlu0 %v7692_v45  ;;  %v2180_v45 = vmul.f32 1.442695, %v2109_v32  ;;  %6048 = vpow2.f32 %v2170_v5  ;;  %v2186_v32 = vmul.f32 1.442695, %v2112_v28  ;;  %v2168_v5 = vmul.f32 1.442695, %v2103_v15  ;;  %v2003_v38 = vpop.xlane.xlu0 %2002 }
 0x4df   : > { %v2184_v52 = vmul.f32 1.442695, %v2111_v20  ;;  %v2116_v1 = vsub.f32 %v7592_v26, %v2003_v38 }
 0x4e0   : > { %2056 = vmax.xlane.f32.xlu1 %v7697_v33  ;;  %6050 = vpow2.f32 %v2180_v45  ;;  %v2110_v45 = vsub.f32 %v7582_v41, %v1991_v11  ;;  %v2005_v6 = vpop.xlane.xlu1 %2004 }
 0x4e1   : > { %6052 = vpow2.f32 %v2166_v46 }
 0x4e2   : > { %2034 = vmax.xlane.f32.xlu0 %v7631_v21  ;;  %6054 = vpow2.f32 %v2176_v8  ;;  %v2182_v23 = vmul.f32 1.442695, %v2110_v45  ;;  %v2117_v8 = vsub.f32 %v7597_v12, %v2005_v6  ;;  %v1999_v36 = vpop.xlane.xlu0 %1998 }
 0x4e3   : > { %6056 = vpow2.f32 %v2172_v9  ;;  %v2194_v9 = vmul.f32 1.442695, %v2116_v1  ;;  %v2114_v12 = vsub.f32 %v7595_v27, %v1999_v36 }
 0x4e4   : > { %2036 = vmax.xlane.f32.xlu1 %v7635_v42  ;;  %v7766_v24 = vpop.eup %6046  ;;  %6058 = vpow2.f32 %v2186_v32  ;;  %v2001_v28 = vpop.xlane.xlu1 %2000  ;;  %v2196_v17 = vmul.f32 1.442695, %v2117_v8 }
 0x4e5   : > { %6060 = vpow2.f32 %v2168_v5  ;;  %v2115_v26 = vsub.f32 %v7600_v29, %v2001_v28 }
 0x4e6   : > { %2066 = vmax.xlane.f32.xlu0 %v7711_v47  ;;  %6062 = vpow2.f32 %v2188_v56  ;;  %v2190_v56 = vmul.f32 1.442695, %v2114_v12 }
 0x4e7   : > { %6064 = vpow2.f32 %v2174_v10  ;;  %v2192_v11 = vmul.f32 1.442695, %v2115_v26 }
 0x4e8   : > { %2068 = vmax.xlane.f32.xlu1 %v7718_v44  ;;  %v7770_v2 = vpop.eup %6048  ;;  %6066 = vpow2.f32 %v2184_v52 }
 0x4e9   : > { %6068 = vpow2.f32 %v2182_v23 }
 0x4ea   : > { %2030 = vmax.xlane.f32.xlu0 %v7633_v19  ;;  %v7774_v48 = vpop.eup %6050  ;;  %6070 = vpow2.f32 %v2194_v9 }
 0x4eb   : > { %v7778_v7 = vpop.eup %6052  ;;  %6072 = vpow2.f32 %v2196_v17 }
 0x4ec   : > { %2032 = vmax.xlane.f32.xlu1 %v7637_v43  ;;  %v7781_v60 = vpop.eup %6054  ;;  %6074 = vpow2.f32 %v2192_v11 }
 0x4ed   : > { %v7784_v46 = vpop.eup %6056  ;;  %6076 = vpow2.f32 %v2190_v56 }
 0x4ee   : > { %2062 = vmax.xlane.f32.xlu0 %v7714_v40  ;;  %v7787_v41 = vpop.eup %6058 }
 0x4ef   : > { %v7791_v61 = vpop.eup %6060 }
 0x4f0   : > { %2064 = vmax.xlane.f32.xlu1 %v7721_v54  ;;  %v7795_v15 = vpop.eup %6062 }
 0x4f1   : > { %v7798_v32 = vpop.eup %6064 }
 0x4f2   : > { %2306 = vadd.xlane.f32.xlu0 %v7766_v24  ;;  %v7802_v5 = vpop.eup %6066 }
 0x4f3   : > { %v7806_v18 = vpop.eup %6068 }
 0x4f4   : > { %2298 = vadd.xlane.f32.xlu1 %v7770_v2  ;;  %v7812_v29 = vpop.eup %6070 }
 0x4f5   : > { %v7815_v27 = vpop.eup %6072 }
 0x4f6   : > { %2308 = vadd.xlane.f32.xlu0 %v7774_v48  ;;  %v7819_v20 = vpop.eup %6074 }
 0x4f7   : > { %v7822_v10 = vpop.eup %6076 }
 0x4f8   : > { %2294 = vadd.xlane.f32.xlu1 %v7778_v7 }
 0x4fa   : > { %2304 = vadd.xlane.f32.xlu0 %v7781_v60 }
 0x4fc   : > { %2300 = vadd.xlane.f32.xlu1 %v7784_v46 }
 0x4fe   : > { %2314 = vadd.xlane.f32.xlu0 %v7787_v41 }
 0x500   : > { %2296 = vadd.xlane.f32.xlu1 %v7791_v61 }
 0x502   : > { %2316 = vadd.xlane.f32.xlu0 %v7795_v15 }
 0x504   : > { %2302 = vadd.xlane.f32.xlu1 %v7798_v32 }
 0x506   : > { %2312 = vadd.xlane.f32.xlu0 %v7802_v5 }
 0x508   : > { %2310 = vadd.xlane.f32.xlu1 %v7806_v18 }
 0x50a   : > { %2074 = vmax.xlane.f32.xlu0 %v7675_v55 }
 0x50c   : > { %2076 = vmax.xlane.f32.xlu1 %v7682_v4 }
 0x50e   : > { %2070 = vmax.xlane.f32.xlu0 %v7678_v53 }
 0x50f   : > { %v2011_v45 = vpop.xlane.xlu0 %2010 }
 0x510   : > { %2322 = vadd.xlane.f32.xlu1 %v7812_v29  ;;  %v2120_v52 = vsub.f32 %v7605_v31, %v2011_v45 }
 0x511   : > { %v2013_v6 = vpop.xlane.xlu1 %2012 }
 0x512   : > { %2324 = vadd.xlane.f32.xlu0 %v7815_v27  ;;  %v2202_v23 = vmul.f32 1.442695, %v2120_v52  ;;  %v2121_v12 = vsub.f32 %v7610_v14, %v2013_v6 }
 0x514   : > { %2072 = vmax.xlane.f32.xlu1 %v7685_v59  ;;  %6078 = vpow2.f32 %v2202_v23 }
 0x516   : > { %2320 = vadd.xlane.f32.xlu0 %v7819_v20 }
 0x518   : > { %2318 = vadd.xlane.f32.xlu1 %v7822_v10 }
 0x51a   : > { %2082 = vmax.xlane.f32.xlu0 %v7701_v63 }
 0x51c   : > { %2084 = vmax.xlane.f32.xlu1 %v7706_v58 }
 0x51e   : > { %2078 = vmax.xlane.f32.xlu0 %v7704_v22  ;;  %v7838_v31 = vpop.eup %6078 }
 0x51f   : > { %8969 = vst [vmem:[#allocation52_spill] sm:$0xff] %v7838_v31 }
 0x520   : > { %2080 = vmax.xlane.f32.xlu1 %v7709_v25 }
 0x522   : > { %2090 = vmax.xlane.f32.xlu0 %v7723_v51 }
 0x524   : > { %2092 = vmax.xlane.f32.xlu1 %v7728_v62 }
 0x526   : > { %2086 = vmax.xlane.f32.xlu0 %v7726_v30 }
 0x528   : > { %2088 = vmax.xlane.f32.xlu1 %v7731_v13 }
 0x52a   : > { %2098 = vmax.xlane.f32.xlu0 %v7737_v39 }
 0x52c   : > { %2100 = vmax.xlane.f32.xlu1 %v7742_v34 }
 0x52e   : > { %2094 = vmax.xlane.f32.xlu0 %v7740_v57 }
 0x530   : > { %2096 = vmax.xlane.f32.xlu1 %v7745_v0 }
 0x532   : > { %2330 = vadd.xlane.f32.xlu0 %v7838_v31  ;;  %v2204_v31 = vmul.f32 1.442695, %v2121_v12 }
 0x543   : > { %v2043_v38 = vpop.xlane.xlu0 %2042 }
 0x544   : > { %v2136_v1 = vsub.f32 %v7645_v35, %v2043_v38 }
 0x545   : > { %v2045_v8 = vpop.xlane.xlu1 %2044 }
 0x546   : > { %v2234_v28 = vmul.f32 1.442695, %v2136_v1  ;;  %v2137_v38 = vsub.f32 %v7652_v16, %v2045_v8 }
 0x547   : > { %v2007_v9 = vpop.xlane.xlu0 %2006 }
 0x548   : > { %6080 = vpow2.f32 %v2234_v28  ;;  %v2118_v36 = vsub.f32 %v7608_v49, %v2007_v9  ;;  %v2236_v6 = vmul.f32 1.442695, %v2137_v38 }
 0x549   : > { %v2009_v17 = vpop.xlane.xlu1 %2008 }
 0x54a   : > { %v2198_v26 = vmul.f32 1.442695, %v2118_v36  ;;  %v8971_v36 = vld [vmem:[#allocation24_spill] sm:$0xff] }
 0x54b   : > { %v2039_v11 = vpop.xlane.xlu0 %2038 }
 0x54c   : > { %6082 = vpow2.f32 %v2198_v26  ;;  %v2134_v56 = vsub.f32 %v7648_v3, %v2039_v11  ;;  %v8972_v26 = vld [vmem:[#allocation38_spill] sm:$0xff] }
 0x54d   : > { %v2041_v45 = vpop.xlane.xlu1 %2040 }
 0x54e   : > { %v2230_v52 = vmul.f32 1.442695, %v2134_v56  ;;  %v2135_v23 = vsub.f32 %v7655_v50, %v2041_v45  ;;  %v2119_v50 = vsub.f32 %v8971_v36, %v2009_v17  ;;  %v8974_v45 = vld [vmem:[#allocation25_spill] sm:$0xff] }
 0x54f   : > { %v2019_v35 = vpop.xlane.xlu0 %2018 }
 0x550   : > { %6084 = vpow2.f32 %v2230_v52  ;;  %v2232_v1 = vmul.f32 1.442695, %v2135_v23  ;;  %v2124_v49 = vsub.f32 %v7615_v37, %v2019_v35  ;;  %v2200_v56 = vmul.f32 1.442695, %v2119_v50 }
 0x551   : > { %v2021_v28 = vpop.xlane.xlu1 %2020 }
 0x552   : > { %v7848_v9 = vpop.eup %6080  ;;  %6086 = vpow2.f32 %v2232_v1  ;;  %v2210_v14 = vmul.f32 1.442695, %v2124_v49  ;;  %v8976_v1 = vld [vmem:[#allocation39_spill] sm:$0xff] }
 0x553   : > { %8970 = vst [vmem:[#allocation53_spill] sm:$0xff] %v7848_v9  ;;  %2362 = vadd.xlane.f32.xlu0 %v7848_v9  ;;  %v2051_v3 = vpop.xlane.xlu0 %2050  ;;  %6088 = vpow2.f32 %v2204_v31 }
 0x554   : > { %v2140_v12 = vsub.f32 %v8972_v26, %v2051_v3  ;;  %6090 = vpow2.f32 %v2210_v14  ;;  %v8977_v14 = vld [vmem:[#allocation26_spill] sm:$0xff] }
 0x555   : > { %v2053_v11 = vpop.xlane.xlu1 %2052  ;;  %6092 = vpow2.f32 %v2236_v6  ;;  %v2125_v3 = vsub.f32 %v8977_v14, %v2021_v28  ;;  %v8979_v26 = vld [vmem:[#allocation42_spill] sm:$0xff]  ;;  %v8983_v14 = vld [vmem:[#allocation40_spill] sm:$0xff] }
 0x556   : > { %v7853_v16 = vpop.eup %6082  ;;  %v2242_v8 = vmul.f32 1.442695, %v2140_v12 }
 0x557   : > { %8973 = vst [vmem:[#allocation24_spill] sm:$0xff] %v7853_v16  ;;  %2326 = vadd.xlane.f32.xlu1 %v7853_v16  ;;  %v2015_v37 = vpop.xlane.xlu0 %2014 }
 0x558   : > { %v2122_v52 = vsub.f32 %v8974_v45, %v2015_v37  ;;  %6094 = vpow2.f32 %v2242_v8 }
 0x559   : > { %v2017_v23 = vpop.xlane.xlu1 %2016  ;;  %6096 = vpow2.f32 %v2200_v56  ;;  %v8981_v56 = vld [vmem:[#allocation28_spill] sm:$0xff] }
 0x55a   : > { %v7857_v35 = vpop.eup %6084  ;;  %v2206_v31 = vmul.f32 1.442695, %v2122_v52 }
 0x55b   : > { %2358 = vadd.xlane.f32.xlu1 %v7857_v35  ;;  %v2047_v17 = vpop.xlane.xlu0 %2046 }
 0x55c   : > { %v7860_v38 = vpop.eup %6086  ;;  %v2138_v49 = vsub.f32 %v8976_v1, %v2047_v17  ;;  %6098 = vpow2.f32 %v2206_v31  ;;  %v2212_v17 = vmul.f32 1.442695, %v2125_v3  ;;  %v2141_v31 = vsub.f32 %v8983_v14, %v2053_v11 }
 0x55d   : > { %8975 = vst [vmem:[#allocation38_spill] sm:$0xff] %v7860_v38  ;;  %v2049_v36 = vpop.xlane.xlu1 %2048  ;;  %2360 = vadd.xlane.f32.xlu0 %v7860_v38  ;;  %v7865_v6 = vpop.eup %6088 }
 0x55e   : > { %8978 = vst [vmem:[#allocation25_spill] sm:$0xff] %v7865_v6  ;;  %v2238_v50 = vmul.f32 1.442695, %v2138_v49  ;;  %v2139_v12 = vsub.f32 %v8979_v26, %v2049_v36  ;;  %v7869_v37 = vpop.eup %6090 }
 0x55f   : > { %2332 = vadd.xlane.f32.xlu1 %v7865_v6  ;;  %v2027_v8 = vpop.xlane.xlu0 %2026  ;;  %8980 = vst [vmem:[#allocation39_spill] sm:$0xff] %v7869_v37  ;;  %v7873_v1 = vpop.eup %6092 }
 0x560   : > { %v2240_v45 = vmul.f32 1.442695, %v2139_v12  ;;  %v2128_v52 = vsub.f32 %v8981_v56, %v2027_v8  ;;  %6100 = vpow2.f32 %v2238_v50  ;;  %8982 = vst [vmem:[#allocation26_spill] sm:$0xff] %v7873_v1  ;;  %v2244_v50 = vmul.f32 1.442695, %v2141_v31  ;;  %v8986_v8 = vld [vmem:[#allocation27_spill] sm:$0xff] }
 0x561   : > { %v2029_v28 = vpop.xlane.xlu1 %2028  ;;  %2338 = vadd.xlane.f32.xlu0 %v7869_v37  ;;  %v2123_v56 = vsub.f32 %v8986_v8, %v2017_v23 }
 0x562   : > { %6102 = vpow2.f32 %v2240_v45  ;;  %v2218_v49 = vmul.f32 1.442695, %v2128_v52  ;;  %v7879_v26 = vpop.eup %6094  ;;  %v8988_v52 = vld [vmem:[#allocation29_spill] sm:$0xff] }
 0x563   : > { %2364 = vadd.xlane.f32.xlu1 %v7873_v1  ;;  %v7877_v36 = vpop.xlane.xlu0 %2058  ;;  %8984 = vst [vmem:[#allocation42_spill] sm:$0xff] %v7879_v26  ;;  %6104 = vpow2.f32 %v2212_v17  ;;  %v7884_v3 = vpop.eup %6096  ;;  %v2208_v17 = vmul.f32 1.442695, %v2123_v56  ;;  %v8989_v1 = vld [vmem:[#allocation30_spill] sm:$0xff] }
 0x564   : > { %8985 = vst [vmem:[#allocation28_spill] sm:$0xff] %v7884_v3  ;;  %6106 = vpow2.f32 %v2218_v49 }
 0x565   : > { %v7881_v12 = vpop.xlane.xlu1 %2060  ;;  %2370 = vadd.xlane.f32.xlu0 %v7879_v26  ;;  %6108 = vpow2.f32 %v2244_v50  ;;  %v2129_v26 = vsub.f32 %v8989_v1, %v2029_v28  ;;  %v8992_v50 = vld [vmem:[#allocation31_spill] sm:$0xff] }
 0x566   : > { %v7888_v45 = vpop.eup %6098 }
 0x567   : > { %2328 = vadd.xlane.f32.xlu1 %v7884_v3  ;;  %v2023_v11 = vpop.xlane.xlu0 %2022  ;;  %8987 = vst [vmem:[#allocation40_spill] sm:$0xff] %v7888_v45  ;;  %v2220_v8 = vmul.f32 1.442695, %v2129_v26 }
 0x568   : > { %v2126_v14 = vsub.f32 %v8988_v52, %v2023_v11 }
 0x569   : > { %v2025_v9 = vpop.xlane.xlu1 %2024  ;;  %2334 = vadd.xlane.f32.xlu0 %v7888_v45 }
 0x56a   : > { %v2214_v37 = vmul.f32 1.442695, %v2126_v14  ;;  %v7893_v16 = vpop.eup %6100  ;;  %v2127_v56 = vsub.f32 %v8992_v50, %v2025_v9 }
 0x56b   : > { %8990 = vst [vmem:[#allocation27_spill] sm:$0xff] %v7893_v16  ;;  %v7895_v31 = vpop.xlane.xlu0 %2054 }
 0x56c   : > { %v7897_v23 = vpop.eup %6102  ;;  %6110 = vpow2.f32 %v2214_v37  ;;  %v2216_v37 = vmul.f32 1.442695, %v2127_v56 }
 0x56d   : > { %8991 = vst [vmem:[#allocation29_spill] sm:$0xff] %v7897_v23  ;;  %v7899_v49 = vpop.xlane.xlu1 %2056  ;;  %2368 = vadd.xlane.f32.xlu1 %v7897_v23  ;;  %2366 = vadd.xlane.f32.xlu0 %v7893_v16  ;;  %6112 = vpow2.f32 %v2208_v17  ;;  %v7904_v11 = vpop.eup %6104 }
 0x56e   : > { %8993 = vst [vmem:[#allocation30_spill] sm:$0xff] %v7904_v11  ;;  %v7906_v1 = vpop.eup %6106  ;;  %6114 = vpow2.f32 %v2220_v8 }
 0x56f   : > { %v2035_v28 = vpop.xlane.xlu0 %2034  ;;  %8994 = vst [vmem:[#allocation31_spill] sm:$0xff] %v7906_v1  ;;  %v7914_v9 = vpop.eup %6108 }
 0x570   : > { %v2132_v52 = vsub.f32 %v7631_v21, %v2035_v28  ;;  %8995 = vst [vmem:[#allocation54_spill] sm:$0xff] %v7914_v9 }
 0x571   : > { %v2037_v14 = vpop.xlane.xlu1 %2036  ;;  %2340 = vadd.xlane.f32.xlu0 %v7904_v11  ;;  %2346 = vadd.xlane.f32.xlu1 %v7906_v1 }
 0x572   : > { %v2226_v23 = vmul.f32 1.442695, %v2132_v52  ;;  %v2133_v17 = vsub.f32 %v7635_v42, %v2037_v14 }
 0x573   : > { %v7912_v26 = vpop.xlane.xlu0 %2066 }
 0x574   : > { %6116 = vpow2.f32 %v2226_v23  ;;  %v2228_v28 = vmul.f32 1.442695, %v2133_v17 }
 0x575   : > { %v7916_v50 = vpop.xlane.xlu1 %2068  ;;  %2372 = vadd.xlane.f32.xlu0 %v7914_v9  ;;  %6118 = vpow2.f32 %v2216_v37 }
 0x576   : > { %v7919_v21 = vpop.eup %6110  ;;  %6120 = vpow2.f32 %v2228_v28 }
 0x577   : > { %8996 = vst [vmem:[#allocation55_spill] sm:$0xff] %v7919_v21  ;;  %2342 = vadd.xlane.f32.xlu1 %v7919_v21  ;;  %v2031_v8 = vpop.xlane.xlu0 %2030  ;;  %v7922_v56 = vpop.eup %6112 }
 0x578   : > { %8997 = vst [vmem:[#allocation56_spill] sm:$0xff] %v7922_v56  ;;  %v2130_v42 = vsub.f32 %v7633_v19, %v2031_v8  ;;  %v7929_v9 = vpop.eup %6114 }
 0x579   : > { %v2033_v52 = vpop.xlane.xlu1 %2032  ;;  %2336 = vadd.xlane.f32.xlu0 %v7922_v56  ;;  %8998 = vst [vmem:[#allocation57_spill] sm:$0xff] %v7929_v9 }
 0x57a   : > { %v2222_v23 = vmul.f32 1.442695, %v2130_v42  ;;  %v2131_v14 = vsub.f32 %v7637_v43, %v2033_v52 }
 0x57b   : > { %v7927_v16 = vpop.xlane.xlu0 %2062 }
 0x57c   : > { %6122 = vpow2.f32 %v2222_v23  ;;  %v2224_v37 = vmul.f32 1.442695, %v2131_v14 }
 0x57d   : > { %v7931_v17 = vpop.xlane.xlu1 %2064  ;;  %2348 = vadd.xlane.f32.xlu0 %v7929_v9 }
 0x57e   : > { %v7934_v1 = vpop.eup %6116  ;;  %6124 = vpow2.f32 %v2224_v37 }
 0x57f   : > { %8999 = vst [vmem:[#allocation58_spill] sm:$0xff] %v7934_v1  ;;  %2354 = vadd.xlane.f32.xlu1 %v7934_v1  ;;  %v2307_v19 = vpop.xlane.xlu0 %2306  ;;  %v7937_v28 = vpop.eup %6118 }
 0x580   : > { %9000 = vst [vmem:[#allocation59_spill] sm:$0xff] %v7937_v28  ;;  %v7940_v42 = vpop.eup %6120 }
 0x581   : > { %v2299_v8 = vpop.xlane.xlu1 %2298  ;;  %2344 = vadd.xlane.f32.xlu0 %v7937_v28  ;;  %9001 = vst [vmem:[#allocation60_spill] sm:$0xff] %v7940_v42 }
 0x583   : > { %v2309_v43 = vpop.xlane.xlu0 %2308 }
 0x585   : > { %v2295_v52 = vpop.xlane.xlu1 %2294  ;;  %2356 = vadd.xlane.f32.xlu0 %v7940_v42 }
 0x586   : > { %v7943_v23 = vpop.eup %6122 }
 0x587   : > { %9002 = vst [vmem:[#allocation61_spill] sm:$0xff] %v7943_v23  ;;  %2350 = vadd.xlane.f32.xlu1 %v7943_v23  ;;  %v2305_v14 = vpop.xlane.xlu0 %2304 }
 0x588   : > { %v7946_v37 = vpop.eup %6124 }
 0x589   : > { %9003 = vst [vmem:[#allocation62_spill] sm:$0xff] %v7946_v37  ;;  %v2301_v1 = vpop.xlane.xlu1 %2300  ;;  %2352 = vadd.xlane.f32.xlu0 %v7946_v37 }
 0x58a   : > { %6126 = vrcp.f32 %v2301_v1 }
 0x58b   : > { %v2315_v21 = vpop.xlane.xlu0 %2314  ;;  %6128 = vrcp.f32 %v2295_v52 }
 0x58c   : > { %6130 = vrcp.f32 %v2299_v8 }
 0x58d   : > { %v2297_v28 = vpop.xlane.xlu1 %2296 }
 0x58e   : > { %6132 = vrcp.f32 %v2297_v28 }
 0x58f   : > { %v2317_v9 = vpop.xlane.xlu0 %2316  ;;  %6134 = vrcp.f32 %v2305_v14 }
 0x591   : > { %v2303_v56 = vpop.xlane.xlu1 %2302 }
 0x592   : > { %6136 = vrcp.f32 %v2303_v56 }
 0x593   : > { %6138 = vrcp.f32 %v2309_v43  ;;  %v2313_v42 = vpop.xlane.xlu0 %2312 }
 0x594   : > { %6140 = vrcp.f32 %v2307_v19  ;;  %v6127_v23 = vpop.eup %6126 }
 0x595   : > { %6142 = vrcp.f32 %v2313_v42  ;;  %v2311_v45 = vpop.xlane.xlu1 %2310  ;;  %v6129_v11 = vpop.eup %6128  ;;  %v2489_v52 = vmul.f32 %v6127_v23, %v7784_v46 }
 0x596   : > { %6144 = vrcp.f32 %v2311_v45  ;;  %v6131_v3 = vpop.eup %6130  ;;  %v2486_v14 = vmul.f32 %v6129_v11, %v7778_v7 }
 0x597   : > { %v2075_v37 = vpop.xlane.xlu0 %2074  ;;  %v2488_v19 = vmul.f32 %v6131_v3, %v7770_v2  ;;  %6146 = vrcp.f32 %v2317_v9  ;;  %v9004_v9 = vld [vmem:[#allocation22_spill] sm:$0xff] }
 0x598   : > { %v6133_v1 = vpop.eup %6132  ;;  %v2152_v8 = vsub.f32 %v7675_v55, %v2075_v37 }
 0x599   : > { %v2077_v28 = vpop.xlane.xlu1 %2076  ;;  %v2487_v56 = vmul.f32 %v6133_v1, %v7791_v61  ;;  %v6135_v43 = vpop.eup %6134  ;;  %v2551_v23 = vpack.c.bf16 %v2489_v52, %v2488_v19 }
 0x59a   : > { %v2266_v6 = vmul.f32 1.442695, %v2152_v8  ;;  %v2153_v42 = vsub.f32 %v7682_v4, %v2077_v28  ;;  %v2491_v2 = vmul.f32 %v6135_v43, %v7781_v60 }
 0x59b   : > { %v2071_v45 = vpop.xlane.xlu0 %2070  ;;  %v2550_v34 = vpack.c.bf16 %v2487_v56, %v2486_v14  ;;  %v9006_v56 = vld [vmem:[#allocation33_spill] sm:$0xff] }
 0x59c   : > { %v6137_v38 = vpop.eup %6136  ;;  %6148 = vpow2.f32 %v2266_v6  ;;  %v2150_v46 = vsub.f32 %v7678_v53, %v2071_v45  ;;  %v2268_v37 = vmul.f32 1.442695, %v2153_v42  ;;  %v9005_v53 = vld [vmem:[#allocation32_spill] sm:$0xff] }
 0x59d   : > { %v6139_v55 = vpop.eup %6138  ;;  %6150 = vrcp.f32 %v2315_v21  ;;  %5461 = vmatprep.mubr.bf16.mxu0 %v2550_v34  ;;  %v2323_v7 = vpop.xlane.xlu1 %2322  ;;  %v2490_v61 = vmul.f32 %v6137_v38, %v7798_v32 }
 0x59e   : > { %v6141_v3 = vpop.eup %6140  ;;  %v2262_v11 = vmul.f32 1.442695, %v2150_v46  ;;  %5462 = vmatmul.mubr.bf16.vlgmr.msra.gmra.mrb[64].mxu0 %v2551_v23  ;;  %v2493_v21 = vmul.f32 %v6139_v55, %v7774_v48 }
 0x59f   : > { %v6143_v4 = vpop.eup %6142  ;;  %5510 = vmatpush3.bf16.msra.mxu0 %v9004_v9  ;;  %v2325_v1 = vpop.xlane.xlu0 %2324  ;;  %v2552_v6 = vpack.c.bf16 %v2491_v2, %v2490_v61  ;;  %v2492_v38 = vmul.f32 %v6141_v3, %v7766_v24 }
 0x5a0   : > { %v6145_v8 = vpop.eup %6144  ;;  %6152 = vpow2.f32 %v2262_v11  ;;  %5511 = vmatprep.subr.bf16.mxu0 %v9005_v53  ;;  %v2495_v28 = vmul.f32 %v6143_v4, %v7802_v5  ;;  %v9007_v5 = vld [vmem:[#allocation34_spill] sm:$0xff]  ;;  %v9008_v11 = vld [vmem:[#allocation36_spill] sm:$0xff] }
 0x5a1   : > { %6154 = vpow2.f32 %v2268_v37  ;;  %v2073_v34 = vpop.xlane.xlu1 %2072  ;;  %5465 = vmatprep.mubr.bf16.mxu0 %v2552_v6  ;;  %v2494_v32 = vmul.f32 %v6145_v8, %v7806_v18  ;;  %v2553_v48 = vpack.c.bf16 %v2493_v21, %v2492_v38  ;;  %v6147_v43 = vpop.eup %6146  ;;  %v9009_v8 = vld [vmem:[#allocation41_spill] sm:$0xff] }
 0x5a2   : > { %v2151_v60 = vsub.f32 %v7685_v59, %v2073_v34  ;;  %6156 = vrcp.f32 %v2323_v7  ;;  %v2497_v46 = vmul.f32 %v6147_v43, %v7795_v15 }
 0x5a3   : > { %5512 = vmatpush3.bf16.msra.mxu0 %v9005_v53  ;;  %v2321_v52 = vpop.xlane.xlu0 %2320  ;;  %6158 = vrcp.f32 %v2325_v1  ;;  %v2554_v42 = vpack.c.bf16 %v2495_v28, %v2494_v32 }
 0x5a4   : > { %v2264_v14 = vmul.f32 1.442695, %v2151_v60  ;;  %5513 = vmatprep.subr.bf16.mxu0 %v9006_v56  ;;  %6160 = vrcp.f32 %v2321_v52  ;;  %v9010_v60 = vld [vmem:[#allocation45_spill] sm:$0xff] }
 0x5a5   : > { %v2319_v19 = vpop.xlane.xlu1 %2318 }
 0x5a6   : > { %v7967_v18 = vpop.eup %6148  ;;  %6162 = vpow2.f32 %v2264_v14  ;;  %5466 = vmatmul.mubr.bf16.gmra.mrb[68].mxu0 %v2553_v48 }
 0x5a7   : > { %v6151_v59 = vpop.eup %6150  ;;  %6164 = vrcp.f32 %v2319_v19  ;;  %5514 = vmatpush3.bf16.msra.mxu0 %v9006_v56  ;;  %5469 = vmatprep.mubr.bf16.mxu0 %v2554_v42  ;;  %v2083_v24 = vpop.xlane.xlu0 %2082  ;;  %v9012_v19 = vld [vmem:[#allocation46_spill] sm:$0xff] }
 0x5a8   : > { %5515 = vmatprep.subr.bf16.mxu0 %v9007_v5  ;;  %2394 = vadd.xlane.f32.xlu1 %v7967_v18  ;;  %v2156_v45 = vsub.f32 %v7701_v63, %v2083_v24  ;;  %v2496_v61 = vmul.f32 %v6151_v59, %v7787_v41  ;;  %v2142_v42 = vsub.f32 %v9012_v19, %v7895_v31 }
 0x5a9   : > { %v2085_v23 = vpop.xlane.xlu1 %2084 }
 0x5aa   : > { %v7974_v55 = vpop.eup %6152  ;;  %v2274_v37 = vmul.f32 1.442695, %v2156_v45  ;;  %v2157_v7 = vsub.f32 %v7706_v58, %v2085_v23  ;;  %v2555_v63 = vpack.c.bf16 %v2497_v46, %v2496_v61  ;;  %v2246_v46 = vmul.f32 1.442695, %v2142_v42 }
 0x5ab   : > { %v7978_v2 = vpop.eup %6154  ;;  %5516 = vmatpush3.bf16.msra.mxu0 %v9007_v5  ;;  %2390 = vadd.xlane.f32.xlu0 %v7974_v55  ;;  %v9013_v5 = vld [vmem:[#allocation44_spill] sm:$0xff] }
 0x5ac   : > { %6166 = vpow2.f32 %v2274_v37  ;;  %v2276_v3 = vmul.f32 1.442695, %v2157_v7  ;;  %5517 = vmatprep.subr.bf16.mxu0 %v9008_v11  ;;  %2396 = vadd.xlane.f32.xlu1 %v7978_v2  ;;  %v6157_v15 = vpop.eup %6156  ;;  %v2144_v45 = vsub.f32 %v9013_v5, %v7877_v36  ;;  %v2143_v36 = vsub.f32 %v7697_v33, %v7899_v49 }
 0x5ad   : > { %v2081_v4 = vpop.xlane.xlu1 %2080  ;;  %v6159_v9 = vpop.eup %6158 }
 0x5ae   : > { %v2155_v58 = vsub.f32 %v7709_v25, %v2081_v4  ;;  %5470 = vmatmul.mubr.bf16.gmra.mrb[72].mxu0 %v2555_v63  ;;  %v6161_v41 = vpop.eup %6160  ;;  %6168 = vpow2.f32 %v2276_v3  ;;  %v2501_v21 = vmul.f32 %v6159_v9, %v7815_v27  ;;  %v2500_v25 = vmul.f32 %v6157_v15, %v7812_v29  ;;  %v9011_v29 = vld [vmem:[#allocation21_spill] sm:$0xff] }
 0x5af   : > { %5518 = vmatpush3.bf16.msra.mxu0 %v9008_v11  ;;  %v2499_v32 = vmul.f32 %v6161_v41, %v7819_v20  ;;  %v2250_v37 = vmul.f32 1.442695, %v2144_v45  ;;  %v2248_v41 = vmul.f32 1.442695, %v2143_v36  ;;  %v9015_v45 = vld [vmem:[#allocation38_spill] sm:$0xff] }
 0x5b0   : > { %v7986_v1 = vpop.eup %6162  ;;  %v2272_v6 = vmul.f32 1.442695, %v2155_v58  ;;  %5519 = vmatprep.subr.bf16.mxu0 %v9009_v8  ;;  %v2557_v52 = vpack.c.bf16 %v2501_v21, %v2500_v25  ;;  %v2147_v21 = vsub.f32 %v7721_v54, %v7931_v17 }
 0x5b1   : > { %v6165_v53 = vpop.eup %6164  ;;  %2392 = vadd.xlane.f32.xlu1 %v7986_v1  ;;  %v2093_v48 = vpop.xlane.xlu1 %2092 }
 0x5b2   : > { %v2498_v34 = vmul.f32 %v6165_v53, %v7822_v10  ;;  %6170 = vpow2.f32 %v2272_v6  ;;  %v2079_v10 = vpop.xlane.xlu0 %2078 }
 0x5b3   : > { %5520 = vmatpush3.bf16.msra.mxu0 %v9009_v8  ;;  %v2154_v56 = vsub.f32 %v7704_v22, %v2079_v10  ;;  %v9014_v22 = vld [vmem:[#allocation47_spill] sm:$0xff]  ;;  %v2149_v10 = vsub.f32 %v7718_v44, %v7916_v50 }
 0x5b4   : > { %5521 = vmatprep.subr.bf16.mxu0 %v9010_v60  ;;  %v2556_v38 = vpack.c.bf16 %v2499_v32, %v2498_v34  ;;  %v2145_v7 = vsub.f32 %v9014_v22, %v7881_v12 }
 0x5b5   : > { %v2270_v59 = vmul.f32 1.442695, %v2154_v56  ;;  %v2089_v24 = vpop.xlane.xlu1 %2088 }
 0x5b6   : > { %v7996_v28 = vpop.eup %6166  ;;  %5473 = vmatprep.mubr.bf16.mxu0 %v2556_v38  ;;  %v2091_v14 = vpop.xlane.xlu0 %2090  ;;  %v2252_v11 = vmul.f32 1.442695, %v2145_v7  ;;  %v2159_v33 = vsub.f32 %v7731_v13, %v2089_v24 }
 0x5b7   : > { %5474 = vmatmul.mubr.bf16.gmra.mrb[76].mxu0 %v2557_v52  ;;  %2402 = vadd.xlane.f32.xlu1 %v7996_v28  ;;  %6172 = vpow2.f32 %v2270_v59  ;;  %v2160_v15 = vsub.f32 %v7723_v51, %v2091_v14  ;;  %v2148_v51 = vsub.f32 %v7711_v47, %v7912_v26  ;;  %v2260_v59 = vmul.f32 1.442695, %v2149_v10 }
 0x5b8   : > { %5522 = vmatpush3.bf16.msra.mxu0 %v9010_v60  ;;  %v8000_v27 = vpop.eup %6168  ;;  %6174 = vpow2.f32 %v2246_v46  ;;  %v2280_v32 = vmul.f32 1.442695, %v2159_v33  ;;  %v2256_v60 = vmul.f32 1.442695, %v2147_v21  ;;  %v9018_v33 = vld [vmem:[#allocation24_spill] sm:$0xff] }
 0x5b9   : > { %v8019_v61 = vpop.xlane.xlu1 %2100  ;;  %6176 = vpow2.f32 %v2250_v37  ;;  %v2282_v6 = vmul.f32 1.442695, %v2160_v15  ;;  %v2258_v47 = vmul.f32 1.442695, %v2148_v51  ;;  %v9019_v21 = vld [vmem:[#allocation28_spill] sm:$0xff] }
 0x5ba   : > { %v2087_v43 = vpop.xlane.xlu0 %2086  ;;  %6178 = vpow2.f32 %v2252_v11 }
 0x5bb   : > { %2404 = vadd.xlane.f32.xlu1 %v8000_v27  ;;  %v2158_v31 = vsub.f32 %v7726_v30, %v2087_v43  ;;  %v2146_v30 = vsub.f32 %v7714_v40, %v7927_v16  ;;  %v2161_v40 = vsub.f32 %v7728_v62, %v2093_v48 }
 0x5bc   : > { %v8003_v20 = vpop.eup %6170 }
 0x5bd   : > { %v8027_v4 = vpop.xlane.xlu1 %2096  ;;  %v2278_v12 = vmul.f32 1.442695, %v2158_v31  ;;  %v2254_v34 = vmul.f32 1.442695, %v2146_v30  ;;  %v2284_v38 = vmul.f32 1.442695, %v2161_v40 }
 0x5be   : > { %v8015_v23 = vpop.xlane.xlu0 %2098  ;;  %v2163_v44 = vsub.f32 %v7745_v0, %v8027_v4  ;;  %v9016_v0 = vld [vmem:[#allocation51_spill] sm:$0xff]  ;;  %v9017_v30 = vld [vmem:[#allocation25_spill] sm:$0xff]  ;;  %v9020_v40 = vld [vmem:[#allocation52_spill] sm:$0xff] }
 0x5bf   : > { %2400 = vadd.xlane.f32.xlu1 %v8003_v20  ;;  %6180 = vpow2.f32 %v2278_v12  ;;  %v2164_v56 = vsub.f32 %v7737_v39, %v8015_v23 }
 0x5c0   : > { %6182 = vpow2.f32 %v2248_v41  ;;  %v2288_v11 = vmul.f32 1.442695, %v2163_v44 }
 0x5c1   : > { %1359 = vrot.lane.b32.xlu0 %v9011_v29, %s6645_s21  ;;  %v8022_v63 = vpop.eup %6172  ;;  %6184 = vpow2.f32 %v2282_v6  ;;  %v2290_v39 = vmul.f32 1.442695, %v2164_v56  ;;  %v9022_v56 = vld [vmem:[#allocation35_spill] sm:$0xff] }
 0x5c2   : > { %v2095_v3 = vpop.xlane.xlu0 %2094  ;;  %v8030_v58 = vpop.eup %6174 }
 0x5c3   : > { %v8040_v53 = vpop.eup %6176  ;;  %v2162_v13 = vsub.f32 %v7740_v57, %v2095_v3  ;;  %v2165_v3 = vsub.f32 %v9016_v0, %v8019_v61 }
 0x5c4   : > { %v8047_v25 = vpop.eup %6178 }
 0x5c5   : > { %v2286_v62 = vmul.f32 1.442695, %v2162_v13  ;;  %v2292_v12 = vmul.f32 1.442695, %v2165_v3 }
 0x5c6   : > { %v2331_v9 = vpop.xlane.xlu0 %2330 }
 0x5c9   : > { %v8052_v52 = vpop.eup %6180 }
 0x5d0   : > { %1383 = vrot.lane.b32.xlu1 %v9011_v29, %s6646_s22  ;;  %v8057_v29 = vpop.eup %6182 }
 0x5d1   : > { %v8061_v14 = vpop.eup %6184 }
 0x5e0   : > { %2398 = vadd.xlane.f32.xlu0 %v8022_v63  ;;  %v8038_v49 = vpop.xlane.xlu0 %2362 }
 0x5e4   : > { %v2327_v8 = vpop.xlane.xlu1 %2326  ;;  %2374 = vadd.xlane.f32.xlu0 %v8030_v58 }
 0x5e8   : > { %v2359_v16 = vpop.xlane.xlu1 %2358  ;;  %2378 = vadd.xlane.f32.xlu0 %v8040_v53 }
 0x5e9   : > { %6186 = vrcp.f32 %v2359_v16 }
 0x5ea   : > { %v2361_v26 = vpop.xlane.xlu0 %2360 }
 0x5eb   : > { %6188 = vrcp.f32 %v2361_v26 }
 0x5ec   : > { %6190 = vpow2.f32 %v2254_v34  ;;  %v2333_v54 = vpop.xlane.xlu1 %2332  ;;  %2380 = vadd.xlane.f32.xlu0 %v8047_v25 }
 0x5ed   : > { %6192 = vpow2.f32 %v2280_v32 }
 0x5ee   : > { %6194 = vpow2.f32 %v2258_v47  ;;  %v8050_v17 = vpop.xlane.xlu0 %2338 }
 0x5ef   : > { %6196 = vpow2.f32 %v2256_v60 }
 0x5f0   : > { %6198 = vpow2.f32 %v2284_v38  ;;  %v8054_v57 = vpop.xlane.xlu1 %2364  ;;  %2406 = vadd.xlane.f32.xlu0 %v8052_v52 }
 0x5f1   : > { %6200 = vpow2.f32 %v2286_v62 }
 0x5f2   : > { %6202 = vrcp.f32 %v2333_v54  ;;  %v8065_v48 = vpop.xlane.xlu0 %2370  ;;  %v9021_v54 = vld [vmem:[#allocation23_spill] sm:$0xff] }
 0x5f3   : > { %v6187_v43 = vpop.eup %6186  ;;  %6204 = vrcp.f32 %v2327_v8 }
 0x5f4   : > { %6206 = vrcp.f32 %v2331_v9  ;;  %v2329_v19 = vpop.xlane.xlu1 %2328  ;;  %2376 = vadd.xlane.f32.xlu1 %v8057_v29  ;;  %2410 = vadd.xlane.f32.xlu0 %v8061_v14  ;;  %v2518_v5 = vmul.f32 %v6187_v43, %v7857_v35 }
 0x5f5   : > { %v6189_v42 = vpop.eup %6188  ;;  %6208 = vrcp.f32 %v2329_v19 }
 0x5f6   : > { %v8071_v50 = vpop.eup %6190  ;;  %v2335_v24 = vpop.xlane.xlu0 %2334  ;;  %v2519_v46 = vmul.f32 %v6189_v42, %v9015_v45  ;;  %6210 = vpow2.f32 %v2260_v59  ;;  %v9023_v59 = vld [vmem:[#allocation37_spill] sm:$0xff] }
 0x5f7   : > { %v8075_v23 = vpop.eup %6192  ;;  %6212 = vpow2.f32 %v2290_v39 }
 0x5f8   : > { %v8077_v37 = vpop.eup %6194  ;;  %2408 = vadd.xlane.f32.xlu1 %v8075_v23  ;;  %2382 = vadd.xlane.f32.xlu0 %v8071_v50  ;;  %v2566_v22 = vpack.c.bf16 %v2519_v46, %v2518_v5  ;;  %6214 = vpow2.f32 %v2288_v11  ;;  %v9026_v11 = vld [vmem:[#allocation40_spill] sm:$0xff] }
 0x5f9   : > { %v8081_v7 = vpop.eup %6196  ;;  %6216 = vpow2.f32 %v2292_v12 }
 0x5fa   : > { %v8085_v31 = vpop.eup %6198  ;;  %5525 = vmatprep.mubr.bf16.mxu0 %v2566_v22  ;;  %v8087_v35 = vpop.xlane.xlu0 %2366  ;;  %v9025_v22 = vld [vmem:[#allocation30_spill] sm:$0xff] }
 0x5fb   : > { %v8089_v36 = vpop.eup %6200  ;;  %v8094_v8 = vpop.xlane.xlu1 %2368 }
 0x5fc   : > { %v6203_v15 = vpop.eup %6202  ;;  %2412 = vadd.xlane.f32.xlu1 %v8085_v31  ;;  %2386 = vadd.xlane.f32.xlu0 %v8077_v37 }
 0x5fd   : > { %v6205_v4 = vpop.eup %6204  ;;  %v2505_v6 = vmul.f32 %v6203_v15, %v9017_v30 }
 0x5fe   : > { %v6207_v9 = vpop.eup %6206  ;;  %v2341_v41 = vpop.xlane.xlu0 %2340  ;;  %v2502_v51 = vmul.f32 %v6205_v4, %v9018_v33  ;;  %v9027_v4 = vld [vmem:[#allocation56_spill] sm:$0xff] }
 0x5ff   : > { %v6209_v61 = vpop.eup %6208  ;;  %v2504_v16 = vmul.f32 %v6207_v9, %v9020_v40  ;;  %6218 = vrcp.f32 %v2341_v41  ;;  %v2347_v38 = vpop.xlane.xlu1 %2346  ;;  %v9028_v9 = vld [vmem:[#allocation48_spill] sm:$0xff]  ;;  %v9029_v41 = vld [vmem:[#allocation39_spill] sm:$0xff]  ;;  %v9030_v40 = vld [vmem:[#allocation49_spill] sm:$0xff] }
 0x600   : > { %2384 = vadd.xlane.f32.xlu1 %v8081_v7  ;;  %2414 = vadd.xlane.f32.xlu0 %v8089_v36  ;;  %v2503_v34 = vmul.f32 %v6209_v61, %v9019_v21  ;;  %v8103_v47 = vpop.eup %6210  ;;  %6220 = vrcp.f32 %v2335_v24  ;;  %v9024_v24 = vld [vmem:[#allocation43_spill] sm:$0xff] }
 0x601   : > { %v2559_v26 = vpack.c.bf16 %v2505_v6, %v2504_v16  ;;  %v8105_v60 = vpop.eup %6212  ;;  %6222 = vrcp.f32 %v8050_v17 }
 0x602   : > { %v8101_v32 = vpop.xlane.xlu0 %2372  ;;  %v2558_v13 = vpack.c.bf16 %v2503_v34, %v2502_v51  ;;  %v8111_v10 = vpop.eup %6214 }
 0x603   : > { %v8116_v42 = vpop.eup %6216 }
 0x604   : > { %5493 = vmatprep.mubr.bf16.mxu1 %v2558_v13  ;;  %2388 = vadd.xlane.f32.xlu1 %v8103_v47  ;;  %v2343_v43 = vpop.xlane.xlu1 %2342 }
 0x605   : > { %2418 = vadd.xlane.f32.xlu0 %v8105_v60  ;;  %5494 = vmatmul.mubr.bf16.vlgmr.msra.gmra.mrb[48].mxu1 %v2559_v26  ;;  %v9031_v26 = vld [vmem:[#allocation57_spill] sm:$0xff] }
 0x606   : > { %5542 = vmatpush3.bf16.msra.mxu1 %v9021_v54  ;;  %v2337_v62 = vpop.xlane.xlu0 %2336  ;;  %v9032_v54 = vld [vmem:[#allocation55_spill] sm:$0xff] }
 0x607   : > { %5543 = vmatprep.subr.bf16.mxu1 %v9022_v56  ;;  %6224 = vrcp.f32 %v2337_v62 }
 0x608   : > { %2416 = vadd.xlane.f32.xlu1 %v8111_v10 }
 0x609   : > { %v6219_v17 = vpop.eup %6218 }
 0x60a   : > { %5544 = vmatpush3.bf16.msra.mxu1 %v9022_v56  ;;  %v2349_v19 = vpop.xlane.xlu0 %2348  ;;  %v6221_v39 = vpop.eup %6220  ;;  %v2509_v0 = vmul.f32 %v6219_v17, %v9025_v22  ;;  %v9033_v56 = vld [vmem:[#allocation59_spill] sm:$0xff]  ;;  %v9036_v22 = vld [vmem:[#allocation60_spill] sm:$0xff] }
 0x60b   : > { %5545 = vmatprep.subr.bf16.mxu1 %v9023_v59  ;;  %6226 = vrcp.f32 %v2349_v19  ;;  %v6223_v5 = vpop.eup %6222  ;;  %v2506_v15 = vmul.f32 %v6221_v39, %v9026_v11  ;;  %v9034_v19 = vld [vmem:[#allocation50_spill] sm:$0xff] }
 0x60c   : > { %2420 = vadd.xlane.f32.xlu1 %v8116_v42  ;;  %6228 = vrcp.f32 %v2343_v43  ;;  %v2355_v45 = vpop.xlane.xlu1 %2354  ;;  %v2508_v61 = vmul.f32 %v6223_v5, %v9029_v41 }
 0x60d   : > { %6230 = vrcp.f32 %v2347_v38 }
 0x60e   : > { %5546 = vmatpush3.bf16.msra.mxu1 %v9023_v59  ;;  %v2345_v44 = vpop.xlane.xlu0 %2344  ;;  %v2561_v33 = vpack.c.bf16 %v2509_v0, %v2508_v61  ;;  %v9035_v59 = vld [vmem:[#allocation31_spill] sm:$0xff] }
 0x60f   : > { %5547 = vmatprep.subr.bf16.mxu1 %v9024_v24  ;;  %6232 = vrcp.f32 %v2345_v44 }
 0x611   : > { %v6225_v46 = vpop.eup %6224 }
 0x612   : > { %5548 = vmatpush3.bf16.msra.mxu1 %v9024_v24  ;;  %v2357_v3 = vpop.xlane.xlu0 %2356  ;;  %v2507_v12 = vmul.f32 %v6225_v46, %v9027_v4 }
 0x613   : > { %5549 = vmatprep.subr.bf16.mxu1 %v9028_v9  ;;  %6234 = vrcp.f32 %v2357_v3  ;;  %v9037_v3 = vld [vmem:[#allocation61_spill] sm:$0xff] }
 0x614   : > { %v2351_v30 = vpop.xlane.xlu1 %2350  ;;  %v2560_v6 = vpack.c.bf16 %v2507_v12, %v2506_v15  ;;  %v9038_v15 = vld [vmem:[#allocation62_spill] sm:$0xff] }
 0x615   : > { %6236 = vrcp.f32 %v2351_v30  ;;  %v6227_v51 = vpop.eup %6226  ;;  %v9039_v12 = vld [vmem:[#allocation58_spill] sm:$0xff] }
 0x616   : > { %6238 = vrcp.f32 %v2355_v45  ;;  %5550 = vmatpush3.bf16.msra.mxu1 %v9028_v9  ;;  %5497 = vmatprep.mubr.bf16.mxu1 %v2560_v6  ;;  %v2353_v21 = vpop.xlane.xlu0 %2352  ;;  %v6229_v34 = vpop.eup %6228  ;;  %v2513_v38 = vmul.f32 %v6227_v51, %v9031_v26  ;;  %v9041_v26 = vld [vmem:[#allocation27_spill] sm:$0xff] }
 0x617   : > { %5551 = vmatprep.subr.bf16.mxu1 %v9030_v40  ;;  %6240 = vrcp.f32 %v2353_v21  ;;  %5498 = vmatmul.mubr.bf16.gmra.mrb[52].mxu1 %v2561_v33  ;;  %v6231_v16 = vpop.eup %6230  ;;  %v2510_v62 = vmul.f32 %v6229_v34, %v9032_v54  ;;  %v9043_v54 = vld [vmem:[#allocation53_spill] sm:$0xff] }
 0x618   : > { %v2512_v17 = vmul.f32 %v6231_v16, %v9035_v59  ;;  %6242 = vrcp.f32 %v8054_v57  ;;  %v9040_v16 = vld [vmem:[#allocation26_spill] sm:$0xff] }
 0x619   : > { %v6233_v13 = vpop.eup %6232  ;;  %6244 = vrcp.f32 %v8094_v8 }
 0x61a   : > { %5552 = vmatpush3.bf16.msra.mxu1 %v9030_v40  ;;  %v2511_v43 = vmul.f32 %v6233_v13, %v9033_v56  ;;  %v2563_v39 = vpack.c.bf16 %v2513_v38, %v2512_v17  ;;  %6246 = vrcp.f32 %v8087_v35  ;;  %v9042_v38 = vld [vmem:[#allocation29_spill] sm:$0xff] }
 0x61b   : > { %5553 = vmatprep.subr.bf16.mxu1 %v9034_v19  ;;  %6248 = vrcp.f32 %v8038_v49 }
 0x61c   : > { %v2562_v44 = vpack.c.bf16 %v2511_v43, %v2510_v62  ;;  %6250 = vrcp.f32 %v8101_v32 }
 0x61d   : > { %v6235_v24 = vpop.eup %6234  ;;  %6252 = vrcp.f32 %v8065_v48 }
 0x61e   : > { %5554 = vmatpush3.bf16.msra.mxu1 %v9034_v19  ;;  %5501 = vmatprep.mubr.bf16.mxu1 %v2562_v44  ;;  %v2517_v0 = vmul.f32 %v6235_v24, %v9036_v22  ;;  %v9044_v19 = vld [vmem:[#allocation54_spill] sm:$0xff] }
 0x61f   : > { %v6237_v5 = vpop.eup %6236  ;;  %5502 = vmatmul.mubr.bf16.gmra.mrb[56].mxu1 %v2563_v39  ;;  %v9045_v44 = vld [vmem:[#allocation42_spill] sm:$0xff] }
 0x620   : > { %v6239_v45 = vpop.eup %6238  ;;  %v2514_v11 = vmul.f32 %v6237_v5, %v9037_v3 }
 0x621   : > { %v6241_v46 = vpop.eup %6240  ;;  %v2516_v9 = vmul.f32 %v6239_v45, %v9039_v12 }
 0x622   : > { %v2515_v4 = vmul.f32 %v6241_v46, %v9038_v15  ;;  %v6243_v6 = vpop.eup %6242 }
 0x623   : > { %v2565_v61 = vpack.c.bf16 %v2517_v0, %v2516_v9  ;;  %v6245_v33 = vpop.eup %6244  ;;  %v2521_v13 = vmul.f32 %v6243_v6, %v9040_v16 }
 0x624   : > { %v2564_v41 = vpack.c.bf16 %v2515_v4, %v2514_v11  ;;  %v6247_v21 = vpop.eup %6246  ;;  %v2523_v35 = vmul.f32 %v6245_v33, %v9042_v38 }
 0x625   : > { %v6249_v34 = vpop.eup %6248  ;;  %v2522_v8 = vmul.f32 %v6247_v21, %v9041_v26 }
 0x626   : > { %5505 = vmatprep.mubr.bf16.mxu1 %v2564_v41  ;;  %v2520_v49 = vmul.f32 %v6249_v34, %v9043_v54  ;;  %v6251_v48 = vpop.eup %6250 }
 0x627   : > { %5506 = vmatmul.mubr.bf16.gmra.mrb[60].mxu1 %v2565_v61  ;;  %v2568_v56 = vpack.c.bf16 %v2523_v35, %v2522_v8  ;;  %v6253_v43 = vpop.eup %6252  ;;  %v2525_v59 = vmul.f32 %v6251_v48, %v9044_v19 }
 0x628   : > { %v2567_v62 = vpack.c.bf16 %v2521_v13, %v2520_v49  ;;  %v2524_v39 = vmul.f32 %v6253_v43, %v9045_v44 }
 0x62a   : > { %v2569_v5 = vpack.c.bf16 %v2525_v59, %v2524_v39 }
 0x635   : > { %v2395_v30 = vpop.xlane.xlu1 %2394 }
 0x638   : > { %v2391_v51 = vpop.xlane.xlu0 %2390 }
 0x639   : > { %v2397_v40 = vpop.xlane.xlu1 %2396  ;;  %6254 = vrcp.f32 %v2391_v51 }
 0x63c   : > { %v1360_v57 = vpop.permute.xlu0 %1359 }
 0x63d   : > { %5523 = vmatprep.subr.bf16.mxu0 %v1360_v57 }
 0x63e   : > { %v2393_v32 = vpop.xlane.xlu1 %2392  ;;  %5524 = vmatpush3.bf16.msra.mxu0 %v1360_v57 }
 0x63f   : > { %6256 = vrcp.f32 %v2393_v32 }
 0x640   : > { %6258 = vrcp.f32 %v2397_v40 }
 0x641   : > { %5526 = vmatmul.mubr.bf16.vlgmr.msra.gmra.mrb[80].mxu0 %v2567_v62  ;;  %6260 = vrcp.f32 %v2395_v30 }
 0x642   : > { %5529 = vmatprep.mubr.bf16.mxu0 %v2568_v56 }
 0x643   : > { %v6255_v24 = vpop.eup %6254 }
 0x644   : > { %v2403_v17 = vpop.xlane.xlu1 %2402  ;;  %v2534_v22 = vmul.f32 %v6255_v24, %v7974_v55 }
 0x648   : > { %v2405_v45 = vpop.xlane.xlu1 %2404 }
 0x649   : > { %v6257_v46 = vpop.eup %6256  ;;  %5530 = vmatmul.mubr.bf16.gmra.mrb[84].mxu0 %v2569_v5  ;;  %6262 = vrcp.f32 %v2405_v45 }
 0x64a   : > { %v2535_v0 = vmul.f32 %v6257_v46, %v7986_v1  ;;  %v6259_v3 = vpop.eup %6258 }
 0x64b   : > { %v6261_v4 = vpop.eup %6260  ;;  %v2537_v12 = vmul.f32 %v6259_v3, %v7978_v2 }
 0x64c   : > { %v2401_v11 = vpop.xlane.xlu1 %2400  ;;  %v2574_v15 = vpack.c.bf16 %v2535_v0, %v2534_v22  ;;  %v2536_v41 = vmul.f32 %v6261_v4, %v7967_v18 }
 0x64d   : > { %6264 = vrcp.f32 %v2401_v11 }
 0x64e   : > { %5557 = vmatprep.mubr.bf16.mxu1 %v2574_v15  ;;  %v2575_v61 = vpack.c.bf16 %v2537_v12, %v2536_v41  ;;  %6266 = vrcp.f32 %v2403_v17 }
 0x650   : > { %v1384_v9 = vpop.permute.xlu1 %1383 }
 0x651   : > { %5555 = vmatprep.subr.bf16.mxu1 %v1384_v9 }
 0x652   : > { %5556 = vmatpush3.bf16.msra.mxu1 %v1384_v9 }
 0x653   : > { %v6263_v51 = vpop.eup %6262 }
 0x654   : > { %v2541_v16 = vmul.f32 %v6263_v51, %v8000_v27 }
 0x655   : > { %5558 = vmatmul.mubr.bf16.vlgmr.msra.gmra.mrb[64].mxu1 %v2575_v61 }
 0x657   : > { %v6265_v21 = vpop.eup %6264 }
 0x658   : > { %v6267_v34 = vpop.eup %6266  ;;  %v2539_v8 = vmul.f32 %v6265_v21, %v8003_v20 }
 0x659   : > { %v2540_v35 = vmul.f32 %v6267_v34, %v7996_v28 }
 0x65b   : > { %v2577_v62 = vpack.c.bf16 %v2541_v16, %v2540_v35 }
 0x66d   : > { %v2399_v55 = vpop.xlane.xlu0 %2398 }
 0x66e   : > { %6268 = vrcp.f32 %v2399_v55 }
 0x671   : > { %v8157_v1 = vpop.f32.mrb[64].mxu0  ;;  %v2375_v30 = vpop.xlane.xlu0 %2374 }
 0x672   : > { %v8159_v6 = vpop.f32.mrb[65].mxu0 }
 0x673   : > { %v8161_v33 = vpop.f32.mrb[66].mxu0 }
 0x674   : > { %v8163_v2 = vpop.f32.mrb[67].mxu0 }
 0x675   : > { %v2379_v18 = vpop.xlane.xlu0 %2378 }
 0x678   : > { %v6269_v40 = vpop.eup %6268 }
 0x679   : > { %v8166_v13 = vpop.f32.mrb[68].mxu0  ;;  %v2381_v57 = vpop.xlane.xlu0 %2380  ;;  %v2538_v26 = vmul.f32 %v6269_v40, %v8022_v63 }
 0x67a   : > { %v8170_v38 = vpop.f32.mrb[69].mxu0  ;;  %6270 = vrcp.f32 %v2381_v57 }
 0x67b   : > { %v8173_v54 = vpop.f32.mrb[70].mxu0  ;;  %v2576_v49 = vpack.c.bf16 %v2539_v8, %v2538_v26  ;;  %6272 = vrcp.f32 %v2375_v30 }
 0x67c   : > { %v8175_v32 = vpop.f32.mrb[71].mxu0  ;;  %6274 = vrcp.f32 %v2379_v18 }
 0x67d   : > { %5561 = vmatprep.mubr.bf16.mxu1 %v2576_v49  ;;  %v2407_v48 = vpop.xlane.xlu0 %2406 }
 0x67e   : > { %5562 = vmatmul.mubr.bf16.gmra.mrb[68].mxu1 %v2577_v62 }
 0x681   : > { %v8177_v27 = vpop.f32.mrb[72].mxu0  ;;  %v2377_v63 = vpop.xlane.xlu1 %2376 }
 0x682   : > { %6276 = vrcp.f32 %v2377_v63  ;;  %v2411_v20 = vpop.xlane.xlu0 %2410  ;;  %v8179_v56 = vpop.f32.mrb[73].mxu0 }
 0x683   : > { %v8181_v28 = vpop.f32.mrb[74].mxu0  ;;  %6278 = vrcp.f32 %v2407_v48 }
 0x684   : > { %v8183_v43 = vpop.f32.mrb[75].mxu0  ;;  %v6271_v17 = vpop.eup %6270 }
 0x685   : > { %v2409_v19 = vpop.xlane.xlu1 %2408  ;;  %v6273_v39 = vpop.eup %6272  ;;  %v2529_v3 = vmul.f32 %v6271_v17, %v8047_v25 }
 0x686   : > { %6280 = vrcp.f32 %v2409_v19  ;;  %v2383_v59 = vpop.xlane.xlu0 %2382  ;;  %v6275_v45 = vpop.eup %6274  ;;  %v2526_v4 = vmul.f32 %v6273_v39, %v8030_v58 }
 0x687   : > { %6282 = vrcp.f32 %v2411_v20  ;;  %v2528_v41 = vmul.f32 %v6275_v45, %v8040_v53 }
 0x689   : > { %v2413_v44 = vpop.xlane.xlu1 %2412  ;;  %v2571_v51 = vpack.c.bf16 %v2529_v3, %v2528_v41 }
 0x68a   : > { %v8185_v24 = vpop.f32.mrb[76].mxu0  ;;  %6284 = vrcp.f32 %v2413_v44  ;;  %v2387_v5 = vpop.xlane.xlu0 %2386 }
 0x68b   : > { %v8187_v46 = vpop.f32.mrb[77].mxu0  ;;  %6286 = vrcp.f32 %v2383_v59 }
 0x68c   : > { %v6277_v22 = vpop.eup %6276  ;;  %v8189_v0 = vpop.f32.mrb[78].mxu0 }
 0x68d   : > { %v8192_v11 = vpop.f32.mrb[79].mxu0  ;;  %v2385_v15 = vpop.xlane.xlu1 %2384  ;;  %v2527_v12 = vmul.f32 %v6277_v22, %v8057_v29 }
 0x68e   : > { %v6279_v9 = vpop.eup %6278  ;;  %6288 = vrcp.f32 %v2385_v15  ;;  %v2415_v61 = vpop.xlane.xlu0 %2414 }
 0x68f   : > { %v2570_v55 = vpack.c.bf16 %v2527_v12, %v2526_v4  ;;  %6290 = vrcp.f32 %v2387_v5  ;;  %v2542_v25 = vmul.f32 %v6279_v9, %v8052_v52 }
 0x690   : > { %v6281_v30 = vpop.eup %6280 }
 0x691   : > { %v2389_v18 = vpop.xlane.xlu1 %2388  ;;  %5533 = vmatprep.mubr.bf16.mxu0 %v2570_v55  ;;  %v2543_v21 = vmul.f32 %v6281_v30, %v8075_v23  ;;  %v6283_v34 = vpop.eup %6282 }
 0x692   : > { %6292 = vrcp.f32 %v2389_v18  ;;  %5534 = vmatmul.mubr.bf16.gmra.mrb[88].mxu0 %v2571_v51  ;;  %v2419_v40 = vpop.xlane.xlu0 %2418  ;;  %v2544_v53 = vmul.f32 %v6283_v34, %v8061_v14 }
 0x693   : > { %v2578_v58 = vpack.c.bf16 %v2543_v21, %v2542_v25  ;;  %6294 = vrcp.f32 %v2415_v61 }
 0x694   : > { %v6285_v29 = vpop.eup %6284 }
 0x695   : > { %v2417_v16 = vpop.xlane.xlu1 %2416  ;;  %5565 = vmatprep.mubr.bf16.mxu1 %v2578_v58  ;;  %v2545_v57 = vmul.f32 %v6285_v29, %v8085_v31  ;;  %v6287_v26 = vpop.eup %6286 }
 0x696   : > { %6296 = vrcp.f32 %v2417_v16  ;;  %v2530_v23 = vmul.f32 %v6287_v26, %v8071_v50  ;;  %v5927_v26 = vld [vmem:[#allocation10 + $0x8] sm:$0xff]  }
 0x697   : > { %v2579_v8 = vpack.c.bf16 %v2545_v57, %v2544_v53  ;;  %6298 = vrcp.f32 %v2419_v40  ;;  %v5926_v57 = vld [vmem:[#allocation10] sm:$0xff]  }
 0x698   : > { %v6289_v35 = vpop.eup %6288  ;;  %5573 = vmatprep.subr.bf16.mxu0 %v5926_v57 }
 0x699   : > { %v2421_v52 = vpop.xlane.xlu1 %2420  ;;  %5566 = vmatmul.mubr.bf16.gmra.mrb[72].mxu1 %v2579_v8  ;;  %v2531_v49 = vmul.f32 %v6289_v35, %v8081_v7  ;;  %v6291_v62 = vpop.eup %6290  ;;  %5574 = vmatpush3.bf16.msra.mxu0 %v5926_v57  ;;  %v5928_v8 = vld [vmem:[#allocation10 + $0x10] sm:$0xff]   ;;  %v5929_v35 = vld [vmem:[#allocation10 + $0x18] sm:$0xff]  }
 0x69a   : > { %6300 = vrcp.f32 %v2421_v52  ;;  %v2532_v14 = vmul.f32 %v6291_v62, %v8077_v37  ;;  %v9046_v37 = vmov 0   ;;  %5575 = vmatprep.subr.bf16.mxu0 %v5927_v26  ;;  %v5930_v52 = vld [vmem:[#allocation10 + $0x20] sm:$0xff]  }
 0x69b   : > { %v2572_v48 = vpack.c.bf16 %v2531_v49, %v2530_v23 }
 0x69c   : > { %v6293_v63 = vpop.eup %6292 }
 0x69d   : > { %5537 = vmatprep.mubr.bf16.mxu0 %v2572_v48  ;;  %v2533_v31 = vmul.f32 %v6293_v63, %v8103_v47  ;;  %v6295_v20 = vpop.eup %6294  ;;  %5576 = vmatpush3.bf16.msra.mxu0 %v5927_v26  ;;  %v5931_v48 = vld [vmem:[#allocation10 + $0x28] sm:$0xff]  }
 0x69e   : > { %v2546_v17 = vmul.f32 %v6295_v20, %v8089_v36  ;;  %5577 = vmatprep.subr.bf16.mxu0 %v5928_v8  ;;  %v5932_v20 = vld [vmem:[#allocation10 + $0x30] sm:$0xff]  }
 0x69f   : > { %v2573_v19 = vpack.c.bf16 %v2533_v31, %v2532_v14 }
 0x6a0   : > { %v6297_v59 = vpop.eup %6296 }
 0x6a1   : > { %5538 = vmatmul.mubr.bf16.gmra.mrb[92].mxu0 %v2573_v19  ;;  %v2547_v44 = vmul.f32 %v6297_v59, %v8111_v10  ;;  %v6299_v50 = vpop.eup %6298 }
 0x6a2   : > { %v2548_v5 = vmul.f32 %v6299_v50, %v8105_v60  ;;  %5578 = vmatpush3.bf16.msra.mxu0 %v5928_v8 }
 0x6a3   : > { %v2580_v39 = vpack.c.bf16 %v2547_v44, %v2546_v17  ;;  %5579 = vmatprep.subr.bf16.mxu0 %v5929_v35 }
 0x6a4   : > { %v6301_v7 = vpop.eup %6300 }
 0x6a5   : > { %5569 = vmatprep.mubr.bf16.mxu1 %v2580_v39  ;;  %v2549_v45 = vmul.f32 %v6301_v7, %v8116_v42  ;;  %v5933_v7 = vld [vmem:[#allocation10 + $0x38] sm:$0xff]  }
 0x6a6   : > { %5580 = vmatpush3.bf16.msra.mxu0 %v5929_v35 }
 0x6a7   : > { %v2581_v22 = vpack.c.bf16 %v2549_v45, %v2548_v5  ;;  %5581 = vmatprep.subr.bf16.mxu0 %v5930_v52 }
 0x6a9   : > { %5570 = vmatmul.mubr.bf16.gmra.mrb[76].mxu1 %v2581_v22 }
 0x6aa   : > { %3896 = vmatprep.mubr.bf16.mxu1 %v9046_v37  ;;  %5582 = vmatpush3.bf16.msra.mxu0 %v5930_v52 }
 0x6ab   : > { %5583 = vmatprep.subr.bf16.mxu0 %v5931_v48 }
 0x6ae   : > { %5584 = vmatpush3.bf16.msra.mxu0 %v5931_v48 }
 0x6af   : > { %5585 = vmatprep.subr.bf16.mxu0 %v5932_v20 }
 0x6b2   : > { %5586 = vmatpush3.bf16.msra.mxu0 %v5932_v20 }
 0x6b3   : > { %5587 = vmatprep.subr.bf16.mxu0 %v5933_v7 }
 0x6b6   : > { %5588 = vmatpush3.bf16.msra.mxu0 %v5933_v7 }
 0x6d8   : > { %v5495_v47 = vpop.f32.mrb[48].mxu1 }
 0x6d9   : > { %v2713_v3 = vpop.f32.mrb[49].mxu1 }
 0x6da   : > { %v5496_v15 = vpop.f32.mrb[50].mxu1 }
 0x6db   : > { %v5774_v4 = vpack.i.bf16 %v5496_v15, %v5495_v47  ;;  %v2716_v12 = vpop.f32.mrb[51].mxu1 }
 0x6dc   : > { %v5784_v36 = vpack.i.bf16 %v2716_v12, %v2713_v3 }
 0x6dd   : > { %5775 = vrot.lane.b32.xlu1 %v5774_v4, %s6646_s22 }
 0x6de   : > { %5785 = vrot.lane.b32.xlu0 %v5784_v36, %s6646_s22 }
 0x6ea   : > { %v8212_v10 = vpop.f32.mrb[52].mxu1 }
 0x6eb   : > { %v8214_v9 = vpop.f32.mrb[53].mxu1 }
 0x6ec   : > { %v5500_v60 = vpop.f32.mrb[54].mxu1 }
 0x6ed   : > { %v5809_v42 = vpack.i.bf16 %v5500_v60, %v8212_v10  ;;  %v2732_v41 = vpop.f32.mrb[55].mxu1 }
 0x6ee   : > { %v5804_v61 = vpack.i.bf16 %v2732_v41, %v8214_v9 }
 0x6f2   : > { %v8218_v55 = vpop.f32.mrb[56].mxu1 }
 0x6f3   : > { %v8220_v30 = vpop.f32.mrb[57].mxu1 }
 0x6f4   : > { %v8222_v51 = vpop.f32.mrb[58].mxu1 }
 0x6f5   : > { %v5839_v18 = vpack.i.bf16 %v8222_v51, %v8218_v55  ;;  %v8226_v25 = vpop.f32.mrb[59].mxu1 }
 0x6f6   : > { %v5834_v21 = vpack.i.bf16 %v8226_v25, %v8220_v30 }
 0x6fa   : > { %v8230_v34 = vpop.f32.mrb[60].mxu1 }
 0x6fb   : > { %v8232_v58 = vpop.f32.mrb[61].mxu1 }
 0x6fc   : > { %v8234_v29 = vpop.f32.mrb[62].mxu1 }
 0x6fd   : > { %v5869_v40 = vpack.i.bf16 %v8234_v29, %v8230_v34  ;;  %v8238_v16 = vpop.f32.mrb[63].mxu1 }
 0x6fe   : > { %v5864_v53 = vpack.i.bf16 %v8238_v16, %v8232_v58 }
 0x714   : > { %v5527_v23 = vpop.f32.mrb[80].mxu0 }
 0x715   : > { %v2810_v49 = vpop.f32.mrb[81].mxu0 }
 0x716   : > { %v5528_v62 = vpop.f32.mrb[82].mxu0 }
 0x717   : > { %v5779_v63 = vpack.i.bf16 %v5528_v62, %v5527_v23  ;;  %v2813_v14 = vpop.f32.mrb[83].mxu0 }
 0x718   : > { %v5789_v31 = vpack.i.bf16 %v2813_v14, %v2810_v49 }
 0x719   : > { %5780 = vrot.lane.b32.xlu1 %v5779_v63, %s6645_s21 }
 0x71c   : > { %v5531_v19 = vpop.f32.mrb[84].mxu0 }
 0x71d   : > { %5790 = vrot.lane.b32.xlu1 %v5789_v31, %s6645_s21  ;;  %v2826_v59 = vpop.f32.mrb[85].mxu0 }
 0x71e   : > { %v5532_v17 = vpop.f32.mrb[86].mxu0 }
 0x71f   : > { %v5819_v44 = vpack.i.bf16 %v5532_v17, %v5531_v19  ;;  %v2829_v50 = vpop.f32.mrb[87].mxu0 }
 0x720   : > { %v5814_v39 = vpack.i.bf16 %v2829_v50, %v2826_v59 }
 0x728   : > { %v5559_v5 = vpop.f32.mrb[64].mxu1 }
 0x729   : > { %v2907_v45 = vpop.f32.mrb[65].mxu1 }
 0x72a   : > { %v5560_v22 = vpop.f32.mrb[66].mxu1 }
 0x72b   : > { %v5799_v47 = vpack.i.bf16 %v5560_v22, %v5559_v5  ;;  %v2910_v3 = vpop.f32.mrb[67].mxu1 }
 0x72c   : > { %v5794_v15 = vpack.i.bf16 %v2910_v3, %v2907_v45 }
 0x72d   : > { %5800 = vrot.lane.b32.xlu1 %v5799_v47, %s6644_s29 }
 0x72e   : > { %5795 = vrot.lane.b32.xlu0 %v5794_v15, %s6644_s29 }
 0x731   : > { %5810 = vrot.lane.b32.xlu1 %v5809_v42, %s6646_s22 }
 0x732   : > { %5805 = vrot.lane.b32.xlu0 %v5804_v61, %s6646_s22 }
 0x735   : > { %5820 = vrot.lane.b32.xlu1 %v5819_v44, %s6645_s21 }
 0x736   : > { %5815 = vrot.lane.b32.xlu0 %v5814_v39, %s6645_s21 }
 0x74f   : > { %v5776_v58 = vpop.permute.xlu1 %5775 }
 0x750   : > { %v5786_v16 = vpop.permute.xlu0 %5785  ;;  %v5777_v19 = vunpack.i.l.bf16 %v5776_v58 }
 0x751   : > { %v5563_v4 = vpop.f32.mrb[68].mxu1  ;;  %v5788_v17 = vunpack.i.h.bf16 %v5786_v16  ;;  %v5787_v44 = vunpack.i.l.bf16 %v5786_v16 }
 0x752   : > { %v2923_v12 = vpop.f32.mrb[69].mxu1  ;;  %v3164_v22 = vsel %vm1393_vm0, %v8157_v1, %v5777_v19 }
 0x753   : > { %v5564_v36 = vpop.f32.mrb[70].mxu1  ;;  %v3163_v3 = vsel %vm1393_vm0, %v8163_v2, %v5788_v17  ;;  %v3162_v15 = vsel %vm1393_vm0, %v8159_v6, %v5787_v44 }
 0x754   : > { %v5829_v10 = vpack.i.bf16 %v5564_v36, %v5563_v4  ;;  %v2926_v9 = vpop.f32.mrb[71].mxu1 }
 0x755   : > { %v5824_v60 = vpack.i.bf16 %v2926_v9, %v2923_v12 }
 0x756   : > { %5830 = vrot.lane.b32.xlu1 %v5829_v10, %s6644_s29 }
 0x757   : > { %5825 = vrot.lane.b32.xlu0 %v5824_v60, %s6644_s29 }
 0x75a   : > { %5840 = vrot.lane.b32.xlu1 %v5839_v18, %s6646_s22 }
 0x75b   : > { %5835 = vrot.lane.b32.xlu0 %v5834_v21, %s6646_s22 }
 0x765   : > { %v5535_v42 = vpop.f32.mrb[88].mxu0 }
 0x766   : > { %v2842_v41 = vpop.f32.mrb[89].mxu0 }
 0x767   : > { %v5536_v61 = vpop.f32.mrb[90].mxu0 }
 0x768   : > { %v5849_v57 = vpack.i.bf16 %v5536_v61, %v5535_v42  ;;  %v2845_v26 = vpop.f32.mrb[91].mxu0 }
 0x769   : > { %v5844_v8 = vpack.i.bf16 %v2845_v26, %v2842_v41 }
 0x76a   : > { %5850 = vrot.lane.b32.xlu1 %v5849_v57, %s6645_s21 }
 0x76b   : > { %5845 = vrot.lane.b32.xlu0 %v5844_v8, %s6645_s21 }
 0x76c   : > { %v5567_v35 = vpop.f32.mrb[72].mxu1 }
 0x76d   : > { %v2939_v52 = vpop.f32.mrb[73].mxu1 }
 0x76e   : > { %v5568_v23 = vpop.f32.mrb[74].mxu1 }
 0x76f   : > { %v5859_v55 = vpack.i.bf16 %v5568_v23, %v5567_v35  ;;  %v2942_v51 = vpop.f32.mrb[75].mxu1 }
 0x770   : > { %v5854_v18 = vpack.i.bf16 %v2942_v51, %v2939_v52 }
 0x771   : > { %5860 = vrot.lane.b32.xlu1 %v5859_v55, %s6644_s29 }
 0x772   : > { %5855 = vrot.lane.b32.xlu0 %v5854_v18, %s6644_s29 }
 0x774   : > { %v5539_v30 = vpop.f32.mrb[92].mxu0 }
 0x775   : > { %5870 = vrot.lane.b32.xlu1 %v5869_v40, %s6646_s22  ;;  %v2858_v25 = vpop.f32.mrb[93].mxu0 }
 0x776   : > { %5865 = vrot.lane.b32.xlu0 %v5864_v53, %s6646_s22  ;;  %v5540_v21 = vpop.f32.mrb[94].mxu0  ;;  %v5778_v53 = vunpack.i.h.bf16 %v5776_v58 }
 0x777   : > { %v5879_v49 = vpack.i.bf16 %v5540_v21, %v5539_v30  ;;  %v2861_v62 = vpop.f32.mrb[95].mxu0 }
 0x778   : > { %v5874_v48 = vpack.i.bf16 %v2861_v62, %v2858_v25  ;;  %v3165_v45 = vsel %vm1393_vm0, %v8161_v33, %v5778_v53 }
 0x779   : > { %5880 = vrot.lane.b32.xlu1 %v5879_v49, %s6645_s21 }
 0x77a   : > { %5875 = vrot.lane.b32.xlu0 %v5874_v48, %s6645_s21 }
 0x77c   : > { %v5571_v63 = vpop.f32.mrb[76].mxu1 }
 0x77d   : > { %v2955_v14 = vpop.f32.mrb[77].mxu1 }
 0x77e   : > { %v5572_v31 = vpop.f32.mrb[78].mxu1 }
 0x77f   : > { %v5889_v20 = vpack.i.bf16 %v5572_v31, %v5571_v63  ;;  %v2958_v34 = vpop.f32.mrb[79].mxu1 }
 0x780   : > { %v5884_v29 = vpack.i.bf16 %v2958_v34, %v2955_v14 }
 0x781   : > { %5890 = vrot.lane.b32.xlu1 %v5889_v20, %s6644_s29 }
 0x782   : > { %5885 = vrot.lane.b32.xlu0 %v5884_v29, %s6644_s29  ;;  %s9049_s29 = sld [smem:[#allocation67_spill]] }
 0x78b   : > { %v5781_v40 = vpop.permute.xlu1 %5780 }
 0x78c   : > { %v5783_v50 = vunpack.i.h.bf16 %v5781_v40  ;;  %v5782_v39 = vunpack.i.l.bf16 %v5781_v40 }
 0x78e   : > { %v3182_v10 = vsel %vm3178_vm1, %v3165_v45, %v5783_v50  ;;  %v3181_v9 = vsel %vm3178_vm1, %v3164_v22, %v5782_v39 }
 0x78f   : > { %v5791_v59 = vpop.permute.xlu1 %5790 }
 0x790   : > { %v5793_v7 = vunpack.i.h.bf16 %v5791_v59  ;;  %v5792_v5 = vunpack.i.l.bf16 %v5791_v59 }
 0x792   : > { %v3179_v42 = vsel %vm3178_vm1, %v3162_v15, %v5792_v5  ;;  %v3180_v1 = vsel %vm3178_vm1, %v3163_v3, %v5793_v7 }
 0x79f   : > { %v5801_v47 = vpop.permute.xlu1 %5800 }
 0x7a0   : > { %v5803_v4 = vunpack.i.h.bf16 %v5801_v47  ;;  %v5802_v12 = vunpack.i.l.bf16 %v5801_v47  ;;  %v5796_v36 = vpop.permute.xlu0 %5795 }
 0x7a1   : > { %v5798_v60 = vunpack.i.h.bf16 %v5796_v36  ;;  %v5797_v33 = vunpack.i.l.bf16 %v5796_v36 }
 0x7a2   : > { %v3199_v41 = vsel %vm3195_vm2, %v3182_v10, %v5803_v4  ;;  %v3198_v2 = vsel %vm3195_vm2, %v3181_v9, %v5802_v12 }
 0x7a3   : > { %v3213_v61 = vpack.c.bf16 %v3199_v41, %v3198_v2  ;;  %v3196_v6 = vsel %vm3195_vm2, %v3179_v42, %v5797_v33  ;;  %v3197_v57 = vsel %vm3195_vm2, %v3180_v1, %v5798_v60  ;;  %v5811_v8 = vpop.permute.xlu1 %5810 }
 0x7a4   : > { %v3212_v26 = vpack.c.bf16 %v3197_v57, %v3196_v6  ;;  %v5806_v35 = vpop.permute.xlu0 %5805  ;;  %v5813_v23 = vunpack.i.h.bf16 %v5811_v8  ;;  %v5812_v55 = vunpack.i.l.bf16 %v5811_v8 }
 0x7a5   : > { %v5808_v18 = vunpack.i.h.bf16 %v5806_v35  ;;  %v5807_v30 = vunpack.i.l.bf16 %v5806_v35 }
 0x7a6   : > { %5589 = vmatprep.mubr.bf16.mxu0 %v3212_v26  ;;  %v3169_v48 = vsel %vm1393_vm0, %v8173_v54, %v5813_v23  ;;  %v3168_v63 = vsel %vm1393_vm0, %v8166_v13, %v5812_v55 }
 0x7a7   : > { %5590 = vmatmul.mubr.bf16.vlgmr.msra.gmra.mrb[96].mxu0 %v3213_v61  ;;  %v5821_v52 = vpop.permute.xlu1 %5820  ;;  %v3167_v31 = vsel %vm1393_vm0, %v8175_v32, %v5808_v18  ;;  %v3166_v20 = vsel %vm1393_vm0, %v8170_v38, %v5807_v30 }
 0x7a8   : > { %v5816_v51 = vpop.permute.xlu0 %5815  ;;  %v5823_v25 = vunpack.i.h.bf16 %v5821_v52  ;;  %v5822_v21 = vunpack.i.l.bf16 %v5821_v52 }
 0x7a9   : > { %v5818_v49 = vunpack.i.h.bf16 %v5816_v51  ;;  %v5817_v62 = vunpack.i.l.bf16 %v5816_v51 }
 0x7aa   : > { %v3186_v40 = vsel %vm3178_vm1, %v3169_v48, %v5823_v25  ;;  %v3185_v16 = vsel %vm3178_vm1, %v3168_v63, %v5822_v21 }
 0x7ab   : > { %v3183_v54 = vsel %vm3178_vm1, %v3166_v20, %v5817_v62  ;;  %v3184_v13 = vsel %vm3178_vm1, %v3167_v31, %v5818_v49 }
 0x7c8   : > { %v5831_v14 = vpop.permute.xlu1 %5830 }
 0x7c9   : > { %v5833_v34 = vunpack.i.h.bf16 %v5831_v14  ;;  %v5832_v29 = vunpack.i.l.bf16 %v5831_v14  ;;  %v5826_v58 = vpop.permute.xlu0 %5825 }
 0x7ca   : > { %v5828_v53 = vunpack.i.h.bf16 %v5826_v58  ;;  %v5827_v19 = vunpack.i.l.bf16 %v5826_v58 }
 0x7cb   : > { %v3202_v59 = vsel %vm3195_vm2, %v3185_v16, %v5832_v29  ;;  %v3203_v32 = vsel %vm3195_vm2, %v3186_v40, %v5833_v34 }
 0x7cc   : > { %v3200_v17 = vsel %vm3195_vm2, %v3183_v54, %v5827_v19  ;;  %v3201_v38 = vsel %vm3195_vm2, %v3184_v13, %v5828_v53  ;;  %v3215_v44 = vpack.c.bf16 %v3203_v32, %v3202_v59  ;;  %v5841_v39 = vpop.permute.xlu1 %5840 }
 0x7cd   : > { %v3214_v50 = vpack.c.bf16 %v3201_v38, %v3200_v17  ;;  %v5836_v7 = vpop.permute.xlu0 %5835  ;;  %v5843_v45 = vunpack.i.h.bf16 %v5841_v39  ;;  %v5842_v22 = vunpack.i.l.bf16 %v5841_v39 }
 0x7ce   : > { %v5838_v3 = vunpack.i.h.bf16 %v5836_v7  ;;  %v5837_v15 = vunpack.i.l.bf16 %v5836_v7 }
 0x7cf   : > { %5593 = vmatprep.mubr.bf16.mxu0 %v3214_v50  ;;  %v3173_v9 = vsel %vm1393_vm0, %v8181_v28, %v5843_v45  ;;  %v3172_v60 = vsel %vm1393_vm0, %v8177_v27, %v5842_v22  ;;  %v6334_v22 = vld [vmem:[%s6982_s30] sm:$0xff] }
 0x7d0   : > { %5594 = vmatmul.mubr.bf16.gmra.mrb[100].mxu0 %v3215_v44  ;;  %v3171_v42 = vsel %vm1393_vm0, %v8183_v43, %v5838_v3  ;;  %v3170_v1 = vsel %vm1393_vm0, %v8179_v56, %v5837_v15 }
 0x7dc   : > { %v5851_v5 = vpop.permute.xlu1 %5850 }
 0x7dd   : > { %v5846_v47 = vpop.permute.xlu0 %5845  ;;  %v5853_v4 = vunpack.i.h.bf16 %v5851_v5  ;;  %v5852_v12 = vunpack.i.l.bf16 %v5851_v5  ;;  %v8344_v5 = vld [vmem:[%s8838_s6] ss:$0 sm:$0xff] }
 0x7de   : > { %v5848_v36 = vunpack.i.h.bf16 %v5846_v47  ;;  %v5847_v10 = vunpack.i.l.bf16 %v5846_v47 }
 0x7df   : > { %v3190_v6 = vsel %vm3178_vm1, %v3173_v9, %v5853_v4  ;;  %v3189_v57 = vsel %vm3178_vm1, %v3172_v60, %v5852_v12  ;;  %v6335_v4 = vld [vmem:[%s6982_s30 + $0x10] sm:$0xff] }
 0x7e0   : > { %v3187_v28 = vsel %vm3178_vm1, %v3170_v1, %v5847_v10  ;;  %v3188_v27 = vsel %vm3178_vm1, %v3171_v42, %v5848_v36  ;;  %v6336_v10 = vld [vmem:[%s6982_s30 + $0x8] sm:$0xff]  ;;  %v6337_v42 = vld [vmem:[%s6982_s30 + $0x18] sm:$0xff] }
 0x7e3   : > { %v5861_v33 = vpop.permute.xlu1 %5860 }
 0x7e4   : > { %v5863_v41 = vunpack.i.h.bf16 %v5861_v33  ;;  %v5862_v2 = vunpack.i.l.bf16 %v5861_v33  ;;  %v5856_v61 = vpop.permute.xlu0 %5855 }
 0x7e5   : > { %v5858_v26 = vunpack.i.h.bf16 %v5856_v61  ;;  %v5857_v8 = vunpack.i.l.bf16 %v5856_v61 }
 0x7e6   : > { %v3206_v35 = vsel %vm3195_vm2, %v3189_v57, %v5862_v2  ;;  %v3207_v43 = vsel %vm3195_vm2, %v3190_v6, %v5863_v41  ;;  %v6338_v6 = vld [vmem:[%s6982_s30 + $0x20] sm:$0xff] }
 0x7e7   : > { %v3204_v52 = vsel %vm3195_vm2, %v3187_v28, %v5857_v8  ;;  %v3205_v56 = vsel %vm3195_vm2, %v3188_v27, %v5858_v26  ;;  %v3217_v23 = vpack.c.bf16 %v3207_v43, %v3206_v35  ;;  %v5871_v55 = vpop.permute.xlu1 %5870  ;;  %v6339_v28 = vld [vmem:[%s6982_s30 + $0x30] sm:$0xff]  ;;  %v6340_v43 = vld [vmem:[%s6982_s30 + $0x28] sm:$0xff] }
 0x7e8   : > { %v3216_v51 = vpack.c.bf16 %v3205_v56, %v3204_v52  ;;  %v5866_v18 = vpop.permute.xlu0 %5865  ;;  %v5873_v25 = vunpack.i.h.bf16 %v5871_v55  ;;  %v5872_v21 = vunpack.i.l.bf16 %v5871_v55  ;;  %v6341_v56 = vld [vmem:[%s6982_s30 + $0x38] sm:$0xff] }
 0x7e9   : > { %v5868_v62 = vunpack.i.h.bf16 %v5866_v18  ;;  %v5867_v48 = vunpack.i.l.bf16 %v5866_v18 }
 0x7ea   : > { %5597 = vmatprep.mubr.bf16.mxu0 %v3216_v51  ;;  %v3177_v34 = vsel %vm1393_vm0, %v8189_v0, %v5873_v25  ;;  %v3176_v29 = vsel %vm1393_vm0, %v8185_v24, %v5872_v21  ;;  %v6342_v21 = vld [vmem:[%s6982_s30 + $0x40] sm:$0xff] }
 0x7eb   : > { %5598 = vmatmul.mubr.bf16.gmra.mrb[104].mxu0 %v3217_v23  ;;  %v5881_v30 = vpop.permute.xlu1 %5880  ;;  %v3175_v40 = vsel %vm1393_vm0, %v8192_v11, %v5868_v62  ;;  %v3174_v16 = vsel %vm1393_vm0, %v8187_v46, %v5867_v48 }
 0x7ec   : > { %v5876_v49 = vpop.permute.xlu0 %5875  ;;  %v5883_v63 = vunpack.i.h.bf16 %v5881_v30  ;;  %v5882_v14 = vunpack.i.l.bf16 %v5881_v30 }
 0x7ed   : > { %v5878_v31 = vunpack.i.h.bf16 %v5876_v49  ;;  %v5877_v20 = vunpack.i.l.bf16 %v5876_v49 }
 0x7ee   : > { %v3194_v13 = vsel %vm3178_vm1, %v3177_v34, %v5883_v63  ;;  %v3193_v59 = vsel %vm3178_vm1, %v3176_v29, %v5882_v14  ;;  %v6343_v63 = vld [vmem:[%s6982_s30 + $0x50] sm:$0xff]  ;;  %v6345_v29 = vld [vmem:[%s6982_s30 + $0x58] sm:$0xff] }
 0x7ef   : > { %v3191_v17 = vsel %vm3178_vm1, %v3174_v16, %v5877_v20  ;;  %v3192_v24 = vsel %vm3178_vm1, %v3175_v40, %v5878_v31  ;;  %v6344_v20 = vld [vmem:[%s6982_s30 + $0x48] sm:$0xff] }
 0x7f3   : > { %v5891_v58 = vpop.permute.xlu1 %5890 }
 0x7f4   : > { %v5893_v53 = vunpack.i.h.bf16 %v5891_v58  ;;  %v5892_v19 = vunpack.i.l.bf16 %v5891_v58  ;;  %v5886_v54 = vpop.permute.xlu0 %5885 }
 0x7f5   : > { %v5888_v32 = vunpack.i.h.bf16 %v5886_v54  ;;  %v5887_v0 = vunpack.i.l.bf16 %v5886_v54 }
 0x7f6   : > { %v3210_v38 = vsel %vm3195_vm2, %v3193_v59, %v5892_v19  ;;  %v3211_v11 = vsel %vm3195_vm2, %v3194_v13, %v5893_v53  ;;  %v6346_v13 = vld [vmem:[%s6982_s30 + $0x60] sm:$0xff] }
 0x7f7   : > { %v3208_v46 = vsel %vm3195_vm2, %v3191_v17, %v5887_v0  ;;  %v3209_v44 = vsel %vm3195_vm2, %v3192_v24, %v5888_v32  ;;  %v3219_v50 = vpack.c.bf16 %v3211_v11, %v3210_v38  ;;  %v6347_v17 = vld [vmem:[%s6982_s30 + $0x70] sm:$0xff]  ;;  %v6348_v11 = vld [vmem:[%s6982_s30 + $0x68] sm:$0xff] }
 0x7f8   : > { %v3218_v39 = vpack.c.bf16 %v3209_v44, %v3208_v46  ;;  %v6349_v44 = vld [vmem:[%s6982_s30 + $0x78] sm:$0xff]  ;;  %s9048_s30 = sld [smem:[#allocation66_spill]] }
 0x7fa   : > { %5601 = vmatprep.mubr.bf16.mxu0 %v3218_v39 }
 0x7fb   : > { %5602 = vmatmul.mubr.bf16.gmra.mrb[108].mxu0 %v3219_v50 }
 0x7fc   : > { %4009 = vmatprep.mubr.bf16.mxu0 %v9046_v37 }
 0x87a   : > { %v5591_v7 = vpop.f32.mrb[96].mxu0 }
 0x87b   : > { %v3318_v45 = vpop.f32.mrb[97].mxu0  ;;  %v3383_v12 = vadd.f32 %v6335_v4, %v5591_v7  ;;  %v5942_v4 = vld [vmem:[#allocation11 + $0x24] ss:$16 sps:$4 sm:$0xff]  }
 0x87c   : > { %v3381_v47 = vadd.f32 %v6334_v22, %v3318_v45  ;;  %v5592_v3 = vpop.f32.mrb[98].mxu0  ;;  %v5934_v22 = vld [vmem:[#allocation11] ss:$16 sps:$4 sm:$0xff]  }
 0x87d   : > { %v3321_v15 = vpop.f32.mrb[99].mxu0  ;;  %v8357_v33 = vadd.f32 %v8344_v5, %v3383_v12  ;;  %v3384_v1 = vadd.f32 %v6337_v42, %v5592_v3  ;;  %v5937_v3 = vld [vmem:[#allocation11 + $0x8] ss:$16 sps:$4 sm:$0xff]   ;;  %v5945_v12 = vld [vmem:[#allocation11 + $0x2c] ss:$16 sps:$4 sm:$0xff]  }
 0x87e   : > { %v8349_v36 = vadd.f32 %v8344_v5, %v3381_v47  ;;  %v3382_v9 = vadd.f32 %v6336_v10, %v3321_v15  ;;  %v5936_v47 = vld [vmem:[#allocation11 + $0x4] ss:$16 sps:$4 sm:$0xff]   ;;  %v5939_v15 = vld [vmem:[#allocation11 + $0xc] ss:$16 sps:$4 sm:$0xff]   ;;  %v5940_v10 = vld [vmem:[#allocation11 + $0x20] ss:$16 sps:$4 sm:$0xff]  }
 0x87f   : > { %v8363_v41 = vadd.f32 %v8344_v5, %v3384_v1  ;;  %3864 = vmatprep.subr.bf16.mxu1 %v5936_v47  ;;  %3977 = vmatprep.subr.bf16.mxu0 %v5939_v15  ;;  %v5981_v47 = vld [vmem:[#allocation11 + $0xec] ss:$16 sps:$4 sm:$0xff]  }
 0x880   : > { %v8353_v60 = vadd.f32 %v8344_v5, %v3382_v9  ;;  %3422 = vadd.xlane.f32.xlu0 %v8349_v36  ;;  %3865 = vmatpush1.bf16.msra.mxu1 %v5934_v22  ;;  %v5943_v9 = vld [vmem:[#allocation11 + $0x28] ss:$16 sps:$4 sm:$0xff]  }
 0x881   : > { %3978 = vmatpush1.bf16.msra.mxu0 %v5937_v3  ;;  %3866 = vmatprep.subr.bf16.mxu1 %v5942_v4  ;;  %v5979_v22 = vld [vmem:[#allocation11 + $0xe8] ss:$16 sps:$4 sm:$0xff]  }
 0x882   : > { %3424 = vadd.xlane.f32.xlu1 %v8353_v60  ;;  %3979 = vmatprep.subr.bf16.mxu0 %v5945_v12 }
 0x884   : > { %3426 = vadd.xlane.f32.xlu0 %v8357_v33  ;;  %3867 = vmatpush1.bf16.msra.mxu1 %v5940_v10 }
 0x885   : > { %3980 = vmatpush1.bf16.msra.mxu0 %v5943_v9 }
 0x888   : > { %3428 = vadd.xlane.f32.xlu0 %v8363_v41 }
 0x8a3   : > { %v5595_v2 = vpop.f32.mrb[100].mxu0 }
 0x8a4   : > { %v3334_v61 = vpop.f32.mrb[101].mxu0  ;;  %v3387_v27 = vadd.f32 %v6339_v28, %v5595_v2 }
 0x8a5   : > { %v3385_v57 = vadd.f32 %v6338_v6, %v3334_v61  ;;  %v5596_v26 = vpop.f32.mrb[102].mxu0 }
 0x8a6   : > { %v3337_v8 = vpop.f32.mrb[103].mxu0  ;;  %v3388_v23 = vadd.f32 %v6341_v56, %v5596_v26  ;;  %v8378_v51 = vadd.f32 %v8344_v5, %v3387_v27 }
 0x8a7   : > { %v8369_v35 = vadd.f32 %v8344_v5, %v3385_v57  ;;  %v3386_v52 = vadd.f32 %v6340_v43, %v3337_v8 }
 0x8a8   : > { %v8382_v18 = vadd.f32 %v8344_v5, %v3388_v23 }
 0x8a9   : > { %v8374_v55 = vadd.f32 %v8344_v5, %v3386_v52  ;;  %3430 = vadd.xlane.f32.xlu0 %v8369_v35 }
 0x8ab   : > { %3432 = vadd.xlane.f32.xlu1 %v8374_v55 }
 0x8ad   : > { %3434 = vadd.xlane.f32.xlu0 %v8378_v51 }
 0x8af   : > { %3436 = vadd.xlane.f32.xlu1 %v8382_v18 }
 0x8be   : > { %v5599_v30 = vpop.f32.mrb[104].mxu0 }
 0x8bf   : > { %v3350_v25 = vpop.f32.mrb[105].mxu0  ;;  %v3391_v14 = vadd.f32 %v6343_v63, %v5599_v30  ;;  %v5957_v63 = vld [vmem:[#allocation11 + $0x6c] ss:$16 sps:$4 sm:$0xff]  }
 0x8c0   : > { %v3389_v49 = vadd.f32 %v6342_v21, %v3350_v25  ;;  %v5600_v62 = vpop.f32.mrb[106].mxu0  ;;  %v5948_v25 = vld [vmem:[#allocation11 + $0x44] ss:$16 sps:$4 sm:$0xff]   ;;  %v5951_v21 = vld [vmem:[#allocation11 + $0x4c] ss:$16 sps:$4 sm:$0xff]  }
 0x8c1   : > { %v3353_v48 = vpop.f32.mrb[107].mxu0  ;;  %v3392_v58 = vadd.f32 %v6345_v29, %v5600_v62  ;;  %v8398_v16 = vadd.f32 %v8344_v5, %v3391_v14  ;;  %v5949_v62 = vld [vmem:[#allocation11 + $0x48] ss:$16 sps:$4 sm:$0xff]   ;;  %3868 = vmatprep.subr.bf16.mxu1 %v5948_v25  ;;  %3981 = vmatprep.subr.bf16.mxu0 %v5951_v21  ;;  %v5952_v14 = vld [vmem:[#allocation11 + $0x60] ss:$16 sps:$4 sm:$0xff]  }
 0x8c2   : > { %v8389_v31 = vadd.f32 %v8344_v5, %v3389_v49  ;;  %v3390_v34 = vadd.f32 %v6344_v20, %v3353_v48  ;;  %v5946_v49 = vld [vmem:[#allocation11 + $0x40] ss:$16 sps:$4 sm:$0xff]   ;;  %3982 = vmatpush1.bf16.msra.mxu0 %v5949_v62  ;;  %v5954_v48 = vld [vmem:[#allocation11 + $0x64] ss:$16 sps:$4 sm:$0xff]   ;;  %v5955_v20 = vld [vmem:[#allocation11 + $0x68] ss:$16 sps:$4 sm:$0xff]  }
 0x8c3   : > { %v8402_v53 = vadd.f32 %v8344_v5, %v3392_v58  ;;  %3869 = vmatpush1.bf16.msra.mxu1 %v5946_v49  ;;  %3983 = vmatprep.subr.bf16.mxu0 %v5957_v63  ;;  %v5963_v29 = vld [vmem:[#allocation11 + $0x8c] ss:$16 sps:$4 sm:$0xff]   ;;  %v5958_v58 = vld [vmem:[#allocation11 + $0x80] ss:$16 sps:$4 sm:$0xff]  }
 0x8c4   : > { %v8394_v40 = vadd.f32 %v8344_v5, %v3390_v34  ;;  %3438 = vadd.xlane.f32.xlu0 %v8389_v31  ;;  %3870 = vmatprep.subr.bf16.mxu1 %v5954_v48  ;;  %v5960_v34 = vld [vmem:[#allocation11 + $0x84] ss:$16 sps:$4 sm:$0xff]  }
 0x8c6   : > { %3440 = vadd.xlane.f32.xlu1 %v8394_v40  ;;  %3984 = vmatpush1.bf16.msra.mxu0 %v5955_v20 }
 0x8c7   : > { %3871 = vmatpush1.bf16.msra.mxu1 %v5952_v14  ;;  %3985 = vmatprep.subr.bf16.mxu0 %v5963_v29 }
 0x8c8   : > { %3442 = vadd.xlane.f32.xlu0 %v8398_v16  ;;  %3872 = vmatprep.subr.bf16.mxu1 %v5960_v34 }
 0x8ca   : > { %3444 = vadd.xlane.f32.xlu1 %v8402_v53 }
 0x8cb   : > { %3873 = vmatpush1.bf16.msra.mxu1 %v5958_v58 }
 0x8ce   : > { %v5603_v19 = vpop.f32.mrb[108].mxu0 }
 0x8cf   : > { %v3366_v54 = vpop.f32.mrb[109].mxu0  ;;  %v3395_v24 = vadd.f32 %v6347_v17, %v5603_v19  ;;  %v5961_v19 = vld [vmem:[#allocation11 + $0x88] ss:$16 sps:$4 sm:$0xff]   ;;  %v5975_v17 = vld [vmem:[#allocation11 + $0xcc] ss:$16 sps:$4 sm:$0xff]  }
 0x8d0   : > { %v3393_v59 = vadd.f32 %v6346_v13, %v3366_v54  ;;  %v5604_v32 = vpop.f32.mrb[110].mxu0  ;;  %3986 = vmatpush1.bf16.msra.mxu0 %v5961_v19  ;;  %v5966_v54 = vld [vmem:[#allocation11 + $0xa4] ss:$16 sps:$4 sm:$0xff]   ;;  %v5969_v13 = vld [vmem:[#allocation11 + $0xac] ss:$16 sps:$4 sm:$0xff]  }
 0x8d1   : > { %v3369_v0 = vpop.f32.mrb[111].mxu0  ;;  %v3396_v50 = vadd.f32 %v6349_v44, %v5604_v32  ;;  %v8418_v7 = vadd.f32 %v8344_v5, %v3395_v24  ;;  %v5967_v32 = vld [vmem:[#allocation11 + $0xa8] ss:$16 sps:$4 sm:$0xff]   ;;  %3874 = vmatprep.subr.bf16.mxu1 %v5966_v54  ;;  %3987 = vmatprep.subr.bf16.mxu0 %v5969_v13  ;;  %v5970_v24 = vld [vmem:[#allocation11 + $0xc0] ss:$16 sps:$4 sm:$0xff]  }
 0x8d2   : > { %v8409_v38 = vadd.f32 %v8344_v5, %v3393_v59  ;;  %v3394_v46 = vadd.f32 %v6348_v11, %v3369_v0  ;;  %v5964_v59 = vld [vmem:[#allocation11 + $0xa0] ss:$16 sps:$4 sm:$0xff]   ;;  %v5972_v0 = vld [vmem:[#allocation11 + $0xc4] ss:$16 sps:$4 sm:$0xff]   ;;  %v5973_v11 = vld [vmem:[#allocation11 + $0xc8] ss:$16 sps:$4 sm:$0xff]  }
 0x8d3   : > { %v8422_v45 = vadd.f32 %v8344_v5, %v3396_v50  ;;  %3875 = vmatpush1.bf16.msra.mxu1 %v5964_v59  ;;  %v5976_v50 = vld [vmem:[#allocation11 + $0xe0] ss:$16 sps:$4 sm:$0xff]  }
 0x8d4   : > { %v8414_v39 = vadd.f32 %v8344_v5, %v3394_v46  ;;  %3446 = vadd.xlane.f32.xlu0 %v8409_v38  ;;  %3988 = vmatpush1.bf16.msra.mxu0 %v5967_v32  ;;  %v5978_v46 = vld [vmem:[#allocation11 + $0xe4] ss:$16 sps:$4 sm:$0xff]  }
 0x8d5   : > { %3876 = vmatprep.subr.bf16.mxu1 %v5972_v0  ;;  %3989 = vmatprep.subr.bf16.mxu0 %v5975_v17 }
 0x8d6   : > { %3448 = vadd.xlane.f32.xlu1 %v8414_v39 }
 0x8d7   : > { %3877 = vmatpush1.bf16.msra.mxu1 %v5970_v24 }
 0x8d8   : > { %3450 = vadd.xlane.f32.xlu0 %v8418_v7  ;;  %3990 = vmatpush1.bf16.msra.mxu0 %v5973_v11 }
 0x8d9   : > { %3878 = vmatprep.subr.bf16.mxu1 %v5978_v46  ;;  %3991 = vmatprep.subr.bf16.mxu0 %v5981_v47 }
 0x8da   : > { %3452 = vadd.xlane.f32.xlu1 %v8422_v45 }
 0x8db   : > { %3879 = vmatpush1.bf16.msra.mxu1 %v5976_v50 }
 0x8dc   : > { %3992 = vmatpush1.bf16.msra.mxu0 %v5979_v22 }
 0x90d   : > { %v3423_v5 = vpop.xlane.xlu0 %3422 }
 0x90e   : > { %v3454_v42 = vmul.f32 0.0078125, %v3423_v5 }
 0x90f   : > { %v3425_v1 = vpop.xlane.xlu1 %3424 }
 0x910   : > { %v8427_v2 = vsub.f32 %v8349_v36, %v3454_v42  ;;  %v3455_v61 = vmul.f32 0.0078125, %v3425_v1 }
 0x911   : > { %v3427_v6 = vpop.xlane.xlu0 %3426 }
 0x912   : > { %v8430_v57 = vsub.f32 %v8353_v60, %v3455_v61  ;;  %v3456_v26 = vmul.f32 0.0078125, %v3427_v6  ;;  %v3486_v8 = vmul.f32 %v8427_v2, %v8427_v2 }
 0x914   : > { %v8435_v28 = vsub.f32 %v8357_v33, %v3456_v26  ;;  %3502 = vadd.xlane.f32.xlu0 %v3486_v8  ;;  %v3487_v27 = vmul.f32 %v8430_v57, %v8430_v57 }
 0x915   : > { %v3429_v43 = vpop.xlane.xlu0 %3428 }
 0x916   : > { %v3457_v52 = vmul.f32 0.0078125, %v3429_v43  ;;  %3504 = vadd.xlane.f32.xlu1 %v3487_v27  ;;  %v3488_v56 = vmul.f32 %v8435_v28, %v8435_v28 }
 0x918   : > { %v8442_v23 = vsub.f32 %v8363_v41, %v3457_v52  ;;  %3506 = vadd.xlane.f32.xlu0 %v3488_v56 }
 0x91a   : > { %v3489_v30 = vmul.f32 %v8442_v23, %v8442_v23 }
 0x91c   : > { %3508 = vadd.xlane.f32.xlu1 %v3489_v30 }
 0x936   : > { %v3431_v44 = vpop.xlane.xlu0 %3430 }
 0x937   : > { %v3458_v3 = vmul.f32 0.0078125, %v3431_v44 }
 0x938   : > { %v3433_v15 = vpop.xlane.xlu1 %3432 }
 0x939   : > { %v8447_v4 = vsub.f32 %v8369_v35, %v3458_v3  ;;  %v3459_v12 = vmul.f32 0.0078125, %v3433_v15 }
 0x93a   : > { %v3435_v10 = vpop.xlane.xlu0 %3434 }
 0x93b   : > { %v8450_v9 = vsub.f32 %v8374_v55, %v3459_v12  ;;  %v3460_v5 = vmul.f32 0.0078125, %v3435_v10  ;;  %v3490_v42 = vmul.f32 %v8447_v4, %v8447_v4 }
 0x93c   : > { %v3437_v1 = vpop.xlane.xlu1 %3436 }
 0x93d   : > { %v8455_v61 = vsub.f32 %v8378_v51, %v3460_v5  ;;  %v3461_v6 = vmul.f32 0.0078125, %v3437_v1  ;;  %3510 = vadd.xlane.f32.xlu0 %v3490_v42  ;;  %v3491_v26 = vmul.f32 %v8450_v9, %v8450_v9  ;;  %v5982_v5 = vld [vmem:[#allocation13 + $0x40] sm:$0xff]  }
 0x93e   : > { %v8506_v42 = vld [vmem:[#allocation13 + $0xc0] sm:$0xff]   ;;  %5157 = vmatprep.subr.bf16.mxu1 %v5982_v5 }
 0x93f   : > { %v8460_v8 = vsub.f32 %v8382_v18, %v3461_v6  ;;  %3512 = vadd.xlane.f32.xlu1 %v3491_v26  ;;  %v3492_v27 = vmul.f32 %v8455_v61, %v8455_v61  ;;  %5221 = vmatprep.subr.bf16.mxu0 %v8506_v42 }
 0x941   : > { %3514 = vadd.xlane.f32.xlu0 %v3492_v27  ;;  %v3493_v43 = vmul.f32 %v8460_v8, %v8460_v8 }
 0x943   : > { %3516 = vadd.xlane.f32.xlu1 %v3493_v43 }
 0x951   : > { %v3439_v52 = vpop.xlane.xlu0 %3438 }
 0x952   : > { %v3462_v56 = vmul.f32 0.0078125, %v3439_v52 }
 0x953   : > { %v3441_v30 = vpop.xlane.xlu1 %3440 }
 0x954   : > { %v8467_v25 = vsub.f32 %v8389_v31, %v3462_v56  ;;  %v3463_v21 = vmul.f32 0.0078125, %v3441_v30 }
 0x955   : > { %v3443_v49 = vpop.xlane.xlu0 %3442 }
 0x956   : > { %v8470_v62 = vsub.f32 %v8394_v40, %v3463_v21  ;;  %v3464_v48 = vmul.f32 0.0078125, %v3443_v49  ;;  %v3494_v63 = vmul.f32 %v8467_v25, %v8467_v25 }
 0x957   : > { %v3445_v14 = vpop.xlane.xlu1 %3444 }
 0x958   : > { %v8475_v20 = vsub.f32 %v8398_v16, %v3464_v48  ;;  %v3465_v34 = vmul.f32 0.0078125, %v3445_v14  ;;  %3518 = vadd.xlane.f32.xlu0 %v3494_v63  ;;  %v3495_v29 = vmul.f32 %v8470_v62, %v8470_v62 }
 0x95a   : > { %v8480_v58 = vsub.f32 %v8402_v53, %v3465_v34  ;;  %3520 = vadd.xlane.f32.xlu1 %v3495_v29  ;;  %v3496_v19 = vmul.f32 %v8475_v20, %v8475_v20  ;;  %v8512_v34 = vld [vmem:[%s9047_s17] ss:$0 sm:$0xff] }
 0x95c   : > { %3522 = vadd.xlane.f32.xlu0 %v3496_v19  ;;  %v3497_v54 = vmul.f32 %v8480_v58, %v8480_v58 }
 0x95e   : > { %3524 = vadd.xlane.f32.xlu1 %v3497_v54 }
 0x961   : > { %v3447_v13 = vpop.xlane.xlu0 %3446 }
 0x962   : > { %v3466_v59 = vmul.f32 0.0078125, %v3447_v13 }
 0x963   : > { %v3449_v32 = vpop.xlane.xlu1 %3448 }
 0x964   : > { %v8487_v0 = vsub.f32 %v8409_v38, %v3466_v59  ;;  %v3467_v17 = vmul.f32 0.0078125, %v3449_v32  ;;  %v8520_v32 = vld [vmem:[%s9048_s30] ss:$0 sm:$0xff]  ;;  %s6548_s30 = scalar_lea.vmem %s8785_s19, 2048 }
 0x965   : > { %v3451_v24 = vpop.xlane.xlu0 %3450  ;;  %p6549_p6 = scmp.ne.s32.totalorder %s8785_s19, %s6548_s30 }
 0x966   : > { %v8490_v11 = vsub.f32 %v8414_v39, %v3467_v17  ;;  %v3468_v46 = vmul.f32 0.0078125, %v3451_v24  ;;  %v3498_v44 = vmul.f32 %v8487_v0, %v8487_v0 }
 0x967   : > { %v3453_v50 = vpop.xlane.xlu1 %3452  ;;  %p6550_p4 = pnand %p6549_p6, %p9056_p9 }
 0x968   : > { %v8495_v22 = vsub.f32 %v8418_v7, %v3468_v46  ;;  %v3469_v47 = vmul.f32 0.0078125, %v3453_v50  ;;  %3526 = vadd.xlane.f32.xlu0 %v3498_v44  ;;  %v3499_v3 = vmul.f32 %v8490_v11, %v8490_v11 }
 0x969   : > { %p6551_p13 = pneg %p6550_p4 }
 0x96a   : > { %v8500_v15 = vsub.f32 %v8422_v45, %v3469_v47  ;;  %3528 = vadd.xlane.f32.xlu1 %v3499_v3  ;;  %v3500_v12 = vmul.f32 %v8495_v22, %v8495_v22  ;;  %v5984_v3 = vld [vmem:[#allocation13] sm:$0xff]  }
 0x96c   : > { %3530 = vadd.xlane.f32.xlu0 %v3500_v12  ;;  %v3501_v10 = vmul.f32 %v8500_v15, %v8500_v15  ;;  %v5986_v12 = vld [vmem:[#allocation13 + $0x48] sm:$0xff]  }
 0x96e   : > { %3532 = vadd.xlane.f32.xlu1 %v3501_v10  ;;  %v8529_v10 = vld [vmem:[#allocation13 + $0xc8] sm:$0xff]  }
 0x9a1   : > { %v3503_v1 = vpop.xlane.xlu0 %3502 }
 0x9a2   : > { %v3534_v6 = vmul.f32 0.0078125, %v3503_v1 }
 0x9a3   : > { %v3505_v26 = vpop.xlane.xlu1 %3504 }
 0x9a4   : > { %v3550_v27 = vadd.f32 1e-05, %v3534_v6  ;;  %v3535_v43 = vmul.f32 0.0078125, %v3505_v26  ;;  %v8537_v6 = vld [vmem:[#allocation13 + $0x88] sm:$0xff]   ;;  %v5990_v26 = vld [vmem:[#allocation13 + $0x50] sm:$0xff]  }
 0x9a5   : > { %v3507_v52 = vpop.xlane.xlu0 %3506 }
 0x9a6   : > { %6302 = vrsqrt.f32 %v3550_v27  ;;  %v3551_v56 = vadd.f32 1e-05, %v3535_v43  ;;  %v3536_v30 = vmul.f32 0.0078125, %v3507_v52  ;;  %v8540_v27 = vld [vmem:[#allocation13 + $0xd0] sm:$0xff]  }
 0x9a8   : > { %6304 = vrsqrt.f32 %v3551_v56  ;;  %v3552_v21 = vadd.f32 1e-05, %v3536_v30  ;;  %v5992_v56 = vld [vmem:[#allocation13 + $0x10] sm:$0xff]  }
 0x9a9   : > { %v3509_v49 = vpop.xlane.xlu1 %3508  ;;  %v8544_v30 = vld [vmem:[#allocation13 + $0x90] sm:$0xff]  }
 0x9aa   : > { %6306 = vrsqrt.f32 %v3552_v21  ;;  %v3537_v48 = vmul.f32 0.0078125, %v3509_v49  ;;  %v5994_v21 = vld [vmem:[#allocation13 + $0x58] sm:$0xff]  }
 0x9ab   : > { %v8547_v49 = vld [vmem:[#allocation13 + $0xd8] sm:$0xff]  }
 0x9ac   : > { %v3553_v63 = vadd.f32 1e-05, %v3537_v48  ;;  %v5996_v48 = vld [vmem:[#allocation13 + $0x18] sm:$0xff]  }
 0x9ae   : > { %6308 = vrsqrt.f32 %v3553_v63  ;;  %v8552_v63 = vld [vmem:[#allocation13 + $0x98] sm:$0xff]  }
 0x9b0   : > { %v6303_v14 = vpop.eup %6302 }
 0x9b1   : > { %v3582_v29 = vmul.f32 %v6303_v14, %v8427_v2  ;;  %v5998_v14 = vld [vmem:[#allocation13 + $0x60] sm:$0xff]  }
 0x9b2   : > { %v6305_v19 = vpop.eup %6304 }
 0x9b3   : > { %v3604_v54 = vmul.f32 %v8512_v34, %v3582_v29  ;;  %v3583_v13 = vmul.f32 %v6305_v19, %v8430_v57  ;;  %v8527_v57 = vld [vmem:[#allocation13 + $0x80] sm:$0xff]  }
 0x9b4   : > { %v6307_v59 = vpop.eup %6306  ;;  %v8555_v29 = vld [vmem:[#allocation13 + $0xe0] sm:$0xff]  }
 0x9b5   : > { %v3605_v17 = vmul.f32 %v8512_v34, %v3583_v13  ;;  %v3626_v24 = vadd.f32 %v8520_v32, %v3604_v54  ;;  %v3584_v44 = vmul.f32 %v6307_v59, %v8435_v28  ;;  %v6000_v19 = vld [vmem:[#allocation13 + $0x20] sm:$0xff]   ;;  %v6002_v59 = vld [vmem:[#allocation13 + $0x68] sm:$0xff]  }
 0x9b6   : > { %v8558_v54 = vld [vmem:[#allocation13 + $0xa0] sm:$0xff]  }
 0x9b7   : > { %v3627_v46 = vadd.f32 %v8520_v32, %v3605_v17  ;;  %v3606_v5 = vmul.f32 %v8512_v34, %v3584_v44  ;;  %v8561_v17 = vld [vmem:[#allocation13 + $0xe8] sm:$0xff]  }
 0x9b8   : > { %v6309_v2 = vpop.eup %6308 }
 0x9b9   : > { %v3642_v50 = vpack.c.bf16 %v3627_v46, %v3626_v24  ;;  %v3585_v47 = vmul.f32 %v6309_v2, %v8442_v23  ;;  %v5988_v23 = vld [vmem:[#allocation13 + $0x8] sm:$0xff]   ;;  %v3628_v43 = vadd.f32 %v8520_v32, %v3606_v5 }
 0x9bb   : > { %3897 = vmatmul.mubr.bf16.vlgmr.msra.gmra.mrb[80].mxu1 %v3642_v50  ;;  %4010 = vmatmul.mubr.bf16.vlgmr.msra.gmra.mrb[112].mxu0 %v3642_v50  ;;  %v3607_v1 = vmul.f32 %v8512_v34, %v3585_v47 }
 0x9bc   : > { %3906 = vmatprep.mubr.bf16.mxu1 %v9046_v37  ;;  %4019 = vmatprep.mubr.bf16.mxu0 %v9046_v37 }
 0x9bd   : > { %v3629_v28 = vadd.f32 %v8520_v32, %v3607_v1  ;;  %5158 = vmatpush3.bf16.msra.mxu1 %v5984_v3  ;;  %5222 = vmatpush3.bf16.msra.mxu0 %v8527_v57 }
 0x9be   : > { %5159 = vmatprep.subr.bf16.mxu1 %v5986_v12  ;;  %5223 = vmatprep.subr.bf16.mxu0 %v8529_v10 }
 0x9bf   : > { %v3643_v52 = vpack.c.bf16 %v3629_v28, %v3628_v43 }
 0x9c1   : > { %5160 = vmatpush3.bf16.msra.mxu1 %v5988_v23  ;;  %5224 = vmatpush3.bf16.msra.mxu0 %v8537_v6 }
 0x9c2   : > { %5161 = vmatprep.subr.bf16.mxu1 %v5990_v26  ;;  %5225 = vmatprep.subr.bf16.mxu0 %v8540_v27 }
 0x9c3   : > { %3907 = vmatmul.mubr.bf16.gmra.mrb[84].mxu1 %v3643_v52  ;;  %4020 = vmatmul.mubr.bf16.gmra.mrb[116].mxu0 %v3643_v52 }
 0x9c4   : > { %3916 = vmatprep.mubr.bf16.mxu1 %v9046_v37  ;;  %4029 = vmatprep.mubr.bf16.mxu0 %v9046_v37 }
 0x9c5   : > { %5162 = vmatpush3.bf16.msra.mxu1 %v5992_v56  ;;  %5226 = vmatpush3.bf16.msra.mxu0 %v8544_v30 }
 0x9c6   : > { %5163 = vmatprep.subr.bf16.mxu1 %v5994_v21  ;;  %5227 = vmatprep.subr.bf16.mxu0 %v8547_v49 }
 0x9c9   : > { %5164 = vmatpush3.bf16.msra.mxu1 %v5996_v48  ;;  %5228 = vmatpush3.bf16.msra.mxu0 %v8552_v63 }
 0x9ca   : > { %v3511_v13 = vpop.xlane.xlu0 %3510  ;;  %5165 = vmatprep.subr.bf16.mxu1 %v5998_v14  ;;  %5229 = vmatprep.subr.bf16.mxu0 %v8555_v29 }
 0x9cb   : > { %v3538_v24 = vmul.f32 0.0078125, %v3511_v13 }
 0x9cc   : > { %v3513_v46 = vpop.xlane.xlu1 %3512 }
 0x9cd   : > { %v3554_v44 = vadd.f32 1e-05, %v3538_v24  ;;  %v3539_v2 = vmul.f32 0.0078125, %v3513_v46  ;;  %5166 = vmatpush3.bf16.msra.mxu1 %v6000_v19  ;;  %5230 = vmatpush3.bf16.msra.mxu0 %v8558_v54 }
 0x9ce   : > { %v3515_v50 = vpop.xlane.xlu0 %3514  ;;  %5167 = vmatprep.subr.bf16.mxu1 %v6002_v59  ;;  %5231 = vmatprep.subr.bf16.mxu0 %v8561_v17 }
 0x9cf   : > { %6310 = vrsqrt.f32 %v3554_v44  ;;  %v3555_v47 = vadd.f32 1e-05, %v3539_v2  ;;  %v3540_v3 = vmul.f32 0.0078125, %v3515_v50 }
 0x9d0   : > { %v3517_v12 = vpop.xlane.xlu1 %3516 }
 0x9d1   : > { %6312 = vrsqrt.f32 %v3555_v47  ;;  %v3556_v5 = vadd.f32 1e-05, %v3540_v3  ;;  %v3541_v1 = vmul.f32 0.0078125, %v3517_v12 }
 0x9d3   : > { %6314 = vrsqrt.f32 %v3556_v5  ;;  %v3557_v28 = vadd.f32 1e-05, %v3541_v1 }
 0x9d5   : > { %6316 = vrsqrt.f32 %v3557_v28 }
 0x9d9   : > { %v6311_v23 = vpop.eup %6310 }
 0x9da   : > { %v3586_v26 = vmul.f32 %v6311_v23, %v8447_v4 }
 0x9db   : > { %v6313_v43 = vpop.eup %6312 }
 0x9dc   : > { %v3587_v52 = vmul.f32 %v6313_v43, %v8450_v9  ;;  %v3608_v56 = vmul.f32 %v8512_v34, %v3586_v26 }
 0x9dd   : > { %v6315_v21 = vpop.eup %6314 }
 0x9de   : > { %v3609_v48 = vmul.f32 %v8512_v34, %v3587_v52  ;;  %v3630_v19 = vadd.f32 %v8520_v32, %v3608_v56  ;;  %v3588_v59 = vmul.f32 %v6315_v21, %v8455_v61 }
 0x9df   : > { %v6317_v14 = vpop.eup %6316 }
 0x9e0   : > { %v3631_v13 = vadd.f32 %v8520_v32, %v3609_v48  ;;  %v3589_v24 = vmul.f32 %v6317_v14, %v8460_v8  ;;  %v3610_v9 = vmul.f32 %v8512_v34, %v3588_v59 }
 0x9e2   : > { %v3644_v46 = vpack.c.bf16 %v3631_v13, %v3630_v19  ;;  %v3611_v4 = vmul.f32 %v8512_v34, %v3589_v24  ;;  %v3632_v8 = vadd.f32 %v8520_v32, %v3610_v9 }
 0x9e4   : > { %3917 = vmatmul.mubr.bf16.gmra.mrb[88].mxu1 %v3644_v46  ;;  %4030 = vmatmul.mubr.bf16.gmra.mrb[120].mxu0 %v3644_v46  ;;  %v3633_v50 = vadd.f32 %v8520_v32, %v3611_v4 }
 0x9e5   : > { %v3519_v44 = vpop.xlane.xlu0 %3518  ;;  %3926 = vmatprep.mubr.bf16.mxu1 %v9046_v37  ;;  %4039 = vmatprep.mubr.bf16.mxu0 %v9046_v37 }
 0x9e6   : > { %v3542_v2 = vmul.f32 0.0078125, %v3519_v44  ;;  %v3645_v28 = vpack.c.bf16 %v3633_v50, %v3632_v8 }
 0x9e7   : > { %v3521_v47 = vpop.xlane.xlu1 %3520 }
 0x9e8   : > { %v3558_v3 = vadd.f32 1e-05, %v3542_v2  ;;  %v3543_v61 = vmul.f32 0.0078125, %v3521_v47 }
 0x9e9   : > { %v3523_v12 = vpop.xlane.xlu0 %3522 }
 0x9ea   : > { %6318 = vrsqrt.f32 %v3558_v3  ;;  %v3559_v5 = vadd.f32 1e-05, %v3543_v61  ;;  %v3544_v1 = vmul.f32 0.0078125, %v3523_v12 }
 0x9eb   : > { %v3525_v23 = vpop.xlane.xlu1 %3524 }
 0x9ec   : > { %6320 = vrsqrt.f32 %v3559_v5  ;;  %v3560_v26 = vadd.f32 1e-05, %v3544_v1  ;;  %v3545_v43 = vmul.f32 0.0078125, %v3525_v23  ;;  %3927 = vmatmul.mubr.bf16.gmra.mrb[92].mxu1 %v3645_v28  ;;  %4040 = vmatmul.mubr.bf16.gmra.mrb[124].mxu0 %v3645_v28 }
 0x9ed   : > { %3936 = vmatprep.mubr.bf16.mxu1 %v9046_v37  ;;  %4049 = vmatprep.mubr.bf16.mxu0 %v9046_v37 }
 0x9ee   : > { %6322 = vrsqrt.f32 %v3560_v26  ;;  %v3561_v52 = vadd.f32 1e-05, %v3545_v43 }
 0x9f0   : > { %6324 = vrsqrt.f32 %v3561_v52 }
 0x9f4   : > { %v6319_v56 = vpop.eup %6318 }
 0x9f5   : > { %v3527_v21 = vpop.xlane.xlu0 %3526  ;;  %v3590_v48 = vmul.f32 %v6319_v56, %v8467_v25 }
 0x9f6   : > { %v6321_v14 = vpop.eup %6320  ;;  %v3546_v19 = vmul.f32 0.0078125, %v3527_v21 }
 0x9f7   : > { %v3529_v13 = vpop.xlane.xlu1 %3528  ;;  %v3591_v59 = vmul.f32 %v6321_v14, %v8470_v62  ;;  %v3612_v24 = vmul.f32 %v8512_v34, %v3590_v48 }
 0x9f8   : > { %v6323_v46 = vpop.eup %6322  ;;  %v3562_v4 = vadd.f32 1e-05, %v3546_v19  ;;  %v3547_v9 = vmul.f32 0.0078125, %v3529_v13 }
 0x9f9   : > { %v3531_v44 = vpop.xlane.xlu0 %3530  ;;  %v3613_v2 = vmul.f32 %v8512_v34, %v3591_v59  ;;  %v3634_v25 = vadd.f32 %v8520_v32, %v3612_v24  ;;  %v3592_v12 = vmul.f32 %v6323_v46, %v8475_v20 }
 0x9fa   : > { %v6325_v50 = vpop.eup %6324  ;;  %6326 = vrsqrt.f32 %v3562_v4  ;;  %v3563_v47 = vadd.f32 1e-05, %v3547_v9  ;;  %v3548_v3 = vmul.f32 0.0078125, %v3531_v44 }
 0x9fb   : > { %v3533_v61 = vpop.xlane.xlu1 %3532  ;;  %v3635_v8 = vadd.f32 %v8520_v32, %v3613_v2  ;;  %v3593_v62 = vmul.f32 %v6325_v50, %v8480_v58  ;;  %v3614_v43 = vmul.f32 %v8512_v34, %v3592_v12  ;;  %v6004_v2 = vld [vmem:[#allocation13 + $0x28] sm:$0xff]   ;;  %v8620_v12 = vld [vmem:[#allocation13 + $0xf8] sm:$0xff]  }
 0x9fc   : > { %6328 = vrsqrt.f32 %v3563_v47  ;;  %v3564_v5 = vadd.f32 1e-05, %v3548_v3  ;;  %v3549_v1 = vmul.f32 0.0078125, %v3533_v61  ;;  %v8606_v50 = vld [vmem:[#allocation13 + $0xa8] sm:$0xff]   ;;  %5168 = vmatpush3.bf16.msra.mxu1 %v6004_v2  ;;  %v6008_v61 = vld [vmem:[#allocation13 + $0x30] sm:$0xff]  }
 0x9fd   : > { %v3646_v28 = vpack.c.bf16 %v3635_v8, %v3634_v25  ;;  %v3615_v23 = vmul.f32 %v8512_v34, %v3593_v62  ;;  %v3636_v58 = vadd.f32 %v8520_v32, %v3614_v43  ;;  %5232 = vmatpush3.bf16.msra.mxu0 %v8606_v50  ;;  %v8615_v25 = vld [vmem:[#allocation13 + $0xb0] sm:$0xff]   ;;  %v6012_v62 = vld [vmem:[#allocation13 + $0x38] sm:$0xff]  }
 0x9fe   : > { %6330 = vrsqrt.f32 %v3564_v5  ;;  %v3565_v26 = vadd.f32 1e-05, %v3549_v1  ;;  %v8622_v5 = vld [vmem:[#allocation13 + $0xb8] sm:$0xff]   ;;  %v9050_v1 = vld [vmem:[#allocation20_spill] sm:$0xff] }
 0x9ff   : > { %3937 = vmatmul.mubr.bf16.gmra.mrb[96].mxu1 %v3646_v28  ;;  %4050 = vmatmul.mubr.bf16.gmra.mrb[128].mxu0 %v3646_v28  ;;  %v3637_v20 = vadd.f32 %v8520_v32, %v3615_v23  ;;  %v3698_v28 = vsub.s32 3, %v9050_v1  ;;  %v9051_v23 = vsub.s32 0, %v9050_v1  ;;  %v9052_v43 = vsub.s32 2, %v9050_v1 }
 0xa00   : > { %6332 = vrsqrt.f32 %v3565_v26  ;;  %3946 = vmatprep.mubr.bf16.mxu1 %v9046_v37  ;;  %4059 = vmatprep.mubr.bf16.mxu0 %v9046_v37 }
 0xa01   : > { %v3647_v56 = vpack.c.bf16 %v3637_v20, %v3636_v58  ;;  %v9053_v58 = vsub.s32 1, %v9050_v1 }
 0xa04   : > { %v6327_v52 = vpop.eup %6326 }
 0xa05   : > { %v3594_v21 = vmul.f32 %v6327_v52, %v8487_v0 }
 0xa06   : > { %v6329_v48 = vpop.eup %6328 }
 0xa07   : > { %3947 = vmatmul.mubr.bf16.gmra.mrb[100].mxu1 %v3647_v56  ;;  %4060 = vmatmul.mubr.bf16.gmra.mrb[132].mxu0 %v3647_v56  ;;  %v3595_v14 = vmul.f32 %v6329_v48, %v8490_v11  ;;  %v3616_v19 = vmul.f32 %v8512_v34, %v3594_v21 }
 0xa08   : > { %v6331_v13 = vpop.eup %6330  ;;  %3956 = vmatprep.mubr.bf16.mxu1 %v9046_v37  ;;  %4069 = vmatprep.mubr.bf16.mxu0 %v9046_v37 }
 0xa09   : > { %v3617_v59 = vmul.f32 %v8512_v34, %v3595_v14  ;;  %v3638_v46 = vadd.f32 %v8520_v32, %v3616_v19  ;;  %v3596_v0 = vmul.f32 %v6331_v13, %v8495_v22  ;;  %v6006_v22 = vld [vmem:[#allocation13 + $0x70] sm:$0xff]  }
 0xa0a   : > { %v6333_v24 = vpop.eup %6332  ;;  %5169 = vmatprep.subr.bf16.mxu1 %v6006_v22 }
 0xa0b   : > { %v3639_v4 = vadd.f32 %v8520_v32, %v3617_v59  ;;  %v3597_v9 = vmul.f32 %v6333_v24, %v8500_v15  ;;  %v3618_v47 = vmul.f32 %v8512_v34, %v3596_v0  ;;  %v8613_v15 = vld [vmem:[#allocation13 + $0xf0] sm:$0xff]   ;;  %5170 = vmatpush3.bf16.msra.mxu1 %v6008_v61 }
 0xa0c   : > { %5233 = vmatprep.subr.bf16.mxu0 %v8613_v15 }
 0xa0d   : > { %v3648_v44 = vpack.c.bf16 %v3639_v4, %v3638_v46  ;;  %v3619_v11 = vmul.f32 %v8512_v34, %v3597_v9  ;;  %v3640_v8 = vadd.f32 %v8520_v32, %v3618_v47  ;;  %5234 = vmatpush3.bf16.msra.mxu0 %v8615_v25 }
 0xa0e   : > { %5235 = vmatprep.subr.bf16.mxu0 %v8620_v12 }
 0xa0f   : > { %3957 = vmatmul.mubr.bf16.gmra.mrb[104].mxu1 %v3648_v44  ;;  %4070 = vmatmul.mubr.bf16.gmra.mrb[136].mxu0 %v3648_v44  ;;  %v3641_v3 = vadd.f32 %v8520_v32, %v3619_v11  ;;  %v3682_v32 = vld [vmem:[%s9049_s29] sm:$0xf]  ;;  %s6554_s29 = scalar_lea.vmem %s6553_s24, 4096 }
 0xa10   : > { %3966 = vmatprep.mubr.bf16.mxu1 %v9046_v37  ;;  %4079 = vmatprep.mubr.bf16.mxu0 %v9046_v37  ;;  %v6010_v37 = vld [vmem:[#allocation13 + $0x78] sm:$0xff]   ;;  %v8633_v26 = vrot.slane %v3682_v32, %v9051_v23  ;;  %v8637_v20 = vrot.slane %v3682_v32, %v9052_v43  ;;  %v8641_v52 = vrot.slane %v3682_v32, %v9053_v58  ;;  %p6556_p3 = scmp.lt.s32.totalorder %s6554_s29, %s6548_s30 }
 0xa11   : > { %v3649_v34 = vpack.c.bf16 %v3641_v3, %v3640_v8  ;;  %5171 = vmatprep.subr.bf16.mxu1 %v6010_v37  ;;  %5236 = vmatpush3.bf16.msra.mxu0 %v8622_v5  ;;  %v8643_v56 = vrot.slane %v3682_v32, %v3698_v28 }
 0xa12   : > { %5172 = vmatpush3.bf16.msra.mxu1 %v6012_v62  ;;  %p6557_p2 = por %p6556_p3, %p6555_p1 }
 0xa13   : > { %5605 = vmatprep.subr.bf16.mxu1 %v8506_v42 }
 0xa14   : > { %p6558_p8 = pnand %p6557_p2, %p6551_p13 }
 0xa17   : > { %3967 = vmatmul.mubr.bf16.gmra.mrb[108].mxu1 %v3649_v34  ;;  %4080 = vmatmul.mubr.bf16.gmra.mrb[140].mxu0 %v3649_v34 }
 0xa8e   : > { %v3898_v42 = vpop.f32.mrb[80].mxu1  ;;  %v4011_v21 = vpop.f32.mrb[112].mxu0 }
 0xa8f   : > { %v3899_v48 = vadd.f32 %v3898_v42, %v8633_v26  ;;  %v4012_v14 = vadd.f32 %v4011_v21, %v8637_v20  ;;  %v3900_v19 = vpop.f32.mrb[81].mxu1  ;;  %v4013_v13 = vpop.f32.mrb[113].mxu0 }
 0xa90   : > { %v3901_v59 = vadd.f32 %v3900_v19, %v8641_v52  ;;  %v4014_v24 = vadd.f32 %v4013_v13, %v8643_v56  ;;  %v3902_v46 = vpop.f32.mrb[82].mxu1  ;;  %v4015_v4 = vpop.f32.mrb[114].mxu0 }
 0xa91   : > { %v3903_v0 = vadd.f32 %v3902_v46, %v8633_v26  ;;  %v4016_v9 = vadd.f32 %v4015_v4, %v8637_v20  ;;  %v3904_v44 = vpop.f32.mrb[83].mxu1  ;;  %v4017_v11 = vpop.f32.mrb[115].mxu0  ;;  %v4090_v3 = vmax.f32 %v3899_v48, 0.0  ;;  %v4092_v22 = vmax.f32 %v4012_v14, 0.0 }
 0xa92   : > { %v3905_v2 = vadd.f32 %v3904_v44, %v8641_v52  ;;  %v4018_v47 = vadd.f32 %v4017_v11, %v8643_v56  ;;  %v4091_v34 = vmax.f32 %v3901_v59, 0.0  ;;  %v4093_v37 = vmax.f32 %v4014_v24, 0.0 }
 0xa93   : > { %v4094_v61 = vmax.f32 %v3903_v0, 0.0  ;;  %v4096_v8 = vmax.f32 %v4016_v9, 0.0 }
 0xa94   : > { %v4095_v62 = vmax.f32 %v3905_v2, 0.0  ;;  %v4097_v32 = vmax.f32 %v4018_v47, 0.0 }
 0xa95   : > { %v4154_v1 = vpack.c.bf16 %v4094_v61, %v4090_v3  ;;  %v4156_v28 = vpack.c.bf16 %v4096_v8, %v4092_v22 }
 0xa96   : > { %v4155_v23 = vpack.c.bf16 %v4095_v62, %v4091_v34  ;;  %v4157_v43 = vpack.c.bf16 %v4097_v32, %v4093_v37  ;;  %v3908_v58 = vpop.f32.mrb[84].mxu1  ;;  %v4021_v42 = vpop.f32.mrb[116].mxu0 }
 0xa97   : > { %v3909_v21 = vadd.f32 %v3908_v58, %v8633_v26  ;;  %v4022_v19 = vadd.f32 %v4021_v42, %v8637_v20  ;;  %v3910_v13 = vpop.f32.mrb[85].mxu1  ;;  %v4023_v46 = vpop.f32.mrb[117].mxu0 }
 0xa98   : > { %v3911_v48 = vadd.f32 %v3910_v13, %v8641_v52  ;;  %v4024_v14 = vadd.f32 %v4023_v46, %v8643_v56  ;;  %v3912_v59 = vpop.f32.mrb[86].mxu1  ;;  %v4025_v24 = vpop.f32.mrb[118].mxu0  ;;  %4474 = vmatprep.mubr.bf16.mxu1 %v4155_v23  ;;  %4571 = vmatprep.mubr.bf16.mxu0 %v4157_v43 }
 0xa99   : > { %v3913_v4 = vadd.f32 %v3912_v59, %v8633_v26  ;;  %v4026_v0 = vadd.f32 %v4025_v24, %v8637_v20  ;;  %v3914_v9 = vpop.f32.mrb[87].mxu1  ;;  %v4027_v44 = vpop.f32.mrb[119].mxu0  ;;  %4475 = vmatmul.mubr.bf16.vlgmr.msra.gmra.mrb[112].mxu1 %v4154_v1  ;;  %4572 = vmatmul.mubr.bf16.vlgmr.msra.gmra.mrb[144].mxu0 %v4156_v28  ;;  %v4098_v47 = vmax.f32 %v3909_v21, 0.0  ;;  %v4100_v3 = vmax.f32 %v4022_v19, 0.0 }
 0xa9a   : > { %v3915_v11 = vadd.f32 %v3914_v9, %v8641_v52  ;;  %v4028_v2 = vadd.f32 %v4027_v44, %v8643_v56  ;;  %5613 = vmatpush3.bf16.msra.mxu1 %v8527_v57  ;;  %v4099_v8 = vmax.f32 %v3911_v48, 0.0  ;;  %v4101_v34 = vmax.f32 %v4024_v14, 0.0 }
 0xa9b   : > { %v4102_v22 = vmax.f32 %v3913_v4, 0.0  ;;  %v4104_v61 = vmax.f32 %v4026_v0, 0.0  ;;  %5606 = vmatprep.subr.bf16.mxu1 %v8529_v10 }
 0xa9c   : > { %v4103_v37 = vmax.f32 %v3915_v11, 0.0  ;;  %v4105_v62 = vmax.f32 %v4028_v2, 0.0 }
 0xa9d   : > { %v4158_v32 = vpack.c.bf16 %v4102_v22, %v4098_v47  ;;  %v4160_v23 = vpack.c.bf16 %v4104_v61, %v4100_v3 }
 0xa9e   : > { %v4159_v1 = vpack.c.bf16 %v4103_v37, %v4099_v8  ;;  %v4161_v28 = vpack.c.bf16 %v4105_v62, %v4101_v34  ;;  %5614 = vmatpush3.bf16.msra.mxu1 %v8537_v6 }
 0xa9f   : > { %5607 = vmatprep.subr.bf16.mxu1 %v8540_v27 }
 0xaa0   : > { %4482 = vmatprep.mubr.bf16.mxu1 %v4159_v1  ;;  %4579 = vmatprep.mubr.bf16.mxu0 %v4161_v28 }
 0xaa1   : > { %4483 = vmatmul.mubr.bf16.gmra.mrb[116].mxu1 %v4158_v32  ;;  %4580 = vmatmul.mubr.bf16.gmra.mrb[148].mxu0 %v4160_v23 }
 0xaa2   : > { %5615 = vmatpush3.bf16.msra.mxu1 %v8544_v30 }
 0xaa3   : > { %5608 = vmatprep.subr.bf16.mxu1 %v8547_v49 }
 0xaa6   : > { %5616 = vmatpush3.bf16.msra.mxu1 %v8552_v63 }
 0xaa7   : > { %5609 = vmatprep.subr.bf16.mxu1 %v8555_v29 }
 0xaaa   : > { %5617 = vmatpush3.bf16.msra.mxu1 %v8558_v54 }
 0xaab   : > { %5610 = vmatprep.subr.bf16.mxu1 %v8561_v17 }
 0xaae   : > { %5618 = vmatpush3.bf16.msra.mxu1 %v8606_v50 }
 0xaaf   : > { %5611 = vmatprep.subr.bf16.mxu1 %v8613_v15 }
 0xab2   : > { %5619 = vmatpush3.bf16.msra.mxu1 %v8615_v25 }
 0xab3   : > { %5612 = vmatprep.subr.bf16.mxu1 %v8620_v12 }
 0xab6   : > { %5620 = vmatpush3.bf16.msra.mxu1 %v8622_v5 }
 0xab7   : > { %v3918_v57 = vpop.f32.mrb[88].mxu1  ;;  %v4031_v10 = vpop.f32.mrb[120].mxu0 }
 0xab8   : > { %v3919_v6 = vadd.f32 %v3918_v57, %v8633_v26  ;;  %v4032_v27 = vadd.f32 %v4031_v10, %v8637_v20  ;;  %v3920_v30 = vpop.f32.mrb[89].mxu1  ;;  %v4033_v49 = vpop.f32.mrb[121].mxu0 }
 0xab9   : > { %v3921_v63 = vadd.f32 %v3920_v30, %v8641_v52  ;;  %v4034_v29 = vadd.f32 %v4033_v49, %v8643_v56  ;;  %v3922_v54 = vpop.f32.mrb[90].mxu1  ;;  %v4035_v17 = vpop.f32.mrb[122].mxu0 }
 0xaba   : > { %v3923_v50 = vadd.f32 %v3922_v54, %v8633_v26  ;;  %v4036_v15 = vadd.f32 %v4035_v17, %v8637_v20  ;;  %v3924_v25 = vpop.f32.mrb[91].mxu1  ;;  %v4037_v12 = vpop.f32.mrb[123].mxu0  ;;  %v4106_v58 = vmax.f32 %v3919_v6, 0.0  ;;  %v4108_v42 = vmax.f32 %v4032_v27, 0.0 }
 0xabb   : > { %v3925_v5 = vadd.f32 %v3924_v25, %v8641_v52  ;;  %v4038_v43 = vadd.f32 %v4037_v12, %v8643_v56  ;;  %v4107_v13 = vmax.f32 %v3921_v63, 0.0  ;;  %v4109_v46 = vmax.f32 %v4034_v29, 0.0 }
 0xabc   : > { %v4110_v21 = vmax.f32 %v3923_v50, 0.0  ;;  %v4112_v19 = vmax.f32 %v4036_v15, 0.0 }
 0xabd   : > { %v4111_v48 = vmax.f32 %v3925_v5, 0.0  ;;  %v4113_v14 = vmax.f32 %v4038_v43, 0.0 }
 0xabe   : > { %v4162_v59 = vpack.c.bf16 %v4110_v21, %v4106_v58  ;;  %v4164_v24 = vpack.c.bf16 %v4112_v19, %v4108_v42 }
 0xabf   : > { %v4163_v4 = vpack.c.bf16 %v4111_v48, %v4107_v13  ;;  %v4165_v0 = vpack.c.bf16 %v4113_v14, %v4109_v46  ;;  %v3928_v9 = vpop.f32.mrb[92].mxu1  ;;  %v4041_v44 = vpop.f32.mrb[124].mxu0 }
 0xac0   : > { %v3929_v11 = vadd.f32 %v3928_v9, %v8633_v26  ;;  %v4042_v2 = vadd.f32 %v4041_v44, %v8637_v20  ;;  %v3930_v47 = vpop.f32.mrb[93].mxu1  ;;  %v4043_v3 = vpop.f32.mrb[125].mxu0 }
 0xac1   : > { %v3931_v22 = vadd.f32 %v3930_v47, %v8641_v52  ;;  %v4044_v61 = vadd.f32 %v4043_v3, %v8643_v56  ;;  %v3932_v8 = vpop.f32.mrb[94].mxu1  ;;  %v4045_v34 = vpop.f32.mrb[126].mxu0  ;;  %4490 = vmatprep.mubr.bf16.mxu1 %v4163_v4  ;;  %4587 = vmatprep.mubr.bf16.mxu0 %v4165_v0 }
 0xac2   : > { %v3933_v37 = vadd.f32 %v3932_v8, %v8633_v26  ;;  %v4046_v62 = vadd.f32 %v4045_v34, %v8637_v20  ;;  %v3934_v32 = vpop.f32.mrb[95].mxu1  ;;  %v4047_v23 = vpop.f32.mrb[127].mxu0  ;;  %4491 = vmatmul.mubr.bf16.gmra.mrb[120].mxu1 %v4162_v59  ;;  %4588 = vmatmul.mubr.bf16.gmra.mrb[152].mxu0 %v4164_v24  ;;  %v4114_v57 = vmax.f32 %v3929_v11, 0.0  ;;  %v4116_v10 = vmax.f32 %v4042_v2, 0.0 }
 0xac3   : > { %v3935_v1 = vadd.f32 %v3934_v32, %v8641_v52  ;;  %v4048_v28 = vadd.f32 %v4047_v23, %v8643_v56  ;;  %v4115_v30 = vmax.f32 %v3931_v22, 0.0  ;;  %v4117_v49 = vmax.f32 %v4044_v61, 0.0 }
 0xac4   : > { %v4118_v6 = vmax.f32 %v3933_v37, 0.0  ;;  %v4120_v27 = vmax.f32 %v4046_v62, 0.0 }
 0xac5   : > { %v4119_v63 = vmax.f32 %v3935_v1, 0.0  ;;  %v4121_v29 = vmax.f32 %v4048_v28, 0.0 }
 0xac6   : > { %v4166_v54 = vpack.c.bf16 %v4118_v6, %v4114_v57  ;;  %v4168_v17 = vpack.c.bf16 %v4120_v27, %v4116_v10 }
 0xac7   : > { %v4167_v50 = vpack.c.bf16 %v4119_v63, %v4115_v30  ;;  %v4169_v15 = vpack.c.bf16 %v4121_v29, %v4117_v49 }
 0xac9   : > { %4498 = vmatprep.mubr.bf16.mxu1 %v4167_v50  ;;  %4595 = vmatprep.mubr.bf16.mxu0 %v4169_v15 }
 0xaca   : > { %4499 = vmatmul.mubr.bf16.gmra.mrb[124].mxu1 %v4166_v54  ;;  %4596 = vmatmul.mubr.bf16.gmra.mrb[156].mxu0 %v4168_v17 }
 0xad2   : > { %v3938_v25 = vpop.f32.mrb[96].mxu1  ;;  %v4051_v12 = vpop.f32.mrb[128].mxu0 }
 0xad3   : > { %v3939_v5 = vadd.f32 %v3938_v25, %v8633_v26  ;;  %v4052_v43 = vadd.f32 %v4051_v12, %v8637_v20  ;;  %v3940_v58 = vpop.f32.mrb[97].mxu1  ;;  %v4053_v42 = vpop.f32.mrb[129].mxu0 }
 0xad4   : > { %v3941_v21 = vadd.f32 %v3940_v58, %v8641_v52  ;;  %v4054_v19 = vadd.f32 %v4053_v42, %v8643_v56  ;;  %v3942_v13 = vpop.f32.mrb[98].mxu1  ;;  %v4055_v46 = vpop.f32.mrb[130].mxu0 }
 0xad5   : > { %v3943_v48 = vadd.f32 %v3942_v13, %v8633_v26  ;;  %v4056_v14 = vadd.f32 %v4055_v46, %v8637_v20  ;;  %v3944_v59 = vpop.f32.mrb[99].mxu1  ;;  %v4057_v24 = vpop.f32.mrb[131].mxu0  ;;  %v4122_v9 = vmax.f32 %v3939_v5, 0.0  ;;  %v4124_v44 = vmax.f32 %v4052_v43, 0.0 }
 0xad6   : > { %v3945_v4 = vadd.f32 %v3944_v59, %v8641_v52  ;;  %v4058_v0 = vadd.f32 %v4057_v24, %v8643_v56  ;;  %v4123_v47 = vmax.f32 %v3941_v21, 0.0  ;;  %v4125_v3 = vmax.f32 %v4054_v19, 0.0 }
 0xad7   : > { %v4126_v11 = vmax.f32 %v3943_v48, 0.0  ;;  %v4128_v2 = vmax.f32 %v4056_v14, 0.0 }
 0xad8   : > { %v4127_v22 = vmax.f32 %v3945_v4, 0.0  ;;  %v4129_v61 = vmax.f32 %v4058_v0, 0.0 }
 0xad9   : > { %v4170_v8 = vpack.c.bf16 %v4126_v11, %v4122_v9  ;;  %v4172_v34 = vpack.c.bf16 %v4128_v2, %v4124_v44 }
 0xada   : > { %v4171_v37 = vpack.c.bf16 %v4127_v22, %v4123_v47  ;;  %v4173_v62 = vpack.c.bf16 %v4129_v61, %v4125_v3  ;;  %v3948_v32 = vpop.f32.mrb[100].mxu1  ;;  %v4061_v23 = vpop.f32.mrb[132].mxu0 }
 0xadb   : > { %v3949_v1 = vadd.f32 %v3948_v32, %v8633_v26  ;;  %v4062_v28 = vadd.f32 %v4061_v23, %v8637_v20  ;;  %v3950_v57 = vpop.f32.mrb[101].mxu1  ;;  %v4063_v10 = vpop.f32.mrb[133].mxu0 }
 0xadc   : > { %v3951_v6 = vadd.f32 %v3950_v57, %v8641_v52  ;;  %v4064_v27 = vadd.f32 %v4063_v10, %v8643_v56  ;;  %v3952_v30 = vpop.f32.mrb[102].mxu1  ;;  %v4065_v49 = vpop.f32.mrb[134].mxu0  ;;  %4506 = vmatprep.mubr.bf16.mxu1 %v4171_v37  ;;  %4603 = vmatprep.mubr.bf16.mxu0 %v4173_v62 }
 0xadd   : > { %v3953_v63 = vadd.f32 %v3952_v30, %v8633_v26  ;;  %v4066_v29 = vadd.f32 %v4065_v49, %v8637_v20  ;;  %v3954_v54 = vpop.f32.mrb[103].mxu1  ;;  %v4067_v17 = vpop.f32.mrb[135].mxu0  ;;  %4507 = vmatmul.mubr.bf16.gmra.mrb[128].mxu1 %v4170_v8  ;;  %4604 = vmatmul.mubr.bf16.gmra.mrb[160].mxu0 %v4172_v34  ;;  %v4130_v25 = vmax.f32 %v3949_v1, 0.0  ;;  %v4132_v12 = vmax.f32 %v4062_v28, 0.0 }
 0xade   : > { %v3955_v50 = vadd.f32 %v3954_v54, %v8641_v52  ;;  %v4068_v15 = vadd.f32 %v4067_v17, %v8643_v56  ;;  %v4131_v58 = vmax.f32 %v3951_v6, 0.0  ;;  %v4133_v42 = vmax.f32 %v4064_v27, 0.0 }
 0xadf   : > { %v4134_v5 = vmax.f32 %v3953_v63, 0.0  ;;  %v4136_v43 = vmax.f32 %v4066_v29, 0.0 }
 0xae0   : > { %v4135_v21 = vmax.f32 %v3955_v50, 0.0  ;;  %v4137_v19 = vmax.f32 %v4068_v15, 0.0 }
 0xae1   : > { %v4174_v13 = vpack.c.bf16 %v4134_v5, %v4130_v25  ;;  %v4176_v46 = vpack.c.bf16 %v4136_v43, %v4132_v12 }
 0xae2   : > { %v4175_v48 = vpack.c.bf16 %v4135_v21, %v4131_v58  ;;  %v4177_v14 = vpack.c.bf16 %v4137_v19, %v4133_v42  ;;  %v3958_v59 = vpop.f32.mrb[104].mxu1  ;;  %v4071_v24 = vpop.f32.mrb[136].mxu0 }
 0xae3   : > { %v3959_v4 = vadd.f32 %v3958_v59, %v8633_v26  ;;  %v4072_v0 = vadd.f32 %v4071_v24, %v8637_v20  ;;  %v3960_v9 = vpop.f32.mrb[105].mxu1  ;;  %v4073_v44 = vpop.f32.mrb[137].mxu0 }
 0xae4   : > { %v3961_v11 = vadd.f32 %v3960_v9, %v8641_v52  ;;  %v4074_v2 = vadd.f32 %v4073_v44, %v8643_v56  ;;  %v3962_v47 = vpop.f32.mrb[106].mxu1  ;;  %v4075_v3 = vpop.f32.mrb[138].mxu0  ;;  %4514 = vmatprep.mubr.bf16.mxu1 %v4175_v48  ;;  %4611 = vmatprep.mubr.bf16.mxu0 %v4177_v14 }
 0xae5   : > { %v3963_v22 = vadd.f32 %v3962_v47, %v8633_v26  ;;  %v4076_v61 = vadd.f32 %v4075_v3, %v8637_v20  ;;  %v3964_v8 = vpop.f32.mrb[107].mxu1  ;;  %v4077_v34 = vpop.f32.mrb[139].mxu0  ;;  %4515 = vmatmul.mubr.bf16.gmra.mrb[132].mxu1 %v4174_v13  ;;  %4612 = vmatmul.mubr.bf16.gmra.mrb[164].mxu0 %v4176_v46  ;;  %v4138_v32 = vmax.f32 %v3959_v4, 0.0  ;;  %v4140_v23 = vmax.f32 %v4072_v0, 0.0 }
 0xae6   : > { %v3965_v37 = vadd.f32 %v3964_v8, %v8641_v52  ;;  %v4078_v62 = vadd.f32 %v4077_v34, %v8643_v56  ;;  %v4139_v57 = vmax.f32 %v3961_v11, 0.0  ;;  %v4141_v10 = vmax.f32 %v4074_v2, 0.0 }
 0xae7   : > { %v4142_v1 = vmax.f32 %v3963_v22, 0.0  ;;  %v4144_v28 = vmax.f32 %v4076_v61, 0.0 }
 0xae8   : > { %v4143_v6 = vmax.f32 %v3965_v37, 0.0  ;;  %v4145_v27 = vmax.f32 %v4078_v62, 0.0 }
 0xae9   : > { %v4178_v30 = vpack.c.bf16 %v4142_v1, %v4138_v32  ;;  %v4180_v49 = vpack.c.bf16 %v4144_v28, %v4140_v23 }
 0xaea   : > { %v4179_v63 = vpack.c.bf16 %v4143_v6, %v4139_v57  ;;  %v4181_v29 = vpack.c.bf16 %v4145_v27, %v4141_v10  ;;  %v3968_v54 = vpop.f32.mrb[108].mxu1  ;;  %v4081_v17 = vpop.f32.mrb[140].mxu0  ;;  %v8727_v10 = vld [vmem:[%s9054_s16] ss:$0 sm:$0xff] }
 0xaeb   : > { %v3969_v50 = vadd.f32 %v3968_v54, %v8633_v26  ;;  %v4082_v15 = vadd.f32 %v4081_v17, %v8637_v20  ;;  %v3970_v25 = vpop.f32.mrb[109].mxu1  ;;  %v4083_v12 = vpop.f32.mrb[141].mxu0 }
 0xaec   : > { %v3971_v5 = vadd.f32 %v3970_v25, %v8641_v52  ;;  %v4084_v43 = vadd.f32 %v4083_v12, %v8643_v56  ;;  %v3972_v58 = vpop.f32.mrb[110].mxu1  ;;  %v4085_v42 = vpop.f32.mrb[142].mxu0  ;;  %4522 = vmatprep.mubr.bf16.mxu1 %v4179_v63 }
 0xaed   : > { %v3973_v21 = vadd.f32 %v3972_v58, %v8633_v26  ;;  %v4086_v19 = vadd.f32 %v4085_v42, %v8637_v20  ;;  %v3974_v13 = vpop.f32.mrb[111].mxu1  ;;  %v4087_v46 = vpop.f32.mrb[143].mxu0  ;;  %4523 = vmatmul.mubr.bf16.gmra.mrb[136].mxu1 %v4178_v30  ;;  %v4146_v59 = vmax.f32 %v3969_v50, 0.0  ;;  %v4148_v24 = vmax.f32 %v4082_v15, 0.0 }
 0xaee   : > { %v3975_v48 = vadd.f32 %v3974_v13, %v8641_v52  ;;  %v4088_v14 = vadd.f32 %v4087_v46, %v8643_v56  ;;  %v4147_v9 = vmax.f32 %v3971_v5, 0.0  ;;  %v4149_v44 = vmax.f32 %v4084_v43, 0.0 }
 0xaef   : > { %v4150_v4 = vmax.f32 %v3973_v21, 0.0  ;;  %v4152_v0 = vmax.f32 %v4086_v19, 0.0 }
 0xaf0   : > { %v4151_v11 = vmax.f32 %v3975_v48, 0.0  ;;  %v4153_v2 = vmax.f32 %v4088_v14, 0.0 }
 0xaf1   : > { %v4182_v47 = vpack.c.bf16 %v4150_v4, %v4146_v59  ;;  %v4184_v3 = vpack.c.bf16 %v4152_v0, %v4148_v24 }
 0xaf2   : > { %v4183_v26 = vpack.c.bf16 %v4151_v11, %v4147_v9  ;;  %v4185_v22 = vpack.c.bf16 %v4153_v2, %v4149_v44 }
 0xaf4   : > { %4530 = vmatprep.mubr.bf16.mxu1 %v4183_v26 }
 0xaf5   : > { %4531 = vmatmul.mubr.bf16.gmra.mrb[140].mxu1 %v4182_v47 }
 0xaf6   : > { %4619 = vmatprep.mubr.bf16.mxu1 %v4181_v29 }
 0xafd   : > { %4620 = vmatmul.mubr.bf16.vlgmr.msra.gmra.mrb[144].mxu1 %v4180_v49 }
 0xafe   : > { %4627 = vmatprep.mubr.bf16.mxu1 %v4185_v22 }
 0xb05   : > { %4628 = vmatmul.mubr.bf16.gmra.mrb[148].mxu1 %v4184_v3 }
 0xb6c   : > { %v5173_v20 = vpop.f32.mrb[112].mxu1  ;;  %v5237_v52 = vpop.f32.mrb[144].mxu0 }
 0xb6d   : > { %v5174_v56 = vpop.f32.mrb[113].mxu1  ;;  %v5238_v61 = vpop.f32.mrb[145].mxu0 }
 0xb6e   : > { %v5175_v8 = vadd.f32 %v5174_v56, %v5173_v20  ;;  %v5239_v34 = vadd.f32 %v5238_v61, %v5237_v52  ;;  %v5176_v37 = vpop.f32.mrb[114].mxu1  ;;  %v5240_v62 = vpop.f32.mrb[146].mxu0 }
 0xb6f   : > { %v5177_v32 = vpop.f32.mrb[115].mxu1  ;;  %v5241_v23 = vpop.f32.mrb[147].mxu0 }
 0xb70   : > { %v4574_v1 = vadd.f32 %v5239_v34, %v5175_v8  ;;  %v5178_v28 = vadd.f32 %v5177_v32, %v5176_v37  ;;  %v5242_v57 = vadd.f32 %v5241_v23, %v5240_v62 }
 0xb72   : > { %v4636_v6 = vadd.f32 %v4574_v1, %v8349_v36  ;;  %v4577_v27 = vadd.f32 %v5242_v57, %v5178_v28 }
 0xb74   : > { %v4659_v30 = vadd.f32 %v8727_v10, %v4636_v6  ;;  %v4637_v49 = vadd.f32 %v4577_v27, %v8353_v60  ;;  %v5179_v63 = vpop.f32.mrb[116].mxu1  ;;  %v5243_v29 = vpop.f32.mrb[148].mxu0 }
 0xb75   : > { %v5180_v54 = vpop.f32.mrb[117].mxu1  ;;  %v5244_v17 = vpop.f32.mrb[149].mxu0 }
 0xb76   : > { %4675 = vst [vmem:[%s8734_s23] sm:$0xff] %v4659_v30  ;;  %v4660_v50 = vadd.f32 %v8727_v10, %v4637_v49  ;;  %v5181_v15 = vadd.f32 %v5180_v54, %v5179_v63  ;;  %v5245_v36 = vadd.f32 %v5244_v17, %v5243_v29  ;;  %v5182_v25 = vpop.f32.mrb[118].mxu1  ;;  %v5246_v12 = vpop.f32.mrb[150].mxu0 }
 0xb77   : > { %v5183_v5 = vpop.f32.mrb[119].mxu1  ;;  %v5247_v60 = vpop.f32.mrb[151].mxu0 }
 0xb78   : > { %4676 = vst [vmem:[%s8734_s23 + $0x8] sm:$0xff] %v4660_v50  ;;  %v4582_v43 = vadd.f32 %v5245_v36, %v5181_v15  ;;  %v5184_v58 = vadd.f32 %v5183_v5, %v5182_v25  ;;  %v5248_v42 = vadd.f32 %v5247_v60, %v5246_v12 }
 0xb7a   : > { %v4638_v21 = vadd.f32 %v4582_v43, %v8357_v33  ;;  %v4585_v19 = vadd.f32 %v5248_v42, %v5184_v58 }
 0xb7c   : > { %v4661_v13 = vadd.f32 %v8727_v10, %v4638_v21  ;;  %v4639_v46 = vadd.f32 %v4585_v19, %v8363_v41 }
 0xb7e   : > { %4677 = vst [vmem:[%s8734_s23 + $0x10] sm:$0xff] %v4661_v13  ;;  %v4662_v48 = vadd.f32 %v8727_v10, %v4639_v46 }
 0xb80   : > { %4678 = vst [vmem:[%s8734_s23 + $0x18] sm:$0xff] %v4662_v48 }
 0xb95   : > { %v5185_v14 = vpop.f32.mrb[120].mxu1  ;;  %v5249_v59 = vpop.f32.mrb[152].mxu0 }
 0xb96   : > { %v5186_v24 = vpop.f32.mrb[121].mxu1  ;;  %v5250_v4 = vpop.f32.mrb[153].mxu0 }
 0xb97   : > { %v5187_v0 = vadd.f32 %v5186_v24, %v5185_v14  ;;  %v5251_v9 = vadd.f32 %v5250_v4, %v5249_v59  ;;  %v5188_v44 = vpop.f32.mrb[122].mxu1  ;;  %v5252_v11 = vpop.f32.mrb[154].mxu0 }
 0xb98   : > { %v5189_v2 = vpop.f32.mrb[123].mxu1  ;;  %v5253_v33 = vpop.f32.mrb[155].mxu0 }
 0xb99   : > { %v4590_v47 = vadd.f32 %v5251_v9, %v5187_v0  ;;  %v5190_v3 = vadd.f32 %v5189_v2, %v5188_v44  ;;  %v5254_v26 = vadd.f32 %v5253_v33, %v5252_v11 }
 0xb9b   : > { %v4640_v41 = vadd.f32 %v4590_v47, %v8369_v35  ;;  %v4593_v22 = vadd.f32 %v5254_v26, %v5190_v3 }
 0xb9d   : > { %v4663_v20 = vadd.f32 %v8727_v10, %v4640_v41  ;;  %v4641_v52 = vadd.f32 %v4593_v22, %v8374_v55  ;;  %v5191_v56 = vpop.f32.mrb[124].mxu1  ;;  %v5255_v61 = vpop.f32.mrb[156].mxu0 }
 0xb9e   : > { %v5192_v8 = vpop.f32.mrb[125].mxu1  ;;  %v5256_v34 = vpop.f32.mrb[157].mxu0 }
 0xb9f   : > { %4679 = vst [vmem:[%s8734_s23 + $0x20] sm:$0xff] %v4663_v20  ;;  %v4664_v37 = vadd.f32 %v8727_v10, %v4641_v52  ;;  %v5193_v62 = vadd.f32 %v5192_v8, %v5191_v56  ;;  %v5257_v32 = vadd.f32 %v5256_v34, %v5255_v61  ;;  %v5194_v23 = vpop.f32.mrb[126].mxu1  ;;  %v5258_v1 = vpop.f32.mrb[158].mxu0 }
 0xba0   : > { %v5195_v35 = vpop.f32.mrb[127].mxu1  ;;  %v5259_v28 = vpop.f32.mrb[159].mxu0 }
 0xba1   : > { %4680 = vst [vmem:[%s8734_s23 + $0x28] sm:$0xff] %v4664_v37  ;;  %v4598_v57 = vadd.f32 %v5257_v32, %v5193_v62  ;;  %v5196_v6 = vadd.f32 %v5195_v35, %v5194_v23  ;;  %v5260_v27 = vadd.f32 %v5259_v28, %v5258_v1 }
 0xba3   : > { %v4642_v55 = vadd.f32 %v4598_v57, %v8378_v51  ;;  %v4601_v30 = vadd.f32 %v5260_v27, %v5196_v6 }
 0xba5   : > { %v4665_v49 = vadd.f32 %v8727_v10, %v4642_v55  ;;  %v4643_v63 = vadd.f32 %v4601_v30, %v8382_v18 }
 0xba7   : > { %4681 = vst [vmem:[%s8734_s23 + $0x30] sm:$0xff] %v4665_v49  ;;  %v4666_v29 = vadd.f32 %v8727_v10, %v4643_v63 }
 0xba9   : > { %4682 = vst [vmem:[%s8734_s23 + $0x38] sm:$0xff] %v4666_v29 }
 0xbb0   : > { %v5197_v54 = vpop.f32.mrb[128].mxu1  ;;  %v5261_v17 = vpop.f32.mrb[160].mxu0 }
 0xbb1   : > { %v5198_v50 = vpop.f32.mrb[129].mxu1  ;;  %v5262_v15 = vpop.f32.mrb[161].mxu0 }
 0xbb2   : > { %v5199_v36 = vadd.f32 %v5198_v50, %v5197_v54  ;;  %v5263_v25 = vadd.f32 %v5262_v15, %v5261_v17  ;;  %v5200_v12 = vpop.f32.mrb[130].mxu1  ;;  %v5264_v5 = vpop.f32.mrb[162].mxu0 }
 0xbb3   : > { %v5201_v60 = vpop.f32.mrb[131].mxu1  ;;  %v5265_v51 = vpop.f32.mrb[163].mxu0 }
 0xbb4   : > { %v4606_v43 = vadd.f32 %v5263_v25, %v5199_v36  ;;  %v5202_v58 = vadd.f32 %v5201_v60, %v5200_v12  ;;  %v5266_v42 = vadd.f32 %v5265_v51, %v5264_v5 }
 0xbb6   : > { %v4644_v18 = vadd.f32 %v4606_v43, %v8389_v31  ;;  %v4609_v21 = vadd.f32 %v5266_v42, %v5202_v58 }
 0xbb8   : > { %v4667_v19 = vadd.f32 %v8727_v10, %v4644_v18  ;;  %v4645_v13 = vadd.f32 %v4609_v21, %v8394_v40  ;;  %v5203_v46 = vpop.f32.mrb[132].mxu1  ;;  %v5267_v48 = vpop.f32.mrb[164].mxu0 }
 0xbb9   : > { %v5204_v14 = vpop.f32.mrb[133].mxu1  ;;  %v5268_v59 = vpop.f32.mrb[165].mxu0 }
 0xbba   : > { %4683 = vst [vmem:[%s8734_s23 + $0x40] sm:$0xff] %v4667_v19  ;;  %v4668_v24 = vadd.f32 %v8727_v10, %v4645_v13  ;;  %v5205_v4 = vadd.f32 %v5204_v14, %v5203_v46  ;;  %v5269_v0 = vadd.f32 %v5268_v59, %v5267_v48  ;;  %v5206_v9 = vpop.f32.mrb[134].mxu1  ;;  %v5270_v44 = vpop.f32.mrb[166].mxu0 }
 0xbbb   : > { %v5207_v11 = vpop.f32.mrb[135].mxu1  ;;  %v5271_v31 = vpop.f32.mrb[167].mxu0 }
 0xbbc   : > { %4684 = vst [vmem:[%s8734_s23 + $0x48] sm:$0xff] %v4668_v24  ;;  %v4614_v2 = vadd.f32 %v5269_v0, %v5205_v4  ;;  %v5208_v33 = vadd.f32 %v5207_v11, %v5206_v9  ;;  %v5272_v47 = vadd.f32 %v5271_v31, %v5270_v44 }
 0xbbe   : > { %v4646_v40 = vadd.f32 %v4614_v2, %v8398_v16  ;;  %v4617_v3 = vadd.f32 %v5272_v47, %v5208_v33 }
 0xbc0   : > { %v4669_v26 = vadd.f32 %v8727_v10, %v4646_v40  ;;  %v4647_v41 = vadd.f32 %v4617_v3, %v8402_v53  ;;  %v5209_v22 = vpop.f32.mrb[136].mxu1 }
 0xbc1   : > { %v5210_v20 = vpop.f32.mrb[137].mxu1 }
 0xbc2   : > { %4685 = vst [vmem:[%s8734_s23 + $0x50] sm:$0xff] %v4669_v26  ;;  %v4670_v52 = vadd.f32 %v8727_v10, %v4647_v41  ;;  %v5211_v56 = vadd.f32 %v5210_v20, %v5209_v22  ;;  %v5212_v61 = vpop.f32.mrb[138].mxu1 }
 0xbc3   : > { %v5213_v8 = vpop.f32.mrb[139].mxu1 }
 0xbc4   : > { %4686 = vst [vmem:[%s8734_s23 + $0x58] sm:$0xff] %v4670_v52  ;;  %v5214_v34 = vadd.f32 %v5213_v8, %v5212_v61 }
 0xbc8   : > { %v5215_v37 = vpop.f32.mrb[140].mxu1 }
 0xbc9   : > { %v5216_v62 = vpop.f32.mrb[141].mxu1 }
 0xbca   : > { %v5217_v32 = vadd.f32 %v5216_v62, %v5215_v37  ;;  %v5218_v23 = vpop.f32.mrb[142].mxu1 }
 0xbcb   : > { %v5219_v16 = vpop.f32.mrb[143].mxu1 }
 0xbcc   : > { %v5220_v1 = vadd.f32 %v5219_v16, %v5218_v23 }
 0xbd0   : > { %v5273_v35 = vpop.f32.mrb[144].mxu1 }
 0xbd1   : > { %v5274_v28 = vpop.f32.mrb[145].mxu1 }
 0xbd2   : > { %v5275_v53 = vadd.f32 %v5274_v28, %v5273_v35  ;;  %v5276_v57 = vpop.f32.mrb[146].mxu1 }
 0xbd3   : > { %v5277_v6 = vpop.f32.mrb[147].mxu1 }
 0xbd4   : > { %v4622_v27 = vadd.f32 %v5275_v53, %v5211_v56  ;;  %v5278_v55 = vadd.f32 %v5277_v6, %v5276_v57 }
 0xbd6   : > { %v4648_v30 = vadd.f32 %v4622_v27, %v8409_v38  ;;  %v4625_v49 = vadd.f32 %v5278_v55, %v5214_v34 }
 0xbd8   : > { %v4671_v63 = vadd.f32 %v8727_v10, %v4648_v30  ;;  %v4649_v29 = vadd.f32 %v4625_v49, %v8414_v39  ;;  %v5279_v54 = vpop.f32.mrb[148].mxu1 }
 0xbd9   : > { %v5280_v17 = vpop.f32.mrb[149].mxu1 }
 0xbda   : > { %4687 = vst [vmem:[%s8734_s23 + $0x60] sm:$0xff] %v4671_v63  ;;  %v4672_v50 = vadd.f32 %v8727_v10, %v4649_v29  ;;  %v5281_v15 = vadd.f32 %v5280_v17, %v5279_v54  ;;  %v5282_v36 = vpop.f32.mrb[150].mxu1 }
 0xbdb   : > { %v5283_v25 = vpop.f32.mrb[151].mxu1 }
 0xbdc   : > { %4688 = vst [vmem:[%s8734_s23 + $0x68] sm:$0xff] %v4672_v50  ;;  %v4630_v38 = vadd.f32 %v5281_v15, %v5217_v32  ;;  %v5284_v12 = vadd.f32 %v5283_v25, %v5282_v36 }
 0xbde   : > { %v4650_v5 = vadd.f32 %v4630_v38, %v8418_v7  ;;  %v4633_v60 = vadd.f32 %v5284_v12, %v5220_v1 }
 0xbe0   : > { %v4673_v39 = vadd.f32 %v8727_v10, %v4650_v5  ;;  %v4651_v51 = vadd.f32 %v4633_v60, %v8422_v45 }
 0xbe2   : > { %4689 = vst [vmem:[%s8734_s23 + $0x70] sm:$0xff] %v4673_v39  ;;  %v4674_v7 = vadd.f32 %v8727_v10, %v4651_v51 }
 0xbe4   : > { %4690 = vst [vmem:[%s8734_s23 + $0x78] sm:$0xff] %v4674_v7 }
 0xbe5   : > { %6561 = shalt.err (!%p6558_p8)
}
 0xbe6   : > { %s6562_s21 = scalar_lea.hbm %s8783_s13, 2048  ;;  %s6566_s23 = scalar_lea.hbm %s9055_s8, 4096 }
 0xbe7   : > { %p6563_p10 = scmp.ne.s32.totalorder %s8783_s13, %s6562_s21  ;;  %p6567_p0 = scmp.lt.u32.totalorder %s8783_s13, %s9055_s8 }
 0xbe8   : > { %p6568_p5 = scmp.lt.u32.totalorder %s6566_s23, %s6562_s21  ;;  %p6570_p6 = scmp.lt.u32.totalorder %s6562_s21, %s8783_s13 }
 0xbe9   : > { %p6564_p11 = pnand %p6563_p10, %p9056_p9 }
 0xbea   : > { %p6569_p7 = por %p6568_p5, %p6567_p0 }
 0xbeb   : > { %p6565_p12 = pneg %p6564_p11 }
 0xbec   : > { %p6571_p4 = por %p6570_p6, %p6569_p7 }
 0xbee   : > { %p6572_p13 = pnand %p6571_p4, %p6565_p12 }
 0xbf0   : > { %6575 = shalt.err (!%p6572_p13)
}
 0xbf1   : > { %s6648_s17 = smov 128   ;;  %s6649_s30 = smov 8  }
 0xbf2   : > { %5679 = dma.vmem_to_hbm [thread:$0]  (%p9056_p9), %s8785_s19, 2048, %s8783_s13, %s4692_s14, %s6648_s17, %s6648_s17, %s6649_s30  }
 0xbf3 PF: > { %s4720_s15 = sand.u32 1, %s6614_s25   ;;  %p9057_p1 = scmp.ne.s32.totalorder %s8928_s7, 0 }
 0xbf4   : > { %p9058_p3 = scmp.ge.s32.totalorder %s6626_s28, 2  ;;  %s4721_s24 = scalar_lea.sflag [#allocation4], %s4720_s15 }
 0xbf6   : > { %p5705_p2 = pnand %p9058_p3, %p9057_p1 }
 0xbf8   : > { %6609 = dma.done.wait (!%p5705_p2), %s4721_s24, 2048  }
 0xbf9   : > { %6611 = vsyncadd (!%p5705_p2), %s4721_s24, 4294965248  ;;  %p29_p8 = scmp.ge.s32.totalorder %s6897_s18, 4   ;;  %s9059_s25 = smov %s6618_s26 }
 0xbfa   : > { %s9060_s26 = smov %s6622_s27  ;;  %s9061_s27 = smov %s6908_s10 }
 0xbfb   : > { %s9062_s28 = smov %s6897_s18  ;;  %31 = sbr.rel (!%p29_p8) target bundleno = 16 (0x10), region = 141 }
 0xc02   :  { %4726 = vsyncpa [#allocation3], 1 }
 0xc03   :  { %4728 = vsyncpa [#allocation3 + $0x1], 1 }
 0xc04   :  { %4729 = vsyncpa [#allocation6], 1 }
 0xc05   :  { %4730 = vsyncpa [#allocation9], 1 }
 0xc06   :  { %4731 = vsyncpa [#allocation12], 1 }
 0xc07   :  { %4732 = vsyncpa [#allocation4], 1 }
 0xc08   :  { %4734 = vsyncpa [#allocation4 + $0x1], 1 }

// kernel: tpu_custom_call.1
= control target key start
LH: loop header
LB: loop body
LE: loop exit
PB: predicated region body
PF: predicated region fallthrough
CT: control target
= control target key end

     0   :  { %s8832_s0 = inlined_call_operand.hbm [shape: f32[2,128,128], index: 0, kind: input, shape index: {}]   ;;  %s8833_s1 = inlined_call_operand.hbm [shape: f32[1,128], index: 1, kind: input, shape index: {}]   ;;  %s8834_s2 = inlined_call_operand.hbm [shape: f32[1,128], index: 2, kind: input, shape index: {}]   ;;  %s8835_s3 = inlined_call_operand.hbm [shape: bf16[128,384], index: 3, kind: input, shape index: {}]   ;;  %s8836_s4 = inlined_call_operand.vmem [shape: f32[1,384], index: 4, kind: input, shape index: {}]   ;;  %s8837_s5 = inlined_call_operand.hbm [shape: bf16[128,128], index: 5, kind: input, shape index: {}]   ;;  %s8838_s6 = inlined_call_operand.vmem [shape: f32[1,128], index: 6, kind: input, shape index: {}]   ;;  %s8839_s7 = inlined_call_operand.vmem [shape: f32[1,128], index: 7, kind: input, shape index: {}]   ;;  %s8840_s8 = inlined_call_operand.vmem [shape: f32[1,128], index: 8, kind: input, shape index: {}]   ;;  %s8841_s9 = inlined_call_operand.hbm [shape: bf16[128,512], index: 9, kind: input, shape index: {}]   ;;  %s8842_s10 = inlined_call_operand.vmem [shape: f32[1,512], index: 10, kind: input, shape index: {}]   ;;  %s8843_s11 = inlined_call_operand.hbm [shape: bf16[512,128], index: 11, kind: input, shape index: {}]   ;;  %s8844_s12 = inlined_call_operand.vmem [shape: f32[1,128], index: 12, kind: input, shape index: {}]   ;;  %s8845_s13 = inlined_call_operand.hbm [shape: f32[2,128,128], index: 13, kind: output, shape index: {}]  }
   0x1   :  { %8912 = sst [smem:[#allocation63_spill]] %s8833_s1 }
   0x2   :  { %8913 = sst [smem:[#allocation64_spill]] %s8835_s3 }
   0x3   :  { %8914 = sst [smem:[#allocation65_spill]] %s8839_s7 }
   0x4   :  { %8915 = sst [smem:[#allocation66_spill]] %s8840_s8 }
   0x5   :  { %8916 = sst [smem:[#allocation67_spill]] %s8842_s10 }
   0x6   :  { %8917 = sst [smem:[#allocation68_spill]] %s8844_s12 }
   0x7   :  { %8918 = sst [smem:[#allocation69_spill]] %s8845_s13 }
   0x8   :  { %18 = vsyncpa [#allocation3], 0 }
   0x9   :  { %20 = vsyncpa [#allocation3 + $0x1], 0 }
   0xa   :  { %21 = vsyncpa [#allocation6], 0 }
   0xb   :  { %22 = vsyncpa [#allocation9], 0 }
   0xc   :  { %23 = vsyncpa [#allocation12], 0 }
   0xd   :  { %24 = vsyncpa [#allocation4], 0 }
   0xe   :  { %26 = vsyncpa [#allocation4 + $0x1], 0  ;;  %s6720_s25 = smov 0   ;;  %s6722_s26 = smov 0  }
   0xf   :  { %s6724_s27 = smov 0   ;;  %s6726_s28 = smov 0  }
  0x10 LB: > { %s6628_s29 = smov [#allocation5]   ;;  %s6741_s14 = sadd.s32 4294967295, %s6626_s28   ;;  %s6626_s28 = sphi %s6726_s28, %s9062_s28   ;;  %s6622_s27 = sphi %s6724_s27, %s9061_s27   ;;  %s6618_s26 = sphi %s6722_s26, %s9060_s26   ;;  %s6614_s25 = sphi %s6720_s25, %s9059_s25  }
  0x11   : > { %s354_s30 = sshll.u32 %s6628_s29, 4  ;;  %p4836_p0 = scmp.ge.s32.totalorder %s6626_s28, 1  ;;  %s6746_s30 = int_to_ptr.vmem [resolvable:$true] %s354_s30 }
  0x12   : > { %p8847_p1 = scmp.eq.s32.totalorder %s6741_s14, 0  ;;  %p341_p2 = scmp.lt.s32.totalorder %s6626_s28, 3 }
  0x13   : > { %s6629_s16 = smov [#allocation8]   ;;  %s6630_s19 = smov [#allocation11]  }
  0x14   : > { %p6748_p3 = pnand %p4836_p0, %p341_p2  ;;  %s375_s17 = sshll.u32 %s6629_s16, 4  ;;  %s6755_s17 = int_to_ptr.vmem [resolvable:$true] %s375_s17 }
  0x15   : > { %s413_s20 = sshll.u32 %s6630_s19, 4  ;;  %s8921_s1 = sld [smem:[#allocation63_spill]]  ;;  %s6763_s20 = int_to_ptr.vmem [resolvable:$true] %s413_s20 }
  0x16   : > { %s8919_s15 = scalar_select %p6748_p3, 1, 0 }
  0x17   : > { %p5681_p5 = pneg %p6748_p3 }
  0x19   : > { %p6759_p6 = pnand %p5681_p5, %p8847_p1 }
  0x1b   : > { %s6350_s23 = scalar_lea.hbm %s8921_s1, 16  ;;  %p6773_p8 = pneg %p6759_p6 }
  0x1c   : > { %p6351_p7 = scmp.ne.s32.totalorder %s8921_s1, %s6350_s23  ;;  %p6357_p11 = scmp.lt.u32.totalorder %s6350_s23, %s8921_s1 }
  0x1e   : > { %p6353_p9 = pnand %p6773_p8, %p6351_p7 }
  0x20   : > { %p6354_p10 = pneg %p6353_p9 }
  0x22   : > { %p6359_p12 = pnand %p6357_p11, %p6354_p10 }
  0x24   : > { %6362 = shalt.err (!%p6359_p12)
}
  0x25   : > { %s6363_s21 = scalar_lea.vmem %s6746_s30, 16  ;;  %s6370_s22 = scalar_lea.vmem %s6746_s30, 32 }
  0x26   : > { %p6364_p13 = scmp.ne.s32.totalorder %s6746_s30, %s6363_s21  ;;  %p6371_p5 = scmp.lt.s32.totalorder %s6746_s30, %s6746_s30 }
  0x27   : > { %p6372_p7 = scmp.lt.s32.totalorder %s6370_s22, %s6363_s21 }
  0x28   : > { %p6366_p0 = pnand %p6364_p13, %p6773_p8 }
  0x29   : > { %p6373_p9 = por %p6372_p7, %p6371_p5 }
  0x2a   : > { %p6367_p2 = pneg %p6366_p0 }
  0x2c   : > { %p6374_p4 = pnand %p6373_p9, %p6367_p2 }
  0x2e   : > { %6377 = shalt.err (!%p6374_p4)
}
  0x2f   : > { %5684 = dma.hbm_to_vmem [thread:$0]  (!%p6759_p6), %s8921_s1, 16, %s6746_s30, [#allocation6]  }
  0x30   : > { %s8923_s3 = sld [smem:[#allocation64_spill]] }
  0x36   : > { %s6378_s19 = scalar_lea.hbm %s8923_s3, 3072 }
  0x37   : > { %p6379_p10 = scmp.ne.s32.totalorder %s8923_s3, %s6378_s19  ;;  %p6385_p4 = scmp.lt.u32.totalorder %s6378_s19, %s8923_s3 }
  0x39   : > { %p6381_p11 = pnand %p6379_p10, %p6773_p8 }
  0x3b   : > { %p6382_p12 = pneg %p6381_p11 }
  0x3d   : > { %p6387_p13 = pnand %p6385_p4, %p6382_p12 }
  0x3f   : > { %6390 = shalt.err (!%p6387_p13)
}
  0x40   : > { %s6391_s30 = scalar_lea.vmem %s6755_s17, 3072  ;;  %p6399_p7 = scmp.lt.s32.totalorder %s6755_s17, %s6755_s17 }
  0x41   : > { %p6392_p0 = scmp.ne.s32.totalorder %s6755_s17, %s6391_s30  ;;  %p6400_p9 = scmp.lt.s32.totalorder %s6391_s30, %s6391_s30 }
  0x43   : > { %p6394_p2 = pnand %p6392_p0, %p6773_p8  ;;  %p6401_p10 = por %p6400_p9, %p6399_p7 }
  0x45   : > { %p6395_p5 = pneg %p6394_p2 }
  0x47   : > { %p6402_p11 = pnand %p6401_p10, %p6395_p5 }
  0x49   : > { %6405 = shalt.err (!%p6402_p11)
}
  0x4a   : > { %s6631_s10 = smov 192   ;;  %s6632_s12 = smov 12  }
  0x4b   : > { %5690 = dma.hbm_to_vmem [thread:$0]  (!%p6759_p6), %s8923_s3, 3072, %s6755_s17, [#allocation9], %s6631_s10, %s6631_s10, %s6632_s12  }
  0x4c   : > { %s6406_s19 = scalar_lea.hbm %s8841_s9, 4096 }
  0x4d   : > { %p6407_p12 = scmp.ne.s32.totalorder %s8841_s9, %s6406_s19  ;;  %p6413_p0 = scmp.lt.u32.totalorder %s6406_s19, %s8841_s9 }
  0x4f   : > { %p6409_p4 = pnand %p6407_p12, %p6773_p8 }
  0x51   : > { %p6410_p13 = pneg %p6409_p4 }
  0x53   : > { %p6415_p2 = pnand %p6413_p0, %p6410_p13 }
  0x55   : > { %6418 = shalt.err (!%p6415_p2)
}
  0x56   : > { %s6419_s17 = scalar_lea.vmem %s6763_s20, 4096  ;;  %p6427_p10 = scmp.lt.s32.totalorder %s6763_s20, %s6763_s20 }
  0x57   : > { %p6420_p5 = scmp.ne.s32.totalorder %s6763_s20, %s6419_s17  ;;  %p6428_p11 = scmp.lt.s32.totalorder %s6419_s17, %s6419_s17 }
  0x59   : > { %p6422_p7 = pnand %p6420_p5, %p6773_p8  ;;  %p6429_p12 = por %p6428_p11, %p6427_p10 }
  0x5b   : > { %p6423_p9 = pneg %p6422_p7 }
  0x5d   : > { %p6430_p4 = pnand %p6429_p12, %p6423_p9 }
  0x5f   : > { %6433 = shalt.err (!%p6430_p4)
}
  0x60   : > { %s6633_s10 = smov 256   ;;  %s6634_s1 = smov 16  }
  0x61   : > { %5696 = dma.hbm_to_vmem [thread:$0]  (!%p6759_p6), %s8841_s9, 4096, %s6763_s20, [#allocation12], %s6633_s10, %s6633_s10, %s6634_s1  }
  0x62   : > { %s6635_s23 = smov [#allocation7]   ;;  %s6636_s29 = smov [#allocation10]  }
  0x63   : > { %s365_s24 = sshll.u32 %s6635_s23, 4  ;;  %s391_s19 = sshll.u32 %s6636_s29, 4  ;;  %s366_s24 = int_to_ptr.vmem [resolvable:$true] %s365_s24  ;;  %s392_s19 = int_to_ptr.vmem [resolvable:$true] %s391_s19 }
  0x64   : > { %s6434_s30 = scalar_lea.hbm %s8834_s2, 16 }
  0x65   : > { %p6435_p13 = scmp.ne.s32.totalorder %s8834_s2, %s6434_s30  ;;  %p6441_p5 = scmp.lt.u32.totalorder %s6434_s30, %s8834_s2 }
  0x67   : > { %p6437_p0 = pnand %p6435_p13, %p6773_p8 }
  0x69   : > { %p6438_p2 = pneg %p6437_p0 }
  0x6b   : > { %p6443_p7 = pnand %p6441_p5, %p6438_p2 }
  0x6d   : > { %6446 = shalt.err (!%p6443_p7)
}
  0x6e   : > { %s6447_s20 = scalar_lea.vmem %s366_s24, 16  ;;  %s6454_s10 = scalar_lea.vmem %s366_s24, 32 }
  0x6f   : > { %p6448_p9 = scmp.ne.s32.totalorder %s366_s24, %s6447_s20  ;;  %p6455_p12 = scmp.lt.s32.totalorder %s366_s24, %s366_s24 }
  0x70   : > { %p6456_p4 = scmp.lt.s32.totalorder %s6454_s10, %s6447_s20 }
  0x71   : > { %p6450_p10 = pnand %p6448_p9, %p6773_p8 }
  0x72   : > { %p6457_p1 = por %p6456_p4, %p6455_p12 }
  0x73   : > { %p6451_p11 = pneg %p6450_p10 }
  0x75   : > { %p6458_p3 = pnand %p6457_p1, %p6451_p11 }
  0x77   : > { %6461 = shalt.err (!%p6458_p3)
}
  0x78   : > { %5687 = dma.hbm_to_vmem [thread:$0]  (!%p6759_p6), %s8834_s2, 16, %s366_s24, [#allocation6]  }
  0x79   : > { %s6462_s12 = scalar_lea.hbm %s8837_s5, 1024 }
  0x7a   : > { %p6463_p13 = scmp.ne.s32.totalorder %s8837_s5, %s6462_s12  ;;  %p6469_p3 = scmp.lt.u32.totalorder %s6462_s12, %s8837_s5 }
  0x7c   : > { %p6465_p0 = pnand %p6463_p13, %p6773_p8 }
  0x7e   : > { %p6466_p1 = pneg %p6465_p0 }
  0x80   : > { %p6471_p2 = pnand %p6469_p3, %p6466_p1 }
  0x82   : > { %6474 = shalt.err (!%p6471_p2)
}
  0x83   : > { %s6475_s22 = scalar_lea.vmem %s392_s19, 1024  ;;  %p6483_p10 = scmp.lt.s32.totalorder %s392_s19, %s392_s19 }
  0x84   : > { %p6476_p5 = scmp.ne.s32.totalorder %s392_s19, %s6475_s22  ;;  %p6484_p11 = scmp.lt.s32.totalorder %s6475_s22, %s6475_s22 }
  0x86   : > { %p6478_p7 = pnand %p6476_p5, %p6773_p8  ;;  %p6485_p12 = por %p6484_p11, %p6483_p10 }
  0x88   : > { %p6479_p9 = pneg %p6478_p7 }
  0x8a   : > { %p6486_p4 = pnand %p6485_p12, %p6479_p9 }
  0x8c   : > { %6489 = shalt.err (!%p6486_p4)
}
  0x8d   : > { %s6637_s24 = smov 64   ;;  %s6638_s30 = smov 4  }
  0x8e   : > { %5693 = dma.hbm_to_vmem [thread:$0]  (!%p6759_p6), %s8837_s5, 1024, %s392_s19, [#allocation9], %s6637_s24, %s6637_s24, %s6638_s30  }
  0x8f   : > { %s6639_s10 = smov [#allocation13]   ;;  %s6490_s8 = scalar_lea.hbm %s8843_s11, 4096 }
  0x90   : > { %s429_s3 = sshll.u32 %s6639_s10, 4  ;;  %p6491_p13 = scmp.ne.s32.totalorder %s8843_s11, %s6490_s8  ;;  %s430_s3 = int_to_ptr.vmem [resolvable:$true] %s429_s3 }
  0x91   : > { %p6497_p3 = scmp.lt.u32.totalorder %s6490_s8, %s8843_s11 }
  0x92   : > { %p6493_p0 = pnand %p6491_p13, %p6773_p8 }
  0x94   : > { %p6494_p1 = pneg %p6493_p0 }
  0x96   : > { %p6499_p2 = pnand %p6497_p3, %p6494_p1 }
  0x98   : > { %6502 = shalt.err (!%p6499_p2)
}
  0x99   : > { %s6503_s19 = scalar_lea.vmem %s430_s3, 4096  ;;  %p6511_p10 = scmp.lt.s32.totalorder %s430_s3, %s430_s3 }
  0x9a   : > { %p6504_p5 = scmp.ne.s32.totalorder %s430_s3, %s6503_s19  ;;  %p6512_p11 = scmp.lt.s32.totalorder %s6503_s19, %s6503_s19 }
  0x9c   : > { %p6506_p7 = pnand %p6504_p5, %p6773_p8  ;;  %p6513_p12 = por %p6512_p11, %p6511_p10 }
  0x9e   : > { %p6507_p9 = pneg %p6506_p7 }
  0xa0   : > { %p6514_p4 = pnand %p6513_p12, %p6507_p9 }
  0xa2   : > { %6517 = shalt.err (!%p6514_p4)
}
  0xa3   : > { %5699 = dma.hbm_to_vmem [thread:$0]  (!%p6759_p6), %s8843_s11, 4096, %s430_s3, [#allocation12], %s6637_s24, %s6637_s24, %s6638_s30  }
  0xa4   : > { %s4835_s16 = sadd.s32 4294967294, %s6626_s28   ;;  %s6897_s18 = sadd.s32 1, %s6626_s28  }
  0xa5   : > { %s36_s17 = ssub.s32 %s6626_s28, %s6897_s18  ;;  %s39_s20 = sadd.s32 1, %s6622_s27 }
  0xa6   : > { %p37_p8 = scmp.eq.s32.totalorder %s36_s17, 0  ;;  %p46_p13 = scmp.ne.s32.totalorder %s6622_s27, %s6618_s26 }
  0xa7   : > { %p47_p0 = scmp.eq.s32.totalorder %s6626_s28, 0  ;;  %p52_p1 = scmp.ne.s32.totalorder %s6618_s26, %s6614_s25 }
  0xa8   : > { %s6908_s10 = scalar_select %p37_p8, %s6622_s27, %s39_s20  }
  0xa9   : > { %p6910_p3 = por %p47_p0, %p46_p13  ;;  %p8925_p2 = scmp.eq.s32.totalorder %s6741_s14, 0 }
  0xaa   : > { %p328_p5 = scmp.eq.s32.totalorder %s6741_s14, 1  ;;  %p334_p7 = scmp.eq.s32.totalorder %s4835_s16, 1 }
  0xab   : > { %p6916_p6 = por %p8925_p2, %p52_p1  ;;  %p5714_p9 = scmp.lt.s32.totalorder %s6626_s28, 2 }
  0xac   : > { %s446_s30 = sand.u32 1, %s6622_s27   ;;  %p6923_p10 = por %p328_p5, %p46_p13 }
  0xad   : > { %p6927_p11 = por %p334_p7, %p52_p1  ;;  %s4844_s8 = sshll.u32 %s446_s30, 7 }
  0xae   : > { %s8927_s3 = scalar_select %p6923_p10, 1, 0 }
  0xaf   : > { %s8928_s7 = scalar_select %p6927_p11, 1, 0 }
  0xb0   : > { %s4995_s12 = sshll.u32 %s6626_s28, 11  ;;  %s450_s19 = scalar_lea.vmem [#allocation2], %s4844_s8 }
  0xb1   : > { %s6935_s29 = scalar_lea.hbm %s8832_s0, %s4995_s12  ;;  %s457_s21 = sshll.u32 %s450_s19, 4  ;;  %s6937_s21 = int_to_ptr.vmem [resolvable:$true] %s457_s21 }
  0xb2   : > { %p6941_p12 = pnand %p5714_p9, %p6910_p3  ;;  %s6945_s16 = scalar_lea.sflag [#allocation3], %s446_s30 }
  0xb3   : > { %s6518_s17 = scalar_lea.hbm %s6935_s29, 2048  ;;  %s6523_s1 = scalar_lea.hbm %s8832_s0, 4096 }
  0xb4   : > { %p6519_p4 = scmp.ne.s32.totalorder %s6935_s29, %s6518_s17  ;;  %p6520_p8 = pneg %p6941_p12 }
  0xb5   : > { %p6524_p1 = scmp.lt.u32.totalorder %s6935_s29, %s8832_s0  ;;  %p6525_p3 = scmp.lt.u32.totalorder %s6523_s1, %s6518_s17 }
  0xb6   : > { %p6521_p13 = pnand %p6520_p8, %p6519_p4  ;;  %p6527_p5 = scmp.lt.u32.totalorder %s6518_s17, %s6935_s29 }
  0xb7   : > { %p6526_p2 = por %p6525_p3, %p6524_p1 }
  0xb8   : > { %p6522_p0 = pneg %p6521_p13 }
  0xb9   : > { %p6528_p7 = por %p6527_p5, %p6526_p2 }
  0xbb   : > { %p6529_p9 = pnand %p6528_p7, %p6522_p0 }
  0xbd   : > { %6532 = shalt.err (!%p6529_p9)
}
  0xbe   : > { %s6533_s30 = scalar_lea.vmem %s6937_s21, 2048  ;;  %s6640_s23 = smov [#allocation2]  }
  0xbf   : > { %p6534_p4 = scmp.ne.s32.totalorder %s6937_s21, %s6533_s30  ;;  %s6538_s19 = sshll.u32 %s6640_s23, 4  ;;  %s6539_s19 = int_to_ptr.vmem [resolvable:$false] %s6538_s19 }
  0xc0   : > { %s6540_s20 = scalar_lea.vmem %s6539_s19, 4096  ;;  %p6541_p10 = scmp.lt.s32.totalorder %s6937_s21, %s6539_s19 }
  0xc1   : > { %p6536_p13 = pnand %p6534_p4, %p6520_p8  ;;  %p6542_p1 = scmp.lt.s32.totalorder %s6540_s20, %s6533_s30 }
  0xc3   : > { %p6537_p11 = pneg %p6536_p13  ;;  %p6543_p3 = por %p6542_p1, %p6541_p10 }
  0xc5   : > { %p6544_p2 = pnand %p6543_p3, %p6537_p11 }
  0xc7   : > { %6547 = shalt.err (!%p6544_p2)
}
  0xc8   : > { %s6641_s17 = smov 128   ;;  %s6642_s8 = smov 8  }
  0xc9   : > { %5703 = dma.hbm_to_vmem [thread:$0]  (!%p6941_p12), %s6935_s29, 2048, %s6937_s21, %s6945_s16, %s6641_s17, %s6641_s17, %s6642_s8  }
  0xca   : > { %p8930_p8 = scmp.ne.s32.totalorder %s8919_s15, 0 }
  0xcc   : > { %469 = sbr.rel (%p8930_p8) target bundleno = 3059 (0xbf3), region = 72 }
  0xd3   : > { %s6976_s1 = sand.u32 1, %s6618_s26  }
  0xd4   : > { %s4848_s12 = sshll.u32 %s6976_s1, 7  ;;  %s472_s13 = scalar_lea.sflag [#allocation3], %s6976_s1 }
  0xd5   : > { %s6982_s30 = scalar_lea.vmem [#allocation2], %s4848_s12 }
  0xd6   : > { %6593 = dma.done.wait (%p6916_p6), %s472_s13, 2048  }
  0xd7   : > { %6595 = vsyncadd (%p6916_p6), %s472_s13, 4294965248  ;;  %p8931_p10 = scmp.eq.s32.totalorder %s6741_s14, 0 }
  0xd9   : > { %6597 = dma.done.wait (%p8931_p10), [#allocation6], 32   ;;  %p8932_p11 = pmov %p8931_p10 }
  0xda   : > { %p8933_p12 = pmov %p8931_p10 }
  0xdb   : > { %6599 = vsyncadd (%p8932_p11), [#allocation6], 4294967264 }
  0xdc   : > { %6601 = dma.done.wait (%p8933_p12), [#allocation9], 4096   ;;  %p8934_p0 = pmov %p8931_p10 }
  0xde   : > { %6603 = vsyncadd (%p8934_p0), [#allocation9], 4294963200  ;;  %p8935_p5 = pmov %p8934_p0 }
  0xdf   : > { %p8936_p7 = pmov %p8934_p0 }
  0xe0   : > { %6605 = dma.done.wait (%p8935_p5), [#allocation12], 8192  }
  0xe1   : > { %6607 = vsyncadd (%p8936_p7), [#allocation12], 4294959104  ;;  %v543_v0 = vld [vmem:[%s6982_s30] sm:$0xff]  ;;  %v545_v1 = vld [vmem:[%s6982_s30 + $0x10] sm:$0xff]  ;;  %vm1393_vm0 = vcmask 261120   ;;  %s6644_s29 = smov 96  }
  0xe2   : > { %561 = vadd.xlane.f32.xlu0 %v543_v0  ;;  %565 = vadd.xlane.f32.xlu1 %v545_v1  ;;  %v544_v2 = vld [vmem:[%s6982_s30 + $0x8] sm:$0xff]  ;;  %v546_v3 = vld [vmem:[%s6982_s30 + $0x18] sm:$0xff]  ;;  %v547_v4 = vld [vmem:[%s6982_s30 + $0x20] sm:$0xff]  ;;  %s6645_s21 = smov 64   ;;  %s6646_s22 = smov 32   ;;  %vm3178_vm1 = vcmask 523264  }
  0xe3   : > { %v548_v5 = vld [vmem:[%s6982_s30 + $0x28] sm:$0xff]  ;;  %v7007_v6 = vld [vmem:[%s6982_s30 + $0x30] sm:$0xff]  ;;  %v7010_v7 = vld [vmem:[%s6982_s30 + $0x38] sm:$0xff]  ;;  %vm3195_vm2 = vcmask 785408   ;;  %s9047_s17 = sld [smem:[#allocation65_spill]]  ;;  %s9054_s16 = sld [smem:[#allocation68_spill]] }
  0xe4   : > { %v7013_v8 = vld [vmem:[%s6982_s30 + $0x40] sm:$0xff]  ;;  %v7016_v9 = vld [vmem:[%s6982_s30 + $0x48] sm:$0xff]  ;;  %v7021_v10 = vld [vmem:[%s6982_s30 + $0x50] sm:$0xff]  ;;  %s8734_s23 = scalar_lea.vmem [#allocation14], %s4848_s12  ;;  %s4996_s12 = sshll.u32 %s6741_s14, 11 }
  0xe5   : > { %v7024_v11 = vld [vmem:[%s6982_s30 + $0x58] sm:$0xff]  ;;  %v7029_v12 = vld [vmem:[%s6982_s30 + $0x60] sm:$0xff]  ;;  %v7032_v13 = vld [vmem:[%s6982_s30 + $0x68] sm:$0xff]  ;;  %s4705_s19 = sshll.u32 %s8734_s23, 4  ;;  %s9055_s8 = sld [smem:[#allocation69_spill]]  ;;  %s8785_s19 = int_to_ptr.vmem [resolvable:$true] %s4705_s19 }
  0xe6   : > { %563 = vadd.xlane.f32.xlu0 %v544_v2  ;;  %567 = vadd.xlane.f32.xlu1 %v546_v3  ;;  %v7037_v14 = vld [vmem:[%s6982_s30 + $0x70] sm:$0xff]  ;;  %v7040_v15 = vld [vmem:[%s6982_s30 + $0x78] sm:$0xff]  ;;  %v5897_v18 = vld [vmem:[#allocation8 + $0x1c] ss:$12 sps:$4 sm:$0xff]   ;;  %s4692_s14 = scalar_lea.sflag [#allocation4], %s6976_s1  ;;  %p9056_p9 = scmp.ne.s32.totalorder %s8927_s3, 0 }
  0xe7   : > { %v5894_v16 = vld [vmem:[#allocation8 + $0x4] ss:$12 sps:$4 sm:$0xff]   ;;  %v5896_v17 = vld [vmem:[#allocation8] ss:$12 sps:$4 sm:$0xff]   ;;  %v5899_v19 = vld [vmem:[#allocation8 + $0x8] ss:$12 sps:$4 sm:$0xff]  }
  0xe8   : > { %967 = vmatprep.subr.bf16.mxu0 %v5894_v16  ;;  %5285 = vmatprep.subr.bf16.mxu1 %v5899_v19  ;;  %v5900_v58 = vld [vmem:[#allocation8 + $0x18] ss:$12 sps:$4 sm:$0xff]   ;;  %s6647_s15 = smov [#allocation14]  }
  0xe9   : > { %968 = vmatpush1.bf16.msra.mxu0 %v5896_v17  ;;  %5286 = vmatpush3.bf16.msra.mxu1 %v5899_v19  ;;  %v5907_v19 = vld [vmem:[#allocation8 + $0x38] ss:$12 sps:$4 sm:$0xff]   ;;  %s6552_s24 = sshll.u32 %s6647_s15, 4  ;;  %s6553_s24 = int_to_ptr.vmem [resolvable:$false] %s6552_s24 }
  0xea   : > { %569 = vadd.xlane.f32.xlu0 %v547_v4  ;;  %571 = vadd.xlane.f32.xlu1 %v548_v5  ;;  %p6555_p1 = scmp.lt.s32.totalorder %s8785_s19, %s6553_s24 }
  0xeb   : > { %969 = vmatprep.subr.bf16.mxu0 %v5897_v18  ;;  %v5905_v18 = vld [vmem:[#allocation8 + $0x4c] ss:$12 sps:$4 sm:$0xff]   ;;  %s8783_s13 = scalar_lea.hbm %s9055_s8, %s4996_s12 }
  0xed   : > { %970 = vmatpush1.bf16.msra.mxu0 %v5900_v58 }
  0xee   : > { %573 = vadd.xlane.f32.xlu0 %v7007_v6  ;;  %575 = vadd.xlane.f32.xlu1 %v7010_v7 }
  0xf2   : > { %577 = vadd.xlane.f32.xlu0 %v7013_v8  ;;  %579 = vadd.xlane.f32.xlu1 %v7016_v9 }
  0xf6   : > { %581 = vadd.xlane.f32.xlu0 %v7021_v10  ;;  %583 = vadd.xlane.f32.xlu1 %v7024_v11 }
  0xfa   : > { %585 = vadd.xlane.f32.xlu0 %v7029_v12  ;;  %587 = vadd.xlane.f32.xlu1 %v7032_v13 }
  0xfe   : > { %589 = vadd.xlane.f32.xlu0 %v7037_v14  ;;  %591 = vadd.xlane.f32.xlu1 %v7040_v15 }
 0x16f   : > { %v562_v20 = vpop.xlane.xlu0 %561  ;;  %v566_v21 = vpop.xlane.xlu1 %565 }
 0x170   : > { %v594_v22 = vmul.f32 0.0078125, %v562_v20  ;;  %v596_v23 = vmul.f32 0.0078125, %v566_v21 }
 0x172   : > { %v7046_v24 = vsub.f32 %v543_v0, %v594_v22  ;;  %v7048_v25 = vsub.f32 %v545_v1, %v596_v23  ;;  %v5901_v0 = vld [vmem:[#allocation8 + $0x34] ss:$12 sps:$4 sm:$0xff]  }
 0x173   : > { %v564_v26 = vpop.xlane.xlu0 %563  ;;  %v568_v27 = vpop.xlane.xlu1 %567  ;;  %v5903_v1 = vld [vmem:[#allocation8 + $0x20] ss:$12 sps:$4 sm:$0xff]   ;;  %971 = vmatprep.subr.bf16.mxu0 %v5901_v0  ;;  %v5908_v22 = vld [vmem:[#allocation8 + $0x48] ss:$12 sps:$4 sm:$0xff]  }
 0x174   : > { %v595_v28 = vmul.f32 0.0078125, %v564_v26  ;;  %v626_v29 = vmul.f32 %v7046_v24, %v7046_v24  ;;  %v597_v30 = vmul.f32 0.0078125, %v568_v27  ;;  %v628_v31 = vmul.f32 %v7048_v25, %v7048_v25  ;;  %5287 = vmatprep.subr.bf16.mxu1 %v5903_v1 }
 0x175   : > { %5288 = vmatpush3.bf16.msra.mxu1 %v5903_v1 }
 0x176   : > { %642 = vadd.xlane.f32.xlu0 %v626_v29  ;;  %v7054_v32 = vsub.f32 %v544_v2, %v595_v28  ;;  %v7056_v33 = vsub.f32 %v546_v3, %v597_v30  ;;  %5289 = vmatprep.subr.bf16.mxu1 %v5907_v19  ;;  %v5909_v29 = vld [vmem:[#allocation8 + $0x64] ss:$12 sps:$4 sm:$0xff]  }
 0x177   : > { %v570_v34 = vpop.xlane.xlu0 %569  ;;  %v572_v35 = vpop.xlane.xlu1 %571  ;;  %v5911_v30 = vld [vmem:[#allocation8 + $0x50] ss:$12 sps:$4 sm:$0xff]  }
 0x178   : > { %v598_v36 = vmul.f32 0.0078125, %v570_v34  ;;  %v627_v37 = vmul.f32 %v7054_v32, %v7054_v32  ;;  %v599_v38 = vmul.f32 0.0078125, %v572_v35  ;;  %v629_v39 = vmul.f32 %v7056_v33, %v7056_v33 }
 0x179   : > { %5290 = vmatpush3.bf16.msra.mxu1 %v5907_v19 }
 0x17a   : > { %646 = vadd.xlane.f32.xlu0 %v628_v31  ;;  %644 = vadd.xlane.f32.xlu1 %v627_v37  ;;  %v7062_v40 = vsub.f32 %v547_v4, %v598_v36  ;;  %v7064_v41 = vsub.f32 %v548_v5, %v599_v38  ;;  %v5912_v31 = vld [vmem:[#allocation8 + $0x60] ss:$12 sps:$4 sm:$0xff]   ;;  %v5915_v36 = vld [vmem:[#allocation8 + $0x68] ss:$12 sps:$4 sm:$0xff]   ;;  %v5916_v37 = vld [vmem:[#allocation8 + $0x78] ss:$12 sps:$4 sm:$0xff]  }
 0x17b   : > { %v574_v42 = vpop.xlane.xlu0 %573  ;;  %v576_v43 = vpop.xlane.xlu1 %575  ;;  %5291 = vmatprep.subr.bf16.mxu1 %v5911_v30  ;;  %v5919_v38 = vld [vmem:[#allocation8 + $0x80] ss:$12 sps:$4 sm:$0xff]  }
 0x17c   : > { %v600_v44 = vmul.f32 0.0078125, %v574_v42  ;;  %v630_v45 = vmul.f32 %v7062_v40, %v7062_v40  ;;  %v601_v46 = vmul.f32 0.0078125, %v576_v43  ;;  %v631_v47 = vmul.f32 %v7064_v41, %v7064_v41  ;;  %v5921_v42 = vld [vmem:[#allocation8 + $0xac] ss:$12 sps:$4 sm:$0xff]  }
 0x17d   : > { %5292 = vmatpush3.bf16.msra.mxu1 %v5911_v30  ;;  %v5923_v43 = vld [vmem:[#allocation8 + $0x98] ss:$12 sps:$4 sm:$0xff]  }
 0x17e   : > { %648 = vadd.xlane.f32.xlu1 %v629_v39  ;;  %650 = vadd.xlane.f32.xlu0 %v630_v45  ;;  %v7071_v48 = vsub.f32 %v7007_v6, %v600_v44  ;;  %v7074_v49 = vsub.f32 %v7010_v7, %v601_v46  ;;  %v5904_v7 = vld [vmem:[#allocation8 + $0x30] ss:$12 sps:$4 sm:$0xff]   ;;  %v5924_v44 = vld [vmem:[#allocation8 + $0xa8] ss:$12 sps:$4 sm:$0xff]   ;;  %v8853_v46 = vmov 0  }
 0x17f   : > { %v578_v50 = vpop.xlane.xlu0 %577  ;;  %v580_v51 = vpop.xlane.xlu1 %579  ;;  %972 = vmatpush1.bf16.msra.mxu0 %v5904_v7  ;;  %5293 = vmatprep.subr.bf16.mxu1 %v5915_v36  ;;  %v5920_v39 = vld [vmem:[#allocation8 + $0x90] ss:$12 sps:$4 sm:$0xff]  }
 0x180   : > { %v602_v52 = vmul.f32 0.0078125, %v578_v50  ;;  %v632_v53 = vmul.f32 %v7071_v48, %v7071_v48  ;;  %v603_v54 = vmul.f32 0.0078125, %v580_v51  ;;  %v633_v55 = vmul.f32 %v7074_v49, %v7074_v49  ;;  %973 = vmatprep.subr.bf16.mxu0 %v5905_v18  ;;  %v5925_v45 = vld [vmem:[#allocation8 + $0xb0] ss:$12 sps:$4 sm:$0xff]   ;;  %999 = vmatprep.mubr.bf16.mxu0 %v8853_v46 }
 0x181   : > { %5294 = vmatpush3.bf16.msra.mxu1 %v5915_v36 }
 0x182   : > { %652 = vadd.xlane.f32.xlu1 %v631_v47  ;;  %654 = vadd.xlane.f32.xlu0 %v632_v53  ;;  %v7081_v56 = vsub.f32 %v7013_v8, %v602_v52  ;;  %v7084_v57 = vsub.f32 %v7016_v9, %v603_v54 }
 0x183   : > { %v582_v59 = vpop.xlane.xlu0 %581  ;;  %v584_v60 = vpop.xlane.xlu1 %583  ;;  %974 = vmatpush1.bf16.msra.mxu0 %v5908_v22  ;;  %5295 = vmatprep.subr.bf16.mxu1 %v5919_v38  ;;  %v7122_v22 = vld [vmem:[#allocation5] ss:$0 sm:$0xff] }
 0x184   : > { %v604_v61 = vmul.f32 0.0078125, %v582_v59  ;;  %v634_v62 = vmul.f32 %v7081_v56, %v7081_v56  ;;  %v605_v63 = vmul.f32 0.0078125, %v584_v60  ;;  %v635_v2 = vmul.f32 %v7084_v57, %v7084_v57  ;;  %975 = vmatprep.subr.bf16.mxu0 %v5909_v29 }
 0x185   : > { %5296 = vmatpush3.bf16.msra.mxu1 %v5919_v38 }
 0x186   : > { %656 = vadd.xlane.f32.xlu1 %v633_v55  ;;  %658 = vadd.xlane.f32.xlu0 %v634_v62  ;;  %v7091_v3 = vsub.f32 %v7021_v10, %v604_v61  ;;  %v7094_v4 = vsub.f32 %v7024_v11, %v605_v63 }
 0x187   : > { %v586_v5 = vpop.xlane.xlu0 %585  ;;  %v588_v6 = vpop.xlane.xlu1 %587  ;;  %976 = vmatpush1.bf16.msra.mxu0 %v5912_v31  ;;  %5297 = vmatprep.subr.bf16.mxu1 %v5923_v43 }
 0x188   : > { %v606_v8 = vmul.f32 0.0078125, %v586_v5  ;;  %v636_v9 = vmul.f32 %v7091_v3, %v7091_v3  ;;  %v607_v16 = vmul.f32 0.0078125, %v588_v6  ;;  %v637_v10 = vmul.f32 %v7094_v4, %v7094_v4 }
 0x189   : > { %5298 = vmatpush3.bf16.msra.mxu1 %v5923_v43 }
 0x18a   : > { %660 = vadd.xlane.f32.xlu1 %v635_v2  ;;  %662 = vadd.xlane.f32.xlu0 %v636_v9  ;;  %v7101_v11 = vsub.f32 %v7029_v12, %v606_v8  ;;  %v7104_v17 = vsub.f32 %v7032_v13, %v607_v16 }
 0x18b   : > { %v590_v20 = vpop.xlane.xlu0 %589  ;;  %v592_v21 = vpop.xlane.xlu1 %591  ;;  %5299 = vmatprep.subr.bf16.mxu1 %v5925_v45 }
 0x18c   : > { %v608_v23 = vmul.f32 0.0078125, %v590_v20  ;;  %v638_v26 = vmul.f32 %v7101_v11, %v7101_v11  ;;  %v609_v27 = vmul.f32 0.0078125, %v592_v21  ;;  %v639_v12 = vmul.f32 %v7104_v17, %v7104_v17 }
 0x18d   : > { %5300 = vmatpush3.bf16.msra.mxu1 %v5925_v45 }
 0x18e   : > { %664 = vadd.xlane.f32.xlu1 %v637_v10  ;;  %666 = vadd.xlane.f32.xlu0 %v638_v26  ;;  %v7111_v13 = vsub.f32 %v7037_v14, %v608_v23  ;;  %v7114_v28 = vsub.f32 %v7040_v15, %v609_v27  ;;  %v5913_v14 = vld [vmem:[#allocation8 + $0x7c] ss:$12 sps:$4 sm:$0xff]   ;;  %v5917_v15 = vld [vmem:[#allocation8 + $0x94] ss:$12 sps:$4 sm:$0xff]  }
 0x18f   : > { %977 = vmatprep.subr.bf16.mxu0 %v5913_v14 }
 0x190   : > { %v640_v34 = vmul.f32 %v7111_v13, %v7111_v13  ;;  %v641_v35 = vmul.f32 %v7114_v28, %v7114_v28  ;;  %978 = vmatpush1.bf16.msra.mxu0 %v5916_v37 }
 0x191   : > { %979 = vmatprep.subr.bf16.mxu0 %v5917_v15 }
 0x192   : > { %668 = vadd.xlane.f32.xlu1 %v639_v12  ;;  %670 = vadd.xlane.f32.xlu0 %v640_v34 }
 0x194   : > { %980 = vmatpush1.bf16.msra.mxu0 %v5920_v39 }
 0x195   : > { %981 = vmatprep.subr.bf16.mxu0 %v5921_v42 }
 0x196   : > { %672 = vadd.xlane.f32.xlu1 %v641_v35 }
 0x198   : > { %982 = vmatpush1.bf16.msra.mxu0 %v5924_v44 }
 0x203   : > { %v643_v47 = vpop.xlane.xlu0 %642 }
 0x204   : > { %v674_v50 = vmul.f32 0.0078125, %v643_v47 }
 0x206   : > { %v690_v51 = vadd.f32 1e-05, %v674_v50 }
 0x207   : > { %v645_v52 = vpop.xlane.xlu1 %644  ;;  %v647_v53 = vpop.xlane.xlu0 %646 }
 0x208   : > { %6014 = vrsqrt.f32 %v690_v51  ;;  %v675_v54 = vmul.f32 0.0078125, %v645_v52  ;;  %v676_v55 = vmul.f32 0.0078125, %v647_v53 }
 0x20a   : > { %v691_v58 = vadd.f32 1e-05, %v675_v54  ;;  %v692_v59 = vadd.f32 1e-05, %v676_v55 }
 0x20b   : > { %v649_v60 = vpop.xlane.xlu1 %648  ;;  %v651_v61 = vpop.xlane.xlu0 %650 }
 0x20c   : > { %6016 = vrsqrt.f32 %v691_v58  ;;  %v677_v62 = vmul.f32 0.0078125, %v649_v60  ;;  %v678_v63 = vmul.f32 0.0078125, %v651_v61 }
 0x20d   : > { %6018 = vrsqrt.f32 %v692_v59 }
 0x20e   : > { %v693_v0 = vadd.f32 1e-05, %v677_v62  ;;  %v694_v1 = vadd.f32 1e-05, %v678_v63 }
 0x20f   : > { %v653_v2 = vpop.xlane.xlu1 %652  ;;  %v655_v5 = vpop.xlane.xlu0 %654 }
 0x210   : > { %6020 = vrsqrt.f32 %v693_v0  ;;  %v679_v6 = vmul.f32 0.0078125, %v653_v2  ;;  %v680_v7 = vmul.f32 0.0078125, %v655_v5 }
 0x211   : > { %6022 = vrsqrt.f32 %v694_v1 }
 0x212   : > { %v6015_v8 = vpop.eup %6014  ;;  %v695_v9 = vadd.f32 1e-05, %v679_v6  ;;  %v696_v16 = vadd.f32 1e-05, %v680_v7 }
 0x213   : > { %v657_v10 = vpop.xlane.xlu1 %656  ;;  %v659_v18 = vpop.xlane.xlu0 %658  ;;  %v722_v19 = vmul.f32 %v6015_v8, %v7046_v24  ;;  %v7126_v24 = vld [vmem:[#allocation7] ss:$0 sm:$0xff] }
 0x214   : > { %6024 = vrsqrt.f32 %v695_v9  ;;  %v681_v20 = vmul.f32 0.0078125, %v657_v10  ;;  %v682_v21 = vmul.f32 0.0078125, %v659_v18 }
 0x215   : > { %6026 = vrsqrt.f32 %v696_v16  ;;  %v744_v34 = vmul.f32 %v7122_v22, %v722_v19 }
 0x216   : > { %v6017_v23 = vpop.eup %6016  ;;  %v697_v26 = vadd.f32 1e-05, %v681_v20  ;;  %v698_v27 = vadd.f32 1e-05, %v682_v21 }
 0x217   : > { %v6019_v12 = vpop.eup %6018  ;;  %v661_v29 = vpop.xlane.xlu1 %660  ;;  %v723_v31 = vmul.f32 %v6017_v23, %v7054_v32  ;;  %v766_v45 = vadd.f32 %v7126_v24, %v744_v34 }
 0x218   : > { %v663_v30 = vpop.xlane.xlu0 %662  ;;  %6028 = vrsqrt.f32 %v697_v26  ;;  %v683_v35 = vmul.f32 0.0078125, %v661_v29  ;;  %v724_v36 = vmul.f32 %v6019_v12, %v7048_v25 }
 0x219   : > { %v684_v14 = vmul.f32 0.0078125, %v663_v30  ;;  %6030 = vrsqrt.f32 %v698_v27  ;;  %v745_v37 = vmul.f32 %v7122_v22, %v723_v31 }
 0x21a   : > { %v6021_v15 = vpop.eup %6020  ;;  %v699_v38 = vadd.f32 1e-05, %v683_v35  ;;  %v746_v42 = vmul.f32 %v7122_v22, %v724_v36 }
 0x21b   : > { %v700_v39 = vadd.f32 1e-05, %v684_v14  ;;  %v6023_v43 = vpop.eup %6022  ;;  %v665_v44 = vpop.xlane.xlu1 %664  ;;  %v767_v47 = vadd.f32 %v7126_v24, %v745_v37  ;;  %v725_v50 = vmul.f32 %v6021_v15, %v7056_v33 }
 0x21c   : > { %v667_v32 = vpop.xlane.xlu0 %666  ;;  %6032 = vrsqrt.f32 %v699_v38  ;;  %v685_v51 = vmul.f32 0.0078125, %v665_v44  ;;  %v726_v54 = vmul.f32 %v6023_v43, %v7062_v40  ;;  %v768_v60 = vadd.f32 %v7126_v24, %v746_v42 }
 0x21d   : > { %v686_v25 = vmul.f32 0.0078125, %v667_v32  ;;  %6034 = vrsqrt.f32 %v700_v39  ;;  %v782_v52 = vpack.c.bf16 %v767_v47, %v766_v45  ;;  %v747_v53 = vmul.f32 %v7122_v22, %v725_v50 }
 0x21e   : > { %v6025_v55 = vpop.eup %6024  ;;  %v701_v58 = vadd.f32 1e-05, %v685_v51  ;;  %v748_v1 = vmul.f32 %v7122_v22, %v726_v54 }
 0x21f   : > { %v702_v59 = vadd.f32 1e-05, %v686_v25  ;;  %v6027_v61 = vpop.eup %6026  ;;  %v669_v62 = vpop.xlane.xlu1 %668  ;;  %1000 = vmatmul.mubr.bf16.vlgmr.msra.gmra.mrb[0].mxu0 %v782_v52  ;;  %5301 = vmatprep.mubr.bf16.mxu1 %v782_v52  ;;  %v769_v33 = vadd.f32 %v7126_v24, %v747_v53  ;;  %v727_v0 = vmul.f32 %v6025_v55, %v7064_v41 }
 0x220   : > { %v671_v63 = vpop.xlane.xlu0 %670  ;;  %6036 = vrsqrt.f32 %v701_v58  ;;  %v687_v2 = vmul.f32 0.0078125, %v669_v62  ;;  %1009 = vmatprep.mubr.bf16.mxu0 %v8853_v46  ;;  %v728_v40 = vmul.f32 %v6027_v61, %v7071_v48  ;;  %v770_v19 = vadd.f32 %v7126_v24, %v748_v1 }
 0x221   : > { %v688_v5 = vmul.f32 0.0078125, %v671_v63  ;;  %6038 = vrsqrt.f32 %v702_v59  ;;  %v783_v6 = vpack.c.bf16 %v769_v33, %v768_v60  ;;  %v749_v7 = vmul.f32 %v7122_v22, %v727_v0 }
 0x222   : > { %v6029_v8 = vpop.eup %6028  ;;  %v703_v9 = vadd.f32 1e-05, %v687_v2  ;;  %v750_v10 = vmul.f32 %v7122_v22, %v728_v40 }
 0x223   : > { %v704_v16 = vadd.f32 1e-05, %v688_v5  ;;  %v6031_v18 = vpop.eup %6030  ;;  %v673_v41 = vpop.xlane.xlu1 %672  ;;  %5302 = vmatmul.mubr.bf16.vlgmr.msra.gmra.mrb[0].mxu1 %v783_v6  ;;  %v771_v20 = vadd.f32 %v7126_v24, %v749_v7  ;;  %v729_v21 = vmul.f32 %v6029_v8, %v7074_v49 }
 0x224   : > { %6040 = vrsqrt.f32 %v703_v9  ;;  %v689_v48 = vmul.f32 0.0078125, %v673_v41  ;;  %v730_v23 = vmul.f32 %v6031_v18, %v7081_v56  ;;  %v772_v30 = vadd.f32 %v7126_v24, %v750_v10 }
 0x225   : > { %6042 = vrsqrt.f32 %v704_v16  ;;  %v784_v26 = vpack.c.bf16 %v771_v20, %v770_v19  ;;  %v751_v27 = vmul.f32 %v7122_v22, %v729_v21 }
 0x226   : > { %v6033_v12 = vpop.eup %6032  ;;  %v705_v29 = vadd.f32 1e-05, %v689_v48  ;;  %v752_v49 = vmul.f32 %v7122_v22, %v730_v23 }
 0x227   : > { %v6035_v31 = vpop.eup %6034  ;;  %1010 = vmatmul.mubr.bf16.gmra.mrb[4].mxu0 %v783_v6  ;;  %5305 = vmatprep.mubr.bf16.mxu1 %v784_v26  ;;  %v773_v34 = vadd.f32 %v7126_v24, %v751_v27  ;;  %v731_v35 = vmul.f32 %v6033_v12, %v7084_v57 }
 0x228   : > { %6044 = vrsqrt.f32 %v705_v29  ;;  %1019 = vmatprep.mubr.bf16.mxu0 %v8853_v46  ;;  %v732_v56 = vmul.f32 %v6035_v31, %v7091_v3  ;;  %v774_v39 = vadd.f32 %v7126_v24, %v752_v49 }
 0x229   : > { %v785_v14 = vpack.c.bf16 %v773_v34, %v772_v30  ;;  %v753_v36 = vmul.f32 %v7122_v22, %v731_v35 }
 0x22a   : > { %v6037_v37 = vpop.eup %6036  ;;  %v754_v15 = vmul.f32 %v7122_v22, %v732_v56 }
 0x22b   : > { %v6039_v38 = vpop.eup %6038  ;;  %5306 = vmatmul.mubr.bf16.gmra.mrb[4].mxu1 %v785_v14  ;;  %v775_v42 = vadd.f32 %v7126_v24, %v753_v36  ;;  %v733_v57 = vmul.f32 %v6037_v37, %v7094_v4 }
 0x22c   : > { %v734_v43 = vmul.f32 %v6039_v38, %v7101_v11  ;;  %v776_v45 = vadd.f32 %v7126_v24, %v754_v15 }
 0x22d   : > { %v786_v44 = vpack.c.bf16 %v775_v42, %v774_v39  ;;  %v755_v32 = vmul.f32 %v7122_v22, %v733_v57 }
 0x22e   : > { %v6041_v3 = vpop.eup %6040  ;;  %v756_v25 = vmul.f32 %v7122_v22, %v734_v43 }
 0x22f   : > { %v6043_v47 = vpop.eup %6042  ;;  %1020 = vmatmul.mubr.bf16.gmra.mrb[8].mxu0 %v784_v26  ;;  %5309 = vmatprep.mubr.bf16.mxu1 %v786_v44  ;;  %v777_v50 = vadd.f32 %v7126_v24, %v755_v32  ;;  %v735_v51 = vmul.f32 %v6041_v3, %v7104_v17 }
 0x230   : > { %1029 = vmatprep.mubr.bf16.mxu0 %v8853_v46  ;;  %v736_v4 = vmul.f32 %v6043_v47, %v7111_v13  ;;  %v778_v54 = vadd.f32 %v7126_v24, %v756_v25 }
 0x231   : > { %v787_v11 = vpack.c.bf16 %v777_v50, %v776_v45  ;;  %v757_v52 = vmul.f32 %v7122_v22, %v735_v51 }
 0x232   : > { %v6045_v53 = vpop.eup %6044  ;;  %v758_v59 = vmul.f32 %v7122_v22, %v736_v4 }
 0x233   : > { %5310 = vmatmul.mubr.bf16.gmra.mrb[8].mxu1 %v787_v11  ;;  %v779_v55 = vadd.f32 %v7126_v24, %v757_v52  ;;  %v737_v58 = vmul.f32 %v6045_v53, %v7114_v28  ;;  %v824_v28 = vlaneseq }
 0x234   : > { %v780_v13 = vadd.f32 %v7126_v24, %v758_v59 }
 0x235   : > { %v788_v17 = vpack.c.bf16 %v779_v55, %v778_v54  ;;  %v759_v60 = vmul.f32 %v7122_v22, %v737_v58  ;;  %v7180_v22 = vshrl.u32 %v824_v28, 7 }
 0x237   : > { %1030 = vmatmul.mubr.bf16.gmra.mrb[12].mxu0 %v785_v14  ;;  %5313 = vmatprep.mubr.bf16.mxu1 %v788_v17  ;;  %v781_v61 = vadd.f32 %v7126_v24, %v759_v60  ;;  %8937 = vst [vmem:[#allocation20_spill] sm:$0xff] %v7180_v22  ;;  %v8852_v63 = vsub.s32 0, %v7180_v22  ;;  %v822_v24 = vld [vmem:[%s8836_s4] sm:$0x7]  ;;  %v8850_v33 = vsub.s32 1, %v7180_v22  ;;  %v8851_v1 = vsub.s32 2, %v7180_v22 }
 0x238   : > { %1039 = vmatprep.mubr.bf16.mxu0 %v8853_v46 }
 0x239   : > { %v789_v62 = vpack.c.bf16 %v781_v61, %v780_v13  ;;  %v7189_v0 = vrot.slane %v822_v24, %v8852_v63  ;;  %v7194_v5 = vrot.slane %v822_v24, %v8850_v33  ;;  %v7200_v16 = vrot.slane %v822_v24, %v8851_v1 }
 0x23b   : > { %5314 = vmatmul.mubr.bf16.gmra.mrb[12].mxu1 %v789_v62 }
 0x23f   : > { %1040 = vmatmul.mubr.bf16.gmra.mrb[16].mxu0 %v786_v44 }
 0x240   : > { %1049 = vmatprep.mubr.bf16.mxu0 %v8853_v46 }
 0x247   : > { %1050 = vmatmul.mubr.bf16.gmra.mrb[20].mxu0 %v787_v11 }
 0x248   : > { %1059 = vmatprep.mubr.bf16.mxu0 %v8853_v46 }
 0x24f   : > { %1060 = vmatmul.mubr.bf16.gmra.mrb[24].mxu0 %v788_v17 }
 0x250   : > { %1069 = vmatprep.mubr.bf16.mxu0 %v8853_v46 }
 0x257   : > { %1070 = vmatmul.mubr.bf16.gmra.mrb[28].mxu0 %v789_v62 }
 0x2f2   : > { %v1001_v2 = vpop.f32.mrb[0].mxu0 }
 0x2f3   : > { %v1003_v40 = vpop.f32.mrb[1].mxu0  ;;  %v1002_v7 = vadd.f32 %v1001_v2, %v7189_v0 }
 0x2f4   : > { %v1005_v6 = vpop.f32.mrb[2].mxu0  ;;  %v1004_v10 = vadd.f32 %v1003_v40, %v7194_v5 }
 0x2f5   : > { %v1006_v8 = vadd.f32 %v1005_v6, %v7189_v0  ;;  %v1007_v9 = vpop.f32.mrb[3].mxu0 }
 0x2f6   : > { %v1008_v18 = vadd.f32 %v1007_v9, %v7194_v5  ;;  %v5303_v41 = vpop.f32.mrb[0].mxu1 }
 0x2f7   : > { %v7204_v19 = vpack.c.bf16 %v1006_v8, %v1002_v7  ;;  %v1114_v20 = vpop.f32.mrb[1].mxu1  ;;  %v1123_v23 = vadd.f32 %v5303_v41, %v7200_v16 }
 0x2f8   : > { %v7206_v21 = vpack.c.bf16 %v1008_v18, %v1004_v10  ;;  %v5304_v48 = vpop.f32.mrb[2].mxu1  ;;  %v1115_v12 = vadd.f32 %v1114_v20, %v7200_v16 }
 0x2f9   : > { %v1126_v26 = vadd.f32 %v5304_v48, %v7200_v16  ;;  %v1117_v27 = vpop.f32.mrb[3].mxu1  ;;  %5333 = vmatprep.mubr.msk.bf16.mxu0 %vm1393_vm0, %v7204_v19 }
 0x2fa   : > { %v1118_v29 = vadd.f32 %v1117_v27, %v7200_v16  ;;  %1265 = vrot.lane.b32.xlu0 %v7206_v21, %s6644_s29  ;;  %v1011_v30 = vpop.f32.mrb[4].mxu0  ;;  %5621 = vmatprep.subr.msk.bf16.mxu0 %vm1393_vm0, %v7206_v21  ;;  %v1419_v31 = vsel %vm1393_vm0, %v7206_v21, 0 }
 0x2fb   : > { %v7220_v34 = vpack.c.bf16 %v1126_v26, %v1123_v23  ;;  %v1012_v35 = vadd.f32 %v1011_v30, %v7189_v0  ;;  %v1013_v49 = vpop.f32.mrb[5].mxu0  ;;  %5318 = vmatpush3.bf16.xpose.msra.mxu0 %v1419_v31 }
 0x2fc   : > { %v7223_v56 = vpack.c.bf16 %v1118_v29, %v1115_v12  ;;  %v1015_v14 = vpop.f32.mrb[6].mxu0  ;;  %v1014_v15 = vadd.f32 %v1013_v49, %v7194_v5 }
 0x2fd   : > { %v1016_v36 = vadd.f32 %v1015_v14, %v7189_v0  ;;  %v1017_v37 = vpop.f32.mrb[7].mxu0 }
 0x2fe   : > { %v1018_v38 = vadd.f32 %v1017_v37, %v7194_v5  ;;  %v5307_v39 = vpop.f32.mrb[4].mxu1 }
 0x2ff   : > { %v7228_v42 = vpack.c.bf16 %v1016_v36, %v1012_v35  ;;  %v1130_v57 = vpop.f32.mrb[5].mxu1  ;;  %v1139_v32 = vadd.f32 %v5307_v39, %v7200_v16 }
 0x300   : > { %v7230_v43 = vpack.c.bf16 %v1018_v38, %v1014_v15  ;;  %v5308_v44 = vpop.f32.mrb[6].mxu1  ;;  %v1131_v47 = vadd.f32 %v1130_v57, %v7200_v16 }
 0x301   : > { %v1142_v3 = vadd.f32 %v5308_v44, %v7200_v16  ;;  %v1133_v45 = vpop.f32.mrb[7].mxu1 }
 0x302   : > { %v1134_v50 = vadd.f32 %v1133_v45, %v7200_v16  ;;  %1267 = vrot.lane.b32.xlu1 %v7230_v43, %s6644_s29  ;;  %v1021_v51 = vpop.f32.mrb[8].mxu0  ;;  %5622 = vmatprep.subr.msk.bf16.mxu0 %vm1393_vm0, %v7230_v43  ;;  %v1422_v25 = vsel %vm1393_vm0, %v7230_v43, 0 }
 0x303   : > { %v7242_v4 = vpack.c.bf16 %v1142_v3, %v1139_v32  ;;  %v1022_v11 = vadd.f32 %v1021_v51, %v7189_v0  ;;  %v1023_v52 = vpop.f32.mrb[9].mxu0  ;;  %5320 = vmatpush3.bf16.xpose.msra.mxu0 %v1422_v25 }
 0x304   : > { %v7245_v53 = vpack.c.bf16 %v1134_v50, %v1131_v47  ;;  %v1025_v54 = vpop.f32.mrb[10].mxu0  ;;  %v1024_v59 = vadd.f32 %v1023_v52, %v7194_v5 }
 0x305   : > { %v1026_v55 = vadd.f32 %v1025_v54, %v7189_v0  ;;  %v1027_v58 = vpop.f32.mrb[11].mxu0 }
 0x306   : > { %v1028_v17 = vadd.f32 %v1027_v58, %v7194_v5  ;;  %v5311_v60 = vpop.f32.mrb[8].mxu1 }
 0x307   : > { %v7250_v13 = vpack.c.bf16 %v1026_v55, %v1022_v11  ;;  %v1146_v61 = vpop.f32.mrb[9].mxu1  ;;  %v1155_v24 = vadd.f32 %v5311_v60, %v7200_v16 }
 0x308   : > { %v7252_v62 = vpack.c.bf16 %v1028_v17, %v1024_v59  ;;  %v5312_v28 = vpop.f32.mrb[10].mxu1  ;;  %v1147_v6 = vadd.f32 %v1146_v61, %v7200_v16 }
 0x309   : > { %v1158_v2 = vadd.f32 %v5312_v28, %v7200_v16  ;;  %v1149_v40 = vpop.f32.mrb[11].mxu1 }
 0x30a   : > { %v1150_v7 = vadd.f32 %v1149_v40, %v7200_v16  ;;  %1269 = vrot.lane.b32.xlu1 %v7252_v62, %s6644_s29  ;;  %v1031_v8 = vpop.f32.mrb[12].mxu0  ;;  %5623 = vmatprep.subr.msk.bf16.mxu0 %vm1393_vm0, %v7252_v62  ;;  %v1425_v9 = vsel %vm1393_vm0, %v7252_v62, 0 }
 0x30b   : > { %v7264_v10 = vpack.c.bf16 %v1158_v2, %v1155_v24  ;;  %v1032_v18 = vadd.f32 %v1031_v8, %v7189_v0  ;;  %v1033_v41 = vpop.f32.mrb[13].mxu0  ;;  %5322 = vmatpush3.bf16.xpose.msra.mxu0 %v1425_v9 }
 0x30c   : > { %v7267_v20 = vpack.c.bf16 %v1150_v7, %v1147_v6  ;;  %v1035_v48 = vpop.f32.mrb[14].mxu0  ;;  %v1034_v27 = vadd.f32 %v1033_v41, %v7194_v5 }
 0x30d   : > { %v1036_v23 = vadd.f32 %v1035_v48, %v7189_v0  ;;  %v1037_v26 = vpop.f32.mrb[15].mxu0 }
 0x30e   : > { %v1038_v12 = vadd.f32 %v1037_v26, %v7194_v5  ;;  %v5315_v29 = vpop.f32.mrb[12].mxu1 }
 0x30f   : > { %v7272_v30 = vpack.c.bf16 %v1036_v23, %v1032_v18  ;;  %v1162_v31 = vpop.f32.mrb[13].mxu1  ;;  %v1171_v14 = vadd.f32 %v5315_v29, %v7200_v16 }
 0x310   : > { %v7274_v35 = vpack.c.bf16 %v1038_v12, %v1034_v27  ;;  %v5316_v49 = vpop.f32.mrb[14].mxu1  ;;  %v1163_v15 = vadd.f32 %v1162_v31, %v7200_v16 }
 0x311   : > { %v1174_v36 = vadd.f32 %v5316_v49, %v7200_v16  ;;  %v1165_v37 = vpop.f32.mrb[15].mxu1 }
 0x312   : > { %v1166_v38 = vadd.f32 %v1165_v37, %v7200_v16  ;;  %1271 = vrot.lane.b32.xlu1 %v7274_v35, %s6644_s29  ;;  %v1041_v39 = vpop.f32.mrb[16].mxu0  ;;  %5624 = vmatprep.subr.msk.bf16.mxu0 %vm1393_vm0, %v7274_v35  ;;  %v1428_v57 = vsel %vm1393_vm0, %v7274_v35, 0 }
 0x313   : > { %v7286_v44 = vpack.c.bf16 %v1174_v36, %v1171_v14  ;;  %v1042_v32 = vadd.f32 %v1041_v39, %v7189_v0  ;;  %v1043_v3 = vpop.f32.mrb[17].mxu0  ;;  %5324 = vmatpush3.bf16.xpose.msra.mxu0 %v1428_v57 }
 0x314   : > { %v7289_v45 = vpack.c.bf16 %v1166_v38, %v1163_v15  ;;  %v1045_v47 = vpop.f32.mrb[18].mxu0  ;;  %v1044_v51 = vadd.f32 %v1043_v3, %v7194_v5 }
 0x315   : > { %8938 = vst [vmem:[#allocation21_spill] sm:$0xff] %v7286_v44  ;;  %v1046_v16 = vadd.f32 %v1045_v47, %v7189_v0  ;;  %v1047_v50 = vpop.f32.mrb[19].mxu0 }
 0x316   : > { %v1048_v25 = vadd.f32 %v1047_v50, %v7194_v5 }
 0x317   : > { %v7294_v11 = vpack.c.bf16 %v1046_v16, %v1042_v32 }
 0x318   : > { %v7296_v52 = vpack.c.bf16 %v1048_v25, %v1044_v51 }
 0x31a   : > { %1273 = vrot.lane.b32.xlu0 %v7296_v52, %s6644_s29  ;;  %v1051_v54 = vpop.f32.mrb[20].mxu0  ;;  %5625 = vmatprep.subr.msk.bf16.mxu0 %vm1393_vm0, %v7296_v52  ;;  %v1431_v55 = vsel %vm1393_vm0, %v7296_v52, 0 }
 0x31b   : > { %v1052_v58 = vadd.f32 %v1051_v54, %v7189_v0  ;;  %v1053_v59 = vpop.f32.mrb[21].mxu0  ;;  %5326 = vmatpush3.bf16.xpose.msra.mxu0 %v1431_v55 }
 0x31c   : > { %v1055_v17 = vpop.f32.mrb[22].mxu0  ;;  %v1054_v28 = vadd.f32 %v1053_v59, %v7194_v5 }
 0x31d   : > { %v1056_v60 = vadd.f32 %v1055_v17, %v7189_v0  ;;  %v1057_v61 = vpop.f32.mrb[23].mxu0 }
 0x31e   : > { %v1058_v24 = vadd.f32 %v1057_v61, %v7194_v5 }
 0x31f   : > { %v7308_v2 = vpack.c.bf16 %v1056_v60, %v1052_v58 }
 0x320   : > { %v1193_v40 = vpack.c.bf16 %v1058_v24, %v1054_v28 }
 0x322   : > { %1275 = vrot.lane.b32.xlu1 %v1193_v40, %s6644_s29  ;;  %v1061_v6 = vpop.f32.mrb[24].mxu0  ;;  %5626 = vmatprep.subr.msk.bf16.mxu0 %vm1393_vm0, %v1193_v40  ;;  %v1434_v7 = vsel %vm1393_vm0, %v1193_v40, 0 }
 0x323   : > { %v1062_v8 = vadd.f32 %v1061_v6, %v7189_v0  ;;  %v1063_v9 = vpop.f32.mrb[25].mxu0  ;;  %5328 = vmatpush3.bf16.xpose.msra.mxu0 %v1434_v7 }
 0x324   : > { %v1065_v18 = vpop.f32.mrb[26].mxu0  ;;  %v1064_v23 = vadd.f32 %v1063_v9, %v7194_v5 }
 0x325   : > { %v1066_v41 = vadd.f32 %v1065_v18, %v7189_v0  ;;  %v1067_v48 = vpop.f32.mrb[27].mxu0 }
 0x326   : > { %v1068_v26 = vadd.f32 %v1067_v48, %v7194_v5 }
 0x327   : > { %v7317_v27 = vpack.c.bf16 %v1066_v41, %v1062_v8 }
 0x328   : > { %v1196_v12 = vpack.c.bf16 %v1068_v26, %v1064_v23 }
 0x32a   : > { %1277 = vrot.lane.b32.xlu0 %v1196_v12, %s6644_s29  ;;  %v1071_v29 = vpop.f32.mrb[28].mxu0  ;;  %5627 = vmatprep.subr.msk.bf16.mxu0 %vm1393_vm0, %v1196_v12  ;;  %v1437_v31 = vsel %vm1393_vm0, %v1196_v12, 0 }
 0x32b   : > { %v1072_v49 = vadd.f32 %v1071_v29, %v7189_v0  ;;  %v1073_v14 = vpop.f32.mrb[29].mxu0  ;;  %5330 = vmatpush3.bf16.xpose.msra.mxu0 %v1437_v31 }
 0x32c   : > { %v1075_v36 = vpop.f32.mrb[30].mxu0  ;;  %v1074_v38 = vadd.f32 %v1073_v14, %v7194_v5 }
 0x32d   : > { %v1076_v37 = vadd.f32 %v1075_v36, %v7189_v0  ;;  %v1077_v15 = vpop.f32.mrb[31].mxu0 }
 0x32e   : > { %v1078_v39 = vadd.f32 %v1077_v15, %v7194_v5  ;;  %1281 = vrot.lane.b32.xlu0 %v7206_v21, %s6645_s21 }
 0x32f   : > { %v7328_v57 = vpack.c.bf16 %v1076_v37, %v1072_v49 }
 0x330   : > { %v1199_v32 = vpack.c.bf16 %v1078_v39, %v1074_v38 }
 0x332   : > { %1297 = vrot.lane.b32.xlu0 %v7206_v21, %s6646_s22  ;;  %1279 = vrot.lane.b32.xlu1 %v1199_v32, %s6644_s29  ;;  %v1440_v0 = vsel %vm1393_vm0, %v1199_v32, 0 }
 0x333   : > { %5628 = vmatprep.subr.msk.bf16.mxu0 %vm1393_vm0, %v1199_v32 }
 0x334   : > { %5332 = vmatpush3.bf16.xpose.msra.mxu0 %v1440_v0 }
 0x336   : > { %1283 = vrot.lane.b32.xlu0 %v7230_v43, %s6645_s21  ;;  %1209 = vrot.lane.b32.xlu1 %v7204_v19, %s6644_s29 }
 0x33a   : > { %1285 = vrot.lane.b32.xlu0 %v7252_v62, %s6645_s21  ;;  %1211 = vrot.lane.b32.xlu1 %v7228_v42, %s6644_s29 }
 0x33b   : > { %5334 = vmatmul.mubr.msk.bf16.vlgmr.msra.gmra.mrb[32].mxu0 %vm1393_vm0, %v7228_v42 }
 0x33c   : > { %5337 = vmatprep.mubr.msk.bf16.mxu0 %vm1393_vm0, %v7250_v13 }
 0x33e   : > { %1287 = vrot.lane.b32.xlu0 %v7274_v35, %s6645_s21  ;;  %1299 = vrot.lane.b32.xlu1 %v7230_v43, %s6646_s22 }
 0x342   : > { %1289 = vrot.lane.b32.xlu0 %v7296_v52, %s6645_s21  ;;  %1301 = vrot.lane.b32.xlu1 %v7252_v62, %s6646_s22 }
 0x343   : > { %5338 = vmatmul.mubr.msk.bf16.gmra.mrb[36].mxu0 %vm1393_vm0, %v7272_v30 }
 0x344   : > { %5341 = vmatprep.mubr.msk.bf16.mxu0 %vm1393_vm0, %v7294_v11 }
 0x346   : > { %1213 = vrot.lane.b32.xlu0 %v7250_v13, %s6644_s29  ;;  %1303 = vrot.lane.b32.xlu1 %v7274_v35, %s6646_s22 }
 0x34a   : > { %1215 = vrot.lane.b32.xlu0 %v7272_v30, %s6644_s29  ;;  %1305 = vrot.lane.b32.xlu1 %v7296_v52, %s6646_s22 }
 0x34b   : > { %5342 = vmatmul.mubr.msk.bf16.gmra.mrb[40].mxu0 %vm1393_vm0, %v7308_v2 }
 0x34c   : > { %5345 = vmatprep.mubr.msk.bf16.mxu0 %vm1393_vm0, %v7317_v27 }
 0x34e   : > { %1217 = vrot.lane.b32.xlu0 %v7294_v11, %s6644_s29  ;;  %1291 = vrot.lane.b32.xlu1 %v1193_v40, %s6645_s21 }
 0x352   : > { %1219 = vrot.lane.b32.xlu0 %v7308_v2, %s6644_s29  ;;  %1307 = vrot.lane.b32.xlu1 %v1193_v40, %s6646_s22 }
 0x353   : > { %5346 = vmatmul.mubr.msk.bf16.gmra.mrb[44].mxu0 %vm1393_vm0, %v7328_v57 }
 0x356   : > { %1221 = vrot.lane.b32.xlu0 %v7317_v27, %s6644_s29  ;;  %1293 = vrot.lane.b32.xlu1 %v1196_v12, %s6645_s21 }
 0x35a   : > { %1309 = vrot.lane.b32.xlu1 %v1196_v12, %s6646_s22  ;;  %1223 = vrot.lane.b32.xlu0 %v7328_v57, %s6644_s29 }
 0x35e   : > { %1295 = vrot.lane.b32.xlu1 %v1199_v32, %s6645_s21  ;;  %1225 = vrot.lane.b32.xlu0 %v7204_v19, %s6645_s21 }
 0x362   : > { %1311 = vrot.lane.b32.xlu1 %v1199_v32, %s6646_s22  ;;  %1241 = vrot.lane.b32.xlu0 %v7204_v19, %s6646_s22 }
 0x366   : > { %1227 = vrot.lane.b32.xlu1 %v7228_v42, %s6645_s21  ;;  %1229 = vrot.lane.b32.xlu0 %v7250_v13, %s6645_s21 }
 0x36a   : > { %1243 = vrot.lane.b32.xlu1 %v7228_v42, %s6646_s22  ;;  %1245 = vrot.lane.b32.xlu0 %v7250_v13, %s6646_s22 }
 0x36c   : > { %v1266_v5 = vpop.permute.xlu0 %1265 }
 0x36d   : > { %5629 = vmatprep.subr.msk.bf16.mxu1 %vm1393_vm0, %v1266_v5  ;;  %v1564_v21 = vsel %vm1393_vm0, %v1266_v5, 0 }
 0x36e   : > { %1231 = vrot.lane.b32.xlu1 %v7272_v30, %s6645_s21  ;;  %1233 = vrot.lane.b32.xlu0 %v7294_v11, %s6645_s21 }
 0x36f   : > { %5350 = vmatpush3.bf16.xpose.msra.mxu1 %v1564_v21 }
 0x372   : > { %1247 = vrot.lane.b32.xlu1 %v7272_v30, %s6646_s22  ;;  %1249 = vrot.lane.b32.xlu0 %v7294_v11, %s6646_s22 }
 0x374   : > { %v1268_v19 = vpop.permute.xlu1 %1267 }
 0x375   : > { %5630 = vmatprep.subr.msk.bf16.mxu1 %vm1393_vm0, %v1268_v19  ;;  %v1567_v42 = vsel %vm1393_vm0, %v1268_v19, 0 }
 0x376   : > { %1235 = vrot.lane.b32.xlu1 %v7308_v2, %s6645_s21  ;;  %1237 = vrot.lane.b32.xlu0 %v7317_v27, %s6645_s21 }
 0x377   : > { %5352 = vmatpush3.bf16.xpose.msra.mxu1 %v1567_v42 }
 0x37a   : > { %1251 = vrot.lane.b32.xlu1 %v7308_v2, %s6646_s22  ;;  %1253 = vrot.lane.b32.xlu0 %v7317_v27, %s6646_s22 }
 0x37c   : > { %v1270_v43 = vpop.permute.xlu1 %1269 }
 0x37d   : > { %5631 = vmatprep.subr.msk.bf16.mxu1 %vm1393_vm0, %v1270_v43  ;;  %v1570_v13 = vsel %vm1393_vm0, %v1270_v43, 0 }
 0x37e   : > { %1239 = vrot.lane.b32.xlu1 %v7328_v57, %s6645_s21  ;;  %1321 = vrot.lane.b32.xlu0 %v7223_v56, %s6644_s29 }
 0x37f   : > { %5354 = vmatpush3.bf16.xpose.msra.mxu1 %v1570_v13 }
 0x382   : > { %1255 = vrot.lane.b32.xlu1 %v7328_v57, %s6646_s22  ;;  %1327 = vrot.lane.b32.xlu0 %v7242_v4, %s6644_s29 }
 0x384   : > { %v1272_v62 = vpop.permute.xlu1 %1271 }
 0x385   : > { %5632 = vmatprep.subr.msk.bf16.mxu1 %vm1393_vm0, %v1272_v62  ;;  %v1573_v30 = vsel %vm1393_vm0, %v1272_v62, 0 }
 0x386   : > { %1323 = vrot.lane.b32.xlu1 %v7220_v34, %s6644_s29  ;;  %1333 = vrot.lane.b32.xlu0 %v7289_v45, %s6644_s29 }
 0x387   : > { %5356 = vmatpush3.bf16.xpose.msra.mxu1 %v1573_v30 }
 0x38a   : > { %1325 = vrot.lane.b32.xlu1 %v7245_v53, %s6644_s29  ;;  %1345 = vrot.lane.b32.xlu0 %v7223_v56, %s6645_s21 }
 0x38c   : > { %v1274_v35 = vpop.permute.xlu0 %1273 }
 0x38d   : > { %5633 = vmatprep.subr.msk.bf16.mxu1 %vm1393_vm0, %v1274_v35  ;;  %v1576_v3 = vsel %vm1393_vm0, %v1274_v35, 0 }
 0x38e   : > { %1329 = vrot.lane.b32.xlu1 %v7267_v20, %s6644_s29  ;;  %1347 = vrot.lane.b32.xlu0 %v7220_v34, %s6645_s21 }
 0x38f   : > { %5358 = vmatpush3.bf16.xpose.msra.mxu1 %v1576_v3 }
 0x392   : > { %1331 = vrot.lane.b32.xlu1 %v7264_v10, %s6644_s29  ;;  %1349 = vrot.lane.b32.xlu0 %v7245_v53, %s6645_s21 }
 0x394   : > { %v1276_v47 = vpop.permute.xlu1 %1275 }
 0x395   : > { %5634 = vmatprep.subr.msk.bf16.mxu1 %vm1393_vm0, %v1276_v47  ;;  %v1579_v16 = vsel %vm1393_vm0, %v1276_v47, 0 }
 0x396   : > { %1335 = vrot.lane.b32.xlu1 %v7286_v44, %s6644_s29  ;;  %1351 = vrot.lane.b32.xlu0 %v7242_v4, %s6645_s21 }
 0x397   : > { %5360 = vmatpush3.bf16.xpose.msra.mxu1 %v1579_v16 }
 0x39a   : > { %1369 = vrot.lane.b32.xlu1 %v7223_v56, %s6646_s22  ;;  %1353 = vrot.lane.b32.xlu0 %v7267_v20, %s6645_s21 }
 0x39c   : > { %v1278_v50 = vpop.permute.xlu0 %1277 }
 0x39d   : > { %5635 = vmatprep.subr.msk.bf16.mxu1 %vm1393_vm0, %v1278_v50  ;;  %v1582_v51 = vsel %vm1393_vm0, %v1278_v50, 0 }
 0x39e   : > { %1371 = vrot.lane.b32.xlu1 %v7220_v34, %s6646_s22  ;;  %1355 = vrot.lane.b32.xlu0 %v7264_v10, %s6645_s21 }
 0x39f   : > { %5362 = vmatpush3.bf16.xpose.msra.mxu1 %v1582_v51 }
 0x3a0   : > { %v1282_v25 = vpop.permute.xlu0 %1281 }
 0x3a1   : > { %5637 = vmatprep.subr.msk.bf16.mxu0 %vm1393_vm0, %v1282_v25  ;;  %v1709_v11 = vsel %vm1393_vm0, %v1282_v25, 0 }
 0x3a2   : > { %1373 = vrot.lane.b32.xlu1 %v7245_v53, %s6646_s22  ;;  %1357 = vrot.lane.b32.xlu0 %v7289_v45, %s6645_s21 }
 0x3a3   : > { %5382 = vmatpush3.bf16.xpose.msra.mxu0 %v1709_v11 }
 0x3a4   : > { %v1280_v52 = vpop.permute.xlu1 %1279  ;;  %v1298_v54 = vpop.permute.xlu0 %1297 }
 0x3a5   : > { %5636 = vmatprep.subr.msk.bf16.mxu1 %vm1393_vm0, %v1280_v52  ;;  %v1585_v55 = vsel %vm1393_vm0, %v1280_v52, 0  ;;  %v1854_v28 = vsel %vm1393_vm0, %v1298_v54, 0 }
 0x3a6   : > { %1375 = vrot.lane.b32.xlu1 %v7242_v4, %s6646_s22 }
 0x3a7   : > { %5364 = vmatpush3.bf16.xpose.msra.mxu1 %v1585_v55 }
 0x3a8   : > { %5645 = vmatprep.subr.msk.bf16.mxu1 %vm1393_vm0, %v1298_v54  ;;  %v1210_v58 = vpop.permute.xlu1 %1209  ;;  %v1284_v59 = vpop.permute.xlu0 %1283 }
 0x3a9   : > { %5365 = vmatprep.mubr.msk.bf16.mxu1 %vm1393_vm0, %v1210_v58  ;;  %5638 = vmatprep.subr.msk.bf16.mxu0 %vm1393_vm0, %v1284_v59  ;;  %v1712_v17 = vsel %vm1393_vm0, %v1284_v59, 0 }
 0x3aa   : > { %1377 = vrot.lane.b32.xlu1 %v7267_v20, %s6646_s22 }
 0x3ab   : > { %5384 = vmatpush3.bf16.xpose.msra.mxu0 %v1712_v17 }
 0x3ac   : > { %v1212_v60 = vpop.permute.xlu1 %1211  ;;  %v1286_v61 = vpop.permute.xlu0 %1285 }
 0x3ad   : > { %5639 = vmatprep.subr.msk.bf16.mxu0 %vm1393_vm0, %v1286_v61  ;;  %v1715_v40 = vsel %vm1393_vm0, %v1286_v61, 0 }
 0x3ae   : > { %5366 = vmatmul.mubr.msk.bf16.vlgmr.msra.gmra.mrb[16].mxu1 %vm1393_vm0, %v1212_v60  ;;  %1379 = vrot.lane.b32.xlu1 %v7264_v10, %s6646_s22 }
 0x3af   : > { %5414 = vmatpush3.bf16.xpose.msra.mxu1 %v1854_v28 }
 0x3b0   : > { %v1300_v24 = vpop.permute.xlu1 %1299  ;;  %v1288_v2 = vpop.permute.xlu0 %1287 }
 0x3b1   : > { %5646 = vmatprep.subr.msk.bf16.mxu1 %vm1393_vm0, %v1300_v24  ;;  %v1857_v8 = vsel %vm1393_vm0, %v1300_v24, 0  ;;  %v1718_v41 = vsel %vm1393_vm0, %v1288_v2, 0 }
 0x3b2   : > { %1381 = vrot.lane.b32.xlu1 %v7289_v45, %s6646_s22 }
 0x3b3   : > { %5386 = vmatpush3.bf16.xpose.msra.mxu0 %v1715_v40 }
 0x3b4   : > { %5640 = vmatprep.subr.msk.bf16.mxu0 %vm1393_vm0, %v1288_v2  ;;  %v1302_v6 = vpop.permute.xlu1 %1301  ;;  %v1290_v7 = vpop.permute.xlu0 %1289 }
 0x3b5   : > { %v1860_v26 = vsel %vm1393_vm0, %v1302_v6, 0  ;;  %v1721_v29 = vsel %vm1393_vm0, %v1290_v7, 0 }
 0x3b7   : > { %5416 = vmatpush3.bf16.xpose.msra.mxu1 %v1857_v8 }
 0x3b8   : > { %5647 = vmatprep.subr.msk.bf16.mxu1 %vm1393_vm0, %v1302_v6  ;;  %v1304_v9 = vpop.permute.xlu1 %1303  ;;  %v1214_v18 = vpop.permute.xlu0 %1213 }
 0x3b9   : > { %5369 = vmatprep.mubr.msk.bf16.mxu1 %vm1393_vm0, %v1214_v18  ;;  %v1863_v14 = vsel %vm1393_vm0, %v1304_v9, 0 }
 0x3bb   : > { %5388 = vmatpush3.bf16.xpose.msra.mxu0 %v1718_v41 }
 0x3bc   : > { %5641 = vmatprep.subr.msk.bf16.mxu0 %vm1393_vm0, %v1290_v7  ;;  %v1306_v48 = vpop.permute.xlu1 %1305  ;;  %v1216_v23 = vpop.permute.xlu0 %1215 }
 0x3bd   : > { %5370 = vmatmul.mubr.msk.bf16.gmra.mrb[20].mxu1 %vm1393_vm0, %v1216_v23  ;;  %v1866_v57 = vsel %vm1393_vm0, %v1306_v48, 0 }
 0x3bf   : > { %5418 = vmatpush3.bf16.xpose.msra.mxu1 %v1860_v26 }
 0x3c0   : > { %5648 = vmatprep.subr.msk.bf16.mxu1 %vm1393_vm0, %v1304_v9  ;;  %v1292_v27 = vpop.permute.xlu1 %1291  ;;  %v1218_v12 = vpop.permute.xlu0 %1217 }
 0x3c1   : > { %5373 = vmatprep.mubr.msk.bf16.mxu1 %vm1393_vm0, %v1218_v12  ;;  %v1724_v15 = vsel %vm1393_vm0, %v1292_v27, 0 }
 0x3c3   : > { %5390 = vmatpush3.bf16.xpose.msra.mxu0 %v1721_v29 }
 0x3c4   : > { %5642 = vmatprep.subr.msk.bf16.mxu0 %vm1393_vm0, %v1292_v27  ;;  %v1308_v31 = vpop.permute.xlu1 %1307  ;;  %v1220_v49 = vpop.permute.xlu0 %1219 }
 0x3c5   : > { %5374 = vmatmul.mubr.msk.bf16.gmra.mrb[24].mxu1 %vm1393_vm0, %v1220_v49  ;;  %v1869_v42 = vsel %vm1393_vm0, %v1308_v31, 0 }
 0x3c7   : > { %5420 = vmatpush3.bf16.xpose.msra.mxu1 %v1863_v14 }
 0x3c8   : > { %5649 = vmatprep.subr.msk.bf16.mxu1 %vm1393_vm0, %v1306_v48  ;;  %v1294_v36 = vpop.permute.xlu1 %1293  ;;  %v1222_v37 = vpop.permute.xlu0 %1221 }
 0x3c9   : > { %5377 = vmatprep.mubr.msk.bf16.mxu1 %vm1393_vm0, %v1222_v37  ;;  %v1727_v5 = vsel %vm1393_vm0, %v1294_v36, 0 }
 0x3cb   : > { %5392 = vmatpush3.bf16.xpose.msra.mxu0 %v1724_v15 }
 0x3cc   : > { %5643 = vmatprep.subr.msk.bf16.mxu0 %vm1393_vm0, %v1294_v36  ;;  %v1310_v38 = vpop.permute.xlu1 %1309  ;;  %v1224_v39 = vpop.permute.xlu0 %1223 }
 0x3cd   : > { %5378 = vmatmul.mubr.msk.bf16.gmra.mrb[28].mxu1 %vm1393_vm0, %v1224_v39  ;;  %v1872_v3 = vsel %vm1393_vm0, %v1310_v38, 0 }
 0x3cf   : > { %5422 = vmatpush3.bf16.xpose.msra.mxu1 %v1866_v57 }
 0x3d0   : > { %5650 = vmatprep.subr.msk.bf16.mxu1 %vm1393_vm0, %v1308_v31  ;;  %v1296_v32 = vpop.permute.xlu1 %1295  ;;  %v1226_v0 = vpop.permute.xlu0 %1225 }
 0x3d1   : > { %5397 = vmatprep.mubr.msk.bf16.mxu0 %vm1393_vm0, %v1226_v0  ;;  %v1730_v62 = vsel %vm1393_vm0, %v1296_v32, 0 }
 0x3d3   : > { %5394 = vmatpush3.bf16.xpose.msra.mxu0 %v1727_v5 }
 0x3d4   : > { %5644 = vmatprep.subr.msk.bf16.mxu0 %vm1393_vm0, %v1296_v32  ;;  %v1312_v21 = vpop.permute.xlu1 %1311  ;;  %v1242_v19 = vpop.permute.xlu0 %1241 }
 0x3d5   : > { %5429 = vmatprep.mubr.msk.bf16.mxu1 %vm1393_vm0, %v1242_v19  ;;  %v1875_v25 = vsel %vm1393_vm0, %v1312_v21, 0 }
 0x3d7   : > { %5424 = vmatpush3.bf16.xpose.msra.mxu1 %v1869_v42 }
 0x3d8   : > { %5651 = vmatprep.subr.msk.bf16.mxu1 %vm1393_vm0, %v1310_v38  ;;  %v1228_v43 = vpop.permute.xlu1 %1227  ;;  %v1230_v13 = vpop.permute.xlu0 %1229 }
 0x3db   : > { %5396 = vmatpush3.bf16.xpose.msra.mxu0 %v1730_v62 }
 0x3dc   : > { %5445 = vmatprep.subr.bf16.mxu0 %v7223_v56  ;;  %v1244_v30 = vpop.permute.xlu1 %1243  ;;  %v1246_v35 = vpop.permute.xlu0 %1245 }
 0x3df   : > { %5426 = vmatpush3.bf16.xpose.msra.mxu1 %v1872_v3 }
 0x3e0   : > { %5652 = vmatprep.subr.msk.bf16.mxu1 %vm1393_vm0, %v1312_v21  ;;  %v1232_v47 = vpop.permute.xlu1 %1231  ;;  %v1234_v16 = vpop.permute.xlu0 %1233 }
 0x3e2   : > { %5398 = vmatmul.mubr.msk.bf16.vlgmr.msra.gmra.mrb[48].mxu0 %vm1393_vm0, %v1228_v43 }
 0x3e3   : > { %5401 = vmatprep.mubr.msk.bf16.mxu0 %vm1393_vm0, %v1230_v13  ;;  %5446 = vmatpush3.bf16.msra.mxu0 %v7223_v56 }
 0x3e4   : > { %5447 = vmatprep.subr.bf16.mxu0 %v7220_v34  ;;  %v1248_v50 = vpop.permute.xlu1 %1247  ;;  %v1250_v51 = vpop.permute.xlu0 %1249 }
 0x3e7   : > { %5428 = vmatpush3.bf16.xpose.msra.mxu1 %v1875_v25  ;;  %5448 = vmatpush3.bf16.msra.mxu0 %v7220_v34 }
 0x3e8   : > { %5449 = vmatprep.subr.bf16.mxu0 %v7245_v53  ;;  %v1236_v11 = vpop.permute.xlu1 %1235  ;;  %v1238_v52 = vpop.permute.xlu0 %1237 }
 0x3ea   : > { %5402 = vmatmul.mubr.msk.bf16.gmra.mrb[52].mxu0 %vm1393_vm0, %v1232_v47 }
 0x3eb   : > { %5405 = vmatprep.mubr.msk.bf16.mxu0 %vm1393_vm0, %v1234_v16  ;;  %5450 = vmatpush3.bf16.msra.mxu0 %v7245_v53 }
 0x3ec   : > { %5451 = vmatprep.subr.bf16.mxu0 %v7242_v4  ;;  %v1252_v56 = vpop.permute.xlu1 %1251  ;;  %v1254_v54 = vpop.permute.xlu0 %1253 }
 0x3ee   : > { %5430 = vmatmul.mubr.msk.bf16.vlgmr.msra.gmra.mrb[32].mxu1 %vm1393_vm0, %v1244_v30 }
 0x3ef   : > { %5433 = vmatprep.mubr.msk.bf16.mxu1 %vm1393_vm0, %v1246_v35  ;;  %5452 = vmatpush3.bf16.msra.mxu0 %v7242_v4 }
 0x3f0   : > { %5453 = vmatprep.subr.bf16.mxu0 %v7267_v20  ;;  %v1240_v34 = vpop.permute.xlu1 %1239  ;;  %v1322_v55 = vpop.permute.xlu0 %1321 }
 0x3f1   : > { %5477 = vmatprep.subr.bf16.mxu1 %v1322_v55 }
 0x3f2   : > { %5406 = vmatmul.mubr.msk.bf16.gmra.mrb[56].mxu0 %vm1393_vm0, %v1236_v11  ;;  %5478 = vmatpush3.bf16.msra.mxu1 %v1322_v55 }
 0x3f3   : > { %5409 = vmatprep.mubr.msk.bf16.mxu0 %vm1393_vm0, %v1238_v52  ;;  %5454 = vmatpush3.bf16.msra.mxu0 %v7267_v20 }
 0x3f4   : > { %5455 = vmatprep.subr.bf16.mxu0 %v7264_v10  ;;  %v1256_v53 = vpop.permute.xlu1 %1255  ;;  %v1328_v58 = vpop.permute.xlu0 %1327 }
 0x3f6   : > { %5434 = vmatmul.mubr.msk.bf16.gmra.mrb[36].mxu1 %vm1393_vm0, %v1248_v50 }
 0x3f7   : > { %5437 = vmatprep.mubr.msk.bf16.mxu1 %vm1393_vm0, %v1250_v51  ;;  %5456 = vmatpush3.bf16.msra.mxu0 %v7264_v10 }
 0x3f8   : > { %5457 = vmatprep.subr.bf16.mxu0 %v7289_v45  ;;  %v1324_v4 = vpop.permute.xlu1 %1323  ;;  %v1334_v59 = vpop.permute.xlu0 %1333 }
 0x3f9   : > { %5479 = vmatprep.subr.bf16.mxu1 %v1324_v4 }
 0x3fa   : > { %5410 = vmatmul.mubr.msk.bf16.gmra.mrb[60].mxu0 %vm1393_vm0, %v1240_v34  ;;  %5480 = vmatpush3.bf16.msra.mxu1 %v1324_v4 }
 0x3fb   : > { %5458 = vmatpush3.bf16.msra.mxu0 %v7289_v45 }
 0x3fc   : > { %5459 = vmatprep.subr.bf16.mxu0 %v7286_v44  ;;  %v1326_v20 = vpop.permute.xlu1 %1325  ;;  %v7548_v17 = vpop.permute.xlu0 %1345 }
 0x3fd   : > { %5481 = vmatprep.subr.bf16.mxu1 %v1326_v20  ;;  %8939 = vst [vmem:[#allocation22_spill] sm:$0xff] %v7548_v17 }
 0x3fe   : > { %5438 = vmatmul.mubr.msk.bf16.gmra.mrb[40].mxu1 %vm1393_vm0, %v1252_v56 }
 0x3ff   : > { %5441 = vmatprep.mubr.msk.bf16.mxu1 %vm1393_vm0, %v1254_v54  ;;  %5460 = vmatpush3.bf16.msra.mxu0 %v7286_v44 }
 0x400   : > { %5482 = vmatpush3.bf16.msra.mxu1 %v1326_v20  ;;  %5509 = vmatprep.subr.bf16.mxu0 %v7548_v17  ;;  %v1330_v10 = vpop.permute.xlu1 %1329  ;;  %v7639_v13 = vpop.permute.xlu0 %1347 }
 0x401   : > { %5483 = vmatprep.subr.bf16.mxu1 %v1328_v58  ;;  %8949 = vst [vmem:[#allocation32_spill] sm:$0xff] %v7639_v13 }
 0x404   : > { %5484 = vmatpush3.bf16.msra.mxu1 %v1328_v58  ;;  %v1332_v45 = vpop.permute.xlu1 %1331  ;;  %v7641_v62 = vpop.permute.xlu0 %1349 }
 0x405   : > { %5485 = vmatprep.subr.bf16.mxu1 %v1330_v10  ;;  %8950 = vst [vmem:[#allocation33_spill] sm:$0xff] %v7641_v62 }
 0x406   : > { %5442 = vmatmul.mubr.msk.bf16.gmra.mrb[44].mxu1 %vm1393_vm0, %v1256_v53 }
 0x408   : > { %5486 = vmatpush3.bf16.msra.mxu1 %v1330_v10  ;;  %v1336_v60 = vpop.permute.xlu1 %1335  ;;  %v7643_v30 = vpop.permute.xlu0 %1351 }
 0x409   : > { %5487 = vmatprep.subr.bf16.mxu1 %v1332_v45  ;;  %8951 = vst [vmem:[#allocation34_spill] sm:$0xff] %v7643_v30 }
 0x40c   : > { %5488 = vmatpush3.bf16.msra.mxu1 %v1332_v45  ;;  %v7565_v40 = vpop.permute.xlu1 %1369  ;;  %v7657_v51 = vpop.permute.xlu0 %1353 }
 0x40d   : > { %5489 = vmatprep.subr.bf16.mxu1 %v1334_v59  ;;  %8940 = vst [vmem:[#allocation23_spill] sm:$0xff] %v7565_v40  ;;  %8953 = vst [vmem:[#allocation36_spill] sm:$0xff] %v7657_v51 }
 0x40e   : > { %v7554_v61 = vpop.f32.mrb[32].mxu0 }
 0x40f   : > { %v7556_v28 = vpop.f32.mrb[33].mxu0  ;;  %1978 = vmax.xlane.f32.xlu0 %v7554_v61 }
 0x410   : > { %5490 = vmatpush3.bf16.msra.mxu1 %v1334_v59  ;;  %v7559_v24 = vpop.f32.mrb[34].mxu0  ;;  %v7650_v47 = vpop.permute.xlu1 %1371 }
 0x411   : > { %5491 = vmatprep.subr.bf16.mxu1 %v1336_v60  ;;  %v7561_v2 = vpop.f32.mrb[35].mxu0  ;;  %8952 = vst [vmem:[#allocation35_spill] sm:$0xff] %v7650_v47  ;;  %v7670_v54 = vpop.permute.xlu0 %1355 }
 0x412   : > { %1976 = vmax.xlane.f32.xlu1 %v7561_v2  ;;  %8958 = vst [vmem:[#allocation41_spill] sm:$0xff] %v7670_v54 }
 0x413   : > { %1974 = vmax.xlane.f32.xlu0 %v7556_v28 }
 0x414   : > { %5492 = vmatpush3.bf16.msra.mxu1 %v1336_v60  ;;  %v7661_v25 = vpop.permute.xlu1 %1373 }
 0x415   : > { %5541 = vmatprep.subr.bf16.mxu1 %v7565_v40  ;;  %8954 = vst [vmem:[#allocation37_spill] sm:$0xff] %v7661_v25  ;;  %v7689_v10 = vpop.permute.xlu0 %1357 }
 0x416   : > { %v7568_v6 = vpop.f32.mrb[36].mxu0  ;;  %8962 = vst [vmem:[#allocation45_spill] sm:$0xff] %v7689_v10 }
 0x417   : > { %v7570_v7 = vpop.f32.mrb[37].mxu0  ;;  %1980 = vmax.xlane.f32.xlu0 %v7559_v24 }
 0x418   : > { %v7573_v8 = vpop.f32.mrb[38].mxu0  ;;  %v7680_v58 = vpop.permute.xlu1 %1375 }
 0x419   : > { %v7575_v9 = vpop.f32.mrb[39].mxu0  ;;  %1988 = vmax.xlane.f32.xlu1 %v7573_v8  ;;  %8960 = vst [vmem:[#allocation43_spill] sm:$0xff] %v7680_v58 }
 0x41b   : > { %1986 = vmax.xlane.f32.xlu0 %v7568_v6 }
 0x41c   : > { %v7699_v1 = vpop.permute.xlu1 %1377 }
 0x41d   : > { %1984 = vmax.xlane.f32.xlu1 %v7575_v9  ;;  %8965 = vst [vmem:[#allocation48_spill] sm:$0xff] %v7699_v1 }
 0x41e   : > { %v7580_v18 = vpop.f32.mrb[40].mxu0 }
 0x41f   : > { %v7582_v41 = vpop.f32.mrb[41].mxu0  ;;  %1982 = vmax.xlane.f32.xlu0 %v7570_v7 }
 0x420   : > { %v7585_v48 = vpop.f32.mrb[42].mxu0  ;;  %v7716_v1 = vpop.permute.xlu1 %1379 }
 0x421   : > { %v7587_v23 = vpop.f32.mrb[43].mxu0  ;;  %1996 = vmax.xlane.f32.xlu1 %v7585_v48  ;;  %8966 = vst [vmem:[#allocation49_spill] sm:$0xff] %v7716_v1 }
 0x423   : > { %1994 = vmax.xlane.f32.xlu0 %v7580_v18 }
 0x424   : > { %v7733_v1 = vpop.permute.xlu1 %1381 }
 0x425   : > { %1992 = vmax.xlane.f32.xlu1 %v7587_v23  ;;  %8967 = vst [vmem:[#allocation50_spill] sm:$0xff] %v7733_v1 }
 0x426   : > { %v7592_v26 = vpop.f32.mrb[44].mxu0 }
 0x427   : > { %1990 = vmax.xlane.f32.xlu0 %v7582_v41  ;;  %v7595_v27 = vpop.f32.mrb[45].mxu0 }
 0x428   : > { %v7597_v12 = vpop.f32.mrb[46].mxu0 }
 0x429   : > { %2004 = vmax.xlane.f32.xlu1 %v7597_v12  ;;  %v7600_v29 = vpop.f32.mrb[47].mxu0 }
 0x42b   : > { %2002 = vmax.xlane.f32.xlu0 %v7592_v26 }
 0x42d   : > { %2000 = vmax.xlane.f32.xlu1 %v7600_v29 }
 0x42f   : > { %1998 = vmax.xlane.f32.xlu0 %v7595_v27 }
 0x481   : > { %v7605_v31 = vpop.f32.mrb[16].mxu1 }
 0x482   : > { %2010 = vmax.xlane.f32.xlu0 %v7605_v31  ;;  %v7608_v49 = vpop.f32.mrb[17].mxu1 }
 0x483   : > { %v7610_v14 = vpop.f32.mrb[18].mxu1 }
 0x484   : > { %2012 = vmax.xlane.f32.xlu1 %v7610_v14  ;;  %v7613_v36 = vpop.f32.mrb[19].mxu1 }
 0x485   : > { %8941 = vst [vmem:[#allocation24_spill] sm:$0xff] %v7613_v36 }
 0x490   : > { %v7615_v37 = vpop.f32.mrb[20].mxu1 }
 0x491   : > { %v7617_v15 = vpop.f32.mrb[21].mxu1 }
 0x492   : > { %8942 = vst [vmem:[#allocation25_spill] sm:$0xff] %v7617_v15  ;;  %v7619_v38 = vpop.f32.mrb[22].mxu1 }
 0x493   : > { %8943 = vst [vmem:[#allocation26_spill] sm:$0xff] %v7619_v38  ;;  %v7621_v39 = vpop.f32.mrb[23].mxu1 }
 0x494   : > { %8944 = vst [vmem:[#allocation27_spill] sm:$0xff] %v7621_v39 }
 0x498   : > { %v7623_v57 = vpop.f32.mrb[24].mxu1 }
 0x499   : > { %8945 = vst [vmem:[#allocation28_spill] sm:$0xff] %v7623_v57  ;;  %v7625_v32 = vpop.f32.mrb[25].mxu1 }
 0x49a   : > { %8946 = vst [vmem:[#allocation29_spill] sm:$0xff] %v7625_v32  ;;  %v7627_v0 = vpop.f32.mrb[26].mxu1 }
 0x49b   : > { %8947 = vst [vmem:[#allocation30_spill] sm:$0xff] %v7627_v0  ;;  %v7629_v5 = vpop.f32.mrb[27].mxu1 }
 0x49c   : > { %8948 = vst [vmem:[#allocation31_spill] sm:$0xff] %v7629_v5  ;;  %v1979_v46 = vpop.xlane.xlu0 %1978 }
 0x4a0   : > { %v7631_v21 = vpop.f32.mrb[28].mxu1  ;;  %v1975_v10 = vpop.xlane.xlu0 %1974 }
 0x4a1   : > { %v7633_v19 = vpop.f32.mrb[29].mxu1 }
 0x4a2   : > { %v7635_v42 = vpop.f32.mrb[30].mxu1 }
 0x4a3   : > { %v7637_v43 = vpop.f32.mrb[31].mxu1 }
 0x4a4   : > { %v1981_v17 = vpop.xlane.xlu0 %1980 }
 0x4b5   : > { %v7645_v35 = vpop.f32.mrb[48].mxu0 }
 0x4b6   : > { %2042 = vmax.xlane.f32.xlu0 %v7645_v35  ;;  %v7648_v3 = vpop.f32.mrb[49].mxu0 }
 0x4b7   : > { %v7652_v16 = vpop.f32.mrb[50].mxu0 }
 0x4b8   : > { %2044 = vmax.xlane.f32.xlu1 %v7652_v16  ;;  %v7655_v50 = vpop.f32.mrb[51].mxu0 }
 0x4ba   : > { %2006 = vmax.xlane.f32.xlu0 %v7608_v49 }
 0x4bc   : > { %2008 = vmax.xlane.f32.xlu1 %v7613_v36  ;;  %v2102_v36 = vsub.f32 %v7556_v28, %v1975_v10 }
 0x4bd   : > { %v7663_v11 = vpop.f32.mrb[52].mxu0 }
 0x4be   : > { %8955 = vst [vmem:[#allocation38_spill] sm:$0xff] %v7663_v11  ;;  %2038 = vmax.xlane.f32.xlu0 %v7648_v3  ;;  %v7666_v52 = vpop.f32.mrb[53].mxu0 }
 0x4bf   : > { %8956 = vst [vmem:[#allocation39_spill] sm:$0xff] %v7666_v52  ;;  %v7668_v56 = vpop.f32.mrb[54].mxu0 }
 0x4c0   : > { %8957 = vst [vmem:[#allocation40_spill] sm:$0xff] %v7668_v56  ;;  %2040 = vmax.xlane.f32.xlu1 %v7655_v50  ;;  %v7673_v34 = vpop.f32.mrb[55].mxu0 }
 0x4c1   : > { %8959 = vst [vmem:[#allocation42_spill] sm:$0xff] %v7673_v34  ;;  %v7675_v55 = vpop.f32.mrb[32].mxu1 }
 0x4c2   : > { %2018 = vmax.xlane.f32.xlu0 %v7615_v37  ;;  %v7678_v53 = vpop.f32.mrb[33].mxu1 }
 0x4c3   : > { %v7682_v4 = vpop.f32.mrb[34].mxu1 }
 0x4c4   : > { %2020 = vmax.xlane.f32.xlu1 %v7619_v38  ;;  %v7685_v59 = vpop.f32.mrb[35].mxu1  ;;  %v1987_v38 = vpop.xlane.xlu0 %1986 }
 0x4c5   : > { %v7687_v20 = vpop.f32.mrb[56].mxu0 }
 0x4c6   : > { %8961 = vst [vmem:[#allocation44_spill] sm:$0xff] %v7687_v20  ;;  %2050 = vmax.xlane.f32.xlu0 %v7663_v11  ;;  %v7692_v45 = vpop.f32.mrb[57].mxu0 }
 0x4c7   : > { %8963 = vst [vmem:[#allocation46_spill] sm:$0xff] %v7692_v45  ;;  %v7694_v60 = vpop.f32.mrb[58].mxu0 }
 0x4c8   : > { %8964 = vst [vmem:[#allocation47_spill] sm:$0xff] %v7694_v60  ;;  %2052 = vmax.xlane.f32.xlu1 %v7668_v56  ;;  %v7697_v33 = vpop.f32.mrb[59].mxu0  ;;  %v1977_v56 = vpop.xlane.xlu1 %1976 }
 0x4c9   : > { %v7701_v63 = vpop.f32.mrb[36].mxu1 }
 0x4ca   : > { %2014 = vmax.xlane.f32.xlu0 %v7617_v15  ;;  %v7704_v22 = vpop.f32.mrb[37].mxu1 }
 0x4cb   : > { %v7706_v58 = vpop.f32.mrb[38].mxu1 }
 0x4cc   : > { %2016 = vmax.xlane.f32.xlu1 %v7621_v39  ;;  %v7709_v25 = vpop.f32.mrb[39].mxu1  ;;  %v1989_v1 = vpop.xlane.xlu1 %1988 }
 0x4cd   : > { %v7711_v47 = vpop.f32.mrb[60].mxu0 }
 0x4ce   : > { %2046 = vmax.xlane.f32.xlu0 %v7666_v52  ;;  %v7714_v40 = vpop.f32.mrb[61].mxu0  ;;  %v1983_v52 = vpop.xlane.xlu0 %1982 }
 0x4cf   : > { %v7718_v44 = vpop.f32.mrb[62].mxu0 }
 0x4d0   : > { %2048 = vmax.xlane.f32.xlu1 %v7673_v34  ;;  %v7721_v54 = vpop.f32.mrb[63].mxu0  ;;  %v1985_v11 = vpop.xlane.xlu1 %1984 }
 0x4d1   : > { %v7723_v51 = vpop.f32.mrb[40].mxu1 }
 0x4d2   : > { %2026 = vmax.xlane.f32.xlu0 %v7623_v57  ;;  %v7726_v30 = vpop.f32.mrb[41].mxu1 }
 0x4d3   : > { %v7728_v62 = vpop.f32.mrb[42].mxu1 }
 0x4d4   : > { %2028 = vmax.xlane.f32.xlu1 %v7627_v0  ;;  %v7731_v13 = vpop.f32.mrb[43].mxu1 }
 0x4d6   : > { %2058 = vmax.xlane.f32.xlu0 %v7687_v20  ;;  %v2108_v20 = vsub.f32 %v7568_v6, %v1987_v38  ;;  %v2107_v6 = vsub.f32 %v7575_v9, %v1985_v11  ;;  %v1995_v38 = vpop.xlane.xlu0 %1994 }
 0x4d7   : > { %v2112_v28 = vsub.f32 %v7580_v18, %v1995_v38  ;;  %v2106_v18 = vsub.f32 %v7570_v7, %v1983_v52 }
 0x4d8   : > { %2060 = vmax.xlane.f32.xlu1 %v7694_v60  ;;  %v2104_v60 = vsub.f32 %v7554_v61, %v1979_v46  ;;  %v2178_v15 = vmul.f32 1.442695, %v2108_v20  ;;  %v2166_v46 = vmul.f32 1.442695, %v2102_v36  ;;  %v1997_v61 = vpop.xlane.xlu1 %1996 }
 0x4d9   : > { %v7737_v39 = vpop.f32.mrb[44].mxu1  ;;  %v2113_v36 = vsub.f32 %v7585_v48, %v1997_v61  ;;  %v2174_v10 = vmul.f32 1.442695, %v2106_v18 }
 0x4da   : > { %2022 = vmax.xlane.f32.xlu0 %v7625_v32  ;;  %v7740_v57 = vpop.f32.mrb[45].mxu1  ;;  %v2109_v32 = vsub.f32 %v7573_v8, %v1989_v1  ;;  %6046 = vpow2.f32 %v2178_v15  ;;  %v2105_v1 = vsub.f32 %v7559_v24, %v1981_v17  ;;  %v2176_v8 = vmul.f32 1.442695, %v2107_v6  ;;  %v1991_v11 = vpop.xlane.xlu0 %1990 }
 0x4db   : > { %v7742_v34 = vpop.f32.mrb[46].mxu1  ;;  %v2103_v15 = vsub.f32 %v7561_v2, %v1977_v56  ;;  %v2188_v56 = vmul.f32 1.442695, %v2113_v36 }
 0x4dc   : > { %8968 = vst [vmem:[#allocation51_spill] sm:$0xff] %v7742_v34  ;;  %2024 = vmax.xlane.f32.xlu1 %v7629_v5  ;;  %v7745_v0 = vpop.f32.mrb[47].mxu1  ;;  %v2170_v5 = vmul.f32 1.442695, %v2104_v60  ;;  %v2172_v9 = vmul.f32 1.442695, %v2105_v1  ;;  %v1993_v17 = vpop.xlane.xlu1 %1992 }
 0x4dd   : > { %v2111_v20 = vsub.f32 %v7587_v23, %v1993_v17 }
 0x4de   : > { %2054 = vmax.xlane.f32.xlu0 %v7692_v45  ;;  %v2180_v45 = vmul.f32 1.442695, %v2109_v32  ;;  %6048 = vpow2.f32 %v2170_v5  ;;  %v2186_v32 = vmul.f32 1.442695, %v2112_v28  ;;  %v2168_v5 = vmul.f32 1.442695, %v2103_v15  ;;  %v2003_v38 = vpop.xlane.xlu0 %2002 }
 0x4df   : > { %v2184_v52 = vmul.f32 1.442695, %v2111_v20  ;;  %v2116_v1 = vsub.f32 %v7592_v26, %v2003_v38 }
 0x4e0   : > { %2056 = vmax.xlane.f32.xlu1 %v7697_v33  ;;  %6050 = vpow2.f32 %v2180_v45  ;;  %v2110_v45 = vsub.f32 %v7582_v41, %v1991_v11  ;;  %v2005_v6 = vpop.xlane.xlu1 %2004 }
 0x4e1   : > { %6052 = vpow2.f32 %v2166_v46 }
 0x4e2   : > { %2034 = vmax.xlane.f32.xlu0 %v7631_v21  ;;  %6054 = vpow2.f32 %v2176_v8  ;;  %v2182_v23 = vmul.f32 1.442695, %v2110_v45  ;;  %v2117_v8 = vsub.f32 %v7597_v12, %v2005_v6  ;;  %v1999_v36 = vpop.xlane.xlu0 %1998 }
 0x4e3   : > { %6056 = vpow2.f32 %v2172_v9  ;;  %v2194_v9 = vmul.f32 1.442695, %v2116_v1  ;;  %v2114_v12 = vsub.f32 %v7595_v27, %v1999_v36 }
 0x4e4   : > { %2036 = vmax.xlane.f32.xlu1 %v7635_v42  ;;  %v7766_v24 = vpop.eup %6046  ;;  %6058 = vpow2.f32 %v2186_v32  ;;  %v2001_v28 = vpop.xlane.xlu1 %2000  ;;  %v2196_v17 = vmul.f32 1.442695, %v2117_v8 }
 0x4e5   : > { %6060 = vpow2.f32 %v2168_v5  ;;  %v2115_v26 = vsub.f32 %v7600_v29, %v2001_v28 }
 0x4e6   : > { %2066 = vmax.xlane.f32.xlu0 %v7711_v47  ;;  %6062 = vpow2.f32 %v2188_v56  ;;  %v2190_v56 = vmul.f32 1.442695, %v2114_v12 }
 0x4e7   : > { %6064 = vpow2.f32 %v2174_v10  ;;  %v2192_v11 = vmul.f32 1.442695, %v2115_v26 }
 0x4e8   : > { %2068 = vmax.xlane.f32.xlu1 %v7718_v44  ;;  %v7770_v2 = vpop.eup %6048  ;;  %6066 = vpow2.f32 %v2184_v52 }
 0x4e9   : > { %6068 = vpow2.f32 %v2182_v23 }
 0x4ea   : > { %2030 = vmax.xlane.f32.xlu0 %v7633_v19  ;;  %v7774_v48 = vpop.eup %6050  ;;  %6070 = vpow2.f32 %v2194_v9 }
 0x4eb   : > { %v7778_v7 = vpop.eup %6052  ;;  %6072 = vpow2.f32 %v2196_v17 }
 0x4ec   : > { %2032 = vmax.xlane.f32.xlu1 %v7637_v43  ;;  %v7781_v60 = vpop.eup %6054  ;;  %6074 = vpow2.f32 %v2192_v11 }
 0x4ed   : > { %v7784_v46 = vpop.eup %6056  ;;  %6076 = vpow2.f32 %v2190_v56 }
 0x4ee   : > { %2062 = vmax.xlane.f32.xlu0 %v7714_v40  ;;  %v7787_v41 = vpop.eup %6058 }
 0x4ef   : > { %v7791_v61 = vpop.eup %6060 }
 0x4f0   : > { %2064 = vmax.xlane.f32.xlu1 %v7721_v54  ;;  %v7795_v15 = vpop.eup %6062 }
 0x4f1   : > { %v7798_v32 = vpop.eup %6064 }
 0x4f2   : > { %2306 = vadd.xlane.f32.xlu0 %v7766_v24  ;;  %v7802_v5 = vpop.eup %6066 }
 0x4f3   : > { %v7806_v18 = vpop.eup %6068 }
 0x4f4   : > { %2298 = vadd.xlane.f32.xlu1 %v7770_v2  ;;  %v7812_v29 = vpop.eup %6070 }
 0x4f5   : > { %v7815_v27 = vpop.eup %6072 }
 0x4f6   : > { %2308 = vadd.xlane.f32.xlu0 %v7774_v48  ;;  %v7819_v20 = vpop.eup %6074 }
 0x4f7   : > { %v7822_v10 = vpop.eup %6076 }
 0x4f8   : > { %2294 = vadd.xlane.f32.xlu1 %v7778_v7 }
 0x4fa   : > { %2304 = vadd.xlane.f32.xlu0 %v7781_v60 }
 0x4fc   : > { %2300 = vadd.xlane.f32.xlu1 %v7784_v46 }
 0x4fe   : > { %2314 = vadd.xlane.f32.xlu0 %v7787_v41 }
 0x500   : > { %2296 = vadd.xlane.f32.xlu1 %v7791_v61 }
 0x502   : > { %2316 = vadd.xlane.f32.xlu0 %v7795_v15 }
 0x504   : > { %2302 = vadd.xlane.f32.xlu1 %v7798_v32 }
 0x506   : > { %2312 = vadd.xlane.f32.xlu0 %v7802_v5 }
 0x508   : > { %2310 = vadd.xlane.f32.xlu1 %v7806_v18 }
 0x50a   : > { %2074 = vmax.xlane.f32.xlu0 %v7675_v55 }
 0x50c   : > { %2076 = vmax.xlane.f32.xlu1 %v7682_v4 }
 0x50e   : > { %2070 = vmax.xlane.f32.xlu0 %v7678_v53 }
 0x50f   : > { %v2011_v45 = vpop.xlane.xlu0 %2010 }
 0x510   : > { %2322 = vadd.xlane.f32.xlu1 %v7812_v29  ;;  %v2120_v52 = vsub.f32 %v7605_v31, %v2011_v45 }
 0x511   : > { %v2013_v6 = vpop.xlane.xlu1 %2012 }
 0x512   : > { %2324 = vadd.xlane.f32.xlu0 %v7815_v27  ;;  %v2202_v23 = vmul.f32 1.442695, %v2120_v52  ;;  %v2121_v12 = vsub.f32 %v7610_v14, %v2013_v6 }
 0x514   : > { %2072 = vmax.xlane.f32.xlu1 %v7685_v59  ;;  %6078 = vpow2.f32 %v2202_v23 }
 0x516   : > { %2320 = vadd.xlane.f32.xlu0 %v7819_v20 }
 0x518   : > { %2318 = vadd.xlane.f32.xlu1 %v7822_v10 }
 0x51a   : > { %2082 = vmax.xlane.f32.xlu0 %v7701_v63 }
 0x51c   : > { %2084 = vmax.xlane.f32.xlu1 %v7706_v58 }
 0x51e   : > { %2078 = vmax.xlane.f32.xlu0 %v7704_v22  ;;  %v7838_v31 = vpop.eup %6078 }
 0x51f   : > { %8969 = vst [vmem:[#allocation52_spill] sm:$0xff] %v7838_v31 }
 0x520   : > { %2080 = vmax.xlane.f32.xlu1 %v7709_v25 }
 0x522   : > { %2090 = vmax.xlane.f32.xlu0 %v7723_v51 }
 0x524   : > { %2092 = vmax.xlane.f32.xlu1 %v7728_v62 }
 0x526   : > { %2086 = vmax.xlane.f32.xlu0 %v7726_v30 }
 0x528   : > { %2088 = vmax.xlane.f32.xlu1 %v7731_v13 }
 0x52a   : > { %2098 = vmax.xlane.f32.xlu0 %v7737_v39 }
 0x52c   : > { %2100 = vmax.xlane.f32.xlu1 %v7742_v34 }
 0x52e   : > { %2094 = vmax.xlane.f32.xlu0 %v7740_v57 }
 0x530   : > { %2096 = vmax.xlane.f32.xlu1 %v7745_v0 }
 0x532   : > { %2330 = vadd.xlane.f32.xlu0 %v7838_v31  ;;  %v2204_v31 = vmul.f32 1.442695, %v2121_v12 }
 0x543   : > { %v2043_v38 = vpop.xlane.xlu0 %2042 }
 0x544   : > { %v2136_v1 = vsub.f32 %v7645_v35, %v2043_v38 }
 0x545   : > { %v2045_v8 = vpop.xlane.xlu1 %2044 }
 0x546   : > { %v2234_v28 = vmul.f32 1.442695, %v2136_v1  ;;  %v2137_v38 = vsub.f32 %v7652_v16, %v2045_v8 }
 0x547   : > { %v2007_v9 = vpop.xlane.xlu0 %2006 }
 0x548   : > { %6080 = vpow2.f32 %v2234_v28  ;;  %v2118_v36 = vsub.f32 %v7608_v49, %v2007_v9  ;;  %v2236_v6 = vmul.f32 1.442695, %v2137_v38 }
 0x549   : > { %v2009_v17 = vpop.xlane.xlu1 %2008 }
 0x54a   : > { %v2198_v26 = vmul.f32 1.442695, %v2118_v36  ;;  %v8971_v36 = vld [vmem:[#allocation24_spill] sm:$0xff] }
 0x54b   : > { %v2039_v11 = vpop.xlane.xlu0 %2038 }
 0x54c   : > { %6082 = vpow2.f32 %v2198_v26  ;;  %v2134_v56 = vsub.f32 %v7648_v3, %v2039_v11  ;;  %v8972_v26 = vld [vmem:[#allocation38_spill] sm:$0xff] }
 0x54d   : > { %v2041_v45 = vpop.xlane.xlu1 %2040 }
 0x54e   : > { %v2230_v52 = vmul.f32 1.442695, %v2134_v56  ;;  %v2135_v23 = vsub.f32 %v7655_v50, %v2041_v45  ;;  %v2119_v50 = vsub.f32 %v8971_v36, %v2009_v17  ;;  %v8974_v45 = vld [vmem:[#allocation25_spill] sm:$0xff] }
 0x54f   : > { %v2019_v35 = vpop.xlane.xlu0 %2018 }
 0x550   : > { %6084 = vpow2.f32 %v2230_v52  ;;  %v2232_v1 = vmul.f32 1.442695, %v2135_v23  ;;  %v2124_v49 = vsub.f32 %v7615_v37, %v2019_v35  ;;  %v2200_v56 = vmul.f32 1.442695, %v2119_v50 }
 0x551   : > { %v2021_v28 = vpop.xlane.xlu1 %2020 }
 0x552   : > { %v7848_v9 = vpop.eup %6080  ;;  %6086 = vpow2.f32 %v2232_v1  ;;  %v2210_v14 = vmul.f32 1.442695, %v2124_v49  ;;  %v8976_v1 = vld [vmem:[#allocation39_spill] sm:$0xff] }
 0x553   : > { %8970 = vst [vmem:[#allocation53_spill] sm:$0xff] %v7848_v9  ;;  %2362 = vadd.xlane.f32.xlu0 %v7848_v9  ;;  %v2051_v3 = vpop.xlane.xlu0 %2050  ;;  %6088 = vpow2.f32 %v2204_v31 }
 0x554   : > { %v2140_v12 = vsub.f32 %v8972_v26, %v2051_v3  ;;  %6090 = vpow2.f32 %v2210_v14  ;;  %v8977_v14 = vld [vmem:[#allocation26_spill] sm:$0xff] }
 0x555   : > { %v2053_v11 = vpop.xlane.xlu1 %2052  ;;  %6092 = vpow2.f32 %v2236_v6  ;;  %v2125_v3 = vsub.f32 %v8977_v14, %v2021_v28  ;;  %v8979_v26 = vld [vmem:[#allocation42_spill] sm:$0xff]  ;;  %v8983_v14 = vld [vmem:[#allocation40_spill] sm:$0xff] }
 0x556   : > { %v7853_v16 = vpop.eup %6082  ;;  %v2242_v8 = vmul.f32 1.442695, %v2140_v12 }
 0x557   : > { %8973 = vst [vmem:[#allocation24_spill] sm:$0xff] %v7853_v16  ;;  %2326 = vadd.xlane.f32.xlu1 %v7853_v16  ;;  %v2015_v37 = vpop.xlane.xlu0 %2014 }
 0x558   : > { %v2122_v52 = vsub.f32 %v8974_v45, %v2015_v37  ;;  %6094 = vpow2.f32 %v2242_v8 }
 0x559   : > { %v2017_v23 = vpop.xlane.xlu1 %2016  ;;  %6096 = vpow2.f32 %v2200_v56  ;;  %v8981_v56 = vld [vmem:[#allocation28_spill] sm:$0xff] }
 0x55a   : > { %v7857_v35 = vpop.eup %6084  ;;  %v2206_v31 = vmul.f32 1.442695, %v2122_v52 }
 0x55b   : > { %2358 = vadd.xlane.f32.xlu1 %v7857_v35  ;;  %v2047_v17 = vpop.xlane.xlu0 %2046 }
 0x55c   : > { %v7860_v38 = vpop.eup %6086  ;;  %v2138_v49 = vsub.f32 %v8976_v1, %v2047_v17  ;;  %6098 = vpow2.f32 %v2206_v31  ;;  %v2212_v17 = vmul.f32 1.442695, %v2125_v3  ;;  %v2141_v31 = vsub.f32 %v8983_v14, %v2053_v11 }
 0x55d   : > { %8975 = vst [vmem:[#allocation38_spill] sm:$0xff] %v7860_v38  ;;  %v2049_v36 = vpop.xlane.xlu1 %2048  ;;  %2360 = vadd.xlane.f32.xlu0 %v7860_v38  ;;  %v7865_v6 = vpop.eup %6088 }
 0x55e   : > { %8978 = vst [vmem:[#allocation25_spill] sm:$0xff] %v7865_v6  ;;  %v2238_v50 = vmul.f32 1.442695, %v2138_v49  ;;  %v2139_v12 = vsub.f32 %v8979_v26, %v2049_v36  ;;  %v7869_v37 = vpop.eup %6090 }
 0x55f   : > { %2332 = vadd.xlane.f32.xlu1 %v7865_v6  ;;  %v2027_v8 = vpop.xlane.xlu0 %2026  ;;  %8980 = vst [vmem:[#allocation39_spill] sm:$0xff] %v7869_v37  ;;  %v7873_v1 = vpop.eup %6092 }
 0x560   : > { %v2240_v45 = vmul.f32 1.442695, %v2139_v12  ;;  %v2128_v52 = vsub.f32 %v8981_v56, %v2027_v8  ;;  %6100 = vpow2.f32 %v2238_v50  ;;  %8982 = vst [vmem:[#allocation26_spill] sm:$0xff] %v7873_v1  ;;  %v2244_v50 = vmul.f32 1.442695, %v2141_v31  ;;  %v8986_v8 = vld [vmem:[#allocation27_spill] sm:$0xff] }
 0x561   : > { %v2029_v28 = vpop.xlane.xlu1 %2028  ;;  %2338 = vadd.xlane.f32.xlu0 %v7869_v37  ;;  %v2123_v56 = vsub.f32 %v8986_v8, %v2017_v23 }
 0x562   : > { %6102 = vpow2.f32 %v2240_v45  ;;  %v2218_v49 = vmul.f32 1.442695, %v2128_v52  ;;  %v7879_v26 = vpop.eup %6094  ;;  %v8988_v52 = vld [vmem:[#allocation29_spill] sm:$0xff] }
 0x563   : > { %2364 = vadd.xlane.f32.xlu1 %v7873_v1  ;;  %v7877_v36 = vpop.xlane.xlu0 %2058  ;;  %8984 = vst [vmem:[#allocation42_spill] sm:$0xff] %v7879_v26  ;;  %6104 = vpow2.f32 %v2212_v17  ;;  %v7884_v3 = vpop.eup %6096  ;;  %v2208_v17 = vmul.f32 1.442695, %v2123_v56  ;;  %v8989_v1 = vld [vmem:[#allocation30_spill] sm:$0xff] }
 0x564   : > { %8985 = vst [vmem:[#allocation28_spill] sm:$0xff] %v7884_v3  ;;  %6106 = vpow2.f32 %v2218_v49 }
 0x565   : > { %v7881_v12 = vpop.xlane.xlu1 %2060  ;;  %2370 = vadd.xlane.f32.xlu0 %v7879_v26  ;;  %6108 = vpow2.f32 %v2244_v50  ;;  %v2129_v26 = vsub.f32 %v8989_v1, %v2029_v28  ;;  %v8992_v50 = vld [vmem:[#allocation31_spill] sm:$0xff] }
 0x566   : > { %v7888_v45 = vpop.eup %6098 }
 0x567   : > { %2328 = vadd.xlane.f32.xlu1 %v7884_v3  ;;  %v2023_v11 = vpop.xlane.xlu0 %2022  ;;  %8987 = vst [vmem:[#allocation40_spill] sm:$0xff] %v7888_v45  ;;  %v2220_v8 = vmul.f32 1.442695, %v2129_v26 }
 0x568   : > { %v2126_v14 = vsub.f32 %v8988_v52, %v2023_v11 }
 0x569   : > { %v2025_v9 = vpop.xlane.xlu1 %2024  ;;  %2334 = vadd.xlane.f32.xlu0 %v7888_v45 }
 0x56a   : > { %v2214_v37 = vmul.f32 1.442695, %v2126_v14  ;;  %v7893_v16 = vpop.eup %6100  ;;  %v2127_v56 = vsub.f32 %v8992_v50, %v2025_v9 }
 0x56b   : > { %8990 = vst [vmem:[#allocation27_spill] sm:$0xff] %v7893_v16  ;;  %v7895_v31 = vpop.xlane.xlu0 %2054 }
 0x56c   : > { %v7897_v23 = vpop.eup %6102  ;;  %6110 = vpow2.f32 %v2214_v37  ;;  %v2216_v37 = vmul.f32 1.442695, %v2127_v56 }
 0x56d   : > { %8991 = vst [vmem:[#allocation29_spill] sm:$0xff] %v7897_v23  ;;  %v7899_v49 = vpop.xlane.xlu1 %2056  ;;  %2368 = vadd.xlane.f32.xlu1 %v7897_v23  ;;  %2366 = vadd.xlane.f32.xlu0 %v7893_v16  ;;  %6112 = vpow2.f32 %v2208_v17  ;;  %v7904_v11 = vpop.eup %6104 }
 0x56e   : > { %8993 = vst [vmem:[#allocation30_spill] sm:$0xff] %v7904_v11  ;;  %v7906_v1 = vpop.eup %6106  ;;  %6114 = vpow2.f32 %v2220_v8 }
 0x56f   : > { %v2035_v28 = vpop.xlane.xlu0 %2034  ;;  %8994 = vst [vmem:[#allocation31_spill] sm:$0xff] %v7906_v1  ;;  %v7914_v9 = vpop.eup %6108 }
 0x570   : > { %v2132_v52 = vsub.f32 %v7631_v21, %v2035_v28  ;;  %8995 = vst [vmem:[#allocation54_spill] sm:$0xff] %v7914_v9 }
 0x571   : > { %v2037_v14 = vpop.xlane.xlu1 %2036  ;;  %2340 = vadd.xlane.f32.xlu0 %v7904_v11  ;;  %2346 = vadd.xlane.f32.xlu1 %v7906_v1 }
 0x572   : > { %v2226_v23 = vmul.f32 1.442695, %v2132_v52  ;;  %v2133_v17 = vsub.f32 %v7635_v42, %v2037_v14 }
 0x573   : > { %v7912_v26 = vpop.xlane.xlu0 %2066 }
 0x574   : > { %6116 = vpow2.f32 %v2226_v23  ;;  %v2228_v28 = vmul.f32 1.442695, %v2133_v17 }
 0x575   : > { %v7916_v50 = vpop.xlane.xlu1 %2068  ;;  %2372 = vadd.xlane.f32.xlu0 %v7914_v9  ;;  %6118 = vpow2.f32 %v2216_v37 }
 0x576   : > { %v7919_v21 = vpop.eup %6110  ;;  %6120 = vpow2.f32 %v2228_v28 }
 0x577   : > { %8996 = vst [vmem:[#allocation55_spill] sm:$0xff] %v7919_v21  ;;  %2342 = vadd.xlane.f32.xlu1 %v7919_v21  ;;  %v2031_v8 = vpop.xlane.xlu0 %2030  ;;  %v7922_v56 = vpop.eup %6112 }
 0x578   : > { %8997 = vst [vmem:[#allocation56_spill] sm:$0xff] %v7922_v56  ;;  %v2130_v42 = vsub.f32 %v7633_v19, %v2031_v8  ;;  %v7929_v9 = vpop.eup %6114 }
 0x579   : > { %v2033_v52 = vpop.xlane.xlu1 %2032  ;;  %2336 = vadd.xlane.f32.xlu0 %v7922_v56  ;;  %8998 = vst [vmem:[#allocation57_spill] sm:$0xff] %v7929_v9 }
 0x57a   : > { %v2222_v23 = vmul.f32 1.442695, %v2130_v42  ;;  %v2131_v14 = vsub.f32 %v7637_v43, %v2033_v52 }
 0x57b   : > { %v7927_v16 = vpop.xlane.xlu0 %2062 }
 0x57c   : > { %6122 = vpow2.f32 %v2222_v23  ;;  %v2224_v37 = vmul.f32 1.442695, %v2131_v14 }
 0x57d   : > { %v7931_v17 = vpop.xlane.xlu1 %2064  ;;  %2348 = vadd.xlane.f32.xlu0 %v7929_v9 }
 0x57e   : > { %v7934_v1 = vpop.eup %6116  ;;  %6124 = vpow2.f32 %v2224_v37 }
 0x57f   : > { %8999 = vst [vmem:[#allocation58_spill] sm:$0xff] %v7934_v1  ;;  %2354 = vadd.xlane.f32.xlu1 %v7934_v1  ;;  %v2307_v19 = vpop.xlane.xlu0 %2306  ;;  %v7937_v28 = vpop.eup %6118 }
 0x580   : > { %9000 = vst [vmem:[#allocation59_spill] sm:$0xff] %v7937_v28  ;;  %v7940_v42 = vpop.eup %6120 }
 0x581   : > { %v2299_v8 = vpop.xlane.xlu1 %2298  ;;  %2344 = vadd.xlane.f32.xlu0 %v7937_v28  ;;  %9001 = vst [vmem:[#allocation60_spill] sm:$0xff] %v7940_v42 }
 0x583   : > { %v2309_v43 = vpop.xlane.xlu0 %2308 }
 0x585   : > { %v2295_v52 = vpop.xlane.xlu1 %2294  ;;  %2356 = vadd.xlane.f32.xlu0 %v7940_v42 }
 0x586   : > { %v7943_v23 = vpop.eup %6122 }
 0x587   : > { %9002 = vst [vmem:[#allocation61_spill] sm:$0xff] %v7943_v23  ;;  %2350 = vadd.xlane.f32.xlu1 %v7943_v23  ;;  %v2305_v14 = vpop.xlane.xlu0 %2304 }
 0x588   : > { %v7946_v37 = vpop.eup %6124 }
 0x589   : > { %9003 = vst [vmem:[#allocation62_spill] sm:$0xff] %v7946_v37  ;;  %v2301_v1 = vpop.xlane.xlu1 %2300  ;;  %2352 = vadd.xlane.f32.xlu0 %v7946_v37 }
 0x58a   : > { %6126 = vrcp.f32 %v2301_v1 }
 0x58b   : > { %v2315_v21 = vpop.xlane.xlu0 %2314  ;;  %6128 = vrcp.f32 %v2295_v52 }
 0x58c   : > { %6130 = vrcp.f32 %v2299_v8 }
 0x58d   : > { %v2297_v28 = vpop.xlane.xlu1 %2296 }
 0x58e   : > { %6132 = vrcp.f32 %v2297_v28 }
 0x58f   : > { %v2317_v9 = vpop.xlane.xlu0 %2316  ;;  %6134 = vrcp.f32 %v2305_v14 }
 0x591   : > { %v2303_v56 = vpop.xlane.xlu1 %2302 }
 0x592   : > { %6136 = vrcp.f32 %v2303_v56 }
 0x593   : > { %6138 = vrcp.f32 %v2309_v43  ;;  %v2313_v42 = vpop.xlane.xlu0 %2312 }
 0x594   : > { %6140 = vrcp.f32 %v2307_v19  ;;  %v6127_v23 = vpop.eup %6126 }
 0x595   : > { %6142 = vrcp.f32 %v2313_v42  ;;  %v2311_v45 = vpop.xlane.xlu1 %2310  ;;  %v6129_v11 = vpop.eup %6128  ;;  %v2489_v52 = vmul.f32 %v6127_v23, %v7784_v46 }
 0x596   : > { %6144 = vrcp.f32 %v2311_v45  ;;  %v6131_v3 = vpop.eup %6130  ;;  %v2486_v14 = vmul.f32 %v6129_v11, %v7778_v7 }
 0x597   : > { %v2075_v37 = vpop.xlane.xlu0 %2074  ;;  %v2488_v19 = vmul.f32 %v6131_v3, %v7770_v2  ;;  %6146 = vrcp.f32 %v2317_v9  ;;  %v9004_v9 = vld [vmem:[#allocation22_spill] sm:$0xff] }
 0x598   : > { %v6133_v1 = vpop.eup %6132  ;;  %v2152_v8 = vsub.f32 %v7675_v55, %v2075_v37 }
 0x599   : > { %v2077_v28 = vpop.xlane.xlu1 %2076  ;;  %v2487_v56 = vmul.f32 %v6133_v1, %v7791_v61  ;;  %v6135_v43 = vpop.eup %6134  ;;  %v2551_v23 = vpack.c.bf16 %v2489_v52, %v2488_v19 }
 0x59a   : > { %v2266_v6 = vmul.f32 1.442695, %v2152_v8  ;;  %v2153_v42 = vsub.f32 %v7682_v4, %v2077_v28  ;;  %v2491_v2 = vmul.f32 %v6135_v43, %v7781_v60 }
 0x59b   : > { %v2071_v45 = vpop.xlane.xlu0 %2070  ;;  %v2550_v34 = vpack.c.bf16 %v2487_v56, %v2486_v14  ;;  %v9006_v56 = vld [vmem:[#allocation33_spill] sm:$0xff] }
 0x59c   : > { %v6137_v38 = vpop.eup %6136  ;;  %6148 = vpow2.f32 %v2266_v6  ;;  %v2150_v46 = vsub.f32 %v7678_v53, %v2071_v45  ;;  %v2268_v37 = vmul.f32 1.442695, %v2153_v42  ;;  %v9005_v53 = vld [vmem:[#allocation32_spill] sm:$0xff] }
 0x59d   : > { %v6139_v55 = vpop.eup %6138  ;;  %6150 = vrcp.f32 %v2315_v21  ;;  %5461 = vmatprep.mubr.bf16.mxu0 %v2550_v34  ;;  %v2323_v7 = vpop.xlane.xlu1 %2322  ;;  %v2490_v61 = vmul.f32 %v6137_v38, %v7798_v32 }
 0x59e   : > { %v6141_v3 = vpop.eup %6140  ;;  %v2262_v11 = vmul.f32 1.442695, %v2150_v46  ;;  %5462 = vmatmul.mubr.bf16.vlgmr.msra.gmra.mrb[64].mxu0 %v2551_v23  ;;  %v2493_v21 = vmul.f32 %v6139_v55, %v7774_v48 }
 0x59f   : > { %v6143_v4 = vpop.eup %6142  ;;  %5510 = vmatpush3.bf16.msra.mxu0 %v9004_v9  ;;  %v2325_v1 = vpop.xlane.xlu0 %2324  ;;  %v2552_v6 = vpack.c.bf16 %v2491_v2, %v2490_v61  ;;  %v2492_v38 = vmul.f32 %v6141_v3, %v7766_v24 }
 0x5a0   : > { %v6145_v8 = vpop.eup %6144  ;;  %6152 = vpow2.f32 %v2262_v11  ;;  %5511 = vmatprep.subr.bf16.mxu0 %v9005_v53  ;;  %v2495_v28 = vmul.f32 %v6143_v4, %v7802_v5  ;;  %v9007_v5 = vld [vmem:[#allocation34_spill] sm:$0xff]  ;;  %v9008_v11 = vld [vmem:[#allocation36_spill] sm:$0xff] }
 0x5a1   : > { %6154 = vpow2.f32 %v2268_v37  ;;  %v2073_v34 = vpop.xlane.xlu1 %2072  ;;  %5465 = vmatprep.mubr.bf16.mxu0 %v2552_v6  ;;  %v2494_v32 = vmul.f32 %v6145_v8, %v7806_v18  ;;  %v2553_v48 = vpack.c.bf16 %v2493_v21, %v2492_v38  ;;  %v6147_v43 = vpop.eup %6146  ;;  %v9009_v8 = vld [vmem:[#allocation41_spill] sm:$0xff] }
 0x5a2   : > { %v2151_v60 = vsub.f32 %v7685_v59, %v2073_v34  ;;  %6156 = vrcp.f32 %v2323_v7  ;;  %v2497_v46 = vmul.f32 %v6147_v43, %v7795_v15 }
 0x5a3   : > { %5512 = vmatpush3.bf16.msra.mxu0 %v9005_v53  ;;  %v2321_v52 = vpop.xlane.xlu0 %2320  ;;  %6158 = vrcp.f32 %v2325_v1  ;;  %v2554_v42 = vpack.c.bf16 %v2495_v28, %v2494_v32 }
 0x5a4   : > { %v2264_v14 = vmul.f32 1.442695, %v2151_v60  ;;  %5513 = vmatprep.subr.bf16.mxu0 %v9006_v56  ;;  %6160 = vrcp.f32 %v2321_v52  ;;  %v9010_v60 = vld [vmem:[#allocation45_spill] sm:$0xff] }
 0x5a5   : > { %v2319_v19 = vpop.xlane.xlu1 %2318 }
 0x5a6   : > { %v7967_v18 = vpop.eup %6148  ;;  %6162 = vpow2.f32 %v2264_v14  ;;  %5466 = vmatmul.mubr.bf16.gmra.mrb[68].mxu0 %v2553_v48 }
 0x5a7   : > { %v6151_v59 = vpop.eup %6150  ;;  %6164 = vrcp.f32 %v2319_v19  ;;  %5514 = vmatpush3.bf16.msra.mxu0 %v9006_v56  ;;  %5469 = vmatprep.mubr.bf16.mxu0 %v2554_v42  ;;  %v2083_v24 = vpop.xlane.xlu0 %2082  ;;  %v9012_v19 = vld [vmem:[#allocation46_spill] sm:$0xff] }
 0x5a8   : > { %5515 = vmatprep.subr.bf16.mxu0 %v9007_v5  ;;  %2394 = vadd.xlane.f32.xlu1 %v7967_v18  ;;  %v2156_v45 = vsub.f32 %v7701_v63, %v2083_v24  ;;  %v2496_v61 = vmul.f32 %v6151_v59, %v7787_v41  ;;  %v2142_v42 = vsub.f32 %v9012_v19, %v7895_v31 }
 0x5a9   : > { %v2085_v23 = vpop.xlane.xlu1 %2084 }
 0x5aa   : > { %v7974_v55 = vpop.eup %6152  ;;  %v2274_v37 = vmul.f32 1.442695, %v2156_v45  ;;  %v2157_v7 = vsub.f32 %v7706_v58, %v2085_v23  ;;  %v2555_v63 = vpack.c.bf16 %v2497_v46, %v2496_v61  ;;  %v2246_v46 = vmul.f32 1.442695, %v2142_v42 }
 0x5ab   : > { %v7978_v2 = vpop.eup %6154  ;;  %5516 = vmatpush3.bf16.msra.mxu0 %v9007_v5  ;;  %2390 = vadd.xlane.f32.xlu0 %v7974_v55  ;;  %v9013_v5 = vld [vmem:[#allocation44_spill] sm:$0xff] }
 0x5ac   : > { %6166 = vpow2.f32 %v2274_v37  ;;  %v2276_v3 = vmul.f32 1.442695, %v2157_v7  ;;  %5517 = vmatprep.subr.bf16.mxu0 %v9008_v11  ;;  %2396 = vadd.xlane.f32.xlu1 %v7978_v2  ;;  %v6157_v15 = vpop.eup %6156  ;;  %v2144_v45 = vsub.f32 %v9013_v5, %v7877_v36  ;;  %v2143_v36 = vsub.f32 %v7697_v33, %v7899_v49 }
 0x5ad   : > { %v2081_v4 = vpop.xlane.xlu1 %2080  ;;  %v6159_v9 = vpop.eup %6158 }
 0x5ae   : > { %v2155_v58 = vsub.f32 %v7709_v25, %v2081_v4  ;;  %5470 = vmatmul.mubr.bf16.gmra.mrb[72].mxu0 %v2555_v63  ;;  %v6161_v41 = vpop.eup %6160  ;;  %6168 = vpow2.f32 %v2276_v3  ;;  %v2501_v21 = vmul.f32 %v6159_v9, %v7815_v27  ;;  %v2500_v25 = vmul.f32 %v6157_v15, %v7812_v29  ;;  %v9011_v29 = vld [vmem:[#allocation21_spill] sm:$0xff] }
 0x5af   : > { %5518 = vmatpush3.bf16.msra.mxu0 %v9008_v11  ;;  %v2499_v32 = vmul.f32 %v6161_v41, %v7819_v20  ;;  %v2250_v37 = vmul.f32 1.442695, %v2144_v45  ;;  %v2248_v41 = vmul.f32 1.442695, %v2143_v36  ;;  %v9015_v45 = vld [vmem:[#allocation38_spill] sm:$0xff] }
 0x5b0   : > { %v7986_v1 = vpop.eup %6162  ;;  %v2272_v6 = vmul.f32 1.442695, %v2155_v58  ;;  %5519 = vmatprep.subr.bf16.mxu0 %v9009_v8  ;;  %v2557_v52 = vpack.c.bf16 %v2501_v21, %v2500_v25  ;;  %v2147_v21 = vsub.f32 %v7721_v54, %v7931_v17 }
 0x5b1   : > { %v6165_v53 = vpop.eup %6164  ;;  %2392 = vadd.xlane.f32.xlu1 %v7986_v1  ;;  %v2093_v48 = vpop.xlane.xlu1 %2092 }
 0x5b2   : > { %v2498_v34 = vmul.f32 %v6165_v53, %v7822_v10  ;;  %6170 = vpow2.f32 %v2272_v6  ;;  %v2079_v10 = vpop.xlane.xlu0 %2078 }
 0x5b3   : > { %5520 = vmatpush3.bf16.msra.mxu0 %v9009_v8  ;;  %v2154_v56 = vsub.f32 %v7704_v22, %v2079_v10  ;;  %v9014_v22 = vld [vmem:[#allocation47_spill] sm:$0xff]  ;;  %v2149_v10 = vsub.f32 %v7718_v44, %v7916_v50 }
 0x5b4   : > { %5521 = vmatprep.subr.bf16.mxu0 %v9010_v60  ;;  %v2556_v38 = vpack.c.bf16 %v2499_v32, %v2498_v34  ;;  %v2145_v7 = vsub.f32 %v9014_v22, %v7881_v12 }
 0x5b5   : > { %v2270_v59 = vmul.f32 1.442695, %v2154_v56  ;;  %v2089_v24 = vpop.xlane.xlu1 %2088 }
 0x5b6   : > { %v7996_v28 = vpop.eup %6166  ;;  %5473 = vmatprep.mubr.bf16.mxu0 %v2556_v38  ;;  %v2091_v14 = vpop.xlane.xlu0 %2090  ;;  %v2252_v11 = vmul.f32 1.442695, %v2145_v7  ;;  %v2159_v33 = vsub.f32 %v7731_v13, %v2089_v24 }
 0x5b7   : > { %5474 = vmatmul.mubr.bf16.gmra.mrb[76].mxu0 %v2557_v52  ;;  %2402 = vadd.xlane.f32.xlu1 %v7996_v28  ;;  %6172 = vpow2.f32 %v2270_v59  ;;  %v2160_v15 = vsub.f32 %v7723_v51, %v2091_v14  ;;  %v2148_v51 = vsub.f32 %v7711_v47, %v7912_v26  ;;  %v2260_v59 = vmul.f32 1.442695, %v2149_v10 }
 0x5b8   : > { %5522 = vmatpush3.bf16.msra.mxu0 %v9010_v60  ;;  %v8000_v27 = vpop.eup %6168  ;;  %6174 = vpow2.f32 %v2246_v46  ;;  %v2280_v32 = vmul.f32 1.442695, %v2159_v33  ;;  %v2256_v60 = vmul.f32 1.442695, %v2147_v21  ;;  %v9018_v33 = vld [vmem:[#allocation24_spill] sm:$0xff] }
 0x5b9   : > { %v8019_v61 = vpop.xlane.xlu1 %2100  ;;  %6176 = vpow2.f32 %v2250_v37  ;;  %v2282_v6 = vmul.f32 1.442695, %v2160_v15  ;;  %v2258_v47 = vmul.f32 1.442695, %v2148_v51  ;;  %v9019_v21 = vld [vmem:[#allocation28_spill] sm:$0xff] }
 0x5ba   : > { %v2087_v43 = vpop.xlane.xlu0 %2086  ;;  %6178 = vpow2.f32 %v2252_v11 }
 0x5bb   : > { %2404 = vadd.xlane.f32.xlu1 %v8000_v27  ;;  %v2158_v31 = vsub.f32 %v7726_v30, %v2087_v43  ;;  %v2146_v30 = vsub.f32 %v7714_v40, %v7927_v16  ;;  %v2161_v40 = vsub.f32 %v7728_v62, %v2093_v48 }
 0x5bc   : > { %v8003_v20 = vpop.eup %6170 }
 0x5bd   : > { %v8027_v4 = vpop.xlane.xlu1 %2096  ;;  %v2278_v12 = vmul.f32 1.442695, %v2158_v31  ;;  %v2254_v34 = vmul.f32 1.442695, %v2146_v30  ;;  %v2284_v38 = vmul.f32 1.442695, %v2161_v40 }
 0x5be   : > { %v8015_v23 = vpop.xlane.xlu0 %2098  ;;  %v2163_v44 = vsub.f32 %v7745_v0, %v8027_v4  ;;  %v9016_v0 = vld [vmem:[#allocation51_spill] sm:$0xff]  ;;  %v9017_v30 = vld [vmem:[#allocation25_spill] sm:$0xff]  ;;  %v9020_v40 = vld [vmem:[#allocation52_spill] sm:$0xff] }
 0x5bf   : > { %2400 = vadd.xlane.f32.xlu1 %v8003_v20  ;;  %6180 = vpow2.f32 %v2278_v12  ;;  %v2164_v56 = vsub.f32 %v7737_v39, %v8015_v23 }
 0x5c0   : > { %6182 = vpow2.f32 %v2248_v41  ;;  %v2288_v11 = vmul.f32 1.442695, %v2163_v44 }
 0x5c1   : > { %1359 = vrot.lane.b32.xlu0 %v9011_v29, %s6645_s21  ;;  %v8022_v63 = vpop.eup %6172  ;;  %6184 = vpow2.f32 %v2282_v6  ;;  %v2290_v39 = vmul.f32 1.442695, %v2164_v56  ;;  %v9022_v56 = vld [vmem:[#allocation35_spill] sm:$0xff] }
 0x5c2   : > { %v2095_v3 = vpop.xlane.xlu0 %2094  ;;  %v8030_v58 = vpop.eup %6174 }
 0x5c3   : > { %v8040_v53 = vpop.eup %6176  ;;  %v2162_v13 = vsub.f32 %v7740_v57, %v2095_v3  ;;  %v2165_v3 = vsub.f32 %v9016_v0, %v8019_v61 }
 0x5c4   : > { %v8047_v25 = vpop.eup %6178 }
 0x5c5   : > { %v2286_v62 = vmul.f32 1.442695, %v2162_v13  ;;  %v2292_v12 = vmul.f32 1.442695, %v2165_v3 }
 0x5c6   : > { %v2331_v9 = vpop.xlane.xlu0 %2330 }
 0x5c9   : > { %v8052_v52 = vpop.eup %6180 }
 0x5d0   : > { %1383 = vrot.lane.b32.xlu1 %v9011_v29, %s6646_s22  ;;  %v8057_v29 = vpop.eup %6182 }
 0x5d1   : > { %v8061_v14 = vpop.eup %6184 }
 0x5e0   : > { %2398 = vadd.xlane.f32.xlu0 %v8022_v63  ;;  %v8038_v49 = vpop.xlane.xlu0 %2362 }
 0x5e4   : > { %v2327_v8 = vpop.xlane.xlu1 %2326  ;;  %2374 = vadd.xlane.f32.xlu0 %v8030_v58 }
 0x5e8   : > { %v2359_v16 = vpop.xlane.xlu1 %2358  ;;  %2378 = vadd.xlane.f32.xlu0 %v8040_v53 }
 0x5e9   : > { %6186 = vrcp.f32 %v2359_v16 }
 0x5ea   : > { %v2361_v26 = vpop.xlane.xlu0 %2360 }
 0x5eb   : > { %6188 = vrcp.f32 %v2361_v26 }
 0x5ec   : > { %6190 = vpow2.f32 %v2254_v34  ;;  %v2333_v54 = vpop.xlane.xlu1 %2332  ;;  %2380 = vadd.xlane.f32.xlu0 %v8047_v25 }
 0x5ed   : > { %6192 = vpow2.f32 %v2280_v32 }
 0x5ee   : > { %6194 = vpow2.f32 %v2258_v47  ;;  %v8050_v17 = vpop.xlane.xlu0 %2338 }
 0x5ef   : > { %6196 = vpow2.f32 %v2256_v60 }
 0x5f0   : > { %6198 = vpow2.f32 %v2284_v38  ;;  %v8054_v57 = vpop.xlane.xlu1 %2364  ;;  %2406 = vadd.xlane.f32.xlu0 %v8052_v52 }
 0x5f1   : > { %6200 = vpow2.f32 %v2286_v62 }
 0x5f2   : > { %6202 = vrcp.f32 %v2333_v54  ;;  %v8065_v48 = vpop.xlane.xlu0 %2370  ;;  %v9021_v54 = vld [vmem:[#allocation23_spill] sm:$0xff] }
 0x5f3   : > { %v6187_v43 = vpop.eup %6186  ;;  %6204 = vrcp.f32 %v2327_v8 }
 0x5f4   : > { %6206 = vrcp.f32 %v2331_v9  ;;  %v2329_v19 = vpop.xlane.xlu1 %2328  ;;  %2376 = vadd.xlane.f32.xlu1 %v8057_v29  ;;  %2410 = vadd.xlane.f32.xlu0 %v8061_v14  ;;  %v2518_v5 = vmul.f32 %v6187_v43, %v7857_v35 }
 0x5f5   : > { %v6189_v42 = vpop.eup %6188  ;;  %6208 = vrcp.f32 %v2329_v19 }
 0x5f6   : > { %v8071_v50 = vpop.eup %6190  ;;  %v2335_v24 = vpop.xlane.xlu0 %2334  ;;  %v2519_v46 = vmul.f32 %v6189_v42, %v9015_v45  ;;  %6210 = vpow2.f32 %v2260_v59  ;;  %v9023_v59 = vld [vmem:[#allocation37_spill] sm:$0xff] }
 0x5f7   : > { %v8075_v23 = vpop.eup %6192  ;;  %6212 = vpow2.f32 %v2290_v39 }
 0x5f8   : > { %v8077_v37 = vpop.eup %6194  ;;  %2408 = vadd.xlane.f32.xlu1 %v8075_v23  ;;  %2382 = vadd.xlane.f32.xlu0 %v8071_v50  ;;  %v2566_v22 = vpack.c.bf16 %v2519_v46, %v2518_v5  ;;  %6214 = vpow2.f32 %v2288_v11  ;;  %v9026_v11 = vld [vmem:[#allocation40_spill] sm:$0xff] }
 0x5f9   : > { %v8081_v7 = vpop.eup %6196  ;;  %6216 = vpow2.f32 %v2292_v12 }
 0x5fa   : > { %v8085_v31 = vpop.eup %6198  ;;  %5525 = vmatprep.mubr.bf16.mxu0 %v2566_v22  ;;  %v8087_v35 = vpop.xlane.xlu0 %2366  ;;  %v9025_v22 = vld [vmem:[#allocation30_spill] sm:$0xff] }
 0x5fb   : > { %v8089_v36 = vpop.eup %6200  ;;  %v8094_v8 = vpop.xlane.xlu1 %2368 }
 0x5fc   : > { %v6203_v15 = vpop.eup %6202  ;;  %2412 = vadd.xlane.f32.xlu1 %v8085_v31  ;;  %2386 = vadd.xlane.f32.xlu0 %v8077_v37 }
 0x5fd   : > { %v6205_v4 = vpop.eup %6204  ;;  %v2505_v6 = vmul.f32 %v6203_v15, %v9017_v30 }
 0x5fe   : > { %v6207_v9 = vpop.eup %6206  ;;  %v2341_v41 = vpop.xlane.xlu0 %2340  ;;  %v2502_v51 = vmul.f32 %v6205_v4, %v9018_v33  ;;  %v9027_v4 = vld [vmem:[#allocation56_spill] sm:$0xff] }
 0x5ff   : > { %v6209_v61 = vpop.eup %6208  ;;  %v2504_v16 = vmul.f32 %v6207_v9, %v9020_v40  ;;  %6218 = vrcp.f32 %v2341_v41  ;;  %v2347_v38 = vpop.xlane.xlu1 %2346  ;;  %v9028_v9 = vld [vmem:[#allocation48_spill] sm:$0xff]  ;;  %v9029_v41 = vld [vmem:[#allocation39_spill] sm:$0xff]  ;;  %v9030_v40 = vld [vmem:[#allocation49_spill] sm:$0xff] }
 0x600   : > { %2384 = vadd.xlane.f32.xlu1 %v8081_v7  ;;  %2414 = vadd.xlane.f32.xlu0 %v8089_v36  ;;  %v2503_v34 = vmul.f32 %v6209_v61, %v9019_v21  ;;  %v8103_v47 = vpop.eup %6210  ;;  %6220 = vrcp.f32 %v2335_v24  ;;  %v9024_v24 = vld [vmem:[#allocation43_spill] sm:$0xff] }
 0x601   : > { %v2559_v26 = vpack.c.bf16 %v2505_v6, %v2504_v16  ;;  %v8105_v60 = vpop.eup %6212  ;;  %6222 = vrcp.f32 %v8050_v17 }
 0x602   : > { %v8101_v32 = vpop.xlane.xlu0 %2372  ;;  %v2558_v13 = vpack.c.bf16 %v2503_v34, %v2502_v51  ;;  %v8111_v10 = vpop.eup %6214 }
 0x603   : > { %v8116_v42 = vpop.eup %6216 }
 0x604   : > { %5493 = vmatprep.mubr.bf16.mxu1 %v2558_v13  ;;  %2388 = vadd.xlane.f32.xlu1 %v8103_v47  ;;  %v2343_v43 = vpop.xlane.xlu1 %2342 }
 0x605   : > { %2418 = vadd.xlane.f32.xlu0 %v8105_v60  ;;  %5494 = vmatmul.mubr.bf16.vlgmr.msra.gmra.mrb[48].mxu1 %v2559_v26  ;;  %v9031_v26 = vld [vmem:[#allocation57_spill] sm:$0xff] }
 0x606   : > { %5542 = vmatpush3.bf16.msra.mxu1 %v9021_v54  ;;  %v2337_v62 = vpop.xlane.xlu0 %2336  ;;  %v9032_v54 = vld [vmem:[#allocation55_spill] sm:$0xff] }
 0x607   : > { %5543 = vmatprep.subr.bf16.mxu1 %v9022_v56  ;;  %6224 = vrcp.f32 %v2337_v62 }
 0x608   : > { %2416 = vadd.xlane.f32.xlu1 %v8111_v10 }
 0x609   : > { %v6219_v17 = vpop.eup %6218 }
 0x60a   : > { %5544 = vmatpush3.bf16.msra.mxu1 %v9022_v56  ;;  %v2349_v19 = vpop.xlane.xlu0 %2348  ;;  %v6221_v39 = vpop.eup %6220  ;;  %v2509_v0 = vmul.f32 %v6219_v17, %v9025_v22  ;;  %v9033_v56 = vld [vmem:[#allocation59_spill] sm:$0xff]  ;;  %v9036_v22 = vld [vmem:[#allocation60_spill] sm:$0xff] }
 0x60b   : > { %5545 = vmatprep.subr.bf16.mxu1 %v9023_v59  ;;  %6226 = vrcp.f32 %v2349_v19  ;;  %v6223_v5 = vpop.eup %6222  ;;  %v2506_v15 = vmul.f32 %v6221_v39, %v9026_v11  ;;  %v9034_v19 = vld [vmem:[#allocation50_spill] sm:$0xff] }
 0x60c   : > { %2420 = vadd.xlane.f32.xlu1 %v8116_v42  ;;  %6228 = vrcp.f32 %v2343_v43  ;;  %v2355_v45 = vpop.xlane.xlu1 %2354  ;;  %v2508_v61 = vmul.f32 %v6223_v5, %v9029_v41 }
 0x60d   : > { %6230 = vrcp.f32 %v2347_v38 }
 0x60e   : > { %5546 = vmatpush3.bf16.msra.mxu1 %v9023_v59  ;;  %v2345_v44 = vpop.xlane.xlu0 %2344  ;;  %v2561_v33 = vpack.c.bf16 %v2509_v0, %v2508_v61  ;;  %v9035_v59 = vld [vmem:[#allocation31_spill] sm:$0xff] }
 0x60f   : > { %5547 = vmatprep.subr.bf16.mxu1 %v9024_v24  ;;  %6232 = vrcp.f32 %v2345_v44 }
 0x611   : > { %v6225_v46 = vpop.eup %6224 }
 0x612   : > { %5548 = vmatpush3.bf16.msra.mxu1 %v9024_v24  ;;  %v2357_v3 = vpop.xlane.xlu0 %2356  ;;  %v2507_v12 = vmul.f32 %v6225_v46, %v9027_v4 }
 0x613   : > { %5549 = vmatprep.subr.bf16.mxu1 %v9028_v9  ;;  %6234 = vrcp.f32 %v2357_v3  ;;  %v9037_v3 = vld [vmem:[#allocation61_spill] sm:$0xff] }
 0x614   : > { %v2351_v30 = vpop.xlane.xlu1 %2350  ;;  %v2560_v6 = vpack.c.bf16 %v2507_v12, %v2506_v15  ;;  %v9038_v15 = vld [vmem:[#allocation62_spill] sm:$0xff] }
 0x615   : > { %6236 = vrcp.f32 %v2351_v30  ;;  %v6227_v51 = vpop.eup %6226  ;;  %v9039_v12 = vld [vmem:[#allocation58_spill] sm:$0xff] }
 0x616   : > { %6238 = vrcp.f32 %v2355_v45  ;;  %5550 = vmatpush3.bf16.msra.mxu1 %v9028_v9  ;;  %5497 = vmatprep.mubr.bf16.mxu1 %v2560_v6  ;;  %v2353_v21 = vpop.xlane.xlu0 %2352  ;;  %v6229_v34 = vpop.eup %6228  ;;  %v2513_v38 = vmul.f32 %v6227_v51, %v9031_v26  ;;  %v9041_v26 = vld [vmem:[#allocation27_spill] sm:$0xff] }
 0x617   : > { %5551 = vmatprep.subr.bf16.mxu1 %v9030_v40  ;;  %6240 = vrcp.f32 %v2353_v21  ;;  %5498 = vmatmul.mubr.bf16.gmra.mrb[52].mxu1 %v2561_v33  ;;  %v6231_v16 = vpop.eup %6230  ;;  %v2510_v62 = vmul.f32 %v6229_v34, %v9032_v54  ;;  %v9043_v54 = vld [vmem:[#allocation53_spill] sm:$0xff] }
 0x618   : > { %v2512_v17 = vmul.f32 %v6231_v16, %v9035_v59  ;;  %6242 = vrcp.f32 %v8054_v57  ;;  %v9040_v16 = vld [vmem:[#allocation26_spill] sm:$0xff] }
 0x619   : > { %v6233_v13 = vpop.eup %6232  ;;  %6244 = vrcp.f32 %v8094_v8 }
 0x61a   : > { %5552 = vmatpush3.bf16.msra.mxu1 %v9030_v40  ;;  %v2511_v43 = vmul.f32 %v6233_v13, %v9033_v56  ;;  %v2563_v39 = vpack.c.bf16 %v2513_v38, %v2512_v17  ;;  %6246 = vrcp.f32 %v8087_v35  ;;  %v9042_v38 = vld [vmem:[#allocation29_spill] sm:$0xff] }
 0x61b   : > { %5553 = vmatprep.subr.bf16.mxu1 %v9034_v19  ;;  %6248 = vrcp.f32 %v8038_v49 }
 0x61c   : > { %v2562_v44 = vpack.c.bf16 %v2511_v43, %v2510_v62  ;;  %6250 = vrcp.f32 %v8101_v32 }
 0x61d   : > { %v6235_v24 = vpop.eup %6234  ;;  %6252 = vrcp.f32 %v8065_v48 }
 0x61e   : > { %5554 = vmatpush3.bf16.msra.mxu1 %v9034_v19  ;;  %5501 = vmatprep.mubr.bf16.mxu1 %v2562_v44  ;;  %v2517_v0 = vmul.f32 %v6235_v24, %v9036_v22  ;;  %v9044_v19 = vld [vmem:[#allocation54_spill] sm:$0xff] }
 0x61f   : > { %v6237_v5 = vpop.eup %6236  ;;  %5502 = vmatmul.mubr.bf16.gmra.mrb[56].mxu1 %v2563_v39  ;;  %v9045_v44 = vld [vmem:[#allocation42_spill] sm:$0xff] }
 0x620   : > { %v6239_v45 = vpop.eup %6238  ;;  %v2514_v11 = vmul.f32 %v6237_v5, %v9037_v3 }
 0x621   : > { %v6241_v46 = vpop.eup %6240  ;;  %v2516_v9 = vmul.f32 %v6239_v45, %v9039_v12 }
 0x622   : > { %v2515_v4 = vmul.f32 %v6241_v46, %v9038_v15  ;;  %v6243_v6 = vpop.eup %6242 }
 0x623   : > { %v2565_v61 = vpack.c.bf16 %v2517_v0, %v2516_v9  ;;  %v6245_v33 = vpop.eup %6244  ;;  %v2521_v13 = vmul.f32 %v6243_v6, %v9040_v16 }
 0x624   : > { %v2564_v41 = vpack.c.bf16 %v2515_v4, %v2514_v11  ;;  %v6247_v21 = vpop.eup %6246  ;;  %v2523_v35 = vmul.f32 %v6245_v33, %v9042_v38 }
 0x625   : > { %v6249_v34 = vpop.eup %6248  ;;  %v2522_v8 = vmul.f32 %v6247_v21, %v9041_v26 }
 0x626   : > { %5505 = vmatprep.mubr.bf16.mxu1 %v2564_v41  ;;  %v2520_v49 = vmul.f32 %v6249_v34, %v9043_v54  ;;  %v6251_v48 = vpop.eup %6250 }
 0x627   : > { %5506 = vmatmul.mubr.bf16.gmra.mrb[60].mxu1 %v2565_v61  ;;  %v2568_v56 = vpack.c.bf16 %v2523_v35, %v2522_v8  ;;  %v6253_v43 = vpop.eup %6252  ;;  %v2525_v59 = vmul.f32 %v6251_v48, %v9044_v19 }
 0x628   : > { %v2567_v62 = vpack.c.bf16 %v2521_v13, %v2520_v49  ;;  %v2524_v39 = vmul.f32 %v6253_v43, %v9045_v44 }
 0x62a   : > { %v2569_v5 = vpack.c.bf16 %v2525_v59, %v2524_v39 }
 0x635   : > { %v2395_v30 = vpop.xlane.xlu1 %2394 }
 0x638   : > { %v2391_v51 = vpop.xlane.xlu0 %2390 }
 0x639   : > { %v2397_v40 = vpop.xlane.xlu1 %2396  ;;  %6254 = vrcp.f32 %v2391_v51 }
 0x63c   : > { %v1360_v57 = vpop.permute.xlu0 %1359 }
 0x63d   : > { %5523 = vmatprep.subr.bf16.mxu0 %v1360_v57 }
 0x63e   : > { %v2393_v32 = vpop.xlane.xlu1 %2392  ;;  %5524 = vmatpush3.bf16.msra.mxu0 %v1360_v57 }
 0x63f   : > { %6256 = vrcp.f32 %v2393_v32 }
 0x640   : > { %6258 = vrcp.f32 %v2397_v40 }
 0x641   : > { %5526 = vmatmul.mubr.bf16.vlgmr.msra.gmra.mrb[80].mxu0 %v2567_v62  ;;  %6260 = vrcp.f32 %v2395_v30 }
 0x642   : > { %5529 = vmatprep.mubr.bf16.mxu0 %v2568_v56 }
 0x643   : > { %v6255_v24 = vpop.eup %6254 }
 0x644   : > { %v2403_v17 = vpop.xlane.xlu1 %2402  ;;  %v2534_v22 = vmul.f32 %v6255_v24, %v7974_v55 }
 0x648   : > { %v2405_v45 = vpop.xlane.xlu1 %2404 }
 0x649   : > { %v6257_v46 = vpop.eup %6256  ;;  %5530 = vmatmul.mubr.bf16.gmra.mrb[84].mxu0 %v2569_v5  ;;  %6262 = vrcp.f32 %v2405_v45 }
 0x64a   : > { %v2535_v0 = vmul.f32 %v6257_v46, %v7986_v1  ;;  %v6259_v3 = vpop.eup %6258 }
 0x64b   : > { %v6261_v4 = vpop.eup %6260  ;;  %v2537_v12 = vmul.f32 %v6259_v3, %v7978_v2 }
 0x64c   : > { %v2401_v11 = vpop.xlane.xlu1 %2400  ;;  %v2574_v15 = vpack.c.bf16 %v2535_v0, %v2534_v22  ;;  %v2536_v41 = vmul.f32 %v6261_v4, %v7967_v18 }
 0x64d   : > { %6264 = vrcp.f32 %v2401_v11 }
 0x64e   : > { %5557 = vmatprep.mubr.bf16.mxu1 %v2574_v15  ;;  %v2575_v61 = vpack.c.bf16 %v2537_v12, %v2536_v41  ;;  %6266 = vrcp.f32 %v2403_v17 }
 0x650   : > { %v1384_v9 = vpop.permute.xlu1 %1383 }
 0x651   : > { %5555 = vmatprep.subr.bf16.mxu1 %v1384_v9 }
 0x652   : > { %5556 = vmatpush3.bf16.msra.mxu1 %v1384_v9 }
 0x653   : > { %v6263_v51 = vpop.eup %6262 }
 0x654   : > { %v2541_v16 = vmul.f32 %v6263_v51, %v8000_v27 }
 0x655   : > { %5558 = vmatmul.mubr.bf16.vlgmr.msra.gmra.mrb[64].mxu1 %v2575_v61 }
 0x657   : > { %v6265_v21 = vpop.eup %6264 }
 0x658   : > { %v6267_v34 = vpop.eup %6266  ;;  %v2539_v8 = vmul.f32 %v6265_v21, %v8003_v20 }
 0x659   : > { %v2540_v35 = vmul.f32 %v6267_v34, %v7996_v28 }
 0x65b   : > { %v2577_v62 = vpack.c.bf16 %v2541_v16, %v2540_v35 }
 0x66d   : > { %v2399_v55 = vpop.xlane.xlu0 %2398 }
 0x66e   : > { %6268 = vrcp.f32 %v2399_v55 }
 0x671   : > { %v8157_v1 = vpop.f32.mrb[64].mxu0  ;;  %v2375_v30 = vpop.xlane.xlu0 %2374 }
 0x672   : > { %v8159_v6 = vpop.f32.mrb[65].mxu0 }
 0x673   : > { %v8161_v33 = vpop.f32.mrb[66].mxu0 }
 0x674   : > { %v8163_v2 = vpop.f32.mrb[67].mxu0 }
 0x675   : > { %v2379_v18 = vpop.xlane.xlu0 %2378 }
 0x678   : > { %v6269_v40 = vpop.eup %6268 }
 0x679   : > { %v8166_v13 = vpop.f32.mrb[68].mxu0  ;;  %v2381_v57 = vpop.xlane.xlu0 %2380  ;;  %v2538_v26 = vmul.f32 %v6269_v40, %v8022_v63 }
 0x67a   : > { %v8170_v38 = vpop.f32.mrb[69].mxu0  ;;  %6270 = vrcp.f32 %v2381_v57 }
 0x67b   : > { %v8173_v54 = vpop.f32.mrb[70].mxu0  ;;  %v2576_v49 = vpack.c.bf16 %v2539_v8, %v2538_v26  ;;  %6272 = vrcp.f32 %v2375_v30 }
 0x67c   : > { %v8175_v32 = vpop.f32.mrb[71].mxu0  ;;  %6274 = vrcp.f32 %v2379_v18 }
 0x67d   : > { %5561 = vmatprep.mubr.bf16.mxu1 %v2576_v49  ;;  %v2407_v48 = vpop.xlane.xlu0 %2406 }
 0x67e   : > { %5562 = vmatmul.mubr.bf16.gmra.mrb[68].mxu1 %v2577_v62 }
 0x681   : > { %v8177_v27 = vpop.f32.mrb[72].mxu0  ;;  %v2377_v63 = vpop.xlane.xlu1 %2376 }
 0x682   : > { %6276 = vrcp.f32 %v2377_v63  ;;  %v2411_v20 = vpop.xlane.xlu0 %2410  ;;  %v8179_v56 = vpop.f32.mrb[73].mxu0 }
 0x683   : > { %v8181_v28 = vpop.f32.mrb[74].mxu0  ;;  %6278 = vrcp.f32 %v2407_v48 }
 0x684   : > { %v8183_v43 = vpop.f32.mrb[75].mxu0  ;;  %v6271_v17 = vpop.eup %6270 }
 0x685   : > { %v2409_v19 = vpop.xlane.xlu1 %2408  ;;  %v6273_v39 = vpop.eup %6272  ;;  %v2529_v3 = vmul.f32 %v6271_v17, %v8047_v25 }
 0x686   : > { %6280 = vrcp.f32 %v2409_v19  ;;  %v2383_v59 = vpop.xlane.xlu0 %2382  ;;  %v6275_v45 = vpop.eup %6274  ;;  %v2526_v4 = vmul.f32 %v6273_v39, %v8030_v58 }
 0x687   : > { %6282 = vrcp.f32 %v2411_v20  ;;  %v2528_v41 = vmul.f32 %v6275_v45, %v8040_v53 }
 0x689   : > { %v2413_v44 = vpop.xlane.xlu1 %2412  ;;  %v2571_v51 = vpack.c.bf16 %v2529_v3, %v2528_v41 }
 0x68a   : > { %v8185_v24 = vpop.f32.mrb[76].mxu0  ;;  %6284 = vrcp.f32 %v2413_v44  ;;  %v2387_v5 = vpop.xlane.xlu0 %2386 }
 0x68b   : > { %v8187_v46 = vpop.f32.mrb[77].mxu0  ;;  %6286 = vrcp.f32 %v2383_v59 }
 0x68c   : > { %v6277_v22 = vpop.eup %6276  ;;  %v8189_v0 = vpop.f32.mrb[78].mxu0 }
 0x68d   : > { %v8192_v11 = vpop.f32.mrb[79].mxu0  ;;  %v2385_v15 = vpop.xlane.xlu1 %2384  ;;  %v2527_v12 = vmul.f32 %v6277_v22, %v8057_v29 }
 0x68e   : > { %v6279_v9 = vpop.eup %6278  ;;  %6288 = vrcp.f32 %v2385_v15  ;;  %v2415_v61 = vpop.xlane.xlu0 %2414 }
 0x68f   : > { %v2570_v55 = vpack.c.bf16 %v2527_v12, %v2526_v4  ;;  %6290 = vrcp.f32 %v2387_v5  ;;  %v2542_v25 = vmul.f32 %v6279_v9, %v8052_v52 }
 0x690   : > { %v6281_v30 = vpop.eup %6280 }
 0x691   : > { %v2389_v18 = vpop.xlane.xlu1 %2388  ;;  %5533 = vmatprep.mubr.bf16.mxu0 %v2570_v55  ;;  %v2543_v21 = vmul.f32 %v6281_v30, %v8075_v23  ;;  %v6283_v34 = vpop.eup %6282 }
 0x692   : > { %6292 = vrcp.f32 %v2389_v18  ;;  %5534 = vmatmul.mubr.bf16.gmra.mrb[88].mxu0 %v2571_v51  ;;  %v2419_v40 = vpop.xlane.xlu0 %2418  ;;  %v2544_v53 = vmul.f32 %v6283_v34, %v8061_v14 }
 0x693   : > { %v2578_v58 = vpack.c.bf16 %v2543_v21, %v2542_v25  ;;  %6294 = vrcp.f32 %v2415_v61 }
 0x694   : > { %v6285_v29 = vpop.eup %6284 }
 0x695   : > { %v2417_v16 = vpop.xlane.xlu1 %2416  ;;  %5565 = vmatprep.mubr.bf16.mxu1 %v2578_v58  ;;  %v2545_v57 = vmul.f32 %v6285_v29, %v8085_v31  ;;  %v6287_v26 = vpop.eup %6286 }
 0x696   : > { %6296 = vrcp.f32 %v2417_v16  ;;  %v2530_v23 = vmul.f32 %v6287_v26, %v8071_v50  ;;  %v5927_v26 = vld [vmem:[#allocation10 + $0x8] sm:$0xff]  }
 0x697   : > { %v2579_v8 = vpack.c.bf16 %v2545_v57, %v2544_v53  ;;  %6298 = vrcp.f32 %v2419_v40  ;;  %v5926_v57 = vld [vmem:[#allocation10] sm:$0xff]  }
 0x698   : > { %v6289_v35 = vpop.eup %6288  ;;  %5573 = vmatprep.subr.bf16.mxu0 %v5926_v57 }
 0x699   : > { %v2421_v52 = vpop.xlane.xlu1 %2420  ;;  %5566 = vmatmul.mubr.bf16.gmra.mrb[72].mxu1 %v2579_v8  ;;  %v2531_v49 = vmul.f32 %v6289_v35, %v8081_v7  ;;  %v6291_v62 = vpop.eup %6290  ;;  %5574 = vmatpush3.bf16.msra.mxu0 %v5926_v57  ;;  %v5928_v8 = vld [vmem:[#allocation10 + $0x10] sm:$0xff]   ;;  %v5929_v35 = vld [vmem:[#allocation10 + $0x18] sm:$0xff]  }
 0x69a   : > { %6300 = vrcp.f32 %v2421_v52  ;;  %v2532_v14 = vmul.f32 %v6291_v62, %v8077_v37  ;;  %v9046_v37 = vmov 0   ;;  %5575 = vmatprep.subr.bf16.mxu0 %v5927_v26  ;;  %v5930_v52 = vld [vmem:[#allocation10 + $0x20] sm:$0xff]  }
 0x69b   : > { %v2572_v48 = vpack.c.bf16 %v2531_v49, %v2530_v23 }
 0x69c   : > { %v6293_v63 = vpop.eup %6292 }
 0x69d   : > { %5537 = vmatprep.mubr.bf16.mxu0 %v2572_v48  ;;  %v2533_v31 = vmul.f32 %v6293_v63, %v8103_v47  ;;  %v6295_v20 = vpop.eup %6294  ;;  %5576 = vmatpush3.bf16.msra.mxu0 %v5927_v26  ;;  %v5931_v48 = vld [vmem:[#allocation10 + $0x28] sm:$0xff]  }
 0x69e   : > { %v2546_v17 = vmul.f32 %v6295_v20, %v8089_v36  ;;  %5577 = vmatprep.subr.bf16.mxu0 %v5928_v8  ;;  %v5932_v20 = vld [vmem:[#allocation10 + $0x30] sm:$0xff]  }
 0x69f   : > { %v2573_v19 = vpack.c.bf16 %v2533_v31, %v2532_v14 }
 0x6a0   : > { %v6297_v59 = vpop.eup %6296 }
 0x6a1   : > { %5538 = vmatmul.mubr.bf16.gmra.mrb[92].mxu0 %v2573_v19  ;;  %v2547_v44 = vmul.f32 %v6297_v59, %v8111_v10  ;;  %v6299_v50 = vpop.eup %6298 }
 0x6a2   : > { %v2548_v5 = vmul.f32 %v6299_v50, %v8105_v60  ;;  %5578 = vmatpush3.bf16.msra.mxu0 %v5928_v8 }
 0x6a3   : > { %v2580_v39 = vpack.c.bf16 %v2547_v44, %v2546_v17  ;;  %5579 = vmatprep.subr.bf16.mxu0 %v5929_v35 }
 0x6a4   : > { %v6301_v7 = vpop.eup %6300 }
 0x6a5   : > { %5569 = vmatprep.mubr.bf16.mxu1 %v2580_v39  ;;  %v2549_v45 = vmul.f32 %v6301_v7, %v8116_v42  ;;  %v5933_v7 = vld [vmem:[#allocation10 + $0x38] sm:$0xff]  }
 0x6a6   : > { %5580 = vmatpush3.bf16.msra.mxu0 %v5929_v35 }
 0x6a7   : > { %v2581_v22 = vpack.c.bf16 %v2549_v45, %v2548_v5  ;;  %5581 = vmatprep.subr.bf16.mxu0 %v5930_v52 }
 0x6a9   : > { %5570 = vmatmul.mubr.bf16.gmra.mrb[76].mxu1 %v2581_v22 }
 0x6aa   : > { %3896 = vmatprep.mubr.bf16.mxu1 %v9046_v37  ;;  %5582 = vmatpush3.bf16.msra.mxu0 %v5930_v52 }
 0x6ab   : > { %5583 = vmatprep.subr.bf16.mxu0 %v5931_v48 }
 0x6ae   : > { %5584 = vmatpush3.bf16.msra.mxu0 %v5931_v48 }
 0x6af   : > { %5585 = vmatprep.subr.bf16.mxu0 %v5932_v20 }
 0x6b2   : > { %5586 = vmatpush3.bf16.msra.mxu0 %v5932_v20 }
 0x6b3   : > { %5587 = vmatprep.subr.bf16.mxu0 %v5933_v7 }
 0x6b6   : > { %5588 = vmatpush3.bf16.msra.mxu0 %v5933_v7 }
 0x6d8   : > { %v5495_v47 = vpop.f32.mrb[48].mxu1 }
 0x6d9   : > { %v2713_v3 = vpop.f32.mrb[49].mxu1 }
 0x6da   : > { %v5496_v15 = vpop.f32.mrb[50].mxu1 }
 0x6db   : > { %v5774_v4 = vpack.i.bf16 %v5496_v15, %v5495_v47  ;;  %v2716_v12 = vpop.f32.mrb[51].mxu1 }
 0x6dc   : > { %v5784_v36 = vpack.i.bf16 %v2716_v12, %v2713_v3 }
 0x6dd   : > { %5775 = vrot.lane.b32.xlu1 %v5774_v4, %s6646_s22 }
 0x6de   : > { %5785 = vrot.lane.b32.xlu0 %v5784_v36, %s6646_s22 }
 0x6ea   : > { %v8212_v10 = vpop.f32.mrb[52].mxu1 }
 0x6eb   : > { %v8214_v9 = vpop.f32.mrb[53].mxu1 }
 0x6ec   : > { %v5500_v60 = vpop.f32.mrb[54].mxu1 }
 0x6ed   : > { %v5809_v42 = vpack.i.bf16 %v5500_v60, %v8212_v10  ;;  %v2732_v41 = vpop.f32.mrb[55].mxu1 }
 0x6ee   : > { %v5804_v61 = vpack.i.bf16 %v2732_v41, %v8214_v9 }
 0x6f2   : > { %v8218_v55 = vpop.f32.mrb[56].mxu1 }
 0x6f3   : > { %v8220_v30 = vpop.f32.mrb[57].mxu1 }
 0x6f4   : > { %v8222_v51 = vpop.f32.mrb[58].mxu1 }
 0x6f5   : > { %v5839_v18 = vpack.i.bf16 %v8222_v51, %v8218_v55  ;;  %v8226_v25 = vpop.f32.mrb[59].mxu1 }
 0x6f6   : > { %v5834_v21 = vpack.i.bf16 %v8226_v25, %v8220_v30 }
 0x6fa   : > { %v8230_v34 = vpop.f32.mrb[60].mxu1 }
 0x6fb   : > { %v8232_v58 = vpop.f32.mrb[61].mxu1 }
 0x6fc   : > { %v8234_v29 = vpop.f32.mrb[62].mxu1 }
 0x6fd   : > { %v5869_v40 = vpack.i.bf16 %v8234_v29, %v8230_v34  ;;  %v8238_v16 = vpop.f32.mrb[63].mxu1 }
 0x6fe   : > { %v5864_v53 = vpack.i.bf16 %v8238_v16, %v8232_v58 }
 0x714   : > { %v5527_v23 = vpop.f32.mrb[80].mxu0 }
 0x715   : > { %v2810_v49 = vpop.f32.mrb[81].mxu0 }
 0x716   : > { %v5528_v62 = vpop.f32.mrb[82].mxu0 }
 0x717   : > { %v5779_v63 = vpack.i.bf16 %v5528_v62, %v5527_v23  ;;  %v2813_v14 = vpop.f32.mrb[83].mxu0 }
 0x718   : > { %v5789_v31 = vpack.i.bf16 %v2813_v14, %v2810_v49 }
 0x719   : > { %5780 = vrot.lane.b32.xlu1 %v5779_v63, %s6645_s21 }
 0x71c   : > { %v5531_v19 = vpop.f32.mrb[84].mxu0 }
 0x71d   : > { %5790 = vrot.lane.b32.xlu1 %v5789_v31, %s6645_s21  ;;  %v2826_v59 = vpop.f32.mrb[85].mxu0 }
 0x71e   : > { %v5532_v17 = vpop.f32.mrb[86].mxu0 }
 0x71f   : > { %v5819_v44 = vpack.i.bf16 %v5532_v17, %v5531_v19  ;;  %v2829_v50 = vpop.f32.mrb[87].mxu0 }
 0x720   : > { %v5814_v39 = vpack.i.bf16 %v2829_v50, %v2826_v59 }
 0x728   : > { %v5559_v5 = vpop.f32.mrb[64].mxu1 }
 0x729   : > { %v2907_v45 = vpop.f32.mrb[65].mxu1 }
 0x72a   : > { %v5560_v22 = vpop.f32.mrb[66].mxu1 }
 0x72b   : > { %v5799_v47 = vpack.i.bf16 %v5560_v22, %v5559_v5  ;;  %v2910_v3 = vpop.f32.mrb[67].mxu1 }
 0x72c   : > { %v5794_v15 = vpack.i.bf16 %v2910_v3, %v2907_v45 }
 0x72d   : > { %5800 = vrot.lane.b32.xlu1 %v5799_v47, %s6644_s29 }
 0x72e   : > { %5795 = vrot.lane.b32.xlu0 %v5794_v15, %s6644_s29 }
 0x731   : > { %5810 = vrot.lane.b32.xlu1 %v5809_v42, %s6646_s22 }
 0x732   : > { %5805 = vrot.lane.b32.xlu0 %v5804_v61, %s6646_s22 }
 0x735   : > { %5820 = vrot.lane.b32.xlu1 %v5819_v44, %s6645_s21 }
 0x736   : > { %5815 = vrot.lane.b32.xlu0 %v5814_v39, %s6645_s21 }
 0x74f   : > { %v5776_v58 = vpop.permute.xlu1 %5775 }
 0x750   : > { %v5786_v16 = vpop.permute.xlu0 %5785  ;;  %v5777_v19 = vunpack.i.l.bf16 %v5776_v58 }
 0x751   : > { %v5563_v4 = vpop.f32.mrb[68].mxu1  ;;  %v5788_v17 = vunpack.i.h.bf16 %v5786_v16  ;;  %v5787_v44 = vunpack.i.l.bf16 %v5786_v16 }
 0x752   : > { %v2923_v12 = vpop.f32.mrb[69].mxu1  ;;  %v3164_v22 = vsel %vm1393_vm0, %v8157_v1, %v5777_v19 }
 0x753   : > { %v5564_v36 = vpop.f32.mrb[70].mxu1  ;;  %v3163_v3 = vsel %vm1393_vm0, %v8163_v2, %v5788_v17  ;;  %v3162_v15 = vsel %vm1393_vm0, %v8159_v6, %v5787_v44 }
 0x754   : > { %v5829_v10 = vpack.i.bf16 %v5564_v36, %v5563_v4  ;;  %v2926_v9 = vpop.f32.mrb[71].mxu1 }
 0x755   : > { %v5824_v60 = vpack.i.bf16 %v2926_v9, %v2923_v12 }
 0x756   : > { %5830 = vrot.lane.b32.xlu1 %v5829_v10, %s6644_s29 }
 0x757   : > { %5825 = vrot.lane.b32.xlu0 %v5824_v60, %s6644_s29 }
 0x75a   : > { %5840 = vrot.lane.b32.xlu1 %v5839_v18, %s6646_s22 }
 0x75b   : > { %5835 = vrot.lane.b32.xlu0 %v5834_v21, %s6646_s22 }
 0x765   : > { %v5535_v42 = vpop.f32.mrb[88].mxu0 }
 0x766   : > { %v2842_v41 = vpop.f32.mrb[89].mxu0 }
 0x767   : > { %v5536_v61 = vpop.f32.mrb[90].mxu0 }
 0x768   : > { %v5849_v57 = vpack.i.bf16 %v5536_v61, %v5535_v42  ;;  %v2845_v26 = vpop.f32.mrb[91].mxu0 }
 0x769   : > { %v5844_v8 = vpack.i.bf16 %v2845_v26, %v2842_v41 }
 0x76a   : > { %5850 = vrot.lane.b32.xlu1 %v5849_v57, %s6645_s21 }
 0x76b   : > { %5845 = vrot.lane.b32.xlu0 %v5844_v8, %s6645_s21 }
 0x76c   : > { %v5567_v35 = vpop.f32.mrb[72].mxu1 }
 0x76d   : > { %v2939_v52 = vpop.f32.mrb[73].mxu1 }
 0x76e   : > { %v5568_v23 = vpop.f32.mrb[74].mxu1 }
 0x76f   : > { %v5859_v55 = vpack.i.bf16 %v5568_v23, %v5567_v35  ;;  %v2942_v51 = vpop.f32.mrb[75].mxu1 }
 0x770   : > { %v5854_v18 = vpack.i.bf16 %v2942_v51, %v2939_v52 }
 0x771   : > { %5860 = vrot.lane.b32.xlu1 %v5859_v55, %s6644_s29 }
 0x772   : > { %5855 = vrot.lane.b32.xlu0 %v5854_v18, %s6644_s29 }
 0x774   : > { %v5539_v30 = vpop.f32.mrb[92].mxu0 }
 0x775   : > { %5870 = vrot.lane.b32.xlu1 %v5869_v40, %s6646_s22  ;;  %v2858_v25 = vpop.f32.mrb[93].mxu0 }
 0x776   : > { %5865 = vrot.lane.b32.xlu0 %v5864_v53, %s6646_s22  ;;  %v5540_v21 = vpop.f32.mrb[94].mxu0  ;;  %v5778_v53 = vunpack.i.h.bf16 %v5776_v58 }
 0x777   : > { %v5879_v49 = vpack.i.bf16 %v5540_v21, %v5539_v30  ;;  %v2861_v62 = vpop.f32.mrb[95].mxu0 }
 0x778   : > { %v5874_v48 = vpack.i.bf16 %v2861_v62, %v2858_v25  ;;  %v3165_v45 = vsel %vm1393_vm0, %v8161_v33, %v5778_v53 }
 0x779   : > { %5880 = vrot.lane.b32.xlu1 %v5879_v49, %s6645_s21 }
 0x77a   : > { %5875 = vrot.lane.b32.xlu0 %v5874_v48, %s6645_s21 }
 0x77c   : > { %v5571_v63 = vpop.f32.mrb[76].mxu1 }
 0x77d   : > { %v2955_v14 = vpop.f32.mrb[77].mxu1 }
 0x77e   : > { %v5572_v31 = vpop.f32.mrb[78].mxu1 }
 0x77f   : > { %v5889_v20 = vpack.i.bf16 %v5572_v31, %v5571_v63  ;;  %v2958_v34 = vpop.f32.mrb[79].mxu1 }
 0x780   : > { %v5884_v29 = vpack.i.bf16 %v2958_v34, %v2955_v14 }
 0x781   : > { %5890 = vrot.lane.b32.xlu1 %v5889_v20, %s6644_s29 }
 0x782   : > { %5885 = vrot.lane.b32.xlu0 %v5884_v29, %s6644_s29  ;;  %s9049_s29 = sld [smem:[#allocation67_spill]] }
 0x78b   : > { %v5781_v40 = vpop.permute.xlu1 %5780 }
 0x78c   : > { %v5783_v50 = vunpack.i.h.bf16 %v5781_v40  ;;  %v5782_v39 = vunpack.i.l.bf16 %v5781_v40 }
 0x78e   : > { %v3182_v10 = vsel %vm3178_vm1, %v3165_v45, %v5783_v50  ;;  %v3181_v9 = vsel %vm3178_vm1, %v3164_v22, %v5782_v39 }
 0x78f   : > { %v5791_v59 = vpop.permute.xlu1 %5790 }
 0x790   : > { %v5793_v7 = vunpack.i.h.bf16 %v5791_v59  ;;  %v5792_v5 = vunpack.i.l.bf16 %v5791_v59 }
 0x792   : > { %v3179_v42 = vsel %vm3178_vm1, %v3162_v15, %v5792_v5  ;;  %v3180_v1 = vsel %vm3178_vm1, %v3163_v3, %v5793_v7 }
 0x79f   : > { %v5801_v47 = vpop.permute.xlu1 %5800 }
 0x7a0   : > { %v5803_v4 = vunpack.i.h.bf16 %v5801_v47  ;;  %v5802_v12 = vunpack.i.l.bf16 %v5801_v47  ;;  %v5796_v36 = vpop.permute.xlu0 %5795 }
 0x7a1   : > { %v5798_v60 = vunpack.i.h.bf16 %v5796_v36  ;;  %v5797_v33 = vunpack.i.l.bf16 %v5796_v36 }
 0x7a2   : > { %v3199_v41 = vsel %vm3195_vm2, %v3182_v10, %v5803_v4  ;;  %v3198_v2 = vsel %vm3195_vm2, %v3181_v9, %v5802_v12 }
 0x7a3   : > { %v3213_v61 = vpack.c.bf16 %v3199_v41, %v3198_v2  ;;  %v3196_v6 = vsel %vm3195_vm2, %v3179_v42, %v5797_v33  ;;  %v3197_v57 = vsel %vm3195_vm2, %v3180_v1, %v5798_v60  ;;  %v5811_v8 = vpop.permute.xlu1 %5810 }
 0x7a4   : > { %v3212_v26 = vpack.c.bf16 %v3197_v57, %v3196_v6  ;;  %v5806_v35 = vpop.permute.xlu0 %5805  ;;  %v5813_v23 = vunpack.i.h.bf16 %v5811_v8  ;;  %v5812_v55 = vunpack.i.l.bf16 %v5811_v8 }
 0x7a5   : > { %v5808_v18 = vunpack.i.h.bf16 %v5806_v35  ;;  %v5807_v30 = vunpack.i.l.bf16 %v5806_v35 }
 0x7a6   : > { %5589 = vmatprep.mubr.bf16.mxu0 %v3212_v26  ;;  %v3169_v48 = vsel %vm1393_vm0, %v8173_v54, %v5813_v23  ;;  %v3168_v63 = vsel %vm1393_vm0, %v8166_v13, %v5812_v55 }
 0x7a7   : > { %5590 = vmatmul.mubr.bf16.vlgmr.msra.gmra.mrb[96].mxu0 %v3213_v61  ;;  %v5821_v52 = vpop.permute.xlu1 %5820  ;;  %v3167_v31 = vsel %vm1393_vm0, %v8175_v32, %v5808_v18  ;;  %v3166_v20 = vsel %vm1393_vm0, %v8170_v38, %v5807_v30 }
 0x7a8   : > { %v5816_v51 = vpop.permute.xlu0 %5815  ;;  %v5823_v25 = vunpack.i.h.bf16 %v5821_v52  ;;  %v5822_v21 = vunpack.i.l.bf16 %v5821_v52 }
 0x7a9   : > { %v5818_v49 = vunpack.i.h.bf16 %v5816_v51  ;;  %v5817_v62 = vunpack.i.l.bf16 %v5816_v51 }
 0x7aa   : > { %v3186_v40 = vsel %vm3178_vm1, %v3169_v48, %v5823_v25  ;;  %v3185_v16 = vsel %vm3178_vm1, %v3168_v63, %v5822_v21 }
 0x7ab   : > { %v3183_v54 = vsel %vm3178_vm1, %v3166_v20, %v5817_v62  ;;  %v3184_v13 = vsel %vm3178_vm1, %v3167_v31, %v5818_v49 }
 0x7c8   : > { %v5831_v14 = vpop.permute.xlu1 %5830 }
 0x7c9   : > { %v5833_v34 = vunpack.i.h.bf16 %v5831_v14  ;;  %v5832_v29 = vunpack.i.l.bf16 %v5831_v14  ;;  %v5826_v58 = vpop.permute.xlu0 %5825 }
 0x7ca   : > { %v5828_v53 = vunpack.i.h.bf16 %v5826_v58  ;;  %v5827_v19 = vunpack.i.l.bf16 %v5826_v58 }
 0x7cb   : > { %v3202_v59 = vsel %vm3195_vm2, %v3185_v16, %v5832_v29  ;;  %v3203_v32 = vsel %vm3195_vm2, %v3186_v40, %v5833_v34 }
 0x7cc   : > { %v3200_v17 = vsel %vm3195_vm2, %v3183_v54, %v5827_v19  ;;  %v3201_v38 = vsel %vm3195_vm2, %v3184_v13, %v5828_v53  ;;  %v3215_v44 = vpack.c.bf16 %v3203_v32, %v3202_v59  ;;  %v5841_v39 = vpop.permute.xlu1 %5840 }
 0x7cd   : > { %v3214_v50 = vpack.c.bf16 %v3201_v38, %v3200_v17  ;;  %v5836_v7 = vpop.permute.xlu0 %5835  ;;  %v5843_v45 = vunpack.i.h.bf16 %v5841_v39  ;;  %v5842_v22 = vunpack.i.l.bf16 %v5841_v39 }
 0x7ce   : > { %v5838_v3 = vunpack.i.h.bf16 %v5836_v7  ;;  %v5837_v15 = vunpack.i.l.bf16 %v5836_v7 }
 0x7cf   : > { %5593 = vmatprep.mubr.bf16.mxu0 %v3214_v50  ;;  %v3173_v9 = vsel %vm1393_vm0, %v8181_v28, %v5843_v45  ;;  %v3172_v60 = vsel %vm1393_vm0, %v8177_v27, %v5842_v22  ;;  %v6334_v22 = vld [vmem:[%s6982_s30] sm:$0xff] }
 0x7d0   : > { %5594 = vmatmul.mubr.bf16.gmra.mrb[100].mxu0 %v3215_v44  ;;  %v3171_v42 = vsel %vm1393_vm0, %v8183_v43, %v5838_v3  ;;  %v3170_v1 = vsel %vm1393_vm0, %v8179_v56, %v5837_v15 }
 0x7dc   : > { %v5851_v5 = vpop.permute.xlu1 %5850 }
 0x7dd   : > { %v5846_v47 = vpop.permute.xlu0 %5845  ;;  %v5853_v4 = vunpack.i.h.bf16 %v5851_v5  ;;  %v5852_v12 = vunpack.i.l.bf16 %v5851_v5  ;;  %v8344_v5 = vld [vmem:[%s8838_s6] ss:$0 sm:$0xff] }
 0x7de   : > { %v5848_v36 = vunpack.i.h.bf16 %v5846_v47  ;;  %v5847_v10 = vunpack.i.l.bf16 %v5846_v47 }
 0x7df   : > { %v3190_v6 = vsel %vm3178_vm1, %v3173_v9, %v5853_v4  ;;  %v3189_v57 = vsel %vm3178_vm1, %v3172_v60, %v5852_v12  ;;  %v6335_v4 = vld [vmem:[%s6982_s30 + $0x10] sm:$0xff] }
 0x7e0   : > { %v3187_v28 = vsel %vm3178_vm1, %v3170_v1, %v5847_v10  ;;  %v3188_v27 = vsel %vm3178_vm1, %v3171_v42, %v5848_v36  ;;  %v6336_v10 = vld [vmem:[%s6982_s30 + $0x8] sm:$0xff]  ;;  %v6337_v42 = vld [vmem:[%s6982_s30 + $0x18] sm:$0xff] }
 0x7e3   : > { %v5861_v33 = vpop.permute.xlu1 %5860 }
 0x7e4   : > { %v5863_v41 = vunpack.i.h.bf16 %v5861_v33  ;;  %v5862_v2 = vunpack.i.l.bf16 %v5861_v33  ;;  %v5856_v61 = vpop.permute.xlu0 %5855 }
 0x7e5   : > { %v5858_v26 = vunpack.i.h.bf16 %v5856_v61  ;;  %v5857_v8 = vunpack.i.l.bf16 %v5856_v61 }
 0x7e6   : > { %v3206_v35 = vsel %vm3195_vm2, %v3189_v57, %v5862_v2  ;;  %v3207_v43 = vsel %vm3195_vm2, %v3190_v6, %v5863_v41  ;;  %v6338_v6 = vld [vmem:[%s6982_s30 + $0x20] sm:$0xff] }
 0x7e7   : > { %v3204_v52 = vsel %vm3195_vm2, %v3187_v28, %v5857_v8  ;;  %v3205_v56 = vsel %vm3195_vm2, %v3188_v27, %v5858_v26  ;;  %v3217_v23 = vpack.c.bf16 %v3207_v43, %v3206_v35  ;;  %v5871_v55 = vpop.permute.xlu1 %5870  ;;  %v6339_v28 = vld [vmem:[%s6982_s30 + $0x30] sm:$0xff]  ;;  %v6340_v43 = vld [vmem:[%s6982_s30 + $0x28] sm:$0xff] }
 0x7e8   : > { %v3216_v51 = vpack.c.bf16 %v3205_v56, %v3204_v52  ;;  %v5866_v18 = vpop.permute.xlu0 %5865  ;;  %v5873_v25 = vunpack.i.h.bf16 %v5871_v55  ;;  %v5872_v21 = vunpack.i.l.bf16 %v5871_v55  ;;  %v6341_v56 = vld [vmem:[%s6982_s30 + $0x38] sm:$0xff] }
 0x7e9   : > { %v5868_v62 = vunpack.i.h.bf16 %v5866_v18  ;;  %v5867_v48 = vunpack.i.l.bf16 %v5866_v18 }
 0x7ea   : > { %5597 = vmatprep.mubr.bf16.mxu0 %v3216_v51  ;;  %v3177_v34 = vsel %vm1393_vm0, %v8189_v0, %v5873_v25  ;;  %v3176_v29 = vsel %vm1393_vm0, %v8185_v24, %v5872_v21  ;;  %v6342_v21 = vld [vmem:[%s6982_s30 + $0x40] sm:$0xff] }
 0x7eb   : > { %5598 = vmatmul.mubr.bf16.gmra.mrb[104].mxu0 %v3217_v23  ;;  %v5881_v30 = vpop.permute.xlu1 %5880  ;;  %v3175_v40 = vsel %vm1393_vm0, %v8192_v11, %v5868_v62  ;;  %v3174_v16 = vsel %vm1393_vm0, %v8187_v46, %v5867_v48 }
 0x7ec   : > { %v5876_v49 = vpop.permute.xlu0 %5875  ;;  %v5883_v63 = vunpack.i.h.bf16 %v5881_v30  ;;  %v5882_v14 = vunpack.i.l.bf16 %v5881_v30 }
 0x7ed   : > { %v5878_v31 = vunpack.i.h.bf16 %v5876_v49  ;;  %v5877_v20 = vunpack.i.l.bf16 %v5876_v49 }
 0x7ee   : > { %v3194_v13 = vsel %vm3178_vm1, %v3177_v34, %v5883_v63  ;;  %v3193_v59 = vsel %vm3178_vm1, %v3176_v29, %v5882_v14  ;;  %v6343_v63 = vld [vmem:[%s6982_s30 + $0x50] sm:$0xff]  ;;  %v6345_v29 = vld [vmem:[%s6982_s30 + $0x58] sm:$0xff] }
 0x7ef   : > { %v3191_v17 = vsel %vm3178_vm1, %v3174_v16, %v5877_v20  ;;  %v3192_v24 = vsel %vm3178_vm1, %v3175_v40, %v5878_v31  ;;  %v6344_v20 = vld [vmem:[%s6982_s30 + $0x48] sm:$0xff] }
 0x7f3   : > { %v5891_v58 = vpop.permute.xlu1 %5890 }
 0x7f4   : > { %v5893_v53 = vunpack.i.h.bf16 %v5891_v58  ;;  %v5892_v19 = vunpack.i.l.bf16 %v5891_v58  ;;  %v5886_v54 = vpop.permute.xlu0 %5885 }
 0x7f5   : > { %v5888_v32 = vunpack.i.h.bf16 %v5886_v54  ;;  %v5887_v0 = vunpack.i.l.bf16 %v5886_v54 }
 0x7f6   : > { %v3210_v38 = vsel %vm3195_vm2, %v3193_v59, %v5892_v19  ;;  %v3211_v11 = vsel %vm3195_vm2, %v3194_v13, %v5893_v53  ;;  %v6346_v13 = vld [vmem:[%s6982_s30 + $0x60] sm:$0xff] }
 0x7f7   : > { %v3208_v46 = vsel %vm3195_vm2, %v3191_v17, %v5887_v0  ;;  %v3209_v44 = vsel %vm3195_vm2, %v3192_v24, %v5888_v32  ;;  %v3219_v50 = vpack.c.bf16 %v3211_v11, %v3210_v38  ;;  %v6347_v17 = vld [vmem:[%s6982_s30 + $0x70] sm:$0xff]  ;;  %v6348_v11 = vld [vmem:[%s6982_s30 + $0x68] sm:$0xff] }
 0x7f8   : > { %v3218_v39 = vpack.c.bf16 %v3209_v44, %v3208_v46  ;;  %v6349_v44 = vld [vmem:[%s6982_s30 + $0x78] sm:$0xff]  ;;  %s9048_s30 = sld [smem:[#allocation66_spill]] }
 0x7fa   : > { %5601 = vmatprep.mubr.bf16.mxu0 %v3218_v39 }
 0x7fb   : > { %5602 = vmatmul.mubr.bf16.gmra.mrb[108].mxu0 %v3219_v50 }
 0x7fc   : > { %4009 = vmatprep.mubr.bf16.mxu0 %v9046_v37 }
 0x87a   : > { %v5591_v7 = vpop.f32.mrb[96].mxu0 }
 0x87b   : > { %v3318_v45 = vpop.f32.mrb[97].mxu0  ;;  %v3383_v12 = vadd.f32 %v6335_v4, %v5591_v7  ;;  %v5942_v4 = vld [vmem:[#allocation11 + $0x24] ss:$16 sps:$4 sm:$0xff]  }
 0x87c   : > { %v3381_v47 = vadd.f32 %v6334_v22, %v3318_v45  ;;  %v5592_v3 = vpop.f32.mrb[98].mxu0  ;;  %v5934_v22 = vld [vmem:[#allocation11] ss:$16 sps:$4 sm:$0xff]  }
 0x87d   : > { %v3321_v15 = vpop.f32.mrb[99].mxu0  ;;  %v8357_v33 = vadd.f32 %v8344_v5, %v3383_v12  ;;  %v3384_v1 = vadd.f32 %v6337_v42, %v5592_v3  ;;  %v5937_v3 = vld [vmem:[#allocation11 + $0x8] ss:$16 sps:$4 sm:$0xff]   ;;  %v5945_v12 = vld [vmem:[#allocation11 + $0x2c] ss:$16 sps:$4 sm:$0xff]  }
 0x87e   : > { %v8349_v36 = vadd.f32 %v8344_v5, %v3381_v47  ;;  %v3382_v9 = vadd.f32 %v6336_v10, %v3321_v15  ;;  %v5936_v47 = vld [vmem:[#allocation11 + $0x4] ss:$16 sps:$4 sm:$0xff]   ;;  %v5939_v15 = vld [vmem:[#allocation11 + $0xc] ss:$16 sps:$4 sm:$0xff]   ;;  %v5940_v10 = vld [vmem:[#allocation11 + $0x20] ss:$16 sps:$4 sm:$0xff]  }
 0x87f   : > { %v8363_v41 = vadd.f32 %v8344_v5, %v3384_v1  ;;  %3864 = vmatprep.subr.bf16.mxu1 %v5936_v47  ;;  %3977 = vmatprep.subr.bf16.mxu0 %v5939_v15  ;;  %v5981_v47 = vld [vmem:[#allocation11 + $0xec] ss:$16 sps:$4 sm:$0xff]  }
 0x880   : > { %v8353_v60 = vadd.f32 %v8344_v5, %v3382_v9  ;;  %3422 = vadd.xlane.f32.xlu0 %v8349_v36  ;;  %3865 = vmatpush1.bf16.msra.mxu1 %v5934_v22  ;;  %v5943_v9 = vld [vmem:[#allocation11 + $0x28] ss:$16 sps:$4 sm:$0xff]  }
 0x881   : > { %3978 = vmatpush1.bf16.msra.mxu0 %v5937_v3  ;;  %3866 = vmatprep.subr.bf16.mxu1 %v5942_v4  ;;  %v5979_v22 = vld [vmem:[#allocation11 + $0xe8] ss:$16 sps:$4 sm:$0xff]  }
 0x882   : > { %3424 = vadd.xlane.f32.xlu1 %v8353_v60  ;;  %3979 = vmatprep.subr.bf16.mxu0 %v5945_v12 }
 0x884   : > { %3426 = vadd.xlane.f32.xlu0 %v8357_v33  ;;  %3867 = vmatpush1.bf16.msra.mxu1 %v5940_v10 }
 0x885   : > { %3980 = vmatpush1.bf16.msra.mxu0 %v5943_v9 }
 0x888   : > { %3428 = vadd.xlane.f32.xlu0 %v8363_v41 }
 0x8a3   : > { %v5595_v2 = vpop.f32.mrb[100].mxu0 }
 0x8a4   : > { %v3334_v61 = vpop.f32.mrb[101].mxu0  ;;  %v3387_v27 = vadd.f32 %v6339_v28, %v5595_v2 }
 0x8a5   : > { %v3385_v57 = vadd.f32 %v6338_v6, %v3334_v61  ;;  %v5596_v26 = vpop.f32.mrb[102].mxu0 }
 0x8a6   : > { %v3337_v8 = vpop.f32.mrb[103].mxu0  ;;  %v3388_v23 = vadd.f32 %v6341_v56, %v5596_v26  ;;  %v8378_v51 = vadd.f32 %v8344_v5, %v3387_v27 }
 0x8a7   : > { %v8369_v35 = vadd.f32 %v8344_v5, %v3385_v57  ;;  %v3386_v52 = vadd.f32 %v6340_v43, %v3337_v8 }
 0x8a8   : > { %v8382_v18 = vadd.f32 %v8344_v5, %v3388_v23 }
 0x8a9   : > { %v8374_v55 = vadd.f32 %v8344_v5, %v3386_v52  ;;  %3430 = vadd.xlane.f32.xlu0 %v8369_v35 }
 0x8ab   : > { %3432 = vadd.xlane.f32.xlu1 %v8374_v55 }
 0x8ad   : > { %3434 = vadd.xlane.f32.xlu0 %v8378_v51 }
 0x8af   : > { %3436 = vadd.xlane.f32.xlu1 %v8382_v18 }
 0x8be   : > { %v5599_v30 = vpop.f32.mrb[104].mxu0 }
 0x8bf   : > { %v3350_v25 = vpop.f32.mrb[105].mxu0  ;;  %v3391_v14 = vadd.f32 %v6343_v63, %v5599_v30  ;;  %v5957_v63 = vld [vmem:[#allocation11 + $0x6c] ss:$16 sps:$4 sm:$0xff]  }
 0x8c0   : > { %v3389_v49 = vadd.f32 %v6342_v21, %v3350_v25  ;;  %v5600_v62 = vpop.f32.mrb[106].mxu0  ;;  %v5948_v25 = vld [vmem:[#allocation11 + $0x44] ss:$16 sps:$4 sm:$0xff]   ;;  %v5951_v21 = vld [vmem:[#allocation11 + $0x4c] ss:$16 sps:$4 sm:$0xff]  }
 0x8c1   : > { %v3353_v48 = vpop.f32.mrb[107].mxu0  ;;  %v3392_v58 = vadd.f32 %v6345_v29, %v5600_v62  ;;  %v8398_v16 = vadd.f32 %v8344_v5, %v3391_v14  ;;  %v5949_v62 = vld [vmem:[#allocation11 + $0x48] ss:$16 sps:$4 sm:$0xff]   ;;  %3868 = vmatprep.subr.bf16.mxu1 %v5948_v25  ;;  %3981 = vmatprep.subr.bf16.mxu0 %v5951_v21  ;;  %v5952_v14 = vld [vmem:[#allocation11 + $0x60] ss:$16 sps:$4 sm:$0xff]  }
 0x8c2   : > { %v8389_v31 = vadd.f32 %v8344_v5, %v3389_v49  ;;  %v3390_v34 = vadd.f32 %v6344_v20, %v3353_v48  ;;  %v5946_v49 = vld [vmem:[#allocation11 + $0x40] ss:$16 sps:$4 sm:$0xff]   ;;  %3982 = vmatpush1.bf16.msra.mxu0 %v5949_v62  ;;  %v5954_v48 = vld [vmem:[#allocation11 + $0x64] ss:$16 sps:$4 sm:$0xff]   ;;  %v5955_v20 = vld [vmem:[#allocation11 + $0x68] ss:$16 sps:$4 sm:$0xff]  }
 0x8c3   : > { %v8402_v53 = vadd.f32 %v8344_v5, %v3392_v58  ;;  %3869 = vmatpush1.bf16.msra.mxu1 %v5946_v49  ;;  %3983 = vmatprep.subr.bf16.mxu0 %v5957_v63  ;;  %v5963_v29 = vld [vmem:[#allocation11 + $0x8c] ss:$16 sps:$4 sm:$0xff]   ;;  %v5958_v58 = vld [vmem:[#allocation11 + $0x80] ss:$16 sps:$4 sm:$0xff]  }
 0x8c4   : > { %v8394_v40 = vadd.f32 %v8344_v5, %v3390_v34  ;;  %3438 = vadd.xlane.f32.xlu0 %v8389_v31  ;;  %3870 = vmatprep.subr.bf16.mxu1 %v5954_v48  ;;  %v5960_v34 = vld [vmem:[#allocation11 + $0x84] ss:$16 sps:$4 sm:$0xff]  }
 0x8c6   : > { %3440 = vadd.xlane.f32.xlu1 %v8394_v40  ;;  %3984 = vmatpush1.bf16.msra.mxu0 %v5955_v20 }
 0x8c7   : > { %3871 = vmatpush1.bf16.msra.mxu1 %v5952_v14  ;;  %3985 = vmatprep.subr.bf16.mxu0 %v5963_v29 }
 0x8c8   : > { %3442 = vadd.xlane.f32.xlu0 %v8398_v16  ;;  %3872 = vmatprep.subr.bf16.mxu1 %v5960_v34 }
 0x8ca   : > { %3444 = vadd.xlane.f32.xlu1 %v8402_v53 }
 0x8cb   : > { %3873 = vmatpush1.bf16.msra.mxu1 %v5958_v58 }
 0x8ce   : > { %v5603_v19 = vpop.f32.mrb[108].mxu0 }
 0x8cf   : > { %v3366_v54 = vpop.f32.mrb[109].mxu0  ;;  %v3395_v24 = vadd.f32 %v6347_v17, %v5603_v19  ;;  %v5961_v19 = vld [vmem:[#allocation11 + $0x88] ss:$16 sps:$4 sm:$0xff]   ;;  %v5975_v17 = vld [vmem:[#allocation11 + $0xcc] ss:$16 sps:$4 sm:$0xff]  }
 0x8d0   : > { %v3393_v59 = vadd.f32 %v6346_v13, %v3366_v54  ;;  %v5604_v32 = vpop.f32.mrb[110].mxu0  ;;  %3986 = vmatpush1.bf16.msra.mxu0 %v5961_v19  ;;  %v5966_v54 = vld [vmem:[#allocation11 + $0xa4] ss:$16 sps:$4 sm:$0xff]   ;;  %v5969_v13 = vld [vmem:[#allocation11 + $0xac] ss:$16 sps:$4 sm:$0xff]  }
 0x8d1   : > { %v3369_v0 = vpop.f32.mrb[111].mxu0  ;;  %v3396_v50 = vadd.f32 %v6349_v44, %v5604_v32  ;;  %v8418_v7 = vadd.f32 %v8344_v5, %v3395_v24  ;;  %v5967_v32 = vld [vmem:[#allocation11 + $0xa8] ss:$16 sps:$4 sm:$0xff]   ;;  %3874 = vmatprep.subr.bf16.mxu1 %v5966_v54  ;;  %3987 = vmatprep.subr.bf16.mxu0 %v5969_v13  ;;  %v5970_v24 = vld [vmem:[#allocation11 + $0xc0] ss:$16 sps:$4 sm:$0xff]  }
 0x8d2   : > { %v8409_v38 = vadd.f32 %v8344_v5, %v3393_v59  ;;  %v3394_v46 = vadd.f32 %v6348_v11, %v3369_v0  ;;  %v5964_v59 = vld [vmem:[#allocation11 + $0xa0] ss:$16 sps:$4 sm:$0xff]   ;;  %v5972_v0 = vld [vmem:[#allocation11 + $0xc4] ss:$16 sps:$4 sm:$0xff]   ;;  %v5973_v11 = vld [vmem:[#allocation11 + $0xc8] ss:$16 sps:$4 sm:$0xff]  }
 0x8d3   : > { %v8422_v45 = vadd.f32 %v8344_v5, %v3396_v50  ;;  %3875 = vmatpush1.bf16.msra.mxu1 %v5964_v59  ;;  %v5976_v50 = vld [vmem:[#allocation11 + $0xe0] ss:$16 sps:$4 sm:$0xff]  }
 0x8d4   : > { %v8414_v39 = vadd.f32 %v8344_v5, %v3394_v46  ;;  %3446 = vadd.xlane.f32.xlu0 %v8409_v38  ;;  %3988 = vmatpush1.bf16.msra.mxu0 %v5967_v32  ;;  %v5978_v46 = vld [vmem:[#allocation11 + $0xe4] ss:$16 sps:$4 sm:$0xff]  }
 0x8d5   : > { %3876 = vmatprep.subr.bf16.mxu1 %v5972_v0  ;;  %3989 = vmatprep.subr.bf16.mxu0 %v5975_v17 }
 0x8d6   : > { %3448 = vadd.xlane.f32.xlu1 %v8414_v39 }
 0x8d7   : > { %3877 = vmatpush1.bf16.msra.mxu1 %v5970_v24 }
 0x8d8   : > { %3450 = vadd.xlane.f32.xlu0 %v8418_v7  ;;  %3990 = vmatpush1.bf16.msra.mxu0 %v5973_v11 }
 0x8d9   : > { %3878 = vmatprep.subr.bf16.mxu1 %v5978_v46  ;;  %3991 = vmatprep.subr.bf16.mxu0 %v5981_v47 }
 0x8da   : > { %3452 = vadd.xlane.f32.xlu1 %v8422_v45 }
 0x8db   : > { %3879 = vmatpush1.bf16.msra.mxu1 %v5976_v50 }
 0x8dc   : > { %3992 = vmatpush1.bf16.msra.mxu0 %v5979_v22 }
 0x90d   : > { %v3423_v5 = vpop.xlane.xlu0 %3422 }
 0x90e   : > { %v3454_v42 = vmul.f32 0.0078125, %v3423_v5 }
 0x90f   : > { %v3425_v1 = vpop.xlane.xlu1 %3424 }
 0x910   : > { %v8427_v2 = vsub.f32 %v8349_v36, %v3454_v42  ;;  %v3455_v61 = vmul.f32 0.0078125, %v3425_v1 }
 0x911   : > { %v3427_v6 = vpop.xlane.xlu0 %3426 }
 0x912   : > { %v8430_v57 = vsub.f32 %v8353_v60, %v3455_v61  ;;  %v3456_v26 = vmul.f32 0.0078125, %v3427_v6  ;;  %v3486_v8 = vmul.f32 %v8427_v2, %v8427_v2 }
 0x914   : > { %v8435_v28 = vsub.f32 %v8357_v33, %v3456_v26  ;;  %3502 = vadd.xlane.f32.xlu0 %v3486_v8  ;;  %v3487_v27 = vmul.f32 %v8430_v57, %v8430_v57 }
 0x915   : > { %v3429_v43 = vpop.xlane.xlu0 %3428 }
 0x916   : > { %v3457_v52 = vmul.f32 0.0078125, %v3429_v43  ;;  %3504 = vadd.xlane.f32.xlu1 %v3487_v27  ;;  %v3488_v56 = vmul.f32 %v8435_v28, %v8435_v28 }
 0x918   : > { %v8442_v23 = vsub.f32 %v8363_v41, %v3457_v52  ;;  %3506 = vadd.xlane.f32.xlu0 %v3488_v56 }
 0x91a   : > { %v3489_v30 = vmul.f32 %v8442_v23, %v8442_v23 }
 0x91c   : > { %3508 = vadd.xlane.f32.xlu1 %v3489_v30 }
 0x936   : > { %v3431_v44 = vpop.xlane.xlu0 %3430 }
 0x937   : > { %v3458_v3 = vmul.f32 0.0078125, %v3431_v44 }
 0x938   : > { %v3433_v15 = vpop.xlane.xlu1 %3432 }
 0x939   : > { %v8447_v4 = vsub.f32 %v8369_v35, %v3458_v3  ;;  %v3459_v12 = vmul.f32 0.0078125, %v3433_v15 }
 0x93a   : > { %v3435_v10 = vpop.xlane.xlu0 %3434 }
 0x93b   : > { %v8450_v9 = vsub.f32 %v8374_v55, %v3459_v12  ;;  %v3460_v5 = vmul.f32 0.0078125, %v3435_v10  ;;  %v3490_v42 = vmul.f32 %v8447_v4, %v8447_v4 }
 0x93c   : > { %v3437_v1 = vpop.xlane.xlu1 %3436 }
 0x93d   : > { %v8455_v61 = vsub.f32 %v8378_v51, %v3460_v5  ;;  %v3461_v6 = vmul.f32 0.0078125, %v3437_v1  ;;  %3510 = vadd.xlane.f32.xlu0 %v3490_v42  ;;  %v3491_v26 = vmul.f32 %v8450_v9, %v8450_v9  ;;  %v5982_v5 = vld [vmem:[#allocation13 + $0x40] sm:$0xff]  }
 0x93e   : > { %v8506_v42 = vld [vmem:[#allocation13 + $0xc0] sm:$0xff]   ;;  %5157 = vmatprep.subr.bf16.mxu1 %v5982_v5 }
 0x93f   : > { %v8460_v8 = vsub.f32 %v8382_v18, %v3461_v6  ;;  %3512 = vadd.xlane.f32.xlu1 %v3491_v26  ;;  %v3492_v27 = vmul.f32 %v8455_v61, %v8455_v61  ;;  %5221 = vmatprep.subr.bf16.mxu0 %v8506_v42 }
 0x941   : > { %3514 = vadd.xlane.f32.xlu0 %v3492_v27  ;;  %v3493_v43 = vmul.f32 %v8460_v8, %v8460_v8 }
 0x943   : > { %3516 = vadd.xlane.f32.xlu1 %v3493_v43 }
 0x951   : > { %v3439_v52 = vpop.xlane.xlu0 %3438 }
 0x952   : > { %v3462_v56 = vmul.f32 0.0078125, %v3439_v52 }
 0x953   : > { %v3441_v30 = vpop.xlane.xlu1 %3440 }
 0x954   : > { %v8467_v25 = vsub.f32 %v8389_v31, %v3462_v56  ;;  %v3463_v21 = vmul.f32 0.0078125, %v3441_v30 }
 0x955   : > { %v3443_v49 = vpop.xlane.xlu0 %3442 }
 0x956   : > { %v8470_v62 = vsub.f32 %v8394_v40, %v3463_v21  ;;  %v3464_v48 = vmul.f32 0.0078125, %v3443_v49  ;;  %v3494_v63 = vmul.f32 %v8467_v25, %v8467_v25 }
 0x957   : > { %v3445_v14 = vpop.xlane.xlu1 %3444 }
 0x958   : > { %v8475_v20 = vsub.f32 %v8398_v16, %v3464_v48  ;;  %v3465_v34 = vmul.f32 0.0078125, %v3445_v14  ;;  %3518 = vadd.xlane.f32.xlu0 %v3494_v63  ;;  %v3495_v29 = vmul.f32 %v8470_v62, %v8470_v62 }
 0x95a   : > { %v8480_v58 = vsub.f32 %v8402_v53, %v3465_v34  ;;  %3520 = vadd.xlane.f32.xlu1 %v3495_v29  ;;  %v3496_v19 = vmul.f32 %v8475_v20, %v8475_v20  ;;  %v8512_v34 = vld [vmem:[%s9047_s17] ss:$0 sm:$0xff] }
 0x95c   : > { %3522 = vadd.xlane.f32.xlu0 %v3496_v19  ;;  %v3497_v54 = vmul.f32 %v8480_v58, %v8480_v58 }
 0x95e   : > { %3524 = vadd.xlane.f32.xlu1 %v3497_v54 }
 0x961   : > { %v3447_v13 = vpop.xlane.xlu0 %3446 }
 0x962   : > { %v3466_v59 = vmul.f32 0.0078125, %v3447_v13 }
 0x963   : > { %v3449_v32 = vpop.xlane.xlu1 %3448 }
 0x964   : > { %v8487_v0 = vsub.f32 %v8409_v38, %v3466_v59  ;;  %v3467_v17 = vmul.f32 0.0078125, %v3449_v32  ;;  %v8520_v32 = vld [vmem:[%s9048_s30] ss:$0 sm:$0xff]  ;;  %s6548_s30 = scalar_lea.vmem %s8785_s19, 2048 }
 0x965   : > { %v3451_v24 = vpop.xlane.xlu0 %3450  ;;  %p6549_p6 = scmp.ne.s32.totalorder %s8785_s19, %s6548_s30 }
 0x966   : > { %v8490_v11 = vsub.f32 %v8414_v39, %v3467_v17  ;;  %v3468_v46 = vmul.f32 0.0078125, %v3451_v24  ;;  %v3498_v44 = vmul.f32 %v8487_v0, %v8487_v0 }
 0x967   : > { %v3453_v50 = vpop.xlane.xlu1 %3452  ;;  %p6550_p4 = pnand %p6549_p6, %p9056_p9 }
 0x968   : > { %v8495_v22 = vsub.f32 %v8418_v7, %v3468_v46  ;;  %v3469_v47 = vmul.f32 0.0078125, %v3453_v50  ;;  %3526 = vadd.xlane.f32.xlu0 %v3498_v44  ;;  %v3499_v3 = vmul.f32 %v8490_v11, %v8490_v11 }
 0x969   : > { %p6551_p13 = pneg %p6550_p4 }
 0x96a   : > { %v8500_v15 = vsub.f32 %v8422_v45, %v3469_v47  ;;  %3528 = vadd.xlane.f32.xlu1 %v3499_v3  ;;  %v3500_v12 = vmul.f32 %v8495_v22, %v8495_v22  ;;  %v5984_v3 = vld [vmem:[#allocation13] sm:$0xff]  }
 0x96c   : > { %3530 = vadd.xlane.f32.xlu0 %v3500_v12  ;;  %v3501_v10 = vmul.f32 %v8500_v15, %v8500_v15  ;;  %v5986_v12 = vld [vmem:[#allocation13 + $0x48] sm:$0xff]  }
 0x96e   : > { %3532 = vadd.xlane.f32.xlu1 %v3501_v10  ;;  %v8529_v10 = vld [vmem:[#allocation13 + $0xc8] sm:$0xff]  }
 0x9a1   : > { %v3503_v1 = vpop.xlane.xlu0 %3502 }
 0x9a2   : > { %v3534_v6 = vmul.f32 0.0078125, %v3503_v1 }
 0x9a3   : > { %v3505_v26 = vpop.xlane.xlu1 %3504 }
 0x9a4   : > { %v3550_v27 = vadd.f32 1e-05, %v3534_v6  ;;  %v3535_v43 = vmul.f32 0.0078125, %v3505_v26  ;;  %v8537_v6 = vld [vmem:[#allocation13 + $0x88] sm:$0xff]   ;;  %v5990_v26 = vld [vmem:[#allocation13 + $0x50] sm:$0xff]  }
 0x9a5   : > { %v3507_v52 = vpop.xlane.xlu0 %3506 }
 0x9a6   : > { %6302 = vrsqrt.f32 %v3550_v27  ;;  %v3551_v56 = vadd.f32 1e-05, %v3535_v43  ;;  %v3536_v30 = vmul.f32 0.0078125, %v3507_v52  ;;  %v8540_v27 = vld [vmem:[#allocation13 + $0xd0] sm:$0xff]  }
 0x9a8   : > { %6304 = vrsqrt.f32 %v3551_v56  ;;  %v3552_v21 = vadd.f32 1e-05, %v3536_v30  ;;  %v5992_v56 = vld [vmem:[#allocation13 + $0x10] sm:$0xff]  }
 0x9a9   : > { %v3509_v49 = vpop.xlane.xlu1 %3508  ;;  %v8544_v30 = vld [vmem:[#allocation13 + $0x90] sm:$0xff]  }
 0x9aa   : > { %6306 = vrsqrt.f32 %v3552_v21  ;;  %v3537_v48 = vmul.f32 0.0078125, %v3509_v49  ;;  %v5994_v21 = vld [vmem:[#allocation13 + $0x58] sm:$0xff]  }
 0x9ab   : > { %v8547_v49 = vld [vmem:[#allocation13 + $0xd8] sm:$0xff]  }
 0x9ac   : > { %v3553_v63 = vadd.f32 1e-05, %v3537_v48  ;;  %v5996_v48 = vld [vmem:[#allocation13 + $0x18] sm:$0xff]  }
 0x9ae   : > { %6308 = vrsqrt.f32 %v3553_v63  ;;  %v8552_v63 = vld [vmem:[#allocation13 + $0x98] sm:$0xff]  }
 0x9b0   : > { %v6303_v14 = vpop.eup %6302 }
 0x9b1   : > { %v3582_v29 = vmul.f32 %v6303_v14, %v8427_v2  ;;  %v5998_v14 = vld [vmem:[#allocation13 + $0x60] sm:$0xff]  }
 0x9b2   : > { %v6305_v19 = vpop.eup %6304 }
 0x9b3   : > { %v3604_v54 = vmul.f32 %v8512_v34, %v3582_v29  ;;  %v3583_v13 = vmul.f32 %v6305_v19, %v8430_v57  ;;  %v8527_v57 = vld [vmem:[#allocation13 + $0x80] sm:$0xff]  }
 0x9b4   : > { %v6307_v59 = vpop.eup %6306  ;;  %v8555_v29 = vld [vmem:[#allocation13 + $0xe0] sm:$0xff]  }
 0x9b5   : > { %v3605_v17 = vmul.f32 %v8512_v34, %v3583_v13  ;;  %v3626_v24 = vadd.f32 %v8520_v32, %v3604_v54  ;;  %v3584_v44 = vmul.f32 %v6307_v59, %v8435_v28  ;;  %v6000_v19 = vld [vmem:[#allocation13 + $0x20] sm:$0xff]   ;;  %v6002_v59 = vld [vmem:[#allocation13 + $0x68] sm:$0xff]  }
 0x9b6   : > { %v8558_v54 = vld [vmem:[#allocation13 + $0xa0] sm:$0xff]  }
 0x9b7   : > { %v3627_v46 = vadd.f32 %v8520_v32, %v3605_v17  ;;  %v3606_v5 = vmul.f32 %v8512_v34, %v3584_v44  ;;  %v8561_v17 = vld [vmem:[#allocation13 + $0xe8] sm:$0xff]  }
 0x9b8   : > { %v6309_v2 = vpop.eup %6308 }
 0x9b9   : > { %v3642_v50 = vpack.c.bf16 %v3627_v46, %v3626_v24  ;;  %v3585_v47 = vmul.f32 %v6309_v2, %v8442_v23  ;;  %v5988_v23 = vld [vmem:[#allocation13 + $0x8] sm:$0xff]   ;;  %v3628_v43 = vadd.f32 %v8520_v32, %v3606_v5 }
 0x9bb   : > { %3897 = vmatmul.mubr.bf16.vlgmr.msra.gmra.mrb[80].mxu1 %v3642_v50  ;;  %4010 = vmatmul.mubr.bf16.vlgmr.msra.gmra.mrb[112].mxu0 %v3642_v50  ;;  %v3607_v1 = vmul.f32 %v8512_v34, %v3585_v47 }
 0x9bc   : > { %3906 = vmatprep.mubr.bf16.mxu1 %v9046_v37  ;;  %4019 = vmatprep.mubr.bf16.mxu0 %v9046_v37 }
 0x9bd   : > { %v3629_v28 = vadd.f32 %v8520_v32, %v3607_v1  ;;  %5158 = vmatpush3.bf16.msra.mxu1 %v5984_v3  ;;  %5222 = vmatpush3.bf16.msra.mxu0 %v8527_v57 }
 0x9be   : > { %5159 = vmatprep.subr.bf16.mxu1 %v5986_v12  ;;  %5223 = vmatprep.subr.bf16.mxu0 %v8529_v10 }
 0x9bf   : > { %v3643_v52 = vpack.c.bf16 %v3629_v28, %v3628_v43 }
 0x9c1   : > { %5160 = vmatpush3.bf16.msra.mxu1 %v5988_v23  ;;  %5224 = vmatpush3.bf16.msra.mxu0 %v8537_v6 }
 0x9c2   : > { %5161 = vmatprep.subr.bf16.mxu1 %v5990_v26  ;;  %5225 = vmatprep.subr.bf16.mxu0 %v8540_v27 }
 0x9c3   : > { %3907 = vmatmul.mubr.bf16.gmra.mrb[84].mxu1 %v3643_v52  ;;  %4020 = vmatmul.mubr.bf16.gmra.mrb[116].mxu0 %v3643_v52 }
 0x9c4   : > { %3916 = vmatprep.mubr.bf16.mxu1 %v9046_v37  ;;  %4029 = vmatprep.mubr.bf16.mxu0 %v9046_v37 }
 0x9c5   : > { %5162 = vmatpush3.bf16.msra.mxu1 %v5992_v56  ;;  %5226 = vmatpush3.bf16.msra.mxu0 %v8544_v30 }
 0x9c6   : > { %5163 = vmatprep.subr.bf16.mxu1 %v5994_v21  ;;  %5227 = vmatprep.subr.bf16.mxu0 %v8547_v49 }
 0x9c9   : > { %5164 = vmatpush3.bf16.msra.mxu1 %v5996_v48  ;;  %5228 = vmatpush3.bf16.msra.mxu0 %v8552_v63 }
 0x9ca   : > { %v3511_v13 = vpop.xlane.xlu0 %3510  ;;  %5165 = vmatprep.subr.bf16.mxu1 %v5998_v14  ;;  %5229 = vmatprep.subr.bf16.mxu0 %v8555_v29 }
 0x9cb   : > { %v3538_v24 = vmul.f32 0.0078125, %v3511_v13 }
 0x9cc   : > { %v3513_v46 = vpop.xlane.xlu1 %3512 }
 0x9cd   : > { %v3554_v44 = vadd.f32 1e-05, %v3538_v24  ;;  %v3539_v2 = vmul.f32 0.0078125, %v3513_v46  ;;  %5166 = vmatpush3.bf16.msra.mxu1 %v6000_v19  ;;  %5230 = vmatpush3.bf16.msra.mxu0 %v8558_v54 }
 0x9ce   : > { %v3515_v50 = vpop.xlane.xlu0 %3514  ;;  %5167 = vmatprep.subr.bf16.mxu1 %v6002_v59  ;;  %5231 = vmatprep.subr.bf16.mxu0 %v8561_v17 }
 0x9cf   : > { %6310 = vrsqrt.f32 %v3554_v44  ;;  %v3555_v47 = vadd.f32 1e-05, %v3539_v2  ;;  %v3540_v3 = vmul.f32 0.0078125, %v3515_v50 }
 0x9d0   : > { %v3517_v12 = vpop.xlane.xlu1 %3516 }
 0x9d1   : > { %6312 = vrsqrt.f32 %v3555_v47  ;;  %v3556_v5 = vadd.f32 1e-05, %v3540_v3  ;;  %v3541_v1 = vmul.f32 0.0078125, %v3517_v12 }
 0x9d3   : > { %6314 = vrsqrt.f32 %v3556_v5  ;;  %v3557_v28 = vadd.f32 1e-05, %v3541_v1 }
 0x9d5   : > { %6316 = vrsqrt.f32 %v3557_v28 }
 0x9d9   : > { %v6311_v23 = vpop.eup %6310 }
 0x9da   : > { %v3586_v26 = vmul.f32 %v6311_v23, %v8447_v4 }
 0x9db   : > { %v6313_v43 = vpop.eup %6312 }
 0x9dc   : > { %v3587_v52 = vmul.f32 %v6313_v43, %v8450_v9  ;;  %v3608_v56 = vmul.f32 %v8512_v34, %v3586_v26 }
 0x9dd   : > { %v6315_v21 = vpop.eup %6314 }
 0x9de   : > { %v3609_v48 = vmul.f32 %v8512_v34, %v3587_v52  ;;  %v3630_v19 = vadd.f32 %v8520_v32, %v3608_v56  ;;  %v3588_v59 = vmul.f32 %v6315_v21, %v8455_v61 }
 0x9df   : > { %v6317_v14 = vpop.eup %6316 }
 0x9e0   : > { %v3631_v13 = vadd.f32 %v8520_v32, %v3609_v48  ;;  %v3589_v24 = vmul.f32 %v6317_v14, %v8460_v8  ;;  %v3610_v9 = vmul.f32 %v8512_v34, %v3588_v59 }
 0x9e2   : > { %v3644_v46 = vpack.c.bf16 %v3631_v13, %v3630_v19  ;;  %v3611_v4 = vmul.f32 %v8512_v34, %v3589_v24  ;;  %v3632_v8 = vadd.f32 %v8520_v32, %v3610_v9 }
 0x9e4   : > { %3917 = vmatmul.mubr.bf16.gmra.mrb[88].mxu1 %v3644_v46  ;;  %4030 = vmatmul.mubr.bf16.gmra.mrb[120].mxu0 %v3644_v46  ;;  %v3633_v50 = vadd.f32 %v8520_v32, %v3611_v4 }
 0x9e5   : > { %v3519_v44 = vpop.xlane.xlu0 %3518  ;;  %3926 = vmatprep.mubr.bf16.mxu1 %v9046_v37  ;;  %4039 = vmatprep.mubr.bf16.mxu0 %v9046_v37 }
 0x9e6   : > { %v3542_v2 = vmul.f32 0.0078125, %v3519_v44  ;;  %v3645_v28 = vpack.c.bf16 %v3633_v50, %v3632_v8 }
 0x9e7   : > { %v3521_v47 = vpop.xlane.xlu1 %3520 }
 0x9e8   : > { %v3558_v3 = vadd.f32 1e-05, %v3542_v2  ;;  %v3543_v61 = vmul.f32 0.0078125, %v3521_v47 }
 0x9e9   : > { %v3523_v12 = vpop.xlane.xlu0 %3522 }
 0x9ea   : > { %6318 = vrsqrt.f32 %v3558_v3  ;;  %v3559_v5 = vadd.f32 1e-05, %v3543_v61  ;;  %v3544_v1 = vmul.f32 0.0078125, %v3523_v12 }
 0x9eb   : > { %v3525_v23 = vpop.xlane.xlu1 %3524 }
 0x9ec   : > { %6320 = vrsqrt.f32 %v3559_v5  ;;  %v3560_v26 = vadd.f32 1e-05, %v3544_v1  ;;  %v3545_v43 = vmul.f32 0.0078125, %v3525_v23  ;;  %3927 = vmatmul.mubr.bf16.gmra.mrb[92].mxu1 %v3645_v28  ;;  %4040 = vmatmul.mubr.bf16.gmra.mrb[124].mxu0 %v3645_v28 }
 0x9ed   : > { %3936 = vmatprep.mubr.bf16.mxu1 %v9046_v37  ;;  %4049 = vmatprep.mubr.bf16.mxu0 %v9046_v37 }
 0x9ee   : > { %6322 = vrsqrt.f32 %v3560_v26  ;;  %v3561_v52 = vadd.f32 1e-05, %v3545_v43 }
 0x9f0   : > { %6324 = vrsqrt.f32 %v3561_v52 }
 0x9f4   : > { %v6319_v56 = vpop.eup %6318 }
 0x9f5   : > { %v3527_v21 = vpop.xlane.xlu0 %3526  ;;  %v3590_v48 = vmul.f32 %v6319_v56, %v8467_v25 }
 0x9f6   : > { %v6321_v14 = vpop.eup %6320  ;;  %v3546_v19 = vmul.f32 0.0078125, %v3527_v21 }
 0x9f7   : > { %v3529_v13 = vpop.xlane.xlu1 %3528  ;;  %v3591_v59 = vmul.f32 %v6321_v14, %v8470_v62  ;;  %v3612_v24 = vmul.f32 %v8512_v34, %v3590_v48 }
 0x9f8   : > { %v6323_v46 = vpop.eup %6322  ;;  %v3562_v4 = vadd.f32 1e-05, %v3546_v19  ;;  %v3547_v9 = vmul.f32 0.0078125, %v3529_v13 }
 0x9f9   : > { %v3531_v44 = vpop.xlane.xlu0 %3530  ;;  %v3613_v2 = vmul.f32 %v8512_v34, %v3591_v59  ;;  %v3634_v25 = vadd.f32 %v8520_v32, %v3612_v24  ;;  %v3592_v12 = vmul.f32 %v6323_v46, %v8475_v20 }
 0x9fa   : > { %v6325_v50 = vpop.eup %6324  ;;  %6326 = vrsqrt.f32 %v3562_v4  ;;  %v3563_v47 = vadd.f32 1e-05, %v3547_v9  ;;  %v3548_v3 = vmul.f32 0.0078125, %v3531_v44 }
 0x9fb   : > { %v3533_v61 = vpop.xlane.xlu1 %3532  ;;  %v3635_v8 = vadd.f32 %v8520_v32, %v3613_v2  ;;  %v3593_v62 = vmul.f32 %v6325_v50, %v8480_v58  ;;  %v3614_v43 = vmul.f32 %v8512_v34, %v3592_v12  ;;  %v6004_v2 = vld [vmem:[#allocation13 + $0x28] sm:$0xff]   ;;  %v8620_v12 = vld [vmem:[#allocation13 + $0xf8] sm:$0xff]  }
 0x9fc   : > { %6328 = vrsqrt.f32 %v3563_v47  ;;  %v3564_v5 = vadd.f32 1e-05, %v3548_v3  ;;  %v3549_v1 = vmul.f32 0.0078125, %v3533_v61  ;;  %v8606_v50 = vld [vmem:[#allocation13 + $0xa8] sm:$0xff]   ;;  %5168 = vmatpush3.bf16.msra.mxu1 %v6004_v2  ;;  %v6008_v61 = vld [vmem:[#allocation13 + $0x30] sm:$0xff]  }
 0x9fd   : > { %v3646_v28 = vpack.c.bf16 %v3635_v8, %v3634_v25  ;;  %v3615_v23 = vmul.f32 %v8512_v34, %v3593_v62  ;;  %v3636_v58 = vadd.f32 %v8520_v32, %v3614_v43  ;;  %5232 = vmatpush3.bf16.msra.mxu0 %v8606_v50  ;;  %v8615_v25 = vld [vmem:[#allocation13 + $0xb0] sm:$0xff]   ;;  %v6012_v62 = vld [vmem:[#allocation13 + $0x38] sm:$0xff]  }
 0x9fe   : > { %6330 = vrsqrt.f32 %v3564_v5  ;;  %v3565_v26 = vadd.f32 1e-05, %v3549_v1  ;;  %v8622_v5 = vld [vmem:[#allocation13 + $0xb8] sm:$0xff]   ;;  %v9050_v1 = vld [vmem:[#allocation20_spill] sm:$0xff] }
 0x9ff   : > { %3937 = vmatmul.mubr.bf16.gmra.mrb[96].mxu1 %v3646_v28  ;;  %4050 = vmatmul.mubr.bf16.gmra.mrb[128].mxu0 %v3646_v28  ;;  %v3637_v20 = vadd.f32 %v8520_v32, %v3615_v23  ;;  %v3698_v28 = vsub.s32 3, %v9050_v1  ;;  %v9051_v23 = vsub.s32 0, %v9050_v1  ;;  %v9052_v43 = vsub.s32 2, %v9050_v1 }
 0xa00   : > { %6332 = vrsqrt.f32 %v3565_v26  ;;  %3946 = vmatprep.mubr.bf16.mxu1 %v9046_v37  ;;  %4059 = vmatprep.mubr.bf16.mxu0 %v9046_v37 }
 0xa01   : > { %v3647_v56 = vpack.c.bf16 %v3637_v20, %v3636_v58  ;;  %v9053_v58 = vsub.s32 1, %v9050_v1 }
 0xa04   : > { %v6327_v52 = vpop.eup %6326 }
 0xa05   : > { %v3594_v21 = vmul.f32 %v6327_v52, %v8487_v0 }
 0xa06   : > { %v6329_v48 = vpop.eup %6328 }
 0xa07   : > { %3947 = vmatmul.mubr.bf16.gmra.mrb[100].mxu1 %v3647_v56  ;;  %4060 = vmatmul.mubr.bf16.gmra.mrb[132].mxu0 %v3647_v56  ;;  %v3595_v14 = vmul.f32 %v6329_v48, %v8490_v11  ;;  %v3616_v19 = vmul.f32 %v8512_v34, %v3594_v21 }
 0xa08   : > { %v6331_v13 = vpop.eup %6330  ;;  %3956 = vmatprep.mubr.bf16.mxu1 %v9046_v37  ;;  %4069 = vmatprep.mubr.bf16.mxu0 %v9046_v37 }
 0xa09   : > { %v3617_v59 = vmul.f32 %v8512_v34, %v3595_v14  ;;  %v3638_v46 = vadd.f32 %v8520_v32, %v3616_v19  ;;  %v3596_v0 = vmul.f32 %v6331_v13, %v8495_v22  ;;  %v6006_v22 = vld [vmem:[#allocation13 + $0x70] sm:$0xff]  }
 0xa0a   : > { %v6333_v24 = vpop.eup %6332  ;;  %5169 = vmatprep.subr.bf16.mxu1 %v6006_v22 }
 0xa0b   : > { %v3639_v4 = vadd.f32 %v8520_v32, %v3617_v59  ;;  %v3597_v9 = vmul.f32 %v6333_v24, %v8500_v15  ;;  %v3618_v47 = vmul.f32 %v8512_v34, %v3596_v0  ;;  %v8613_v15 = vld [vmem:[#allocation13 + $0xf0] sm:$0xff]   ;;  %5170 = vmatpush3.bf16.msra.mxu1 %v6008_v61 }
 0xa0c   : > { %5233 = vmatprep.subr.bf16.mxu0 %v8613_v15 }
 0xa0d   : > { %v3648_v44 = vpack.c.bf16 %v3639_v4, %v3638_v46  ;;  %v3619_v11 = vmul.f32 %v8512_v34, %v3597_v9  ;;  %v3640_v8 = vadd.f32 %v8520_v32, %v3618_v47  ;;  %5234 = vmatpush3.bf16.msra.mxu0 %v8615_v25 }
 0xa0e   : > { %5235 = vmatprep.subr.bf16.mxu0 %v8620_v12 }
 0xa0f   : > { %3957 = vmatmul.mubr.bf16.gmra.mrb[104].mxu1 %v3648_v44  ;;  %4070 = vmatmul.mubr.bf16.gmra.mrb[136].mxu0 %v3648_v44  ;;  %v3641_v3 = vadd.f32 %v8520_v32, %v3619_v11  ;;  %v3682_v32 = vld [vmem:[%s9049_s29] sm:$0xf]  ;;  %s6554_s29 = scalar_lea.vmem %s6553_s24, 4096 }
 0xa10   : > { %3966 = vmatprep.mubr.bf16.mxu1 %v9046_v37  ;;  %4079 = vmatprep.mubr.bf16.mxu0 %v9046_v37  ;;  %v6010_v37 = vld [vmem:[#allocation13 + $0x78] sm:$0xff]   ;;  %v8633_v26 = vrot.slane %v3682_v32, %v9051_v23  ;;  %v8637_v20 = vrot.slane %v3682_v32, %v9052_v43  ;;  %v8641_v52 = vrot.slane %v3682_v32, %v9053_v58  ;;  %p6556_p3 = scmp.lt.s32.totalorder %s6554_s29, %s6548_s30 }
 0xa11   : > { %v3649_v34 = vpack.c.bf16 %v3641_v3, %v3640_v8  ;;  %5171 = vmatprep.subr.bf16.mxu1 %v6010_v37  ;;  %5236 = vmatpush3.bf16.msra.mxu0 %v8622_v5  ;;  %v8643_v56 = vrot.slane %v3682_v32, %v3698_v28 }
 0xa12   : > { %5172 = vmatpush3.bf16.msra.mxu1 %v6012_v62  ;;  %p6557_p2 = por %p6556_p3, %p6555_p1 }
 0xa13   : > { %5605 = vmatprep.subr.bf16.mxu1 %v8506_v42 }
 0xa14   : > { %p6558_p8 = pnand %p6557_p2, %p6551_p13 }
 0xa17   : > { %3967 = vmatmul.mubr.bf16.gmra.mrb[108].mxu1 %v3649_v34  ;;  %4080 = vmatmul.mubr.bf16.gmra.mrb[140].mxu0 %v3649_v34 }
 0xa8e   : > { %v3898_v42 = vpop.f32.mrb[80].mxu1  ;;  %v4011_v21 = vpop.f32.mrb[112].mxu0 }
 0xa8f   : > { %v3899_v48 = vadd.f32 %v3898_v42, %v8633_v26  ;;  %v4012_v14 = vadd.f32 %v4011_v21, %v8637_v20  ;;  %v3900_v19 = vpop.f32.mrb[81].mxu1  ;;  %v4013_v13 = vpop.f32.mrb[113].mxu0 }
 0xa90   : > { %v3901_v59 = vadd.f32 %v3900_v19, %v8641_v52  ;;  %v4014_v24 = vadd.f32 %v4013_v13, %v8643_v56  ;;  %v3902_v46 = vpop.f32.mrb[82].mxu1  ;;  %v4015_v4 = vpop.f32.mrb[114].mxu0 }
 0xa91   : > { %v3903_v0 = vadd.f32 %v3902_v46, %v8633_v26  ;;  %v4016_v9 = vadd.f32 %v4015_v4, %v8637_v20  ;;  %v3904_v44 = vpop.f32.mrb[83].mxu1  ;;  %v4017_v11 = vpop.f32.mrb[115].mxu0  ;;  %v4090_v3 = vmax.f32 %v3899_v48, 0.0  ;;  %v4092_v22 = vmax.f32 %v4012_v14, 0.0 }
 0xa92   : > { %v3905_v2 = vadd.f32 %v3904_v44, %v8641_v52  ;;  %v4018_v47 = vadd.f32 %v4017_v11, %v8643_v56  ;;  %v4091_v34 = vmax.f32 %v3901_v59, 0.0  ;;  %v4093_v37 = vmax.f32 %v4014_v24, 0.0 }
 0xa93   : > { %v4094_v61 = vmax.f32 %v3903_v0, 0.0  ;;  %v4096_v8 = vmax.f32 %v4016_v9, 0.0 }
 0xa94   : > { %v4095_v62 = vmax.f32 %v3905_v2, 0.0  ;;  %v4097_v32 = vmax.f32 %v4018_v47, 0.0 }
 0xa95   : > { %v4154_v1 = vpack.c.bf16 %v4094_v61, %v4090_v3  ;;  %v4156_v28 = vpack.c.bf16 %v4096_v8, %v4092_v22 }
 0xa96   : > { %v4155_v23 = vpack.c.bf16 %v4095_v62, %v4091_v34  ;;  %v4157_v43 = vpack.c.bf16 %v4097_v32, %v4093_v37  ;;  %v3908_v58 = vpop.f32.mrb[84].mxu1  ;;  %v4021_v42 = vpop.f32.mrb[116].mxu0 }
 0xa97   : > { %v3909_v21 = vadd.f32 %v3908_v58, %v8633_v26  ;;  %v4022_v19 = vadd.f32 %v4021_v42, %v8637_v20  ;;  %v3910_v13 = vpop.f32.mrb[85].mxu1  ;;  %v4023_v46 = vpop.f32.mrb[117].mxu0 }
 0xa98   : > { %v3911_v48 = vadd.f32 %v3910_v13, %v8641_v52  ;;  %v4024_v14 = vadd.f32 %v4023_v46, %v8643_v56  ;;  %v3912_v59 = vpop.f32.mrb[86].mxu1  ;;  %v4025_v24 = vpop.f32.mrb[118].mxu0  ;;  %4474 = vmatprep.mubr.bf16.mxu1 %v4155_v23  ;;  %4571 = vmatprep.mubr.bf16.mxu0 %v4157_v43 }
 0xa99   : > { %v3913_v4 = vadd.f32 %v3912_v59, %v8633_v26  ;;  %v4026_v0 = vadd.f32 %v4025_v24, %v8637_v20  ;;  %v3914_v9 = vpop.f32.mrb[87].mxu1  ;;  %v4027_v44 = vpop.f32.mrb[119].mxu0  ;;  %4475 = vmatmul.mubr.bf16.vlgmr.msra.gmra.mrb[112].mxu1 %v4154_v1  ;;  %4572 = vmatmul.mubr.bf16.vlgmr.msra.gmra.mrb[144].mxu0 %v4156_v28  ;;  %v4098_v47 = vmax.f32 %v3909_v21, 0.0  ;;  %v4100_v3 = vmax.f32 %v4022_v19, 0.0 }
 0xa9a   : > { %v3915_v11 = vadd.f32 %v3914_v9, %v8641_v52  ;;  %v4028_v2 = vadd.f32 %v4027_v44, %v8643_v56  ;;  %5613 = vmatpush3.bf16.msra.mxu1 %v8527_v57  ;;  %v4099_v8 = vmax.f32 %v3911_v48, 0.0  ;;  %v4101_v34 = vmax.f32 %v4024_v14, 0.0 }
 0xa9b   : > { %v4102_v22 = vmax.f32 %v3913_v4, 0.0  ;;  %v4104_v61 = vmax.f32 %v4026_v0, 0.0  ;;  %5606 = vmatprep.subr.bf16.mxu1 %v8529_v10 }
 0xa9c   : > { %v4103_v37 = vmax.f32 %v3915_v11, 0.0  ;;  %v4105_v62 = vmax.f32 %v4028_v2, 0.0 }
 0xa9d   : > { %v4158_v32 = vpack.c.bf16 %v4102_v22, %v4098_v47  ;;  %v4160_v23 = vpack.c.bf16 %v4104_v61, %v4100_v3 }
 0xa9e   : > { %v4159_v1 = vpack.c.bf16 %v4103_v37, %v4099_v8  ;;  %v4161_v28 = vpack.c.bf16 %v4105_v62, %v4101_v34  ;;  %5614 = vmatpush3.bf16.msra.mxu1 %v8537_v6 }
 0xa9f   : > { %5607 = vmatprep.subr.bf16.mxu1 %v8540_v27 }
 0xaa0   : > { %4482 = vmatprep.mubr.bf16.mxu1 %v4159_v1  ;;  %4579 = vmatprep.mubr.bf16.mxu0 %v4161_v28 }
 0xaa1   : > { %4483 = vmatmul.mubr.bf16.gmra.mrb[116].mxu1 %v4158_v32  ;;  %4580 = vmatmul.mubr.bf16.gmra.mrb[148].mxu0 %v4160_v23 }
 0xaa2   : > { %5615 = vmatpush3.bf16.msra.mxu1 %v8544_v30 }
 0xaa3   : > { %5608 = vmatprep.subr.bf16.mxu1 %v8547_v49 }
 0xaa6   : > { %5616 = vmatpush3.bf16.msra.mxu1 %v8552_v63 }
 0xaa7   : > { %5609 = vmatprep.subr.bf16.mxu1 %v8555_v29 }
 0xaaa   : > { %5617 = vmatpush3.bf16.msra.mxu1 %v8558_v54 }
 0xaab   : > { %5610 = vmatprep.subr.bf16.mxu1 %v8561_v17 }
 0xaae   : > { %5618 = vmatpush3.bf16.msra.mxu1 %v8606_v50 }
 0xaaf   : > { %5611 = vmatprep.subr.bf16.mxu1 %v8613_v15 }
 0xab2   : > { %5619 = vmatpush3.bf16.msra.mxu1 %v8615_v25 }
 0xab3   : > { %5612 = vmatprep.subr.bf16.mxu1 %v8620_v12 }
 0xab6   : > { %5620 = vmatpush3.bf16.msra.mxu1 %v8622_v5 }
 0xab7   : > { %v3918_v57 = vpop.f32.mrb[88].mxu1  ;;  %v4031_v10 = vpop.f32.mrb[120].mxu0 }
 0xab8   : > { %v3919_v6 = vadd.f32 %v3918_v57, %v8633_v26  ;;  %v4032_v27 = vadd.f32 %v4031_v10, %v8637_v20  ;;  %v3920_v30 = vpop.f32.mrb[89].mxu1  ;;  %v4033_v49 = vpop.f32.mrb[121].mxu0 }
 0xab9   : > { %v3921_v63 = vadd.f32 %v3920_v30, %v8641_v52  ;;  %v4034_v29 = vadd.f32 %v4033_v49, %v8643_v56  ;;  %v3922_v54 = vpop.f32.mrb[90].mxu1  ;;  %v4035_v17 = vpop.f32.mrb[122].mxu0 }
 0xaba   : > { %v3923_v50 = vadd.f32 %v3922_v54, %v8633_v26  ;;  %v4036_v15 = vadd.f32 %v4035_v17, %v8637_v20  ;;  %v3924_v25 = vpop.f32.mrb[91].mxu1  ;;  %v4037_v12 = vpop.f32.mrb[123].mxu0  ;;  %v4106_v58 = vmax.f32 %v3919_v6, 0.0  ;;  %v4108_v42 = vmax.f32 %v4032_v27, 0.0 }
 0xabb   : > { %v3925_v5 = vadd.f32 %v3924_v25, %v8641_v52  ;;  %v4038_v43 = vadd.f32 %v4037_v12, %v8643_v56  ;;  %v4107_v13 = vmax.f32 %v3921_v63, 0.0  ;;  %v4109_v46 = vmax.f32 %v4034_v29, 0.0 }
 0xabc   : > { %v4110_v21 = vmax.f32 %v3923_v50, 0.0  ;;  %v4112_v19 = vmax.f32 %v4036_v15, 0.0 }
 0xabd   : > { %v4111_v48 = vmax.f32 %v3925_v5, 0.0  ;;  %v4113_v14 = vmax.f32 %v4038_v43, 0.0 }
 0xabe   : > { %v4162_v59 = vpack.c.bf16 %v4110_v21, %v4106_v58  ;;  %v4164_v24 = vpack.c.bf16 %v4112_v19, %v4108_v42 }
 0xabf   : > { %v4163_v4 = vpack.c.bf16 %v4111_v48, %v4107_v13  ;;  %v4165_v0 = vpack.c.bf16 %v4113_v14, %v4109_v46  ;;  %v3928_v9 = vpop.f32.mrb[92].mxu1  ;;  %v4041_v44 = vpop.f32.mrb[124].mxu0 }
 0xac0   : > { %v3929_v11 = vadd.f32 %v3928_v9, %v8633_v26  ;;  %v4042_v2 = vadd.f32 %v4041_v44, %v8637_v20  ;;  %v3930_v47 = vpop.f32.mrb[93].mxu1  ;;  %v4043_v3 = vpop.f32.mrb[125].mxu0 }
 0xac1   : > { %v3931_v22 = vadd.f32 %v3930_v47, %v8641_v52  ;;  %v4044_v61 = vadd.f32 %v4043_v3, %v8643_v56  ;;  %v3932_v8 = vpop.f32.mrb[94].mxu1  ;;  %v4045_v34 = vpop.f32.mrb[126].mxu0  ;;  %4490 = vmatprep.mubr.bf16.mxu1 %v4163_v4  ;;  %4587 = vmatprep.mubr.bf16.mxu0 %v4165_v0 }
 0xac2   : > { %v3933_v37 = vadd.f32 %v3932_v8, %v8633_v26  ;;  %v4046_v62 = vadd.f32 %v4045_v34, %v8637_v20  ;;  %v3934_v32 = vpop.f32.mrb[95].mxu1  ;;  %v4047_v23 = vpop.f32.mrb[127].mxu0  ;;  %4491 = vmatmul.mubr.bf16.gmra.mrb[120].mxu1 %v4162_v59  ;;  %4588 = vmatmul.mubr.bf16.gmra.mrb[152].mxu0 %v4164_v24  ;;  %v4114_v57 = vmax.f32 %v3929_v11, 0.0  ;;  %v4116_v10 = vmax.f32 %v4042_v2, 0.0 }
 0xac3   : > { %v3935_v1 = vadd.f32 %v3934_v32, %v8641_v52  ;;  %v4048_v28 = vadd.f32 %v4047_v23, %v8643_v56  ;;  %v4115_v30 = vmax.f32 %v3931_v22, 0.0  ;;  %v4117_v49 = vmax.f32 %v4044_v61, 0.0 }
 0xac4   : > { %v4118_v6 = vmax.f32 %v3933_v37, 0.0  ;;  %v4120_v27 = vmax.f32 %v4046_v62, 0.0 }
 0xac5   : > { %v4119_v63 = vmax.f32 %v3935_v1, 0.0  ;;  %v4121_v29 = vmax.f32 %v4048_v28, 0.0 }
 0xac6   : > { %v4166_v54 = vpack.c.bf16 %v4118_v6, %v4114_v57  ;;  %v4168_v17 = vpack.c.bf16 %v4120_v27, %v4116_v10 }
 0xac7   : > { %v4167_v50 = vpack.c.bf16 %v4119_v63, %v4115_v30  ;;  %v4169_v15 = vpack.c.bf16 %v4121_v29, %v4117_v49 }
 0xac9   : > { %4498 = vmatprep.mubr.bf16.mxu1 %v4167_v50  ;;  %4595 = vmatprep.mubr.bf16.mxu0 %v4169_v15 }
 0xaca   : > { %4499 = vmatmul.mubr.bf16.gmra.mrb[124].mxu1 %v4166_v54  ;;  %4596 = vmatmul.mubr.bf16.gmra.mrb[156].mxu0 %v4168_v17 }
 0xad2   : > { %v3938_v25 = vpop.f32.mrb[96].mxu1  ;;  %v4051_v12 = vpop.f32.mrb[128].mxu0 }
 0xad3   : > { %v3939_v5 = vadd.f32 %v3938_v25, %v8633_v26  ;;  %v4052_v43 = vadd.f32 %v4051_v12, %v8637_v20  ;;  %v3940_v58 = vpop.f32.mrb[97].mxu1  ;;  %v4053_v42 = vpop.f32.mrb[129].mxu0 }
 0xad4   : > { %v3941_v21 = vadd.f32 %v3940_v58, %v8641_v52  ;;  %v4054_v19 = vadd.f32 %v4053_v42, %v8643_v56  ;;  %v3942_v13 = vpop.f32.mrb[98].mxu1  ;;  %v4055_v46 = vpop.f32.mrb[130].mxu0 }
 0xad5   : > { %v3943_v48 = vadd.f32 %v3942_v13, %v8633_v26  ;;  %v4056_v14 = vadd.f32 %v4055_v46, %v8637_v20  ;;  %v3944_v59 = vpop.f32.mrb[99].mxu1  ;;  %v4057_v24 = vpop.f32.mrb[131].mxu0  ;;  %v4122_v9 = vmax.f32 %v3939_v5, 0.0  ;;  %v4124_v44 = vmax.f32 %v4052_v43, 0.0 }
 0xad6   : > { %v3945_v4 = vadd.f32 %v3944_v59, %v8641_v52  ;;  %v4058_v0 = vadd.f32 %v4057_v24, %v8643_v56  ;;  %v4123_v47 = vmax.f32 %v3941_v21, 0.0  ;;  %v4125_v3 = vmax.f32 %v4054_v19, 0.0 }
 0xad7   : > { %v4126_v11 = vmax.f32 %v3943_v48, 0.0  ;;  %v4128_v2 = vmax.f32 %v4056_v14, 0.0 }
 0xad8   : > { %v4127_v22 = vmax.f32 %v3945_v4, 0.0  ;;  %v4129_v61 = vmax.f32 %v4058_v0, 0.0 }
 0xad9   : > { %v4170_v8 = vpack.c.bf16 %v4126_v11, %v4122_v9  ;;  %v4172_v34 = vpack.c.bf16 %v4128_v2, %v4124_v44 }
 0xada   : > { %v4171_v37 = vpack.c.bf16 %v4127_v22, %v4123_v47  ;;  %v4173_v62 = vpack.c.bf16 %v4129_v61, %v4125_v3  ;;  %v3948_v32 = vpop.f32.mrb[100].mxu1  ;;  %v4061_v23 = vpop.f32.mrb[132].mxu0 }
 0xadb   : > { %v3949_v1 = vadd.f32 %v3948_v32, %v8633_v26  ;;  %v4062_v28 = vadd.f32 %v4061_v23, %v8637_v20  ;;  %v3950_v57 = vpop.f32.mrb[101].mxu1  ;;  %v4063_v10 = vpop.f32.mrb[133].mxu0 }
 0xadc   : > { %v3951_v6 = vadd.f32 %v3950_v57, %v8641_v52  ;;  %v4064_v27 = vadd.f32 %v4063_v10, %v8643_v56  ;;  %v3952_v30 = vpop.f32.mrb[102].mxu1  ;;  %v4065_v49 = vpop.f32.mrb[134].mxu0  ;;  %4506 = vmatprep.mubr.bf16.mxu1 %v4171_v37  ;;  %4603 = vmatprep.mubr.bf16.mxu0 %v4173_v62 }
 0xadd   : > { %v3953_v63 = vadd.f32 %v3952_v30, %v8633_v26  ;;  %v4066_v29 = vadd.f32 %v4065_v49, %v8637_v20  ;;  %v3954_v54 = vpop.f32.mrb[103].mxu1  ;;  %v4067_v17 = vpop.f32.mrb[135].mxu0  ;;  %4507 = vmatmul.mubr.bf16.gmra.mrb[128].mxu1 %v4170_v8  ;;  %4604 = vmatmul.mubr.bf16.gmra.mrb[160].mxu0 %v4172_v34  ;;  %v4130_v25 = vmax.f32 %v3949_v1, 0.0  ;;  %v4132_v12 = vmax.f32 %v4062_v28, 0.0 }
 0xade   : > { %v3955_v50 = vadd.f32 %v3954_v54, %v8641_v52  ;;  %v4068_v15 = vadd.f32 %v4067_v17, %v8643_v56  ;;  %v4131_v58 = vmax.f32 %v3951_v6, 0.0  ;;  %v4133_v42 = vmax.f32 %v4064_v27, 0.0 }
 0xadf   : > { %v4134_v5 = vmax.f32 %v3953_v63, 0.0  ;;  %v4136_v43 = vmax.f32 %v4066_v29, 0.0 }
 0xae0   : > { %v4135_v21 = vmax.f32 %v3955_v50, 0.0  ;;  %v4137_v19 = vmax.f32 %v4068_v15, 0.0 }
 0xae1   : > { %v4174_v13 = vpack.c.bf16 %v4134_v5, %v4130_v25  ;;  %v4176_v46 = vpack.c.bf16 %v4136_v43, %v4132_v12 }
 0xae2   : > { %v4175_v48 = vpack.c.bf16 %v4135_v21, %v4131_v58  ;;  %v4177_v14 = vpack.c.bf16 %v4137_v19, %v4133_v42  ;;  %v3958_v59 = vpop.f32.mrb[104].mxu1  ;;  %v4071_v24 = vpop.f32.mrb[136].mxu0 }
 0xae3   : > { %v3959_v4 = vadd.f32 %v3958_v59, %v8633_v26  ;;  %v4072_v0 = vadd.f32 %v4071_v24, %v8637_v20  ;;  %v3960_v9 = vpop.f32.mrb[105].mxu1  ;;  %v4073_v44 = vpop.f32.mrb[137].mxu0 }
 0xae4   : > { %v3961_v11 = vadd.f32 %v3960_v9, %v8641_v52  ;;  %v4074_v2 = vadd.f32 %v4073_v44, %v8643_v56  ;;  %v3962_v47 = vpop.f32.mrb[106].mxu1  ;;  %v4075_v3 = vpop.f32.mrb[138].mxu0  ;;  %4514 = vmatprep.mubr.bf16.mxu1 %v4175_v48  ;;  %4611 = vmatprep.mubr.bf16.mxu0 %v4177_v14 }
 0xae5   : > { %v3963_v22 = vadd.f32 %v3962_v47, %v8633_v26  ;;  %v4076_v61 = vadd.f32 %v4075_v3, %v8637_v20  ;;  %v3964_v8 = vpop.f32.mrb[107].mxu1  ;;  %v4077_v34 = vpop.f32.mrb[139].mxu0  ;;  %4515 = vmatmul.mubr.bf16.gmra.mrb[132].mxu1 %v4174_v13  ;;  %4612 = vmatmul.mubr.bf16.gmra.mrb[164].mxu0 %v4176_v46  ;;  %v4138_v32 = vmax.f32 %v3959_v4, 0.0  ;;  %v4140_v23 = vmax.f32 %v4072_v0, 0.0 }
 0xae6   : > { %v3965_v37 = vadd.f32 %v3964_v8, %v8641_v52  ;;  %v4078_v62 = vadd.f32 %v4077_v34, %v8643_v56  ;;  %v4139_v57 = vmax.f32 %v3961_v11, 0.0  ;;  %v4141_v10 = vmax.f32 %v4074_v2, 0.0 }
 0xae7   : > { %v4142_v1 = vmax.f32 %v3963_v22, 0.0  ;;  %v4144_v28 = vmax.f32 %v4076_v61, 0.0 }
 0xae8   : > { %v4143_v6 = vmax.f32 %v3965_v37, 0.0  ;;  %v4145_v27 = vmax.f32 %v4078_v62, 0.0 }
 0xae9   : > { %v4178_v30 = vpack.c.bf16 %v4142_v1, %v4138_v32  ;;  %v4180_v49 = vpack.c.bf16 %v4144_v28, %v4140_v23 }
 0xaea   : > { %v4179_v63 = vpack.c.bf16 %v4143_v6, %v4139_v57  ;;  %v4181_v29 = vpack.c.bf16 %v4145_v27, %v4141_v10  ;;  %v3968_v54 = vpop.f32.mrb[108].mxu1  ;;  %v4081_v17 = vpop.f32.mrb[140].mxu0  ;;  %v8727_v10 = vld [vmem:[%s9054_s16] ss:$0 sm:$0xff] }
 0xaeb   : > { %v3969_v50 = vadd.f32 %v3968_v54, %v8633_v26  ;;  %v4082_v15 = vadd.f32 %v4081_v17, %v8637_v20  ;;  %v3970_v25 = vpop.f32.mrb[109].mxu1  ;;  %v4083_v12 = vpop.f32.mrb[141].mxu0 }
 0xaec   : > { %v3971_v5 = vadd.f32 %v3970_v25, %v8641_v52  ;;  %v4084_v43 = vadd.f32 %v4083_v12, %v8643_v56  ;;  %v3972_v58 = vpop.f32.mrb[110].mxu1  ;;  %v4085_v42 = vpop.f32.mrb[142].mxu0  ;;  %4522 = vmatprep.mubr.bf16.mxu1 %v4179_v63 }
 0xaed   : > { %v3973_v21 = vadd.f32 %v3972_v58, %v8633_v26  ;;  %v4086_v19 = vadd.f32 %v4085_v42, %v8637_v20  ;;  %v3974_v13 = vpop.f32.mrb[111].mxu1  ;;  %v4087_v46 = vpop.f32.mrb[143].mxu0  ;;  %4523 = vmatmul.mubr.bf16.gmra.mrb[136].mxu1 %v4178_v30  ;;  %v4146_v59 = vmax.f32 %v3969_v50, 0.0  ;;  %v4148_v24 = vmax.f32 %v4082_v15, 0.0 }
 0xaee   : > { %v3975_v48 = vadd.f32 %v3974_v13, %v8641_v52  ;;  %v4088_v14 = vadd.f32 %v4087_v46, %v8643_v56  ;;  %v4147_v9 = vmax.f32 %v3971_v5, 0.0  ;;  %v4149_v44 = vmax.f32 %v4084_v43, 0.0 }
 0xaef   : > { %v4150_v4 = vmax.f32 %v3973_v21, 0.0  ;;  %v4152_v0 = vmax.f32 %v4086_v19, 0.0 }
 0xaf0   : > { %v4151_v11 = vmax.f32 %v3975_v48, 0.0  ;;  %v4153_v2 = vmax.f32 %v4088_v14, 0.0 }
 0xaf1   : > { %v4182_v47 = vpack.c.bf16 %v4150_v4, %v4146_v59  ;;  %v4184_v3 = vpack.c.bf16 %v4152_v0, %v4148_v24 }
 0xaf2   : > { %v4183_v26 = vpack.c.bf16 %v4151_v11, %v4147_v9  ;;  %v4185_v22 = vpack.c.bf16 %v4153_v2, %v4149_v44 }
 0xaf4   : > { %4530 = vmatprep.mubr.bf16.mxu1 %v4183_v26 }
 0xaf5   : > { %4531 = vmatmul.mubr.bf16.gmra.mrb[140].mxu1 %v4182_v47 }
 0xaf6   : > { %4619 = vmatprep.mubr.bf16.mxu1 %v4181_v29 }
 0xafd   : > { %4620 = vmatmul.mubr.bf16.vlgmr.msra.gmra.mrb[144].mxu1 %v4180_v49 }
 0xafe   : > { %4627 = vmatprep.mubr.bf16.mxu1 %v4185_v22 }
 0xb05   : > { %4628 = vmatmul.mubr.bf16.gmra.mrb[148].mxu1 %v4184_v3 }
 0xb6c   : > { %v5173_v20 = vpop.f32.mrb[112].mxu1  ;;  %v5237_v52 = vpop.f32.mrb[144].mxu0 }
 0xb6d   : > { %v5174_v56 = vpop.f32.mrb[113].mxu1  ;;  %v5238_v61 = vpop.f32.mrb[145].mxu0 }
 0xb6e   : > { %v5175_v8 = vadd.f32 %v5174_v56, %v5173_v20  ;;  %v5239_v34 = vadd.f32 %v5238_v61, %v5237_v52  ;;  %v5176_v37 = vpop.f32.mrb[114].mxu1  ;;  %v5240_v62 = vpop.f32.mrb[146].mxu0 }
 0xb6f   : > { %v5177_v32 = vpop.f32.mrb[115].mxu1  ;;  %v5241_v23 = vpop.f32.mrb[147].mxu0 }
 0xb70   : > { %v4574_v1 = vadd.f32 %v5239_v34, %v5175_v8  ;;  %v5178_v28 = vadd.f32 %v5177_v32, %v5176_v37  ;;  %v5242_v57 = vadd.f32 %v5241_v23, %v5240_v62 }
 0xb72   : > { %v4636_v6 = vadd.f32 %v4574_v1, %v8349_v36  ;;  %v4577_v27 = vadd.f32 %v5242_v57, %v5178_v28 }
 0xb74   : > { %v4659_v30 = vadd.f32 %v8727_v10, %v4636_v6  ;;  %v4637_v49 = vadd.f32 %v4577_v27, %v8353_v60  ;;  %v5179_v63 = vpop.f32.mrb[116].mxu1  ;;  %v5243_v29 = vpop.f32.mrb[148].mxu0 }
 0xb75   : > { %v5180_v54 = vpop.f32.mrb[117].mxu1  ;;  %v5244_v17 = vpop.f32.mrb[149].mxu0 }
 0xb76   : > { %4675 = vst [vmem:[%s8734_s23] sm:$0xff] %v4659_v30  ;;  %v4660_v50 = vadd.f32 %v8727_v10, %v4637_v49  ;;  %v5181_v15 = vadd.f32 %v5180_v54, %v5179_v63  ;;  %v5245_v36 = vadd.f32 %v5244_v17, %v5243_v29  ;;  %v5182_v25 = vpop.f32.mrb[118].mxu1  ;;  %v5246_v12 = vpop.f32.mrb[150].mxu0 }
 0xb77   : > { %v5183_v5 = vpop.f32.mrb[119].mxu1  ;;  %v5247_v60 = vpop.f32.mrb[151].mxu0 }
 0xb78   : > { %4676 = vst [vmem:[%s8734_s23 + $0x8] sm:$0xff] %v4660_v50  ;;  %v4582_v43 = vadd.f32 %v5245_v36, %v5181_v15  ;;  %v5184_v58 = vadd.f32 %v5183_v5, %v5182_v25  ;;  %v5248_v42 = vadd.f32 %v5247_v60, %v5246_v12 }
 0xb7a   : > { %v4638_v21 = vadd.f32 %v4582_v43, %v8357_v33  ;;  %v4585_v19 = vadd.f32 %v5248_v42, %v5184_v58 }
 0xb7c   : > { %v4661_v13 = vadd.f32 %v8727_v10, %v4638_v21  ;;  %v4639_v46 = vadd.f32 %v4585_v19, %v8363_v41 }
 0xb7e   : > { %4677 = vst [vmem:[%s8734_s23 + $0x10] sm:$0xff] %v4661_v13  ;;  %v4662_v48 = vadd.f32 %v8727_v10, %v4639_v46 }
 0xb80   : > { %4678 = vst [vmem:[%s8734_s23 + $0x18] sm:$0xff] %v4662_v48 }
 0xb95   : > { %v5185_v14 = vpop.f32.mrb[120].mxu1  ;;  %v5249_v59 = vpop.f32.mrb[152].mxu0 }
 0xb96   : > { %v5186_v24 = vpop.f32.mrb[121].mxu1  ;;  %v5250_v4 = vpop.f32.mrb[153].mxu0 }
 0xb97   : > { %v5187_v0 = vadd.f32 %v5186_v24, %v5185_v14  ;;  %v5251_v9 = vadd.f32 %v5250_v4, %v5249_v59  ;;  %v5188_v44 = vpop.f32.mrb[122].mxu1  ;;  %v5252_v11 = vpop.f32.mrb[154].mxu0 }
 0xb98   : > { %v5189_v2 = vpop.f32.mrb[123].mxu1  ;;  %v5253_v33 = vpop.f32.mrb[155].mxu0 }
 0xb99   : > { %v4590_v47 = vadd.f32 %v5251_v9, %v5187_v0  ;;  %v5190_v3 = vadd.f32 %v5189_v2, %v5188_v44  ;;  %v5254_v26 = vadd.f32 %v5253_v33, %v5252_v11 }
 0xb9b   : > { %v4640_v41 = vadd.f32 %v4590_v47, %v8369_v35  ;;  %v4593_v22 = vadd.f32 %v5254_v26, %v5190_v3 }
 0xb9d   : > { %v4663_v20 = vadd.f32 %v8727_v10, %v4640_v41  ;;  %v4641_v52 = vadd.f32 %v4593_v22, %v8374_v55  ;;  %v5191_v56 = vpop.f32.mrb[124].mxu1  ;;  %v5255_v61 = vpop.f32.mrb[156].mxu0 }
 0xb9e   : > { %v5192_v8 = vpop.f32.mrb[125].mxu1  ;;  %v5256_v34 = vpop.f32.mrb[157].mxu0 }
 0xb9f   : > { %4679 = vst [vmem:[%s8734_s23 + $0x20] sm:$0xff] %v4663_v20  ;;  %v4664_v37 = vadd.f32 %v8727_v10, %v4641_v52  ;;  %v5193_v62 = vadd.f32 %v5192_v8, %v5191_v56  ;;  %v5257_v32 = vadd.f32 %v5256_v34, %v5255_v61  ;;  %v5194_v23 = vpop.f32.mrb[126].mxu1  ;;  %v5258_v1 = vpop.f32.mrb[158].mxu0 }
 0xba0   : > { %v5195_v35 = vpop.f32.mrb[127].mxu1  ;;  %v5259_v28 = vpop.f32.mrb[159].mxu0 }
 0xba1   : > { %4680 = vst [vmem:[%s8734_s23 + $0x28] sm:$0xff] %v4664_v37  ;;  %v4598_v57 = vadd.f32 %v5257_v32, %v5193_v62  ;;  %v5196_v6 = vadd.f32 %v5195_v35, %v5194_v23  ;;  %v5260_v27 = vadd.f32 %v5259_v28, %v5258_v1 }
 0xba3   : > { %v4642_v55 = vadd.f32 %v4598_v57, %v8378_v51  ;;  %v4601_v30 = vadd.f32 %v5260_v27, %v5196_v6 }
 0xba5   : > { %v4665_v49 = vadd.f32 %v8727_v10, %v4642_v55  ;;  %v4643_v63 = vadd.f32 %v4601_v30, %v8382_v18 }
 0xba7   : > { %4681 = vst [vmem:[%s8734_s23 + $0x30] sm:$0xff] %v4665_v49  ;;  %v4666_v29 = vadd.f32 %v8727_v10, %v4643_v63 }
 0xba9   : > { %4682 = vst [vmem:[%s8734_s23 + $0x38] sm:$0xff] %v4666_v29 }
 0xbb0   : > { %v5197_v54 = vpop.f32.mrb[128].mxu1  ;;  %v5261_v17 = vpop.f32.mrb[160].mxu0 }
 0xbb1   : > { %v5198_v50 = vpop.f32.mrb[129].mxu1  ;;  %v5262_v15 = vpop.f32.mrb[161].mxu0 }
 0xbb2   : > { %v5199_v36 = vadd.f32 %v5198_v50, %v5197_v54  ;;  %v5263_v25 = vadd.f32 %v5262_v15, %v5261_v17  ;;  %v5200_v12 = vpop.f32.mrb[130].mxu1  ;;  %v5264_v5 = vpop.f32.mrb[162].mxu0 }
 0xbb3   : > { %v5201_v60 = vpop.f32.mrb[131].mxu1  ;;  %v5265_v51 = vpop.f32.mrb[163].mxu0 }
 0xbb4   : > { %v4606_v43 = vadd.f32 %v5263_v25, %v5199_v36  ;;  %v5202_v58 = vadd.f32 %v5201_v60, %v5200_v12  ;;  %v5266_v42 = vadd.f32 %v5265_v51, %v5264_v5 }
 0xbb6   : > { %v4644_v18 = vadd.f32 %v4606_v43, %v8389_v31  ;;  %v4609_v21 = vadd.f32 %v5266_v42, %v5202_v58 }
 0xbb8   : > { %v4667_v19 = vadd.f32 %v8727_v10, %v4644_v18  ;;  %v4645_v13 = vadd.f32 %v4609_v21, %v8394_v40  ;;  %v5203_v46 = vpop.f32.mrb[132].mxu1  ;;  %v5267_v48 = vpop.f32.mrb[164].mxu0 }
 0xbb9   : > { %v5204_v14 = vpop.f32.mrb[133].mxu1  ;;  %v5268_v59 = vpop.f32.mrb[165].mxu0 }
 0xbba   : > { %4683 = vst [vmem:[%s8734_s23 + $0x40] sm:$0xff] %v4667_v19  ;;  %v4668_v24 = vadd.f32 %v8727_v10, %v4645_v13  ;;  %v5205_v4 = vadd.f32 %v5204_v14, %v5203_v46  ;;  %v5269_v0 = vadd.f32 %v5268_v59, %v5267_v48  ;;  %v5206_v9 = vpop.f32.mrb[134].mxu1  ;;  %v5270_v44 = vpop.f32.mrb[166].mxu0 }
 0xbbb   : > { %v5207_v11 = vpop.f32.mrb[135].mxu1  ;;  %v5271_v31 = vpop.f32.mrb[167].mxu0 }
 0xbbc   : > { %4684 = vst [vmem:[%s8734_s23 + $0x48] sm:$0xff] %v4668_v24  ;;  %v4614_v2 = vadd.f32 %v5269_v0, %v5205_v4  ;;  %v5208_v33 = vadd.f32 %v5207_v11, %v5206_v9  ;;  %v5272_v47 = vadd.f32 %v5271_v31, %v5270_v44 }
 0xbbe   : > { %v4646_v40 = vadd.f32 %v4614_v2, %v8398_v16  ;;  %v4617_v3 = vadd.f32 %v5272_v47, %v5208_v33 }
 0xbc0   : > { %v4669_v26 = vadd.f32 %v8727_v10, %v4646_v40  ;;  %v4647_v41 = vadd.f32 %v4617_v3, %v8402_v53  ;;  %v5209_v22 = vpop.f32.mrb[136].mxu1 }
 0xbc1   : > { %v5210_v20 = vpop.f32.mrb[137].mxu1 }
 0xbc2   : > { %4685 = vst [vmem:[%s8734_s23 + $0x50] sm:$0xff] %v4669_v26  ;;  %v4670_v52 = vadd.f32 %v8727_v10, %v4647_v41  ;;  %v5211_v56 = vadd.f32 %v5210_v20, %v5209_v22  ;;  %v5212_v61 = vpop.f32.mrb[138].mxu1 }
 0xbc3   : > { %v5213_v8 = vpop.f32.mrb[139].mxu1 }
 0xbc4   : > { %4686 = vst [vmem:[%s8734_s23 + $0x58] sm:$0xff] %v4670_v52  ;;  %v5214_v34 = vadd.f32 %v5213_v8, %v5212_v61 }
 0xbc8   : > { %v5215_v37 = vpop.f32.mrb[140].mxu1 }
 0xbc9   : > { %v5216_v62 = vpop.f32.mrb[141].mxu1 }
 0xbca   : > { %v5217_v32 = vadd.f32 %v5216_v62, %v5215_v37  ;;  %v5218_v23 = vpop.f32.mrb[142].mxu1 }
 0xbcb   : > { %v5219_v16 = vpop.f32.mrb[143].mxu1 }
 0xbcc   : > { %v5220_v1 = vadd.f32 %v5219_v16, %v5218_v23 }
 0xbd0   : > { %v5273_v35 = vpop.f32.mrb[144].mxu1 }
 0xbd1   : > { %v5274_v28 = vpop.f32.mrb[145].mxu1 }
 0xbd2   : > { %v5275_v53 = vadd.f32 %v5274_v28, %v5273_v35  ;;  %v5276_v57 = vpop.f32.mrb[146].mxu1 }
 0xbd3   : > { %v5277_v6 = vpop.f32.mrb[147].mxu1 }
 0xbd4   : > { %v4622_v27 = vadd.f32 %v5275_v53, %v5211_v56  ;;  %v5278_v55 = vadd.f32 %v5277_v6, %v5276_v57 }
 0xbd6   : > { %v4648_v30 = vadd.f32 %v4622_v27, %v8409_v38  ;;  %v4625_v49 = vadd.f32 %v5278_v55, %v5214_v34 }
 0xbd8   : > { %v4671_v63 = vadd.f32 %v8727_v10, %v4648_v30  ;;  %v4649_v29 = vadd.f32 %v4625_v49, %v8414_v39  ;;  %v5279_v54 = vpop.f32.mrb[148].mxu1 }
 0xbd9   : > { %v5280_v17 = vpop.f32.mrb[149].mxu1 }
 0xbda   : > { %4687 = vst [vmem:[%s8734_s23 + $0x60] sm:$0xff] %v4671_v63  ;;  %v4672_v50 = vadd.f32 %v8727_v10, %v4649_v29  ;;  %v5281_v15 = vadd.f32 %v5280_v17, %v5279_v54  ;;  %v5282_v36 = vpop.f32.mrb[150].mxu1 }
 0xbdb   : > { %v5283_v25 = vpop.f32.mrb[151].mxu1 }
 0xbdc   : > { %4688 = vst [vmem:[%s8734_s23 + $0x68] sm:$0xff] %v4672_v50  ;;  %v4630_v38 = vadd.f32 %v5281_v15, %v5217_v32  ;;  %v5284_v12 = vadd.f32 %v5283_v25, %v5282_v36 }
 0xbde   : > { %v4650_v5 = vadd.f32 %v4630_v38, %v8418_v7  ;;  %v4633_v60 = vadd.f32 %v5284_v12, %v5220_v1 }
 0xbe0   : > { %v4673_v39 = vadd.f32 %v8727_v10, %v4650_v5  ;;  %v4651_v51 = vadd.f32 %v4633_v60, %v8422_v45 }
 0xbe2   : > { %4689 = vst [vmem:[%s8734_s23 + $0x70] sm:$0xff] %v4673_v39  ;;  %v4674_v7 = vadd.f32 %v8727_v10, %v4651_v51 }
 0xbe4   : > { %4690 = vst [vmem:[%s8734_s23 + $0x78] sm:$0xff] %v4674_v7 }
 0xbe5   : > { %6561 = shalt.err (!%p6558_p8)
}
 0xbe6   : > { %s6562_s21 = scalar_lea.hbm %s8783_s13, 2048  ;;  %s6566_s23 = scalar_lea.hbm %s9055_s8, 4096 }
 0xbe7   : > { %p6563_p10 = scmp.ne.s32.totalorder %s8783_s13, %s6562_s21  ;;  %p6567_p0 = scmp.lt.u32.totalorder %s8783_s13, %s9055_s8 }
 0xbe8   : > { %p6568_p5 = scmp.lt.u32.totalorder %s6566_s23, %s6562_s21  ;;  %p6570_p6 = scmp.lt.u32.totalorder %s6562_s21, %s8783_s13 }
 0xbe9   : > { %p6564_p11 = pnand %p6563_p10, %p9056_p9 }
 0xbea   : > { %p6569_p7 = por %p6568_p5, %p6567_p0 }
 0xbeb   : > { %p6565_p12 = pneg %p6564_p11 }
 0xbec   : > { %p6571_p4 = por %p6570_p6, %p6569_p7 }
 0xbee   : > { %p6572_p13 = pnand %p6571_p4, %p6565_p12 }
 0xbf0   : > { %6575 = shalt.err (!%p6572_p13)
}
 0xbf1   : > { %s6648_s17 = smov 128   ;;  %s6649_s30 = smov 8  }
 0xbf2   : > { %5679 = dma.vmem_to_hbm [thread:$0]  (%p9056_p9), %s8785_s19, 2048, %s8783_s13, %s4692_s14, %s6648_s17, %s6648_s17, %s6649_s30  }
 0xbf3 PF: > { %s4720_s15 = sand.u32 1, %s6614_s25   ;;  %p9057_p1 = scmp.ne.s32.totalorder %s8928_s7, 0 }
 0xbf4   : > { %p9058_p3 = scmp.ge.s32.totalorder %s6626_s28, 2  ;;  %s4721_s24 = scalar_lea.sflag [#allocation4], %s4720_s15 }
 0xbf6   : > { %p5705_p2 = pnand %p9058_p3, %p9057_p1 }
 0xbf8   : > { %6609 = dma.done.wait (!%p5705_p2), %s4721_s24, 2048  }
 0xbf9   : > { %6611 = vsyncadd (!%p5705_p2), %s4721_s24, 4294965248  ;;  %p29_p8 = scmp.ge.s32.totalorder %s6897_s18, 4   ;;  %s9059_s25 = smov %s6618_s26 }
 0xbfa   : > { %s9060_s26 = smov %s6622_s27  ;;  %s9061_s27 = smov %s6908_s10 }
 0xbfb   : > { %s9062_s28 = smov %s6897_s18  ;;  %31 = sbr.rel (!%p29_p8) target bundleno = 16 (0x10), region = 141 }
 0xc02   :  { %4726 = vsyncpa [#allocation3], 1 }
 0xc03   :  { %4728 = vsyncpa [#allocation3 + $0x1], 1 }
 0xc04   :  { %4729 = vsyncpa [#allocation6], 1 }
 0xc05   :  { %4730 = vsyncpa [#allocation9], 1 }
 0xc06   :  { %4731 = vsyncpa [#allocation12], 1 }
 0xc07   :  { %4732 = vsyncpa [#allocation4], 1 }
 0xc08   :  { %4734 = vsyncpa [#allocation4 + $0x1], 1 }

</bundles_post_ra>
